<compile_context>
chip_gen: v7x
topology: tpu7x:2x2x1
jax: 0.10.0
libtpu: 0.0.40
codegen_flags: <defaults>
</compile_context>

<pallas_src>
import functools

import jax
import jax.numpy as jnp
from jax import lax
from jax.experimental import pallas as pl
from jax.experimental.pallas import tpu as pltpu


# ----------------------------- configuration ------------------------------
DIM = 32                              # C
NUM_HEADS = 4                         # H
WINDOW_SIZE = (4, 4)                  # (Wh, Ww)
N = WINDOW_SIZE[0] * WINDOW_SIZE[1]   # tokens per window = 16
HEAD_DIM = DIM // NUM_HEADS           # hd = 8
SCALE = HEAD_DIM ** (-0.5)
GROUP = 8                             # windows packed into one dense 128x128 score tile
GN = GROUP * N                        # 128 rows per group
MAX_GROUPS_PER_BLOCK = 8              # up to 8 * 128 = 1024 token-rows per grid step
NEG_INF = -1e9                        # off-diagonal (cross-window) mask value
B_ = 8                                # num_windows * batch (test size)


# ------------------------------ Pallas kernel ------------------------------
def _window_attn_kernel(x_ref, wqkv_ref, bqkv_ref, wo_ref, bo_ref, bias_ref,
                        o_ref, *, ng):
    # x_ref:    (ng*GN, C)        ng groups of 8 windows, tokens flattened into rows
    # wqkv_ref: (C, 3C)   bf16    fused QKV weights (qk scale folded into Q columns)
    # bqkv_ref: (1, 3C)   f32     fused QKV bias (scale folded into Q part)
    # wo_ref:   (C, C)    bf16    output projection weights
    # bo_ref:   (1, C)    f32     output projection bias
    # bias_ref: (H, GN, GN) f32   block-diagonal rel-pos bias with -1e9 off-diagonal
    # o_ref:    (ng*GN, C)
    x = x_ref[...].astype(jnp.bfloat16)                                     # (R, C)

    # Fused QKV projection: one wide MXU matmul for the whole block.
    qkv = jnp.dot(x, wqkv_ref[...], preferred_element_type=jnp.float32)    # (R, 3C)
    qkv = (qkv + bqkv_ref[...]).astype(jnp.bfloat16)

    wo = wo_ref[...]                                                        # (C, C) bf16
    bo = bo_ref[...]                                                        # (1, C) f32

    for g in range(ng):                              # static unroll over 128-row groups
        qkv_g = qkv[g * GN:(g + 1) * GN, :]          # (GN, 3C) sublane-aligned slice
        acc = jnp.zeros((GN, DIM), jnp.float32)

        for h in range(NUM_HEADS):                   # static unroll (H = 4)
            lo = h * HEAD_DIM
            q_h = qkv_g[:, lo:lo + HEAD_DIM]                     # (GN, hd)
            k_h = qkv_g[:, DIM + lo:DIM + lo + HEAD_DIM]         # (GN, hd)
            v_h = qkv_g[:, 2 * DIM + lo:2 * DIM + lo + HEAD_DIM]

            # Dense (128, 128) score tile; contraction on last dims (no explicit k.T).
            s = lax.dot_general(q_h, k_h, (((1,), (1,)), ((), ())),
                                preferred_element_type=jnp.float32)         # (GN, GN)
            s = s + bias_ref[h]                      # block-diag bias + -1e9 off-diag

            # numerically-stable softmax over all 128 lanes (exact reciprocal)
            m = jnp.max(s, axis=-1, keepdims=True)
            p = jnp.exp(s - m)
            denom = jnp.sum(p, axis=-1, keepdims=True)
            attn = (p * (1.0 / denom)).astype(jnp.bfloat16)                  # (GN, GN)

            o_h = jnp.dot(attn, v_h, preferred_element_type=jnp.float32)    # (GN, hd)

            # head-concat folded into the output projection (accumulate per-head slab)
            acc = acc + jnp.dot(o_h.astype(jnp.bfloat16),
                                wo[lo:lo + HEAD_DIM, :],
                                preferred_element_type=jnp.float32)          # (GN, C)

        o_ref[g * GN:(g + 1) * GN, :] = (acc + bo).astype(o_ref.dtype)


# --------------------------- wrapper / glue (JAX) ---------------------------
def make_relative_position_index(window_size):
    Wh, Ww = window_size
    coords_h = jnp.arange(Wh)
    coords_w = jnp.arange(Ww)
    coords = jnp.stack(jnp.meshgrid(coords_h, coords_w, indexing="ij"))   # (2, Wh, Ww)
    coords_flatten = coords.reshape(2, -1)                                # (2, N)
    rel = coords_flatten[:, :, None] - coords_flatten[:, None, :]         # (2, N, N)
    rel = rel.transpose(1, 2, 0)                                          # (N, N, 2)
    rel = rel.at[:, :, 0].add(Wh - 1)
    rel = rel.at[:, :, 1].add(Ww - 1)
    rel = rel.at[:, :, 0].multiply(2 * Ww - 1)
    return rel.sum(-1)                                                    # (N, N)


def _prep_params(params):
    """Fuse QKV weights (with qk scale folded in) and build the block-diag bias mask."""
    C, H = DIM, NUM_HEADS

    wqkv = params["wqkv"].astype(jnp.float32)                             # (C, 3C)
    bqkv = params["bqkv"].astype(jnp.float32)                             # (3C,)
    # fold the qk scale into the Q projection (weights + bias): one-time transform
    scale_vec = jnp.concatenate(
        [jnp.full((C,), SCALE, jnp.float32), jnp.ones((2 * C,), jnp.float32)])
    wqkv = wqkv * scale_vec[None, :]
    bqkv = (bqkv * scale_vec).reshape(1, 3 * C)

    wo = params["wproj"].astype(jnp.float32)                              # (C, C)
    bo = params["bproj"].reshape(1, C).astype(jnp.float32)

    # relative position bias gather (plain JAX glue), then expand to a dense
    # block-diagonal (H, GN, GN) bias with -1e9 off the per-window diagonal blocks.
    rpi = make_relative_position_index(WINDOW_SIZE).reshape(-1)           # (N*N,)
    bias = params["rpb_table"][rpi].reshape(N, N, H).transpose(2, 0, 1)   # (H, N, N)
    bias_big = jnp.tile(bias, (1, GROUP, GROUP))                          # (H, GN, GN)
    win_id = jnp.arange(GN) // N
    same_win = win_id[:, None] == win_id[None, :]                         # (GN, GN)
    bias_mask = jnp.where(same_win[None], bias_big,
                          jnp.float32(NEG_INF)).astype(jnp.float32)       # (H, GN, GN)

    return (wqkv.astype(jnp.bfloat16), bqkv.astype(jnp.float32),
            wo.astype(jnp.bfloat16), bo.astype(jnp.float32), bias_mask)


def window_attention(x, params):
    """x: (B_, N, C) float32 -> (B_, N, C) float32."""
    Bw, n, c = x.shape
    assert n == N and c == DIM

    wqkv, bqkv, wo, bo, bias_mask = _prep_params(params)

    # --- grid sizing -------------------------------------------------------
    total_groups = pl.cdiv(Bw, GROUP)
    # target >= 2 grid steps when possible (v7x has 2 TensorCores), but amortize
    # per-step overhead with up to MAX_GROUPS_PER_BLOCK groups per step (v5e/v6e).
    gpb = min(MAX_GROUPS_PER_BLOCK, max(1, pl.cdiv(total_groups, 2)))
    num_blocks = pl.cdiv(total_groups, gpb)
    r_blk = gpb * GN                              # rows per grid step (multiple of 128)
    r_total = num_blocks * r_blk

    x2 = x.reshape(Bw * N, DIM)
    if r_total != Bw * N:                         # pad to a whole number of blocks
        x2 = jnp.pad(x2, ((0, r_total - Bw * N), (0, 0)))

    # --- cost estimate ------------------------------------------------------
    flops = (2 * r_total * DIM * 3 * DIM
             + num_blocks * gpb * NUM_HEADS * (4 * GN * GN * HEAD_DIM
                                               + 2 * GN * HEAD_DIM * DIM))
    transcendentals = num_blocks * gpb * NUM_HEADS * GN * GN
    bytes_accessed = (4 * 2 * r_total * DIM                       # x in + out
                      + 2 * (DIM * 3 * DIM + DIM * DIM)           # bf16 weights
                      + 4 * (3 * DIM + DIM + NUM_HEADS * GN * GN))

    kernel = functools.partial(_window_attn_kernel, ng=gpb)

    out2 = pl.pallas_call(
        kernel,
        out_shape=jax.ShapeDtypeStruct((r_total, DIM), x.dtype),
        grid_spec=pltpu.PrefetchScalarGridSpec(
            num_scalar_prefetch=0,
            grid=(num_blocks,),
            in_specs=[
                pl.BlockSpec((r_blk, DIM), lambda b: (b, 0)),                 # x
                pl.BlockSpec((DIM, 3 * DIM), lambda b: (0, 0)),               # wqkv
                pl.BlockSpec((1, 3 * DIM), lambda b: (0, 0)),                 # bqkv
                pl.BlockSpec((DIM, DIM), lambda b: (0, 0)),                   # wproj
                pl.BlockSpec((1, DIM), lambda b: (0, 0)),                     # bproj
                pl.BlockSpec((NUM_HEADS, GN, GN), lambda b: (0, 0, 0)),       # bias mask
            ],
            out_specs=pl.BlockSpec((r_blk, DIM), lambda b: (b, 0)),
        ),
        compiler_params=pltpu.CompilerParams(
            dimension_semantics=("parallel",),
        ),
        cost_estimate=pl.CostEstimate(
            flops=int(flops),
            transcendentals=int(transcendentals),
            bytes_accessed=int(bytes_accessed),
        ),
    )(x2, wqkv, bqkv, wo, bo, bias_mask)

    return out2[:Bw * N].reshape(Bw, N, DIM)


# ------------------------------- parameters --------------------------------
def init_params(key):
    k1, k2, k3, k4 = jax.random.split(key, 4)
    num_rel = (2 * WINDOW_SIZE[0] - 1) * (2 * WINDOW_SIZE[1] - 1)
    return {
        # trunc_normal_(std=0.02) approximated with normal*0.02 (synthetic init)
        "rpb_table": 0.02 * jax.random.normal(k1, (num_rel, NUM_HEADS), jnp.float32),
        # torch Linear stores (3C, C) and computes x @ W.T; we store the transposed form
        "wqkv": 0.02 * jax.random.normal(k2, (DIM, 3 * DIM), jnp.float32),
        "bqkv": 0.02 * jax.random.normal(k4, (3 * DIM,), jnp.float32),
        "wproj": 0.02 * jax.random.normal(k3, (DIM, DIM), jnp.float32),
        "bproj": jnp.zeros((DIM,), jnp.float32),
    }


# -------------------------------- reference --------------------------------
def window_attention_ref(x, params):
    Bw = x.shape[0]
    qkv = x @ params["wqkv"] + params["bqkv"]                              # (B_, N, 3C)
    qkv = qkv.reshape(Bw, N, 3, NUM_HEADS, HEAD_DIM).transpose(2, 0, 3, 1, 4)
    q, k, v = qkv[0], qkv[1], qkv[2]                                       # (B_, H, N, hd)
    q = q * SCALE
    attn = jnp.einsum("bhnd,bhmd->bhnm", q, k)
    rpi = make_relative_position_index(WINDOW_SIZE).reshape(-1)
    bias = params["rpb_table"][rpi].reshape(N, N, NUM_HEADS).transpose(2, 0, 1)
    attn = attn + bias[None]
    attn = jax.nn.softmax(attn, axis=-1)
    out = jnp.einsum("bhnm,bhmd->bhnd", attn, v).transpose(0, 2, 1, 3).reshape(Bw, N, DIM)
    return out @ params["wproj"] + params["bproj"]


# ----------------------------------- main -----------------------------------
if __name__ == "__main__":
    key = jax.random.PRNGKey(0)
    kx, kp = jax.random.split(key)
    x = jax.random.normal(kx, (B_, N, DIM), jnp.float32)
    params = init_params(kp)

    out = jax.jit(window_attention)(x, params)
    out = jax.block_until_ready(out)

    ref = window_attention_ref(x, params)
    assert out.shape == (B_, N, DIM)
    max_err = float(jnp.max(jnp.abs(out - ref)))
    # tolerance accounts for bf16 MXU operands (f32 accumulation, exact softmax recip)
    assert jnp.allclose(out, ref, atol=2e-3, rtol=2e-2), max_err
    print("KERNEL_OK")
</pallas_src>

<mosaic_0001>
module attributes {stable_mosaic.version = 11 : i64} {
  func.func @_window_attn_kernel(%arg0: i32, %arg1: memref<128x32xf32, #tpu.memory_space<vmem>>, %arg2: memref<32x96xbf16, #tpu.memory_space<vmem>>, %arg3: memref<1x96xf32, #tpu.memory_space<vmem>>, %arg4: memref<32x32xbf16, #tpu.memory_space<vmem>>, %arg5: memref<1x32xf32, #tpu.memory_space<vmem>>, %arg6: memref<4x128x128xf32, #tpu.memory_space<vmem>>, %arg7: memref<128x32xf32, #tpu.memory_space<vmem>>) attributes {dimension_semantics = [#tpu.dimension_semantics<parallel>], iteration_bounds = array<i64: 1>, scalar_prefetch = 0 : i64, scratch_operands = 0 : i64, tpu.core_type = #tpu.core_type<tc>, window_params = [{transform_indices = @transform_0, window_bounds = array<i64: 128, 32>}, {pipeline_mode = #tpu.pipeline_mode<synchronous>, transform_indices = @transform_1, window_bounds = array<i64: 32, 96>}, {pipeline_mode = #tpu.pipeline_mode<synchronous>, transform_indices = @transform_2, window_bounds = array<i64: 1, 96>}, {pipeline_mode = #tpu.pipeline_mode<synchronous>, transform_indices = @transform_3, window_bounds = array<i64: 32, 32>}, {pipeline_mode = #tpu.pipeline_mode<synchronous>, transform_indices = @transform_4, window_bounds = array<i64: 1, 32>}, {pipeline_mode = #tpu.pipeline_mode<synchronous>, transform_indices = @transform_5, window_bounds = array<i64: 4, 128, 128>}, {transform_indices = @transform_6, window_bounds = array<i64: 128, 32>}]} {
    %c0 = arith.constant 0 : index
    %c0_0 = arith.constant 0 : index
    %0 = vector.load %arg1[%c0, %c0_0] : memref<128x32xf32, #tpu.memory_space<vmem>>, vector<128x32xf32>
    %1 = arith.truncf %0 : vector<128x32xf32> to vector<128x32xbf16>
    %c0_1 = arith.constant 0 : index
    %c0_2 = arith.constant 0 : index
    %2 = vector.load %arg2[%c0_1, %c0_2] : memref<32x96xbf16, #tpu.memory_space<vmem>>, vector<32x96xbf16>
    %cst = arith.constant dense<0.000000e+00> : vector<128x96xf32>
    %3 = tpu.matmul %1, %2, %cst {dimension_numbers = #tpu.dot_dimension_numbers<[1], [0], [0], [1], [0, 0, 1, 1], [], []>} : vector<128x32xbf16>, vector<32x96xbf16>, vector<128x96xf32> -> vector<128x96xf32>
    %c0_3 = arith.constant 0 : index
    %c0_4 = arith.constant 0 : index
    %4 = vector.load %arg3[%c0_3, %c0_4] : memref<1x96xf32, #tpu.memory_space<vmem>>, vector<1x96xf32>
    %5 = vector.broadcast %4 : vector<1x96xf32> to vector<128x96xf32>
    %6 = arith.addf %3, %5 : vector<128x96xf32>
    %7 = arith.truncf %6 : vector<128x96xf32> to vector<128x96xbf16>
    %c0_5 = arith.constant 0 : index
    %c0_6 = arith.constant 0 : index
    %8 = vector.load %arg4[%c0_5, %c0_6] : memref<32x32xbf16, #tpu.memory_space<vmem>>, vector<32x32xbf16>
    %c0_7 = arith.constant 0 : index
    %c0_8 = arith.constant 0 : index
    %9 = vector.load %arg5[%c0_7, %c0_8] : memref<1x32xf32, #tpu.memory_space<vmem>>, vector<1x32xf32>
    %cst_9 = arith.constant 0.000000e+00 : f32
    %10 = vector.broadcast %cst_9 : f32 to vector<128x32xf32>
    %11 = vector.extract_strided_slice %7 {offsets = [0, 0], sizes = [128, 8], strides = [1, 1]} : vector<128x96xbf16> to vector<128x8xbf16>
    %12 = vector.extract_strided_slice %7 {offsets = [0, 32], sizes = [128, 8], strides = [1, 1]} : vector<128x96xbf16> to vector<128x8xbf16>
    %13 = vector.extract_strided_slice %7 {offsets = [0, 64], sizes = [128, 8], strides = [1, 1]} : vector<128x96xbf16> to vector<128x8xbf16>
    %cst_10 = arith.constant dense<0.000000e+00> : vector<128x128xf32>
    %14 = tpu.matmul %11, %12, %cst_10 {dimension_numbers = #tpu.dot_dimension_numbers<[1], [1], [0], [0], [0, 0, 1, 0], [], []>} : vector<128x8xbf16>, vector<128x8xbf16>, vector<128x128xf32> -> vector<128x128xf32>
    %c0_11 = arith.constant 0 : index
    %c0_12 = arith.constant 0 : index
    %c0_13 = arith.constant 0 : index
    %15 = vector.load %arg6[%c0_11, %c0_12, %c0_13] : memref<4x128x128xf32, #tpu.memory_space<vmem>>, vector<1x128x128xf32>
    %16 = vector.shape_cast %15 : vector<1x128x128xf32> to vector<128x128xf32>
    %17 = arith.addf %14, %16 : vector<128x128xf32>
    %cst_14 = arith.constant dense<0xFF800000> : vector<128xf32>
    %18 = vector.multi_reduction <maximumf>, %17, %cst_14 [1] : vector<128x128xf32> to vector<128xf32>
    %19 = vector.shape_cast %18 : vector<128xf32> to vector<128x1xf32>
    %20 = vector.broadcast %19 : vector<128x1xf32> to vector<128x128xf32>
    %21 = arith.subf %17, %20 : vector<128x128xf32>
    %22 = math.exp %21 : vector<128x128xf32>
    %cst_15 = arith.constant dense<0.000000e+00> : vector<128xf32>
    %23 = vector.multi_reduction <add>, %22, %cst_15 [1] : vector<128x128xf32> to vector<128xf32>
    %24 = vector.shape_cast %23 : vector<128xf32> to vector<128x1xf32>
    %cst_16 = arith.constant 1.000000e+00 : f32
    %25 = vector.broadcast %cst_16 : f32 to vector<128x1xf32>
    %26 = arith.divf %25, %24 : vector<128x1xf32>
    %27 = vector.broadcast %26 : vector<128x1xf32> to vector<128x128xf32>
    %28 = arith.mulf %22, %27 : vector<128x128xf32>
    %29 = arith.truncf %28 : vector<128x128xf32> to vector<128x128xbf16>
    %cst_17 = arith.constant dense<0.000000e+00> : vector<128x8xf32>
    %30 = tpu.matmul %29, %13, %cst_17 {dimension_numbers = #tpu.dot_dimension_numbers<[1], [0], [0], [1], [0, 0, 1, 1], [], []>} : vector<128x128xbf16>, vector<128x8xbf16>, vector<128x8xf32> -> vector<128x8xf32>
    %31 = arith.truncf %30 : vector<128x8xf32> to vector<128x8xbf16>
    %32 = vector.extract_strided_slice %8 {offsets = [0, 0], sizes = [8, 32], strides = [1, 1]} : vector<32x32xbf16> to vector<8x32xbf16>
    %cst_18 = arith.constant dense<0.000000e+00> : vector<128x32xf32>
    %33 = tpu.matmul %31, %32, %cst_18 {dimension_numbers = #tpu.dot_dimension_numbers<[1], [0], [0], [1], [0, 0, 1, 1], [], []>} : vector<128x8xbf16>, vector<8x32xbf16>, vector<128x32xf32> -> vector<128x32xf32>
    %34 = arith.addf %10, %33 : vector<128x32xf32>
    %35 = vector.extract_strided_slice %7 {offsets = [0, 8], sizes = [128, 8], strides = [1, 1]} : vector<128x96xbf16> to vector<128x8xbf16>
    %36 = vector.extract_strided_slice %7 {offsets = [0, 40], sizes = [128, 8], strides = [1, 1]} : vector<128x96xbf16> to vector<128x8xbf16>
    %37 = vector.extract_strided_slice %7 {offsets = [0, 72], sizes = [128, 8], strides = [1, 1]} : vector<128x96xbf16> to vector<128x8xbf16>
    %cst_19 = arith.constant dense<0.000000e+00> : vector<128x128xf32>
    %38 = tpu.matmul %35, %36, %cst_19 {dimension_numbers = #tpu.dot_dimension_numbers<[1], [1], [0], [0], [0, 0, 1, 0], [], []>} : vector<128x8xbf16>, vector<128x8xbf16>, vector<128x128xf32> -> vector<128x128xf32>
    %c1 = arith.constant 1 : index
    %c0_20 = arith.constant 0 : index
    %c0_21 = arith.constant 0 : index
    %39 = vector.load %arg6[%c1, %c0_20, %c0_21] : memref<4x128x128xf32, #tpu.memory_space<vmem>>, vector<1x128x128xf32>
    %40 = vector.shape_cast %39 : vector<1x128x128xf32> to vector<128x128xf32>
    %41 = arith.addf %38, %40 : vector<128x128xf32>
    %cst_22 = arith.constant dense<0xFF800000> : vector<128xf32>
    %42 = vector.multi_reduction <maximumf>, %41, %cst_22 [1] : vector<128x128xf32> to vector<128xf32>
    %43 = vector.shape_cast %42 : vector<128xf32> to vector<128x1xf32>
    %44 = vector.broadcast %43 : vector<128x1xf32> to vector<128x128xf32>
    %45 = arith.subf %41, %44 : vector<128x128xf32>
    %46 = math.exp %45 : vector<128x128xf32>
    %cst_23 = arith.constant dense<0.000000e+00> : vector<128xf32>
    %47 = vector.multi_reduction <add>, %46, %cst_23 [1] : vector<128x128xf32> to vector<128xf32>
    %48 = vector.shape_cast %47 : vector<128xf32> to vector<128x1xf32>
    %cst_24 = arith.constant 1.000000e+00 : f32
    %49 = vector.broadcast %cst_24 : f32 to vector<128x1xf32>
    %50 = arith.divf %49, %48 : vector<128x1xf32>
    %51 = vector.broadcast %50 : vector<128x1xf32> to vector<128x128xf32>
    %52 = arith.mulf %46, %51 : vector<128x128xf32>
    %53 = arith.truncf %52 : vector<128x128xf32> to vector<128x128xbf16>
    %cst_25 = arith.constant dense<0.000000e+00> : vector<128x8xf32>
    %54 = tpu.matmul %53, %37, %cst_25 {dimension_numbers = #tpu.dot_dimension_numbers<[1], [0], [0], [1], [0, 0, 1, 1], [], []>} : vector<128x128xbf16>, vector<128x8xbf16>, vector<128x8xf32> -> vector<128x8xf32>
    %55 = arith.truncf %54 : vector<128x8xf32> to vector<128x8xbf16>
    %56 = vector.extract_strided_slice %8 {offsets = [8, 0], sizes = [8, 32], strides = [1, 1]} : vector<32x32xbf16> to vector<8x32xbf16>
    %cst_26 = arith.constant dense<0.000000e+00> : vector<128x32xf32>
    %57 = tpu.matmul %55, %56, %cst_26 {dimension_numbers = #tpu.dot_dimension_numbers<[1], [0], [0], [1], [0, 0, 1, 1], [], []>} : vector<128x8xbf16>, vector<8x32xbf16>, vector<128x32xf32> -> vector<128x32xf32>
    %58 = arith.addf %34, %57 : vector<128x32xf32>
    %59 = vector.extract_strided_slice %7 {offsets = [0, 16], sizes = [128, 8], strides = [1, 1]} : vector<128x96xbf16> to vector<128x8xbf16>
    %60 = vector.extract_strided_slice %7 {offsets = [0, 48], sizes = [128, 8], strides = [1, 1]} : vector<128x96xbf16> to vector<128x8xbf16>
    %61 = vector.extract_strided_slice %7 {offsets = [0, 80], sizes = [128, 8], strides = [1, 1]} : vector<128x96xbf16> to vector<128x8xbf16>
    %cst_27 = arith.constant dense<0.000000e+00> : vector<128x128xf32>
    %62 = tpu.matmul %59, %60, %cst_27 {dimension_numbers = #tpu.dot_dimension_numbers<[1], [1], [0], [0], [0, 0, 1, 0], [], []>} : vector<128x8xbf16>, vector<128x8xbf16>, vector<128x128xf32> -> vector<128x128xf32>
    %c2 = arith.constant 2 : index
    %c0_28 = arith.constant 0 : index
    %c0_29 = arith.constant 0 : index
    %63 = vector.load %arg6[%c2, %c0_28, %c0_29] : memref<4x128x128xf32, #tpu.memory_space<vmem>>, vector<1x128x128xf32>
    %64 = vector.shape_cast %63 : vector<1x128x128xf32> to vector<128x128xf32>
    %65 = arith.addf %62, %64 : vector<128x128xf32>
    %cst_30 = arith.constant dense<0xFF800000> : vector<128xf32>
    %66 = vector.multi_reduction <maximumf>, %65, %cst_30 [1] : vector<128x128xf32> to vector<128xf32>
    %67 = vector.shape_cast %66 : vector<128xf32> to vector<128x1xf32>
    %68 = vector.broadcast %67 : vector<128x1xf32> to vector<128x128xf32>
    %69 = arith.subf %65, %68 : vector<128x128xf32>
    %70 = math.exp %69 : vector<128x128xf32>
    %cst_31 = arith.constant dense<0.000000e+00> : vector<128xf32>
    %71 = vector.multi_reduction <add>, %70, %cst_31 [1] : vector<128x128xf32> to vector<128xf32>
    %72 = vector.shape_cast %71 : vector<128xf32> to vector<128x1xf32>
    %cst_32 = arith.constant 1.000000e+00 : f32
    %73 = vector.broadcast %cst_32 : f32 to vector<128x1xf32>
    %74 = arith.divf %73, %72 : vector<128x1xf32>
    %75 = vector.broadcast %74 : vector<128x1xf32> to vector<128x128xf32>
    %76 = arith.mulf %70, %75 : vector<128x128xf32>
    %77 = arith.truncf %76 : vector<128x128xf32> to vector<128x128xbf16>
    %cst_33 = arith.constant dense<0.000000e+00> : vector<128x8xf32>
    %78 = tpu.matmul %77, %61, %cst_33 {dimension_numbers = #tpu.dot_dimension_numbers<[1], [0], [0], [1], [0, 0, 1, 1], [], []>} : vector<128x128xbf16>, vector<128x8xbf16>, vector<128x8xf32> -> vector<128x8xf32>
    %79 = arith.truncf %78 : vector<128x8xf32> to vector<128x8xbf16>
    %80 = vector.extract_strided_slice %8 {offsets = [16, 0], sizes = [8, 32], strides = [1, 1]} : vector<32x32xbf16> to vector<8x32xbf16>
    %cst_34 = arith.constant dense<0.000000e+00> : vector<128x32xf32>
    %81 = tpu.matmul %79, %80, %cst_34 {dimension_numbers = #tpu.dot_dimension_numbers<[1], [0], [0], [1], [0, 0, 1, 1], [], []>} : vector<128x8xbf16>, vector<8x32xbf16>, vector<128x32xf32> -> vector<128x32xf32>
    %82 = arith.addf %58, %81 : vector<128x32xf32>
    %83 = vector.extract_strided_slice %7 {offsets = [0, 24], sizes = [128, 8], strides = [1, 1]} : vector<128x96xbf16> to vector<128x8xbf16>
    %84 = vector.extract_strided_slice %7 {offsets = [0, 56], sizes = [128, 8], strides = [1, 1]} : vector<128x96xbf16> to vector<128x8xbf16>
    %85 = vector.extract_strided_slice %7 {offsets = [0, 88], sizes = [128, 8], strides = [1, 1]} : vector<128x96xbf16> to vector<128x8xbf16>
    %cst_35 = arith.constant dense<0.000000e+00> : vector<128x128xf32>
    %86 = tpu.matmul %83, %84, %cst_35 {dimension_numbers = #tpu.dot_dimension_numbers<[1], [1], [0], [0], [0, 0, 1, 0], [], []>} : vector<128x8xbf16>, vector<128x8xbf16>, vector<128x128xf32> -> vector<128x128xf32>
    %c3 = arith.constant 3 : index
    %c0_36 = arith.constant 0 : index
    %c0_37 = arith.constant 0 : index
    %87 = vector.load %arg6[%c3, %c0_36, %c0_37] : memref<4x128x128xf32, #tpu.memory_space<vmem>>, vector<1x128x128xf32>
    %88 = vector.shape_cast %87 : vector<1x128x128xf32> to vector<128x128xf32>
    %89 = arith.addf %86, %88 : vector<128x128xf32>
    %cst_38 = arith.constant dense<0xFF800000> : vector<128xf32>
    %90 = vector.multi_reduction <maximumf>, %89, %cst_38 [1] : vector<128x128xf32> to vector<128xf32>
    %91 = vector.shape_cast %90 : vector<128xf32> to vector<128x1xf32>
    %92 = vector.broadcast %91 : vector<128x1xf32> to vector<128x128xf32>
    %93 = arith.subf %89, %92 : vector<128x128xf32>
    %94 = math.exp %93 : vector<128x128xf32>
    %cst_39 = arith.constant dense<0.000000e+00> : vector<128xf32>
    %95 = vector.multi_reduction <add>, %94, %cst_39 [1] : vector<128x128xf32> to vector<128xf32>
    %96 = vector.shape_cast %95 : vector<128xf32> to vector<128x1xf32>
    %cst_40 = arith.constant 1.000000e+00 : f32
    %97 = vector.broadcast %cst_40 : f32 to vector<128x1xf32>
    %98 = arith.divf %97, %96 : vector<128x1xf32>
    %99 = vector.broadcast %98 : vector<128x1xf32> to vector<128x128xf32>
    %100 = arith.mulf %94, %99 : vector<128x128xf32>
    %101 = arith.truncf %100 : vector<128x128xf32> to vector<128x128xbf16>
    %cst_41 = arith.constant dense<0.000000e+00> : vector<128x8xf32>
    %102 = tpu.matmul %101, %85, %cst_41 {dimension_numbers = #tpu.dot_dimension_numbers<[1], [0], [0], [1], [0, 0, 1, 1], [], []>} : vector<128x128xbf16>, vector<128x8xbf16>, vector<128x8xf32> -> vector<128x8xf32>
    %103 = arith.truncf %102 : vector<128x8xf32> to vector<128x8xbf16>
    %104 = vector.extract_strided_slice %8 {offsets = [24, 0], sizes = [8, 32], strides = [1, 1]} : vector<32x32xbf16> to vector<8x32xbf16>
    %cst_42 = arith.constant dense<0.000000e+00> : vector<128x32xf32>
    %105 = tpu.matmul %103, %104, %cst_42 {dimension_numbers = #tpu.dot_dimension_numbers<[1], [0], [0], [1], [0, 0, 1, 1], [], []>} : vector<128x8xbf16>, vector<8x32xbf16>, vector<128x32xf32> -> vector<128x32xf32>
    %106 = arith.addf %82, %105 : vector<128x32xf32>
    %107 = vector.broadcast %9 : vector<1x32xf32> to vector<128x32xf32>
    %108 = arith.addf %106, %107 : vector<128x32xf32>
    %c0_43 = arith.constant 0 : index
    %c0_44 = arith.constant 0 : index
    %109 = vector.load %arg7[%c0_43, %c0_44] : memref<128x32xf32, #tpu.memory_space<vmem>>, vector<128x32xf32>
    tpu.vector_store %arg7[%c0_43, %c0_44], %108 {strides = array<i32>} : memref<128x32xf32, #tpu.memory_space<vmem>>, vector<128x32xf32>,
    return
  }
  func.func @transform_0(%arg0: i32) -> (i32, i32) {
    %c0_i32 = arith.constant 0 : i32
    %c0_i32_0 = arith.constant 0 : i32
    return %arg0, %c0_i32 : i32, i32
  }
  func.func @transform_1(%arg0: i32) -> (i32, i32) {
    %c0_i32 = arith.constant 0 : i32
    %c0_i32_0 = arith.constant 0 : i32
    %c0_i32_1 = arith.constant 0 : i32
    return %c0_i32, %c0_i32_0 : i32, i32
  }
  func.func @transform_2(%arg0: i32) -> (i32, i32) {
    %c0_i32 = arith.constant 0 : i32
    %c0_i32_0 = arith.constant 0 : i32
    %c0_i32_1 = arith.constant 0 : i32
    return %c0_i32, %c0_i32_0 : i32, i32
  }
  func.func @transform_3(%arg0: i32) -> (i32, i32) {
    %c0_i32 = arith.constant 0 : i32
    %c0_i32_0 = arith.constant 0 : i32
    %c0_i32_1 = arith.constant 0 : i32
    return %c0_i32, %c0_i32_0 : i32, i32
  }
  func.func @transform_4(%arg0: i32) -> (i32, i32) {
    %c0_i32 = arith.constant 0 : i32
    %c0_i32_0 = arith.constant 0 : i32
    %c0_i32_1 = arith.constant 0 : i32
    return %c0_i32, %c0_i32_0 : i32, i32
  }
  func.func @transform_5(%arg0: i32) -> (i32, i32, i32) {
    %c0_i32 = arith.constant 0 : i32
    %c0_i32_0 = arith.constant 0 : i32
    %c0_i32_1 = arith.constant 0 : i32
    %c0_i32_2 = arith.constant 0 : i32
    return %c0_i32, %c0_i32_0, %c0_i32_1 : i32, i32, i32
  }
  func.func @transform_6(%arg0: i32) -> (i32, i32) {
    %c0_i32 = arith.constant 0 : i32
    %c0_i32_0 = arith.constant 0 : i32
    return %arg0, %c0_i32 : i32, i32
  }
}

</mosaic_0001>

<bundles_post_ra>
// kernel: sub.12
= control target key start
LH: loop header
LB: loop body
LE: loop exit
PB: predicated region body
PF: predicated region fallthrough
CT: control target
= control target key end

     0   :  { %s29_s10 = smov 3  ;;  %s10_s11 = smov 3  ;;  %vm12_vm0 = vcmask 31744   ;;  %vm19_vm1 = vcmask 130144   ;;  %vm26_vm2 = vcmask 97344   ;;  %vm33_vm3 = vcmask 64544   ;;  %s67_s0 = inlined_call_operand.vmem [shape: s32[2,4,4], index: 0, kind: input, shape index: {}]   ;;  %s68_s1 = inlined_call_operand.vmem [shape: s32[2,16], index: 1, kind: output, shape index: {}]  }
   0x1   :  { %v41_v0 = vld [vmem:[%s67_s0 + $0x4] sm:$0xf]  ;;  %v8_v1 = vld [vmem:[%s67_s0] sm:$0xf]  ;;  %s15_s0 = smov 3  ;;  %s22_s12 = smov 3 }
   0x2   :  { %7 = vst [vmem:[#allocation1 + $0x8] sm:$0xf] %v41_v0  ;;  %9 = vst [vmem:[#allocation1] sm:$0xf] %v8_v1  ;;  %s45_s13 = smov 12   ;;  %s46_s14 = smov 4  }
   0x3   :  { %s47_s15 = smov 8  }
   0x9   :  { %v16_v2 = vld [vmem:[#allocation1 + $0x3] ss:$8 sm:%s15_s0]   ;;  %v30_v3 = vld [vmem:[#allocation1 + $0x1] ss:$8 sm:%s29_s10]   ;;  %v11_v4 = vld [vmem:[#allocation1] ss:$8 sm:%s10_s11]  }
   0xa   :  { %17 = vrot.lane.b32.xlu0 %v16_v2, %s45_s13  ;;  %31 = vrot.lane.b32.xlu1 %v30_v3, %s46_s14  ;;  %v23_v5 = vld [vmem:[#allocation1 + $0x2] ss:$8 sm:%s22_s12]   ;;  %13 = vst.msk [vmem:[#allocation0] sm:$0x3] %vm12_vm0, %v11_v4  }
   0xe   :  { %24 = vrot.lane.b32.xlu0 %v23_v5, %s47_s15 }
  0x7c   :  { %v18_v6 = vpop.permute.xlu0 %17   ;;  %v32_v7 = vpop.permute.xlu1 %31  }
  0x7d   :  { %20 = vst.msk [vmem:[#allocation0] sm:$0x3] %vm19_vm1, %v18_v6  }
  0x80   :  { %v25_v8 = vpop.permute.xlu0 %24  }
  0x81   :  { %27 = vst.msk [vmem:[#allocation0] sm:$0x3] %vm26_vm2, %v25_v8  }
  0x82   :  { %34 = vst.msk [vmem:[#allocation0] sm:$0x3] %vm33_vm3, %v32_v7  }
  0x89   :  { %v38_v9 = vld [vmem:[#allocation0] sm:$0x3] }
  0x8a   :  { %40 = vst [vmem:[%s68_s1] sm:$0x3] %v38_v9 }

// kernel: tile.9
= control target key start
LH: loop header
LB: loop body
LE: loop exit
PB: predicated region body
PF: predicated region fallthrough
CT: control target
= control target key end

     0   :  { %vm4_vm0 = vcmask 1047556   ;;  %s7029_s14 = smov 112   ;;  %vm6_vm1 = vcmask 130048   ;;  %vm583_vm2 = vcmask 1048448   ;;  %s7030_s3 = smov 96   ;;  %vm1286_vm3 = vcmask 917248   ;;  %s13126_s0 = inlined_call_operand.vmem [shape: f32[4,8,16,8,16], index: 0, kind: input, shape index: {}]   ;;  %s13127_s1 = inlined_call_operand.vmem [shape: f32[4,128,128], index: 1, kind: output, shape index: {}]  }
   0x1   :  { %v5690_v0 = vld [vmem:[%s13126_s0 + $0x207] ss:$8 sm:$0xf]   ;;  %s7031_s25 = smov 80   ;;  %vm1989_vm4 = vcmask 786048   ;;  %s7032_s16 = smov 64  }
   0x2   :  { %v5691_v1 = vld [vmem:[%s13126_s0 + $0x207] ss:$8 sm:$0xf0]   ;;  %vm2692_vm5 = vcmask 654848   ;;  %s7033_s8 = smov 48   ;;  %vm3395_vm6 = vcmask 523648  }
   0x3   :  { %v601_v2 = vsel %vm4_vm0, %v5691_v1, %v5690_v0  ;;  %v5685_v3 = vld [vmem:[%s13126_s0 + $0x7] ss:$8 sm:$0xf]   ;;  %s7034_s28 = smov 32   ;;  %vm4098_vm7 = vcmask 392448   ;;  %s7035_s19 = smov 16  }
   0x4   :  { %v5686_v4 = vld [vmem:[%s13126_s0 + $0x7] ss:$8 sm:$0xf0]   ;;  %602 = vrot.lane.b32.xlu1 %v601_v2, %s7029_s14  ;;  %vm4801_vm8 = vcmask 261248  }
   0x5   :  { %v580_v5 = vsel %vm4_vm0, %v5686_v4, %v5685_v3  ;;  %v5693_v6 = vld [vmem:[%s13126_s0 + $0x307] ss:$8 sm:$0xf]  }
   0x6   :  { %v5694_v7 = vld [vmem:[%s13126_s0 + $0x307] ss:$8 sm:$0xf0]   ;;  %581 = vrot.lane.b32.xlu0 %v580_v5, %s7029_s14 }
   0x7   :  { %v612_v8 = vsel %vm4_vm0, %v5694_v7, %v5693_v6  ;;  %v5687_v9 = vld [vmem:[%s13126_s0 + $0x107] ss:$8 sm:$0xf]  }
   0x8   :  { %v5688_v10 = vld [vmem:[%s13126_s0 + $0x107] ss:$8 sm:$0xf0]   ;;  %613 = vrot.lane.b32.xlu1 %v612_v8, %s7029_s14 }
   0x9   :  { %v590_v11 = vsel %vm4_vm0, %v5688_v10, %v5687_v9  ;;  %v5699_v12 = vld [vmem:[%s13126_s0 + $0x507] ss:$8 sm:$0xf]  }
   0xa   :  { %v5700_v13 = vld [vmem:[%s13126_s0 + $0x507] ss:$8 sm:$0xf0]   ;;  %591 = vrot.lane.b32.xlu0 %v590_v11, %s7029_s14 }
   0xb   :  { %v5696_v14 = vld [vmem:[%s13126_s0 + $0x407] ss:$8 sm:$0xf]   ;;  %v634_v16 = vsel %vm4_vm0, %v5700_v13, %v5699_v12 }
   0xc   :  { %v5697_v15 = vld [vmem:[%s13126_s0 + $0x407] ss:$8 sm:$0xf0]   ;;  %635 = vrot.lane.b32.xlu1 %v634_v16, %s7029_s14 }
   0xd   :  { %v623_v17 = vsel %vm4_vm0, %v5697_v15, %v5696_v14  ;;  %v5705_v18 = vld [vmem:[%s13126_s0 + $0x707] ss:$8 sm:$0xf]  }
   0xe   :  { %v5706_v19 = vld [vmem:[%s13126_s0 + $0x707] ss:$8 sm:$0xf0]   ;;  %624 = vrot.lane.b32.xlu0 %v623_v17, %s7029_s14 }
   0xf   :  { %v5702_v20 = vld [vmem:[%s13126_s0 + $0x607] ss:$8 sm:$0xf]   ;;  %v656_v22 = vsel %vm4_vm0, %v5706_v19, %v5705_v18 }
  0x10   :  { %v5703_v21 = vld [vmem:[%s13126_s0 + $0x607] ss:$8 sm:$0xf0]   ;;  %657 = vrot.lane.b32.xlu1 %v656_v22, %s7029_s14 }
  0x11   :  { %v645_v23 = vsel %vm4_vm0, %v5703_v21, %v5702_v20  ;;  %v5711_v24 = vld [vmem:[%s13126_s0 + $0x907] ss:$8 sm:$0xf]  }
  0x12   :  { %v5712_v25 = vld [vmem:[%s13126_s0 + $0x907] ss:$8 sm:$0xf0]   ;;  %646 = vrot.lane.b32.xlu0 %v645_v23, %s7029_s14 }
  0x13   :  { %v5708_v26 = vld [vmem:[%s13126_s0 + $0x807] ss:$8 sm:$0xf]   ;;  %v678_v28 = vsel %vm4_vm0, %v5712_v25, %v5711_v24 }
  0x14   :  { %v5709_v27 = vld [vmem:[%s13126_s0 + $0x807] ss:$8 sm:$0xf0]   ;;  %679 = vrot.lane.b32.xlu1 %v678_v28, %s7029_s14 }
  0x15   :  { %v667_v29 = vsel %vm4_vm0, %v5709_v27, %v5708_v26  ;;  %v5717_v30 = vld [vmem:[%s13126_s0 + $0xb07] ss:$8 sm:$0xf]  }
  0x16   :  { %v5718_v31 = vld [vmem:[%s13126_s0 + $0xb07] ss:$8 sm:$0xf0]   ;;  %668 = vrot.lane.b32.xlu0 %v667_v29, %s7029_s14 }
  0x17   :  { %v5714_v32 = vld [vmem:[%s13126_s0 + $0xa07] ss:$8 sm:$0xf]   ;;  %v700_v34 = vsel %vm4_vm0, %v5718_v31, %v5717_v30  ;;  %v5517_v30 = vld [vmem:[%s13126_s0 + $0x200] ss:$8 sm:$0xf]  }
  0x18   :  { %v5715_v33 = vld [vmem:[%s13126_s0 + $0xa07] ss:$8 sm:$0xf0]   ;;  %701 = vrot.lane.b32.xlu1 %v700_v34, %s7029_s14  ;;  %v5518_v31 = vld [vmem:[%s13126_s0 + $0x200] ss:$8 sm:$0xf0]  }
  0x19   :  { %v689_v35 = vsel %vm4_vm0, %v5715_v33, %v5714_v32  ;;  %v5723_v36 = vld [vmem:[%s13126_s0 + $0xd07] ss:$8 sm:$0xf]   ;;  %v76_v33 = vsel %vm4_vm0, %v5518_v31, %v5517_v30  ;;  %v2_v34 = vld [vmem:[%s13126_s0] ss:$8 sm:$0xf]  }
  0x1a   :  { %v5724_v37 = vld [vmem:[%s13126_s0 + $0xd07] ss:$8 sm:$0xf0]   ;;  %690 = vrot.lane.b32.xlu0 %v689_v35, %s7029_s14  ;;  %v3_v35 = vld [vmem:[%s13126_s0] ss:$8 sm:$0xf0]  }
  0x1b   :  { %v5720_v38 = vld [vmem:[%s13126_s0 + $0xc07] ss:$8 sm:$0xf]   ;;  %v722_v40 = vsel %vm4_vm0, %v5724_v37, %v5723_v36  ;;  %5519 = vst.msk [vmem:[%s13127_s1 + $0x40] sm:$0xff] %vm6_vm1, %v76_v33  }
  0x1c   :  { %v5721_v39 = vld [vmem:[%s13126_s0 + $0xc07] ss:$8 sm:$0xf0]   ;;  %723 = vrot.lane.b32.xlu1 %v722_v40, %s7029_s14  ;;  %v5613_v30 = vld [vmem:[%s13126_s0 + $0xa00] ss:$8 sm:$0xf]  }
  0x1d   :  { %v711_v41 = vsel %vm4_vm0, %v5721_v39, %v5720_v38  ;;  %v5729_v42 = vld [vmem:[%s13126_s0 + $0xf07] ss:$8 sm:$0xf]   ;;  %v5_v39 = vsel %vm4_vm0, %v3_v35, %v2_v34  ;;  %v5614_v34 = vld [vmem:[%s13126_s0 + $0xa00] ss:$8 sm:$0xf0]  }
  0x1e   :  { %v5730_v43 = vld [vmem:[%s13126_s0 + $0xf07] ss:$8 sm:$0xf0]   ;;  %712 = vrot.lane.b32.xlu0 %v711_v41, %s7029_s14  ;;  %7 = vst.msk [vmem:[%s13127_s1] sm:$0xff] %vm6_vm1, %v5_v39  }
  0x1f   :  { %v5726_v44 = vld [vmem:[%s13126_s0 + $0xe07] ss:$8 sm:$0xf]   ;;  %v744_v46 = vsel %vm4_vm0, %v5730_v43, %v5729_v42  ;;  %v5529_v42 = vld [vmem:[%s13126_s0 + $0x300] ss:$8 sm:$0xf]  }
  0x20   :  { %v5727_v45 = vld [vmem:[%s13126_s0 + $0xe07] ss:$8 sm:$0xf0]   ;;  %745 = vrot.lane.b32.xlu1 %v744_v46, %s7029_s14  ;;  %v5530_v43 = vld [vmem:[%s13126_s0 + $0x300] ss:$8 sm:$0xf0]  }
  0x21   :  { %v733_v47 = vsel %vm4_vm0, %v5727_v45, %v5726_v44  ;;  %v5735_v48 = vld [vmem:[%s13126_s0 + $0x147] ss:$8 sm:$0xf]   ;;  %v112_v45 = vsel %vm4_vm0, %v5530_v43, %v5529_v42  ;;  %v5505_v46 = vld [vmem:[%s13126_s0 + $0x100] ss:$8 sm:$0xf]  }
  0x22   :  { %v5736_v49 = vld [vmem:[%s13126_s0 + $0x147] ss:$8 sm:$0xf0]   ;;  %734 = vrot.lane.b32.xlu0 %v733_v47, %s7029_s14  ;;  %v5506_v47 = vld [vmem:[%s13126_s0 + $0x100] ss:$8 sm:$0xf0]  }
  0x23   :  { %v5732_v50 = vld [vmem:[%s13126_s0 + $0x47] ss:$8 sm:$0xf]   ;;  %v766_v52 = vsel %vm4_vm0, %v5736_v49, %v5735_v48  ;;  %5531 = vst.msk [vmem:[%s13127_s1 + $0x60] sm:$0xff] %vm6_vm1, %v112_v45  }
  0x24   :  { %v5733_v51 = vld [vmem:[%s13126_s0 + $0x47] ss:$8 sm:$0xf0]   ;;  %767 = vrot.lane.b32.xlu1 %v766_v52, %s7029_s14  ;;  %v5649_v39 = vld [vmem:[%s13126_s0 + $0xd00] ss:$8 sm:$0xf]  }
  0x25   :  { %v755_v53 = vsel %vm4_vm0, %v5733_v51, %v5732_v50  ;;  %v5741_v54 = vld [vmem:[%s13126_s0 + $0x347] ss:$8 sm:$0xf]   ;;  %v40_v51 = vsel %vm4_vm0, %v5506_v47, %v5505_v46  ;;  %v5637_v42 = vld [vmem:[%s13126_s0 + $0xc00] ss:$8 sm:$0xf]  }
  0x26   :  { %v5742_v55 = vld [vmem:[%s13126_s0 + $0x347] ss:$8 sm:$0xf0]   ;;  %756 = vrot.lane.b32.xlu0 %v755_v53, %s7029_s14  ;;  %5507 = vst.msk [vmem:[%s13127_s1 + $0x20] sm:$0xff] %vm6_vm1, %v40_v51  }
  0x27   :  { %v5738_v56 = vld [vmem:[%s13126_s0 + $0x247] ss:$8 sm:$0xf]   ;;  %v788_v58 = vsel %vm4_vm0, %v5742_v55, %v5741_v54  ;;  %v5553_v54 = vld [vmem:[%s13126_s0 + $0x500] ss:$8 sm:$0xf]  }
  0x28   :  { %v5739_v57 = vld [vmem:[%s13126_s0 + $0x247] ss:$8 sm:$0xf0]   ;;  %789 = vrot.lane.b32.xlu1 %v788_v58, %s7029_s14  ;;  %v5554_v55 = vld [vmem:[%s13126_s0 + $0x500] ss:$8 sm:$0xf0]  }
  0x29   :  { %v777_v59 = vsel %vm4_vm0, %v5739_v57, %v5738_v56  ;;  %v5747_v60 = vld [vmem:[%s13126_s0 + $0x547] ss:$8 sm:$0xf]   ;;  %v184_v57 = vsel %vm4_vm0, %v5554_v55, %v5553_v54  ;;  %v5541_v58 = vld [vmem:[%s13126_s0 + $0x400] ss:$8 sm:$0xf]  }
  0x2a   :  { %v5748_v61 = vld [vmem:[%s13126_s0 + $0x547] ss:$8 sm:$0xf0]   ;;  %778 = vrot.lane.b32.xlu0 %v777_v59, %s7029_s14  ;;  %v5542_v59 = vld [vmem:[%s13126_s0 + $0x400] ss:$8 sm:$0xf0]  }
  0x2b   :  { %v5744_v62 = vld [vmem:[%s13126_s0 + $0x447] ss:$8 sm:$0xf]   ;;  %v810_v0 = vsel %vm4_vm0, %v5748_v61, %v5747_v60  ;;  %5555 = vst.msk [vmem:[%s13127_s1 + $0xa0] sm:$0xff] %vm6_vm1, %v184_v57  }
  0x2c   :  { %v5745_v63 = vld [vmem:[%s13126_s0 + $0x447] ss:$8 sm:$0xf0]   ;;  %811 = vrot.lane.b32.xlu1 %v810_v0, %s7029_s14  ;;  %v5638_v46 = vld [vmem:[%s13126_s0 + $0xc00] ss:$8 sm:$0xf0]  }
  0x2d   :  { %v799_v1 = vsel %vm4_vm0, %v5745_v63, %v5744_v62  ;;  %v5753_v2 = vld [vmem:[%s13126_s0 + $0x747] ss:$8 sm:$0xf]   ;;  %v148_v63 = vsel %vm4_vm0, %v5542_v59, %v5541_v58  ;;  %v5673_v51 = vld [vmem:[%s13126_s0 + $0xf00] ss:$8 sm:$0xf]  }
  0x2e   :  { %v5754_v3 = vld [vmem:[%s13126_s0 + $0x747] ss:$8 sm:$0xf0]   ;;  %800 = vrot.lane.b32.xlu0 %v799_v1, %s7029_s14  ;;  %5543 = vst.msk [vmem:[%s13127_s1 + $0x80] sm:$0xff] %vm6_vm1, %v148_v63  }
  0x2f   :  { %v5750_v4 = vld [vmem:[%s13126_s0 + $0x647] ss:$8 sm:$0xf]   ;;  %v832_v6 = vsel %vm4_vm0, %v5754_v3, %v5753_v2  ;;  %v5577_v2 = vld [vmem:[%s13126_s0 + $0x700] ss:$8 sm:$0xf]  }
  0x30   :  { %v5751_v5 = vld [vmem:[%s13126_s0 + $0x647] ss:$8 sm:$0xf0]   ;;  %833 = vrot.lane.b32.xlu1 %v832_v6, %s7029_s14  ;;  %v5578_v3 = vld [vmem:[%s13126_s0 + $0x700] ss:$8 sm:$0xf0]  }
  0x31   :  { %v821_v7 = vsel %vm4_vm0, %v5751_v5, %v5750_v4  ;;  %v5759_v8 = vld [vmem:[%s13126_s0 + $0x947] ss:$8 sm:$0xf]   ;;  %v256_v5 = vsel %vm4_vm0, %v5578_v3, %v5577_v2  ;;  %v5565_v6 = vld [vmem:[%s13126_s0 + $0x600] ss:$8 sm:$0xf]  }
  0x32   :  { %v5760_v9 = vld [vmem:[%s13126_s0 + $0x947] ss:$8 sm:$0xf0]   ;;  %822 = vrot.lane.b32.xlu0 %v821_v7, %s7029_s14  ;;  %v5566_v7 = vld [vmem:[%s13126_s0 + $0x600] ss:$8 sm:$0xf0]  }
  0x33   :  { %v5756_v10 = vld [vmem:[%s13126_s0 + $0x847] ss:$8 sm:$0xf]   ;;  %v854_v12 = vsel %vm4_vm0, %v5760_v9, %v5759_v8  ;;  %5579 = vst.msk [vmem:[%s13127_s1 + $0xe0] sm:$0xff] %vm6_vm1, %v256_v5  }
  0x34   :  { %v5757_v11 = vld [vmem:[%s13126_s0 + $0x847] ss:$8 sm:$0xf0]   ;;  %855 = vrot.lane.b32.xlu1 %v854_v12, %s7029_s14  ;;  %v5661_v54 = vld [vmem:[%s13126_s0 + $0xe00] ss:$8 sm:$0xf]  }
  0x35   :  { %v843_v13 = vsel %vm4_vm0, %v5757_v11, %v5756_v10  ;;  %v5765_v14 = vld [vmem:[%s13126_s0 + $0xb47] ss:$8 sm:$0xf]   ;;  %v220_v11 = vsel %vm4_vm0, %v5566_v7, %v5565_v6  ;;  %v5662_v58 = vld [vmem:[%s13126_s0 + $0xe00] ss:$8 sm:$0xf0]  }
  0x36   :  { %v5766_v15 = vld [vmem:[%s13126_s0 + $0xb47] ss:$8 sm:$0xf0]   ;;  %844 = vrot.lane.b32.xlu0 %v843_v13, %s7029_s14  ;;  %5567 = vst.msk [vmem:[%s13127_s1 + $0xc0] sm:$0xff] %vm6_vm1, %v220_v11  }
  0x37   :  { %v5762_v16 = vld [vmem:[%s13126_s0 + $0xa47] ss:$8 sm:$0xf]   ;;  %v876_v18 = vsel %vm4_vm0, %v5766_v15, %v5765_v14  ;;  %v5601_v15 = vld [vmem:[%s13126_s0 + $0x900] ss:$8 sm:$0xf]  }
  0x38   :  { %v5763_v17 = vld [vmem:[%s13126_s0 + $0xa47] ss:$8 sm:$0xf0]   ;;  %877 = vrot.lane.b32.xlu1 %v876_v18, %s7029_s14  ;;  %v5589_v18 = vld [vmem:[%s13126_s0 + $0x800] ss:$8 sm:$0xf]  }
  0x39   :  { %v865_v19 = vsel %vm4_vm0, %v5763_v17, %v5762_v16  ;;  %v5771_v20 = vld [vmem:[%s13126_s0 + $0xd47] ss:$8 sm:$0xf]   ;;  %v5602_v17 = vld [vmem:[%s13126_s0 + $0x900] ss:$8 sm:$0xf0]  }
  0x3a   :  { %v5772_v21 = vld [vmem:[%s13126_s0 + $0xd47] ss:$8 sm:$0xf0]   ;;  %866 = vrot.lane.b32.xlu0 %v865_v19, %s7029_s14  ;;  %v5508_v63 = vld [vmem:[%s13126_s0 + $0x140] ss:$8 sm:$0xf]  }
  0x3b   :  { %v5768_v22 = vld [vmem:[%s13126_s0 + $0xc47] ss:$8 sm:$0xf]   ;;  %v898_v24 = vsel %vm4_vm0, %v5772_v21, %v5771_v20  ;;  %v328_v21 = vsel %vm4_vm0, %v5602_v17, %v5601_v15  ;;  %v5496_v2 = vld [vmem:[%s13126_s0 + $0x40] ss:$8 sm:$0xf]  }
  0x3c   :  { %v5769_v23 = vld [vmem:[%s13126_s0 + $0xc47] ss:$8 sm:$0xf0]   ;;  %899 = vrot.lane.b32.xlu1 %v898_v24, %s7029_s14  ;;  %5603 = vst.msk [vmem:[%s13127_s1 + $0x120] sm:$0xff] %vm6_vm1, %v328_v21  }
  0x3d   :  { %v887_v25 = vsel %vm4_vm0, %v5769_v23, %v5768_v22  ;;  %v5777_v26 = vld [vmem:[%s13126_s0 + $0xf47] ss:$8 sm:$0xf]   ;;  %v5590_v22 = vld [vmem:[%s13126_s0 + $0x800] ss:$8 sm:$0xf0]  }
  0x3e   :  { %v5778_v27 = vld [vmem:[%s13126_s0 + $0xf47] ss:$8 sm:$0xf0]   ;;  %888 = vrot.lane.b32.xlu0 %v887_v25, %s7029_s14  ;;  %v292_v25 = vsel %vm4_vm0, %v5590_v22, %v5589_v18  ;;  %v5497_v6 = vld [vmem:[%s13126_s0 + $0x40] ss:$8 sm:$0xf0]  }
  0x3f   :  { %v5774_v28 = vld [vmem:[%s13126_s0 + $0xe47] ss:$8 sm:$0xf]   ;;  %v920_v32 = vsel %vm4_vm0, %v5778_v27, %v5777_v26  ;;  %5591 = vst.msk [vmem:[%s13127_s1 + $0x100] sm:$0xff] %vm6_vm1, %v292_v25  }
  0x40   :  { %v5775_v29 = vld [vmem:[%s13126_s0 + $0xe47] ss:$8 sm:$0xf0]   ;;  %921 = vrot.lane.b32.xlu1 %v920_v32, %s7029_s14  ;;  %v5625_v27 = vld [vmem:[%s13126_s0 + $0xb00] ss:$8 sm:$0xf]  }
  0x41   :  { %v909_v36 = vsel %vm4_vm0, %v5775_v29, %v5774_v28  ;;  %v5783_v37 = vld [vmem:[%s13126_s0 + $0x187] ss:$8 sm:$0xf]   ;;  %v5626_v29 = vld [vmem:[%s13126_s0 + $0xb00] ss:$8 sm:$0xf0]  }
  0x42   :  { %v5784_v38 = vld [vmem:[%s13126_s0 + $0x187] ss:$8 sm:$0xf0]   ;;  %910 = vrot.lane.b32.xlu0 %v909_v36, %s7029_s14  ;;  %v400_v33 = vsel %vm4_vm0, %v5626_v29, %v5625_v27  ;;  %v5532_v11 = vld [vmem:[%s13126_s0 + $0x340] ss:$8 sm:$0xf]  }
  0x43   :  { %v5780_v40 = vld [vmem:[%s13126_s0 + $0x87] ss:$8 sm:$0xf]   ;;  %v942_v44 = vsel %vm4_vm0, %v5784_v38, %v5783_v37  ;;  %5627 = vst.msk [vmem:[%s13127_s1 + $0x160] sm:$0xff] %vm6_vm1, %v400_v33   ;;  %v364_v37 = vsel %vm4_vm0, %v5614_v34, %v5613_v30 }
  0x44   :  { %v5781_v41 = vld [vmem:[%s13126_s0 + $0x87] ss:$8 sm:$0xf0]   ;;  %943 = vrot.lane.b32.xlu1 %v942_v44, %s7029_s14  ;;  %5615 = vst.msk [vmem:[%s13127_s1 + $0x140] sm:$0xff] %vm6_vm1, %v364_v37  }
  0x45   :  { %v931_v48 = vsel %vm4_vm0, %v5781_v41, %v5780_v40  ;;  %v5789_v49 = vld [vmem:[%s13126_s0 + $0x387] ss:$8 sm:$0xf]   ;;  %v5650_v41 = vld [vmem:[%s13126_s0 + $0xd00] ss:$8 sm:$0xf0]  }
  0x46   :  { %v5790_v50 = vld [vmem:[%s13126_s0 + $0x387] ss:$8 sm:$0xf0]   ;;  %932 = vrot.lane.b32.xlu0 %v931_v48, %s7029_s14  ;;  %v472_v45 = vsel %vm4_vm0, %v5650_v41, %v5649_v39  ;;  %v5521_v18 = vld [vmem:[%s13126_s0 + $0x240] ss:$8 sm:$0xf0]  }
  0x47   :  { %v5786_v52 = vld [vmem:[%s13126_s0 + $0x287] ss:$8 sm:$0xf]   ;;  %v964_v56 = vsel %vm4_vm0, %v5790_v50, %v5789_v49  ;;  %5651 = vst.msk [vmem:[%s13127_s1 + $0x1a0] sm:$0xff] %vm6_vm1, %v472_v45   ;;  %v436_v49 = vsel %vm4_vm0, %v5638_v46, %v5637_v42 }
  0x48   :  { %v5787_v53 = vld [vmem:[%s13126_s0 + $0x287] ss:$8 sm:$0xf0]   ;;  %965 = vrot.lane.b32.xlu1 %v964_v56, %s7029_s14  ;;  %5639 = vst.msk [vmem:[%s13127_s1 + $0x180] sm:$0xff] %vm6_vm1, %v436_v49  }
  0x49   :  { %v953_v60 = vsel %vm4_vm0, %v5787_v53, %v5786_v52  ;;  %v5795_v61 = vld [vmem:[%s13126_s0 + $0x587] ss:$8 sm:$0xf]   ;;  %v5674_v53 = vld [vmem:[%s13126_s0 + $0xf00] ss:$8 sm:$0xf0]  }
  0x4a   :  { %v5796_v62 = vld [vmem:[%s13126_s0 + $0x587] ss:$8 sm:$0xf0]   ;;  %954 = vrot.lane.b32.xlu0 %v953_v60, %s7029_s14  ;;  %v544_v57 = vsel %vm4_vm0, %v5674_v53, %v5673_v51  ;;  %v5557_v25 = vld [vmem:[%s13126_s0 + $0x540] ss:$8 sm:$0xf0]  }
  0x4b   :  { %v5792_v0 = vld [vmem:[%s13126_s0 + $0x487] ss:$8 sm:$0xf]   ;;  %v986_v4 = vsel %vm4_vm0, %v5796_v62, %v5795_v61  ;;  %5675 = vst.msk [vmem:[%s13127_s1 + $0x1e0] sm:$0xff] %vm6_vm1, %v544_v57   ;;  %v508_v61 = vsel %vm4_vm0, %v5662_v58, %v5661_v54 }
  0x4c   :  { %v5793_v1 = vld [vmem:[%s13126_s0 + $0x487] ss:$8 sm:$0xf0]   ;;  %987 = vrot.lane.b32.xlu1 %v986_v4, %s7029_s14  ;;  %5663 = vst.msk [vmem:[%s13127_s1 + $0x1c0] sm:$0xff] %vm6_vm1, %v508_v61  }
  0x4d   :  { %v975_v8 = vsel %vm4_vm0, %v5793_v1, %v5792_v0  ;;  %v5801_v9 = vld [vmem:[%s13126_s0 + $0x787] ss:$8 sm:$0xf]   ;;  %v5509_v1 = vld [vmem:[%s13126_s0 + $0x140] ss:$8 sm:$0xf0]  }
  0x4e   :  { %v5802_v10 = vld [vmem:[%s13126_s0 + $0x787] ss:$8 sm:$0xf0]   ;;  %976 = vrot.lane.b32.xlu0 %v975_v8, %s7029_s14  ;;  %v49_v5 = vsel %vm4_vm0, %v5509_v1, %v5508_v63  ;;  %v5545_v30 = vld [vmem:[%s13126_s0 + $0x440] ss:$8 sm:$0xf0]  }
  0x4f   :  { %v5798_v12 = vld [vmem:[%s13126_s0 + $0x687] ss:$8 sm:$0xf]   ;;  %v1008_v16 = vsel %vm4_vm0, %v5802_v10, %v5801_v9  ;;  %5510 = vst.msk [vmem:[%s13127_s1 + $0x28] sm:$0xff] %vm6_vm1, %v49_v5   ;;  %v13_v9 = vsel %vm4_vm0, %v5497_v6, %v5496_v2 }
  0x50   :  { %v5799_v13 = vld [vmem:[%s13126_s0 + $0x687] ss:$8 sm:$0xf0]   ;;  %1009 = vrot.lane.b32.xlu1 %v1008_v16, %s7029_s14  ;;  %5498 = vst.msk [vmem:[%s13127_s1 + $0x8] sm:$0xff] %vm6_vm1, %v13_v9  }
  0x51   :  { %v5807_v14 = vld [vmem:[%s13126_s0 + $0x987] ss:$8 sm:$0xf]   ;;  %v997_v19 = vsel %vm4_vm0, %v5799_v13, %v5798_v12  ;;  %v5533_v13 = vld [vmem:[%s13126_s0 + $0x340] ss:$8 sm:$0xf0]  }
  0x52   :  { %v5808_v20 = vld [vmem:[%s13126_s0 + $0x987] ss:$8 sm:$0xf0]   ;;  %998 = vrot.lane.b32.xlu0 %v997_v19, %s7029_s14  ;;  %v121_v17 = vsel %vm4_vm0, %v5533_v13, %v5532_v11  ;;  %v5581_v37 = vld [vmem:[%s13126_s0 + $0x740] ss:$8 sm:$0xf0]  }
  0x53   :  { %v5804_v23 = vld [vmem:[%s13126_s0 + $0x887] ss:$8 sm:$0xf]   ;;  %v1030_v28 = vsel %vm4_vm0, %v5808_v20, %v5807_v14  ;;  %v5520_v14 = vld [vmem:[%s13126_s0 + $0x240] ss:$8 sm:$0xf]  }
  0x54   :  { %v5805_v24 = vld [vmem:[%s13126_s0 + $0x887] ss:$8 sm:$0xf0]   ;;  %1031 = vrot.lane.b32.xlu1 %v1030_v28, %s7029_s14  ;;  %5534 = vst.msk [vmem:[%s13127_s1 + $0x68] sm:$0xff] %vm6_vm1, %v121_v17   ;;  %v85_v21 = vsel %vm4_vm0, %v5521_v18, %v5520_v14 }
  0x55   :  { %v5813_v26 = vld [vmem:[%s13126_s0 + $0xb87] ss:$8 sm:$0xf]   ;;  %v1019_v31 = vsel %vm4_vm0, %v5805_v24, %v5804_v23  ;;  %5522 = vst.msk [vmem:[%s13127_s1 + $0x48] sm:$0xff] %vm6_vm1, %v85_v21  }
  0x56   :  { %v5814_v32 = vld [vmem:[%s13126_s0 + $0xb87] ss:$8 sm:$0xf0]   ;;  %1020 = vrot.lane.b32.xlu0 %v1019_v31, %s7029_s14  ;;  %v5556_v23 = vld [vmem:[%s13126_s0 + $0x540] ss:$8 sm:$0xf]  }
  0x57   :  { %v5810_v35 = vld [vmem:[%s13126_s0 + $0xa87] ss:$8 sm:$0xf]   ;;  %v1052_v40 = vsel %vm4_vm0, %v5814_v32, %v5813_v26  ;;  %v5544_v26 = vld [vmem:[%s13126_s0 + $0x440] ss:$8 sm:$0xf]   ;;  %v193_v29 = vsel %vm4_vm0, %v5557_v25, %v5556_v23 }
  0x58   :  { %v5811_v36 = vld [vmem:[%s13126_s0 + $0xa87] ss:$8 sm:$0xf0]   ;;  %1053 = vrot.lane.b32.xlu1 %v1052_v40, %s7029_s14  ;;  %5558 = vst.msk [vmem:[%s13127_s1 + $0xa8] sm:$0xff] %vm6_vm1, %v193_v29   ;;  %v157_v33 = vsel %vm4_vm0, %v5545_v30, %v5544_v26 }
  0x59   :  { %v5819_v38 = vld [vmem:[%s13126_s0 + $0xd87] ss:$8 sm:$0xf]   ;;  %v1041_v43 = vsel %vm4_vm0, %v5811_v36, %v5810_v35  ;;  %5546 = vst.msk [vmem:[%s13127_s1 + $0x88] sm:$0xff] %vm6_vm1, %v157_v33  }
  0x5a   :  { %v5820_v44 = vld [vmem:[%s13126_s0 + $0xd87] ss:$8 sm:$0xf0]   ;;  %1042 = vrot.lane.b32.xlu0 %v1041_v43, %s7029_s14  ;;  %v5580_v35 = vld [vmem:[%s13126_s0 + $0x740] ss:$8 sm:$0xf]  }
  0x5b   :  { %v5816_v47 = vld [vmem:[%s13126_s0 + $0xc87] ss:$8 sm:$0xf]   ;;  %v1074_v52 = vsel %vm4_vm0, %v5820_v44, %v5819_v38  ;;  %v5568_v38 = vld [vmem:[%s13126_s0 + $0x640] ss:$8 sm:$0xf]   ;;  %v265_v41 = vsel %vm4_vm0, %v5581_v37, %v5580_v35 }
  0x5c   :  { %v5817_v48 = vld [vmem:[%s13126_s0 + $0xc87] ss:$8 sm:$0xf0]   ;;  %1075 = vrot.lane.b32.xlu1 %v1074_v52, %s7029_s14  ;;  %v5569_v42 = vld [vmem:[%s13126_s0 + $0x640] ss:$8 sm:$0xf0]  }
  0x5d   :  { %v5825_v50 = vld [vmem:[%s13126_s0 + $0xf87] ss:$8 sm:$0xf]   ;;  %v1063_v55 = vsel %vm4_vm0, %v5817_v48, %v5816_v47  ;;  %5582 = vst.msk [vmem:[%s13127_s1 + $0xe8] sm:$0xff] %vm6_vm1, %v265_v41   ;;  %v229_v45 = vsel %vm4_vm0, %v5569_v42, %v5568_v38 }
  0x5e   :  { %v5826_v56 = vld [vmem:[%s13126_s0 + $0xf87] ss:$8 sm:$0xf0]   ;;  %1064 = vrot.lane.b32.xlu0 %v1063_v55, %s7029_s14  ;;  %5570 = vst.msk [vmem:[%s13127_s1 + $0xc8] sm:$0xff] %vm6_vm1, %v229_v45  }
  0x5f   :  { %v5822_v59 = vld [vmem:[%s13126_s0 + $0xe87] ss:$8 sm:$0xf]   ;;  %v1096_v0 = vsel %vm4_vm0, %v5826_v56, %v5825_v50  ;;  %v5604_v47 = vld [vmem:[%s13126_s0 + $0x940] ss:$8 sm:$0xf]  }
  0x60   :  { %v5823_v60 = vld [vmem:[%s13126_s0 + $0xe87] ss:$8 sm:$0xf0]   ;;  %1097 = vrot.lane.b32.xlu1 %v1096_v0, %s7029_s14  ;;  %v5605_v49 = vld [vmem:[%s13126_s0 + $0x940] ss:$8 sm:$0xf0]  }
  0x61   :  { %v5831_v62 = vld [vmem:[%s13126_s0 + $0x1c7] ss:$8 sm:$0xf]   ;;  %v1085_v3 = vsel %vm4_vm0, %v5823_v60, %v5822_v59  ;;  %v5592_v50 = vld [vmem:[%s13126_s0 + $0x840] ss:$8 sm:$0xf]   ;;  %v337_v53 = vsel %vm4_vm0, %v5605_v49, %v5604_v47 }
  0x62   :  { %v5832_v4 = vld [vmem:[%s13126_s0 + $0x1c7] ss:$8 sm:$0xf0]   ;;  %1086 = vrot.lane.b32.xlu0 %v1085_v3, %s7029_s14  ;;  %v5593_v54 = vld [vmem:[%s13126_s0 + $0x840] ss:$8 sm:$0xf0]  }
  0x63   :  { %v5828_v7 = vld [vmem:[%s13126_s0 + $0xc7] ss:$8 sm:$0xf]   ;;  %v1118_v12 = vsel %vm4_vm0, %v5832_v4, %v5831_v62  ;;  %5606 = vst.msk [vmem:[%s13127_s1 + $0x128] sm:$0xff] %vm6_vm1, %v337_v53   ;;  %v301_v57 = vsel %vm4_vm0, %v5593_v54, %v5592_v50 }
  0x64   :  { %v5829_v8 = vld [vmem:[%s13126_s0 + $0xc7] ss:$8 sm:$0xf0]   ;;  %1119 = vrot.lane.b32.xlu1 %v1118_v12, %s7029_s14  ;;  %5594 = vst.msk [vmem:[%s13127_s1 + $0x108] sm:$0xff] %vm6_vm1, %v301_v57  }
  0x65   :  { %v5837_v10 = vld [vmem:[%s13126_s0 + $0x3c7] ss:$8 sm:$0xf]   ;;  %v1107_v15 = vsel %vm4_vm0, %v5829_v8, %v5828_v7  ;;  %v5628_v59 = vld [vmem:[%s13126_s0 + $0xb40] ss:$8 sm:$0xf]  }
  0x66   :  { %v5838_v16 = vld [vmem:[%s13126_s0 + $0x3c7] ss:$8 sm:$0xf0]   ;;  %1108 = vrot.lane.b32.xlu0 %v1107_v15, %s7029_s14  ;;  %v5629_v61 = vld [vmem:[%s13126_s0 + $0xb40] ss:$8 sm:$0xf0]  }
  0x67   :  { %v5834_v19 = vld [vmem:[%s13126_s0 + $0x2c7] ss:$8 sm:$0xf]   ;;  %v1140_v24 = vsel %vm4_vm0, %v5838_v16, %v5837_v10  ;;  %v5616_v62 = vld [vmem:[%s13126_s0 + $0xa40] ss:$8 sm:$0xf]   ;;  %v409_v1 = vsel %vm4_vm0, %v5629_v61, %v5628_v59 }
  0x68   :  { %v5835_v20 = vld [vmem:[%s13126_s0 + $0x2c7] ss:$8 sm:$0xf0]   ;;  %1141 = vrot.lane.b32.xlu1 %v1140_v24, %s7029_s14  ;;  %v5617_v2 = vld [vmem:[%s13126_s0 + $0xa40] ss:$8 sm:$0xf0]  }
  0x69   :  { %v5843_v22 = vld [vmem:[%s13126_s0 + $0x5c7] ss:$8 sm:$0xf]   ;;  %v1129_v27 = vsel %vm4_vm0, %v5835_v20, %v5834_v19  ;;  %5630 = vst.msk [vmem:[%s13127_s1 + $0x168] sm:$0xff] %vm6_vm1, %v409_v1   ;;  %v373_v5 = vsel %vm4_vm0, %v5617_v2, %v5616_v62 }
  0x6a   :  { %v5844_v28 = vld [vmem:[%s13126_s0 + $0x5c7] ss:$8 sm:$0xf0]   ;;  %1130 = vrot.lane.b32.xlu0 %v1129_v27, %s7029_s14  ;;  %5618 = vst.msk [vmem:[%s13127_s1 + $0x148] sm:$0xff] %vm6_vm1, %v373_v5  }
  0x6b   :  { %v5840_v31 = vld [vmem:[%s13126_s0 + $0x4c7] ss:$8 sm:$0xf]   ;;  %v1162_v36 = vsel %vm4_vm0, %v5844_v28, %v5843_v22  ;;  %v5652_v7 = vld [vmem:[%s13126_s0 + $0xd40] ss:$8 sm:$0xf]  }
  0x6c   :  { %v5841_v32 = vld [vmem:[%s13126_s0 + $0x4c7] ss:$8 sm:$0xf0]   ;;  %1163 = vrot.lane.b32.xlu1 %v1162_v36, %s7029_s14  ;;  %v5653_v9 = vld [vmem:[%s13126_s0 + $0xd40] ss:$8 sm:$0xf0]  }
  0x6d   :  { %v5849_v34 = vld [vmem:[%s13126_s0 + $0x7c7] ss:$8 sm:$0xf]   ;;  %v1151_v39 = vsel %vm4_vm0, %v5841_v32, %v5840_v31  ;;  %v5640_v10 = vld [vmem:[%s13126_s0 + $0xc40] ss:$8 sm:$0xf]   ;;  %v481_v14 = vsel %vm4_vm0, %v5653_v9, %v5652_v7 }
  0x6e   :  { %v5850_v40 = vld [vmem:[%s13126_s0 + $0x7c7] ss:$8 sm:$0xf0]   ;;  %1152 = vrot.lane.b32.xlu0 %v1151_v39, %s7029_s14  ;;  %v5641_v15 = vld [vmem:[%s13126_s0 + $0xc40] ss:$8 sm:$0xf0]  }
  0x6f   :  { %v5846_v43 = vld [vmem:[%s13126_s0 + $0x6c7] ss:$8 sm:$0xf]   ;;  %v1184_v48 = vsel %vm4_vm0, %v5850_v40, %v5849_v34  ;;  %5654 = vst.msk [vmem:[%s13127_s1 + $0x1a8] sm:$0xff] %vm6_vm1, %v481_v14   ;;  %v445_v19 = vsel %vm4_vm0, %v5641_v15, %v5640_v10 }
  0x70   :  { %v5847_v44 = vld [vmem:[%s13126_s0 + $0x6c7] ss:$8 sm:$0xf0]   ;;  %1185 = vrot.lane.b32.xlu1 %v1184_v48, %s7029_s14  ;;  %5642 = vst.msk [vmem:[%s13127_s1 + $0x188] sm:$0xff] %vm6_vm1, %v445_v19  }
  0x71   :  { %v5855_v46 = vld [vmem:[%s13126_s0 + $0x9c7] ss:$8 sm:$0xf]   ;;  %v1173_v51 = vsel %vm4_vm0, %v5847_v44, %v5846_v43  ;;  %v5676_v22 = vld [vmem:[%s13126_s0 + $0xf40] ss:$8 sm:$0xf]  }
  0x72   :  { %v5856_v52 = vld [vmem:[%s13126_s0 + $0x9c7] ss:$8 sm:$0xf0]   ;;  %1174 = vrot.lane.b32.xlu0 %v1173_v51, %s7029_s14  ;;  %v5677_v24 = vld [vmem:[%s13126_s0 + $0xf40] ss:$8 sm:$0xf0]  }
  0x73   :  { %v5852_v55 = vld [vmem:[%s13126_s0 + $0x8c7] ss:$8 sm:$0xf]   ;;  %v1206_v60 = vsel %vm4_vm0, %v5856_v52, %v5855_v46  ;;  %v5664_v25 = vld [vmem:[%s13126_s0 + $0xe40] ss:$8 sm:$0xf]   ;;  %v553_v29 = vsel %vm4_vm0, %v5677_v24, %v5676_v22 }
  0x74   :  { %v5853_v56 = vld [vmem:[%s13126_s0 + $0x8c7] ss:$8 sm:$0xf0]   ;;  %1207 = vrot.lane.b32.xlu1 %v1206_v60, %s7029_s14  ;;  %v5665_v30 = vld [vmem:[%s13126_s0 + $0xe40] ss:$8 sm:$0xf0]  }
  0x75   :  { %v5861_v58 = vld [vmem:[%s13126_s0 + $0xbc7] ss:$8 sm:$0xf]   ;;  %v1195_v63 = vsel %vm4_vm0, %v5853_v56, %v5852_v55  ;;  %5678 = vst.msk [vmem:[%s13127_s1 + $0x1e8] sm:$0xff] %vm6_vm1, %v553_v29   ;;  %v517_v33 = vsel %vm4_vm0, %v5665_v30, %v5664_v25 }
  0x76   :  { %v5862_v0 = vld [vmem:[%s13126_s0 + $0xbc7] ss:$8 sm:$0xf0]   ;;  %1196 = vrot.lane.b32.xlu0 %v1195_v63, %s7029_s14  ;;  %v603_v11 = vpop.permute.xlu1 %602   ;;  %v5878_v34 = vld [vmem:[%s13126_s0 + $0x106] ss:$8 sm:$0xf]  }
  0x77   :  { %v5858_v3 = vld [vmem:[%s13126_s0 + $0xac7] ss:$8 sm:$0xf]   ;;  %v1228_v8 = vsel %vm4_vm0, %v5862_v0, %v5861_v58  ;;  %5692 = vst.msk [vmem:[%s13127_s1 + $0x40] sm:$0xff] %vm583_vm2, %v603_v11  }
  0x78   :  { %v5859_v4 = vld [vmem:[%s13126_s0 + $0xac7] ss:$8 sm:$0xf0]   ;;  %v582_v16 = vpop.permute.xlu0 %581   ;;  %1229 = vrot.lane.b32.xlu1 %v1228_v8, %s7029_s14  ;;  %5666 = vst.msk [vmem:[%s13127_s1 + $0x1c8] sm:$0xff] %vm6_vm1, %v517_v33  }
  0x79   :  { %v5867_v6 = vld [vmem:[%s13126_s0 + $0xdc7] ss:$8 sm:$0xf]   ;;  %v1217_v12 = vsel %vm4_vm0, %v5859_v4, %v5858_v3  ;;  %584 = vst.msk [vmem:[%s13127_s1] sm:$0xff] %vm583_vm2, %v582_v16  }
  0x7a   :  { %v5868_v13 = vld [vmem:[%s13126_s0 + $0xdc7] ss:$8 sm:$0xf0]   ;;  %1218 = vrot.lane.b32.xlu0 %v1217_v12, %s7029_s14  ;;  %v614_v26 = vpop.permute.xlu1 %613   ;;  %v5511_v35 = vld [vmem:[%s13126_s0 + $0x180] ss:$8 sm:$0xf]  }
  0x7b   :  { %v5864_v17 = vld [vmem:[%s13126_s0 + $0xcc7] ss:$8 sm:$0xf]   ;;  %v1250_v23 = vsel %vm4_vm0, %v5868_v13, %v5867_v6  ;;  %5695 = vst.msk [vmem:[%s13127_s1 + $0x60] sm:$0xff] %vm583_vm2, %v614_v26  }
  0x7c   :  { %v5865_v18 = vld [vmem:[%s13126_s0 + $0xcc7] ss:$8 sm:$0xf0]   ;;  %v592_v31 = vpop.permute.xlu0 %591   ;;  %1251 = vrot.lane.b32.xlu1 %v1250_v23, %s7029_s14  ;;  %v5512_v37 = vld [vmem:[%s13126_s0 + $0x180] ss:$8 sm:$0xf0]  }
  0x7d   :  { %v5873_v20 = vld [vmem:[%s13126_s0 + $0xfc7] ss:$8 sm:$0xf]   ;;  %v1239_v27 = vsel %vm4_vm0, %v5865_v18, %v5864_v17  ;;  %5689 = vst.msk [vmem:[%s13127_s1 + $0x20] sm:$0xff] %vm583_vm2, %v592_v31   ;;  %v58_v42 = vsel %vm4_vm0, %v5512_v37, %v5511_v35 }
  0x7e   :  { %v5874_v21 = vld [vmem:[%s13126_s0 + $0xfc7] ss:$8 sm:$0xf0]   ;;  %1240 = vrot.lane.b32.xlu0 %v1239_v27, %s7029_s14  ;;  %v5499_v38 = vld [vmem:[%s13126_s0 + $0x80] ss:$8 sm:$0xf]   ;;  %v636_v39 = vpop.permute.xlu1 %635  }
  0x7f   :  { %v5870_v28 = vld [vmem:[%s13126_s0 + $0xec7] ss:$8 sm:$0xf]   ;;  %v1272_v36 = vsel %vm4_vm0, %v5874_v21, %v5873_v20  ;;  %v5879_v41 = vld [vmem:[%s13126_s0 + $0x106] ss:$8 sm:$0xf0]  }
  0x80   :  { %v5871_v32 = vld [vmem:[%s13126_s0 + $0xec7] ss:$8 sm:$0xf0]   ;;  %v5500_v43 = vld [vmem:[%s13126_s0 + $0x80] ss:$8 sm:$0xf0]   ;;  %v625_v44 = vpop.permute.xlu0 %624   ;;  %1273 = vrot.lane.b32.xlu1 %v1272_v36, %s7029_s14  ;;  %v1293_v50 = vsel %vm4_vm0, %v5879_v41, %v5878_v34 }
  0x81   :  { %v1261_v40 = vsel %vm4_vm0, %v5871_v32, %v5870_v28  ;;  %5701 = vst.msk [vmem:[%s13127_s1 + $0xa0] sm:$0xff] %vm583_vm2, %v636_v39   ;;  %v5876_v45 = vld [vmem:[%s13126_s0 + $0x6] ss:$8 sm:$0xf]   ;;  %v22_v47 = vsel %vm4_vm0, %v5500_v43, %v5499_v38  ;;  %5698 = vst.msk [vmem:[%s13127_s1 + $0x80] sm:$0xff] %vm583_vm2, %v625_v44  }
  0x82   :  { %v5877_v46 = vld [vmem:[%s13126_s0 + $0x6] ss:$8 sm:$0xf0]   ;;  %5513 = vst.msk [vmem:[%s13127_s1 + $0x30] sm:$0xff] %vm6_vm1, %v58_v42   ;;  %5501 = vst.msk [vmem:[%s13127_s1 + $0x10] sm:$0xff] %vm6_vm1, %v22_v47   ;;  %1262 = vrot.lane.b32.xlu0 %v1261_v40, %s7029_s14  ;;  %v658_v53 = vpop.permute.xlu1 %657  }
  0x83   :  { %v5884_v48 = vld [vmem:[%s13126_s0 + $0x306] ss:$8 sm:$0xf]   ;;  %v5535_v49 = vld [vmem:[%s13126_s0 + $0x380] ss:$8 sm:$0xf]   ;;  %v1283_v54 = vsel %vm4_vm0, %v5877_v46, %v5876_v45 }
  0x84   :  { %v5536_v51 = vld [vmem:[%s13126_s0 + $0x380] ss:$8 sm:$0xf0]   ;;  %v5885_v55 = vld [vmem:[%s13126_s0 + $0x306] ss:$8 sm:$0xf0]   ;;  %v647_v58 = vpop.permute.xlu0 %646   ;;  %1294 = vrot.lane.b32.xlu1 %v1293_v50, %s7030_s3 }
  0x85   :  { %v5523_v52 = vld [vmem:[%s13126_s0 + $0x280] ss:$8 sm:$0xf]   ;;  %v130_v56 = vsel %vm4_vm0, %v5536_v51, %v5535_v49  ;;  %5707 = vst.msk [vmem:[%s13127_s1 + $0xe0] sm:$0xff] %vm583_vm2, %v658_v53   ;;  %5704 = vst.msk [vmem:[%s13127_s1 + $0xc0] sm:$0xff] %vm583_vm2, %v647_v58   ;;  %v1315_v0 = vsel %vm4_vm0, %v5885_v55, %v5884_v48 }
  0x86   :  { %v5524_v57 = vld [vmem:[%s13126_s0 + $0x280] ss:$8 sm:$0xf0]   ;;  %v5881_v59 = vld [vmem:[%s13126_s0 + $0x206] ss:$8 sm:$0xf]   ;;  %1284 = vrot.lane.b32.xlu0 %v1283_v54, %s7030_s3  ;;  %v680_v3 = vpop.permute.xlu1 %679  }
  0x87   :  { %v5882_v60 = vld [vmem:[%s13126_s0 + $0x206] ss:$8 sm:$0xf0]   ;;  %5537 = vst.msk [vmem:[%s13127_s1 + $0x70] sm:$0xff] %vm6_vm1, %v130_v56   ;;  %v94_v61 = vsel %vm4_vm0, %v5524_v57, %v5523_v52 }
  0x88   :  { %v5890_v62 = vld [vmem:[%s13126_s0 + $0x506] ss:$8 sm:$0xf]   ;;  %5525 = vst.msk [vmem:[%s13127_s1 + $0x50] sm:$0xff] %vm6_vm1, %v94_v61   ;;  %v1304_v4 = vsel %vm4_vm0, %v5882_v60, %v5881_v59  ;;  %v669_v8 = vpop.permute.xlu0 %668   ;;  %1316 = vrot.lane.b32.xlu1 %v1315_v0, %s7030_s3 }
  0x89   :  { %v5559_v63 = vld [vmem:[%s13126_s0 + $0x580] ss:$8 sm:$0xf]   ;;  %v5891_v5 = vld [vmem:[%s13126_s0 + $0x506] ss:$8 sm:$0xf0]  }
  0x8a   :  { %v5560_v1 = vld [vmem:[%s13126_s0 + $0x580] ss:$8 sm:$0xf0]   ;;  %5713 = vst.msk [vmem:[%s13127_s1 + $0x120] sm:$0xff] %vm583_vm2, %v680_v3   ;;  %5710 = vst.msk [vmem:[%s13127_s1 + $0x100] sm:$0xff] %vm583_vm2, %v669_v8   ;;  %1305 = vrot.lane.b32.xlu0 %v1304_v4, %s7030_s3  ;;  %v1337_v14 = vsel %vm4_vm0, %v5891_v5, %v5890_v62  ;;  %v702_v17 = vpop.permute.xlu1 %701  }
  0x8b   :  { %v5547_v2 = vld [vmem:[%s13126_s0 + $0x480] ss:$8 sm:$0xf]   ;;  %v202_v6 = vsel %vm4_vm0, %v5560_v1, %v5559_v63  ;;  %v5887_v9 = vld [vmem:[%s13126_s0 + $0x406] ss:$8 sm:$0xf]  }
  0x8c   :  { %v5548_v7 = vld [vmem:[%s13126_s0 + $0x480] ss:$8 sm:$0xf0]   ;;  %v5888_v10 = vld [vmem:[%s13126_s0 + $0x406] ss:$8 sm:$0xf0]   ;;  %v691_v22 = vpop.permute.xlu0 %690   ;;  %1338 = vrot.lane.b32.xlu1 %v1337_v14, %s7030_s3 }
  0x8d   :  { %5561 = vst.msk [vmem:[%s13127_s1 + $0xb0] sm:$0xff] %vm6_vm1, %v202_v6   ;;  %v166_v11 = vsel %vm4_vm0, %v5548_v7, %v5547_v2  ;;  %v5896_v12 = vld [vmem:[%s13126_s0 + $0x706] ss:$8 sm:$0xf]   ;;  %v1326_v18 = vsel %vm4_vm0, %v5888_v10, %v5887_v9 }
  0x8e   :  { %5549 = vst.msk [vmem:[%s13127_s1 + $0x90] sm:$0xff] %vm6_vm1, %v166_v11   ;;  %v5583_v13 = vld [vmem:[%s13126_s0 + $0x780] ss:$8 sm:$0xf]   ;;  %1327 = vrot.lane.b32.xlu0 %v1326_v18, %s7030_s3  ;;  %v724_v31 = vpop.permute.xlu1 %723  }
  0x8f   :  { %v5584_v15 = vld [vmem:[%s13126_s0 + $0x780] ss:$8 sm:$0xf0]   ;;  %v5897_v19 = vld [vmem:[%s13126_s0 + $0x706] ss:$8 sm:$0xf0]  }
  0x90   :  { %v5571_v16 = vld [vmem:[%s13126_s0 + $0x680] ss:$8 sm:$0xf]   ;;  %v274_v20 = vsel %vm4_vm0, %v5584_v15, %v5583_v13  ;;  %5719 = vst.msk [vmem:[%s13127_s1 + $0x160] sm:$0xff] %vm583_vm2, %v702_v17   ;;  %5716 = vst.msk [vmem:[%s13127_s1 + $0x140] sm:$0xff] %vm583_vm2, %v691_v22   ;;  %v1359_v28 = vsel %vm4_vm0, %v5897_v19, %v5896_v12  ;;  %v713_v36 = vpop.permute.xlu0 %712  }
  0x91   :  { %v5572_v21 = vld [vmem:[%s13126_s0 + $0x680] ss:$8 sm:$0xf0]   ;;  %v5893_v23 = vld [vmem:[%s13126_s0 + $0x606] ss:$8 sm:$0xf]   ;;  %1360 = vrot.lane.b32.xlu1 %v1359_v28, %s7030_s3 }
  0x92   :  { %v5894_v24 = vld [vmem:[%s13126_s0 + $0x606] ss:$8 sm:$0xf0]   ;;  %5585 = vst.msk [vmem:[%s13127_s1 + $0xf0] sm:$0xff] %vm6_vm1, %v274_v20   ;;  %v238_v25 = vsel %vm4_vm0, %v5572_v21, %v5571_v16  ;;  %v746_v45 = vpop.permute.xlu1 %745  }
  0x93   :  { %v5902_v26 = vld [vmem:[%s13126_s0 + $0x906] ss:$8 sm:$0xf]   ;;  %5573 = vst.msk [vmem:[%s13127_s1 + $0xd0] sm:$0xff] %vm6_vm1, %v238_v25   ;;  %v1348_v32 = vsel %vm4_vm0, %v5894_v24, %v5893_v23 }
  0x94   :  { %v5607_v27 = vld [vmem:[%s13126_s0 + $0x980] ss:$8 sm:$0xf]   ;;  %v5903_v33 = vld [vmem:[%s13126_s0 + $0x906] ss:$8 sm:$0xf0]   ;;  %1349 = vrot.lane.b32.xlu0 %v1348_v32, %s7030_s3  ;;  %v735_v50 = vpop.permute.xlu0 %734  }
  0x95   :  { %v5608_v29 = vld [vmem:[%s13126_s0 + $0x980] ss:$8 sm:$0xf0]   ;;  %5725 = vst.msk [vmem:[%s13127_s1 + $0x1a0] sm:$0xff] %vm583_vm2, %v724_v31   ;;  %5722 = vst.msk [vmem:[%s13127_s1 + $0x180] sm:$0xff] %vm583_vm2, %v713_v36   ;;  %v1381_v42 = vsel %vm4_vm0, %v5903_v33, %v5902_v26 }
  0x96   :  { %v5595_v30 = vld [vmem:[%s13126_s0 + $0x880] ss:$8 sm:$0xf]   ;;  %v346_v34 = vsel %vm4_vm0, %v5608_v29, %v5607_v27  ;;  %v5899_v37 = vld [vmem:[%s13126_s0 + $0x806] ss:$8 sm:$0xf]   ;;  %1382 = vrot.lane.b32.xlu1 %v1381_v42, %s7030_s3  ;;  %v768_v59 = vpop.permute.xlu1 %767  }
  0x97   :  { %v5596_v35 = vld [vmem:[%s13126_s0 + $0x880] ss:$8 sm:$0xf0]   ;;  %v5900_v38 = vld [vmem:[%s13126_s0 + $0x806] ss:$8 sm:$0xf0]  }
  0x98   :  { %5609 = vst.msk [vmem:[%s13127_s1 + $0x130] sm:$0xff] %vm6_vm1, %v346_v34   ;;  %v310_v39 = vsel %vm4_vm0, %v5596_v35, %v5595_v30  ;;  %v5908_v40 = vld [vmem:[%s13126_s0 + $0xb06] ss:$8 sm:$0xf]   ;;  %v1370_v46 = vsel %vm4_vm0, %v5900_v38, %v5899_v37  ;;  %v757_v0 = vpop.permute.xlu0 %756  }
  0x99   :  { %5597 = vst.msk [vmem:[%s13127_s1 + $0x110] sm:$0xff] %vm6_vm1, %v310_v39   ;;  %v5631_v41 = vld [vmem:[%s13126_s0 + $0xb80] ss:$8 sm:$0xf]   ;;  %1371 = vrot.lane.b32.xlu0 %v1370_v46, %s7030_s3 }
  0x9a   :  { %v5632_v43 = vld [vmem:[%s13126_s0 + $0xb80] ss:$8 sm:$0xf0]   ;;  %v5909_v47 = vld [vmem:[%s13126_s0 + $0xb06] ss:$8 sm:$0xf0]   ;;  %v790_v9 = vpop.permute.xlu1 %789  }
  0x9b   :  { %v5619_v44 = vld [vmem:[%s13126_s0 + $0xa80] ss:$8 sm:$0xf]   ;;  %v418_v48 = vsel %vm4_vm0, %v5632_v43, %v5631_v41  ;;  %5731 = vst.msk [vmem:[%s13127_s1 + $0x1e0] sm:$0xff] %vm583_vm2, %v746_v45   ;;  %5728 = vst.msk [vmem:[%s13127_s1 + $0x1c0] sm:$0xff] %vm583_vm2, %v735_v50   ;;  %v1403_v56 = vsel %vm4_vm0, %v5909_v47, %v5908_v40 }
  0x9c   :  { %v5620_v49 = vld [vmem:[%s13126_s0 + $0xa80] ss:$8 sm:$0xf0]   ;;  %v5905_v51 = vld [vmem:[%s13126_s0 + $0xa06] ss:$8 sm:$0xf]   ;;  %1404 = vrot.lane.b32.xlu1 %v1403_v56, %s7030_s3  ;;  %v779_v14 = vpop.permute.xlu0 %778  }
  0x9d   :  { %v5906_v52 = vld [vmem:[%s13126_s0 + $0xa06] ss:$8 sm:$0xf0]   ;;  %5633 = vst.msk [vmem:[%s13127_s1 + $0x170] sm:$0xff] %vm6_vm1, %v418_v48   ;;  %v382_v53 = vsel %vm4_vm0, %v5620_v49, %v5619_v44 }
  0x9e   :  { %v5914_v54 = vld [vmem:[%s13126_s0 + $0xd06] ss:$8 sm:$0xf]   ;;  %5621 = vst.msk [vmem:[%s13127_s1 + $0x150] sm:$0xff] %vm6_vm1, %v382_v53   ;;  %v1392_v60 = vsel %vm4_vm0, %v5906_v52, %v5905_v51  ;;  %v812_v23 = vpop.permute.xlu1 %811  }
  0x9f   :  { %v5655_v55 = vld [vmem:[%s13126_s0 + $0xd80] ss:$8 sm:$0xf]   ;;  %v5915_v61 = vld [vmem:[%s13126_s0 + $0xd06] ss:$8 sm:$0xf0]   ;;  %1393 = vrot.lane.b32.xlu0 %v1392_v60, %s7030_s3 }
  0xa0   :  { %v5656_v57 = vld [vmem:[%s13126_s0 + $0xd80] ss:$8 sm:$0xf0]   ;;  %5737 = vst.msk [vmem:[%s13127_s1 + $0x28] sm:$0xff] %vm583_vm2, %v768_v59   ;;  %5734 = vst.msk [vmem:[%s13127_s1 + $0x8] sm:$0xff] %vm583_vm2, %v757_v0   ;;  %v1425_v6 = vsel %vm4_vm0, %v5915_v61, %v5914_v54  ;;  %v801_v28 = vpop.permute.xlu0 %800  }
  0xa1   :  { %v5643_v58 = vld [vmem:[%s13126_s0 + $0xc80] ss:$8 sm:$0xf]   ;;  %v490_v62 = vsel %vm4_vm0, %v5656_v57, %v5655_v55  ;;  %v5911_v1 = vld [vmem:[%s13126_s0 + $0xc06] ss:$8 sm:$0xf]   ;;  %1426 = vrot.lane.b32.xlu1 %v1425_v6, %s7030_s3 }
  0xa2   :  { %v5644_v63 = vld [vmem:[%s13126_s0 + $0xc80] ss:$8 sm:$0xf0]   ;;  %v5912_v2 = vld [vmem:[%s13126_s0 + $0xc06] ss:$8 sm:$0xf0]   ;;  %v834_v37 = vpop.permute.xlu1 %833  }
  0xa3   :  { %5657 = vst.msk [vmem:[%s13127_s1 + $0x1b0] sm:$0xff] %vm6_vm1, %v490_v62   ;;  %v454_v3 = vsel %vm4_vm0, %v5644_v63, %v5643_v58  ;;  %v5920_v4 = vld [vmem:[%s13126_s0 + $0xf06] ss:$8 sm:$0xf]   ;;  %v1414_v10 = vsel %vm4_vm0, %v5912_v2, %v5911_v1 }
  0xa4   :  { %5645 = vst.msk [vmem:[%s13127_s1 + $0x190] sm:$0xff] %vm6_vm1, %v454_v3   ;;  %v5679_v5 = vld [vmem:[%s13126_s0 + $0xf80] ss:$8 sm:$0xf]   ;;  %1415 = vrot.lane.b32.xlu0 %v1414_v10, %s7030_s3  ;;  %v823_v42 = vpop.permute.xlu0 %822  }
  0xa5   :  { %v5680_v7 = vld [vmem:[%s13126_s0 + $0xf80] ss:$8 sm:$0xf0]   ;;  %v5921_v11 = vld [vmem:[%s13126_s0 + $0xf06] ss:$8 sm:$0xf0]  }
  0xa6   :  { %v5667_v8 = vld [vmem:[%s13126_s0 + $0xe80] ss:$8 sm:$0xf]   ;;  %v562_v12 = vsel %vm4_vm0, %v5680_v7, %v5679_v5  ;;  %5743 = vst.msk [vmem:[%s13127_s1 + $0x68] sm:$0xff] %vm583_vm2, %v790_v9   ;;  %5740 = vst.msk [vmem:[%s13127_s1 + $0x48] sm:$0xff] %vm583_vm2, %v779_v14   ;;  %v1447_v20 = vsel %vm4_vm0, %v5921_v11, %v5920_v4  ;;  %v856_v51 = vpop.permute.xlu1 %855  }
  0xa7   :  { %v5668_v13 = vld [vmem:[%s13126_s0 + $0xe80] ss:$8 sm:$0xf0]   ;;  %v5917_v15 = vld [vmem:[%s13126_s0 + $0xe06] ss:$8 sm:$0xf]   ;;  %1448 = vrot.lane.b32.xlu1 %v1447_v20, %s7030_s3 }
  0xa8   :  { %v5918_v16 = vld [vmem:[%s13126_s0 + $0xe06] ss:$8 sm:$0xf0]   ;;  %5681 = vst.msk [vmem:[%s13127_s1 + $0x1f0] sm:$0xff] %vm6_vm1, %v562_v12   ;;  %v526_v17 = vsel %vm4_vm0, %v5668_v13, %v5667_v8  ;;  %v845_v56 = vpop.permute.xlu0 %844  }
  0xa9   :  { %v5926_v18 = vld [vmem:[%s13126_s0 + $0x146] ss:$8 sm:$0xf]   ;;  %5669 = vst.msk [vmem:[%s13127_s1 + $0x1d0] sm:$0xff] %vm6_vm1, %v526_v17   ;;  %v1436_v24 = vsel %vm4_vm0, %v5918_v16, %v5917_v15 }
  0xaa   :  { %v5514_v19 = vld [vmem:[%s13126_s0 + $0x1c0] ss:$8 sm:$0xf]   ;;  %v5927_v25 = vld [vmem:[%s13126_s0 + $0x146] ss:$8 sm:$0xf0]   ;;  %1437 = vrot.lane.b32.xlu0 %v1436_v24, %s7030_s3  ;;  %v878_v1 = vpop.permute.xlu1 %877  }
  0xab   :  { %v5515_v21 = vld [vmem:[%s13126_s0 + $0x1c0] ss:$8 sm:$0xf0]   ;;  %5749 = vst.msk [vmem:[%s13127_s1 + $0xa8] sm:$0xff] %vm583_vm2, %v812_v23   ;;  %5746 = vst.msk [vmem:[%s13127_s1 + $0x88] sm:$0xff] %vm583_vm2, %v801_v28   ;;  %v1469_v34 = vsel %vm4_vm0, %v5927_v25, %v5926_v18 }
  0xac   :  { %v5502_v22 = vld [vmem:[%s13126_s0 + $0xc0] ss:$8 sm:$0xf]   ;;  %v67_v26 = vsel %vm4_vm0, %v5515_v21, %v5514_v19  ;;  %v5923_v29 = vld [vmem:[%s13126_s0 + $0x46] ss:$8 sm:$0xf]   ;;  %1470 = vrot.lane.b32.xlu1 %v1469_v34, %s7030_s3  ;;  %v867_v6 = vpop.permute.xlu0 %866  }
  0xad   :  { %v5503_v27 = vld [vmem:[%s13126_s0 + $0xc0] ss:$8 sm:$0xf0]   ;;  %v5924_v30 = vld [vmem:[%s13126_s0 + $0x46] ss:$8 sm:$0xf0]  }
  0xae   :  { %5516 = vst.msk [vmem:[%s13127_s1 + $0x38] sm:$0xff] %vm6_vm1, %v67_v26   ;;  %v31_v31 = vsel %vm4_vm0, %v5503_v27, %v5502_v22  ;;  %v5932_v32 = vld [vmem:[%s13126_s0 + $0x346] ss:$8 sm:$0xf]   ;;  %v1458_v38 = vsel %vm4_vm0, %v5924_v30, %v5923_v29  ;;  %v900_v15 = vpop.permute.xlu1 %899  }
  0xaf   :  { %5504 = vst.msk [vmem:[%s13127_s1 + $0x18] sm:$0xff] %vm6_vm1, %v31_v31   ;;  %v5538_v33 = vld [vmem:[%s13126_s0 + $0x3c0] ss:$8 sm:$0xf]   ;;  %1459 = vrot.lane.b32.xlu0 %v1458_v38, %s7030_s3 }
  0xb0   :  { %v5539_v35 = vld [vmem:[%s13126_s0 + $0x3c0] ss:$8 sm:$0xf0]   ;;  %v5933_v39 = vld [vmem:[%s13126_s0 + $0x346] ss:$8 sm:$0xf0]   ;;  %v889_v20 = vpop.permute.xlu0 %888  }
  0xb1   :  { %v5526_v36 = vld [vmem:[%s13126_s0 + $0x2c0] ss:$8 sm:$0xf]   ;;  %v139_v40 = vsel %vm4_vm0, %v5539_v35, %v5538_v33  ;;  %5755 = vst.msk [vmem:[%s13127_s1 + $0xe8] sm:$0xff] %vm583_vm2, %v834_v37   ;;  %5752 = vst.msk [vmem:[%s13127_s1 + $0xc8] sm:$0xff] %vm583_vm2, %v823_v42   ;;  %v1491_v48 = vsel %vm4_vm0, %v5933_v39, %v5932_v32 }
  0xb2   :  { %v5527_v41 = vld [vmem:[%s13126_s0 + $0x2c0] ss:$8 sm:$0xf0]   ;;  %v5929_v43 = vld [vmem:[%s13126_s0 + $0x246] ss:$8 sm:$0xf]   ;;  %1492 = vrot.lane.b32.xlu1 %v1491_v48, %s7030_s3  ;;  %v922_v29 = vpop.permute.xlu1 %921  }
  0xb3   :  { %v5930_v44 = vld [vmem:[%s13126_s0 + $0x246] ss:$8 sm:$0xf0]   ;;  %5540 = vst.msk [vmem:[%s13127_s1 + $0x78] sm:$0xff] %vm6_vm1, %v139_v40   ;;  %v103_v45 = vsel %vm4_vm0, %v5527_v41, %v5526_v36 }
  0xb4   :  { %v5938_v46 = vld [vmem:[%s13126_s0 + $0x546] ss:$8 sm:$0xf]   ;;  %5528 = vst.msk [vmem:[%s13127_s1 + $0x58] sm:$0xff] %vm6_vm1, %v103_v45   ;;  %v1480_v52 = vsel %vm4_vm0, %v5930_v44, %v5929_v43  ;;  %v911_v34 = vpop.permute.xlu0 %910  }
  0xb5   :  { %v5562_v47 = vld [vmem:[%s13126_s0 + $0x5c0] ss:$8 sm:$0xf]   ;;  %v5939_v53 = vld [vmem:[%s13126_s0 + $0x546] ss:$8 sm:$0xf0]   ;;  %1481 = vrot.lane.b32.xlu0 %v1480_v52, %s7030_s3 }
  0xb6   :  { %v5563_v49 = vld [vmem:[%s13126_s0 + $0x5c0] ss:$8 sm:$0xf0]   ;;  %5761 = vst.msk [vmem:[%s13127_s1 + $0x128] sm:$0xff] %vm583_vm2, %v856_v51   ;;  %5758 = vst.msk [vmem:[%s13127_s1 + $0x108] sm:$0xff] %vm583_vm2, %v845_v56   ;;  %v1513_v62 = vsel %vm4_vm0, %v5939_v53, %v5938_v46  ;;  %v944_v43 = vpop.permute.xlu1 %943  }
  0xb7   :  { %v5550_v50 = vld [vmem:[%s13126_s0 + $0x4c0] ss:$8 sm:$0xf]   ;;  %v211_v54 = vsel %vm4_vm0, %v5563_v49, %v5562_v47  ;;  %v5935_v57 = vld [vmem:[%s13126_s0 + $0x446] ss:$8 sm:$0xf]   ;;  %1514 = vrot.lane.b32.xlu1 %v1513_v62, %s7030_s3 }
  0xb8   :  { %v5551_v55 = vld [vmem:[%s13126_s0 + $0x4c0] ss:$8 sm:$0xf0]   ;;  %v5936_v58 = vld [vmem:[%s13126_s0 + $0x446] ss:$8 sm:$0xf0]   ;;  %v933_v48 = vpop.permute.xlu0 %932  }
  0xb9   :  { %5564 = vst.msk [vmem:[%s13127_s1 + $0xb8] sm:$0xff] %vm6_vm1, %v211_v54   ;;  %v175_v59 = vsel %vm4_vm0, %v5551_v55, %v5550_v50  ;;  %v5944_v60 = vld [vmem:[%s13126_s0 + $0x746] ss:$8 sm:$0xf]   ;;  %v1502_v2 = vsel %vm4_vm0, %v5936_v58, %v5935_v57 }
  0xba   :  { %5552 = vst.msk [vmem:[%s13127_s1 + $0x98] sm:$0xff] %vm6_vm1, %v175_v59   ;;  %v5586_v61 = vld [vmem:[%s13126_s0 + $0x7c0] ss:$8 sm:$0xf]   ;;  %1503 = vrot.lane.b32.xlu0 %v1502_v2, %s7030_s3  ;;  %v966_v57 = vpop.permute.xlu1 %965  }
  0xbb   :  { %v5587_v63 = vld [vmem:[%s13126_s0 + $0x7c0] ss:$8 sm:$0xf0]   ;;  %v5945_v3 = vld [vmem:[%s13126_s0 + $0x746] ss:$8 sm:$0xf0]  }
  0xbc   :  { %v5574_v0 = vld [vmem:[%s13126_s0 + $0x6c0] ss:$8 sm:$0xf]   ;;  %v283_v4 = vsel %vm4_vm0, %v5587_v63, %v5586_v61  ;;  %5767 = vst.msk [vmem:[%s13127_s1 + $0x168] sm:$0xff] %vm583_vm2, %v878_v1   ;;  %5764 = vst.msk [vmem:[%s13127_s1 + $0x148] sm:$0xff] %vm583_vm2, %v867_v6   ;;  %v1535_v12 = vsel %vm4_vm0, %v5945_v3, %v5944_v60  ;;  %v955_v62 = vpop.permute.xlu0 %954  }
  0xbd   :  { %v5575_v5 = vld [vmem:[%s13126_s0 + $0x6c0] ss:$8 sm:$0xf0]   ;;  %v5941_v7 = vld [vmem:[%s13126_s0 + $0x646] ss:$8 sm:$0xf]   ;;  %1536 = vrot.lane.b32.xlu1 %v1535_v12, %s7030_s3 }
  0xbe   :  { %v5942_v8 = vld [vmem:[%s13126_s0 + $0x646] ss:$8 sm:$0xf0]   ;;  %5588 = vst.msk [vmem:[%s13127_s1 + $0xf8] sm:$0xff] %vm6_vm1, %v283_v4   ;;  %v247_v9 = vsel %vm4_vm0, %v5575_v5, %v5574_v0  ;;  %v988_v3 = vpop.permute.xlu1 %987  }
  0xbf   :  { %v5950_v10 = vld [vmem:[%s13126_s0 + $0x946] ss:$8 sm:$0xf]   ;;  %5576 = vst.msk [vmem:[%s13127_s1 + $0xd8] sm:$0xff] %vm6_vm1, %v247_v9   ;;  %v1524_v16 = vsel %vm4_vm0, %v5942_v8, %v5941_v7 }
  0xc0   :  { %v5610_v11 = vld [vmem:[%s13126_s0 + $0x9c0] ss:$8 sm:$0xf]   ;;  %v5951_v17 = vld [vmem:[%s13126_s0 + $0x946] ss:$8 sm:$0xf0]   ;;  %1525 = vrot.lane.b32.xlu0 %v1524_v16, %s7030_s3  ;;  %v977_v7 = vpop.permute.xlu0 %976  }
  0xc1   :  { %v5611_v13 = vld [vmem:[%s13126_s0 + $0x9c0] ss:$8 sm:$0xf0]   ;;  %5773 = vst.msk [vmem:[%s13127_s1 + $0x1a8] sm:$0xff] %vm583_vm2, %v900_v15   ;;  %5770 = vst.msk [vmem:[%s13127_s1 + $0x188] sm:$0xff] %vm583_vm2, %v889_v20   ;;  %v1557_v26 = vsel %vm4_vm0, %v5951_v17, %v5950_v10 }
  0xc2   :  { %v5598_v14 = vld [vmem:[%s13126_s0 + $0x8c0] ss:$8 sm:$0xf]   ;;  %v355_v18 = vsel %vm4_vm0, %v5611_v13, %v5610_v11  ;;  %v5947_v21 = vld [vmem:[%s13126_s0 + $0x846] ss:$8 sm:$0xf]   ;;  %1558 = vrot.lane.b32.xlu1 %v1557_v26, %s7030_s3  ;;  %v1010_v11 = vpop.permute.xlu1 %1009  }
  0xc3   :  { %v5599_v19 = vld [vmem:[%s13126_s0 + $0x8c0] ss:$8 sm:$0xf0]   ;;  %v5948_v22 = vld [vmem:[%s13126_s0 + $0x846] ss:$8 sm:$0xf0]  }
  0xc4   :  { %5612 = vst.msk [vmem:[%s13127_s1 + $0x138] sm:$0xff] %vm6_vm1, %v355_v18   ;;  %v319_v23 = vsel %vm4_vm0, %v5599_v19, %v5598_v14  ;;  %v5956_v24 = vld [vmem:[%s13126_s0 + $0xb46] ss:$8 sm:$0xf]   ;;  %v1546_v30 = vsel %vm4_vm0, %v5948_v22, %v5947_v21  ;;  %v999_v15 = vpop.permute.xlu0 %998  }
  0xc5   :  { %5600 = vst.msk [vmem:[%s13127_s1 + $0x118] sm:$0xff] %vm6_vm1, %v319_v23   ;;  %v5634_v25 = vld [vmem:[%s13126_s0 + $0xbc0] ss:$8 sm:$0xf]   ;;  %1547 = vrot.lane.b32.xlu0 %v1546_v30, %s7030_s3 }
  0xc6   :  { %v5635_v27 = vld [vmem:[%s13126_s0 + $0xbc0] ss:$8 sm:$0xf0]   ;;  %v5957_v31 = vld [vmem:[%s13126_s0 + $0xb46] ss:$8 sm:$0xf0]   ;;  %v1032_v19 = vpop.permute.xlu1 %1031  }
  0xc7   :  { %v5622_v28 = vld [vmem:[%s13126_s0 + $0xac0] ss:$8 sm:$0xf]   ;;  %v427_v32 = vsel %vm4_vm0, %v5635_v27, %v5634_v25  ;;  %5779 = vst.msk [vmem:[%s13127_s1 + $0x1e8] sm:$0xff] %vm583_vm2, %v922_v29   ;;  %5776 = vst.msk [vmem:[%s13127_s1 + $0x1c8] sm:$0xff] %vm583_vm2, %v911_v34   ;;  %v1579_v40 = vsel %vm4_vm0, %v5957_v31, %v5956_v24 }
  0xc8   :  { %v5623_v33 = vld [vmem:[%s13126_s0 + $0xac0] ss:$8 sm:$0xf0]   ;;  %v5953_v35 = vld [vmem:[%s13126_s0 + $0xa46] ss:$8 sm:$0xf]   ;;  %1580 = vrot.lane.b32.xlu1 %v1579_v40, %s7030_s3  ;;  %v1021_v23 = vpop.permute.xlu0 %1020  }
  0xc9   :  { %v5954_v36 = vld [vmem:[%s13126_s0 + $0xa46] ss:$8 sm:$0xf0]   ;;  %5636 = vst.msk [vmem:[%s13127_s1 + $0x178] sm:$0xff] %vm6_vm1, %v427_v32   ;;  %v391_v37 = vsel %vm4_vm0, %v5623_v33, %v5622_v28 }
  0xca   :  { %v5962_v38 = vld [vmem:[%s13126_s0 + $0xd46] ss:$8 sm:$0xf]   ;;  %5624 = vst.msk [vmem:[%s13127_s1 + $0x158] sm:$0xff] %vm6_vm1, %v391_v37   ;;  %v1568_v44 = vsel %vm4_vm0, %v5954_v36, %v5953_v35  ;;  %v1054_v27 = vpop.permute.xlu1 %1053  }
  0xcb   :  { %v5658_v39 = vld [vmem:[%s13126_s0 + $0xdc0] ss:$8 sm:$0xf]   ;;  %v5963_v45 = vld [vmem:[%s13126_s0 + $0xd46] ss:$8 sm:$0xf0]   ;;  %1569 = vrot.lane.b32.xlu0 %v1568_v44, %s7030_s3 }
  0xcc   :  { %v5659_v41 = vld [vmem:[%s13126_s0 + $0xdc0] ss:$8 sm:$0xf0]   ;;  %5785 = vst.msk [vmem:[%s13127_s1 + $0x30] sm:$0xff] %vm583_vm2, %v944_v43   ;;  %5782 = vst.msk [vmem:[%s13127_s1 + $0x10] sm:$0xff] %vm583_vm2, %v933_v48   ;;  %v1601_v54 = vsel %vm4_vm0, %v5963_v45, %v5962_v38  ;;  %v1043_v31 = vpop.permute.xlu0 %1042  }
  0xcd   :  { %v5646_v42 = vld [vmem:[%s13126_s0 + $0xcc0] ss:$8 sm:$0xf]   ;;  %v499_v46 = vsel %vm4_vm0, %v5659_v41, %v5658_v39  ;;  %v5959_v49 = vld [vmem:[%s13126_s0 + $0xc46] ss:$8 sm:$0xf]   ;;  %1602 = vrot.lane.b32.xlu1 %v1601_v54, %s7030_s3 }
  0xce   :  { %v5647_v47 = vld [vmem:[%s13126_s0 + $0xcc0] ss:$8 sm:$0xf0]   ;;  %v5960_v50 = vld [vmem:[%s13126_s0 + $0xc46] ss:$8 sm:$0xf0]   ;;  %v1076_v35 = vpop.permute.xlu1 %1075  }
  0xcf   :  { %5660 = vst.msk [vmem:[%s13127_s1 + $0x1b8] sm:$0xff] %vm6_vm1, %v499_v46   ;;  %v463_v51 = vsel %vm4_vm0, %v5647_v47, %v5646_v42  ;;  %v5968_v52 = vld [vmem:[%s13126_s0 + $0xf46] ss:$8 sm:$0xf]   ;;  %v1590_v58 = vsel %vm4_vm0, %v5960_v50, %v5959_v49 }
  0xd0   :  { %5648 = vst.msk [vmem:[%s13127_s1 + $0x198] sm:$0xff] %vm6_vm1, %v463_v51   ;;  %v5682_v53 = vld [vmem:[%s13126_s0 + $0xfc0] ss:$8 sm:$0xf]   ;;  %1591 = vrot.lane.b32.xlu0 %v1590_v58, %s7030_s3  ;;  %v1065_v39 = vpop.permute.xlu0 %1064  }
  0xd1   :  { %v5683_v55 = vld [vmem:[%s13126_s0 + $0xfc0] ss:$8 sm:$0xf0]   ;;  %v5969_v59 = vld [vmem:[%s13126_s0 + $0xf46] ss:$8 sm:$0xf0]  }
  0xd2   :  { %v5670_v56 = vld [vmem:[%s13126_s0 + $0xec0] ss:$8 sm:$0xf]   ;;  %v571_v60 = vsel %vm4_vm0, %v5683_v55, %v5682_v53  ;;  %5791 = vst.msk [vmem:[%s13127_s1 + $0x70] sm:$0xff] %vm583_vm2, %v966_v57   ;;  %5788 = vst.msk [vmem:[%s13127_s1 + $0x50] sm:$0xff] %vm583_vm2, %v955_v62   ;;  %v1623_v2 = vsel %vm4_vm0, %v5969_v59, %v5968_v52  ;;  %v1098_v43 = vpop.permute.xlu1 %1097  }
  0xd3   :  { %v5671_v61 = vld [vmem:[%s13126_s0 + $0xec0] ss:$8 sm:$0xf0]   ;;  %v5965_v63 = vld [vmem:[%s13126_s0 + $0xe46] ss:$8 sm:$0xf]   ;;  %1624 = vrot.lane.b32.xlu1 %v1623_v2, %s7030_s3 }
  0xd4   :  { %v5966_v0 = vld [vmem:[%s13126_s0 + $0xe46] ss:$8 sm:$0xf0]   ;;  %5684 = vst.msk [vmem:[%s13127_s1 + $0x1f8] sm:$0xff] %vm6_vm1, %v571_v60   ;;  %v535_v1 = vsel %vm4_vm0, %v5671_v61, %v5670_v56  ;;  %v1087_v47 = vpop.permute.xlu0 %1086  }
  0xd5   :  { %5672 = vst.msk [vmem:[%s13127_s1 + $0x1d8] sm:$0xff] %vm6_vm1, %v535_v1   ;;  %v1612_v4 = vsel %vm4_vm0, %v5966_v0, %v5965_v63  ;;  %v5974_v5 = vld [vmem:[%s13126_s0 + $0x186] ss:$8 sm:$0xf]  }
  0xd6   :  { %v5975_v6 = vld [vmem:[%s13126_s0 + $0x186] ss:$8 sm:$0xf0]   ;;  %5797 = vst.msk [vmem:[%s13127_s1 + $0xb0] sm:$0xff] %vm583_vm2, %v988_v3   ;;  %5794 = vst.msk [vmem:[%s13127_s1 + $0x90] sm:$0xff] %vm583_vm2, %v977_v7   ;;  %1613 = vrot.lane.b32.xlu0 %v1612_v4, %s7030_s3  ;;  %v1120_v51 = vpop.permute.xlu1 %1119  }
  0xd7   :  { %v5971_v8 = vld [vmem:[%s13126_s0 + $0x86] ss:$8 sm:$0xf]   ;;  %v1645_v10 = vsel %vm4_vm0, %v5975_v6, %v5974_v5  ;;  %5803 = vst.msk [vmem:[%s13127_s1 + $0xf0] sm:$0xff] %vm583_vm2, %v1010_v11   ;;  %5800 = vst.msk [vmem:[%s13127_s1 + $0xd0] sm:$0xff] %vm583_vm2, %v999_v15  }
  0xd8   :  { %v5972_v9 = vld [vmem:[%s13126_s0 + $0x86] ss:$8 sm:$0xf0]   ;;  %1646 = vrot.lane.b32.xlu1 %v1645_v10, %s7030_s3  ;;  %5809 = vst.msk [vmem:[%s13127_s1 + $0x130] sm:$0xff] %vm583_vm2, %v1032_v19   ;;  %5806 = vst.msk [vmem:[%s13127_s1 + $0x110] sm:$0xff] %vm583_vm2, %v1021_v23   ;;  %v1109_v55 = vpop.permute.xlu0 %1108  }
  0xd9   :  { %v1634_v12 = vsel %vm4_vm0, %v5972_v9, %v5971_v8  ;;  %v5980_v13 = vld [vmem:[%s13126_s0 + $0x386] ss:$8 sm:$0xf]   ;;  %5815 = vst.msk [vmem:[%s13127_s1 + $0x170] sm:$0xff] %vm583_vm2, %v1054_v27   ;;  %5812 = vst.msk [vmem:[%s13127_s1 + $0x150] sm:$0xff] %vm583_vm2, %v1043_v31  }
  0xda   :  { %v5981_v14 = vld [vmem:[%s13126_s0 + $0x386] ss:$8 sm:$0xf0]   ;;  %1635 = vrot.lane.b32.xlu0 %v1634_v12, %s7030_s3  ;;  %5821 = vst.msk [vmem:[%s13127_s1 + $0x1b0] sm:$0xff] %vm583_vm2, %v1076_v35   ;;  %5818 = vst.msk [vmem:[%s13127_s1 + $0x190] sm:$0xff] %vm583_vm2, %v1065_v39   ;;  %v1142_v59 = vpop.permute.xlu1 %1141  }
  0xdb   :  { %v5977_v16 = vld [vmem:[%s13126_s0 + $0x286] ss:$8 sm:$0xf]   ;;  %v1667_v18 = vsel %vm4_vm0, %v5981_v14, %v5980_v13  ;;  %5827 = vst.msk [vmem:[%s13127_s1 + $0x1f0] sm:$0xff] %vm583_vm2, %v1098_v43   ;;  %5824 = vst.msk [vmem:[%s13127_s1 + $0x1d0] sm:$0xff] %vm583_vm2, %v1087_v47  }
  0xdc   :  { %v5978_v17 = vld [vmem:[%s13126_s0 + $0x286] ss:$8 sm:$0xf0]   ;;  %1668 = vrot.lane.b32.xlu1 %v1667_v18, %s7030_s3  ;;  %5833 = vst.msk [vmem:[%s13127_s1 + $0x38] sm:$0xff] %vm583_vm2, %v1120_v51   ;;  %5830 = vst.msk [vmem:[%s13127_s1 + $0x18] sm:$0xff] %vm583_vm2, %v1109_v55   ;;  %v1131_v63 = vpop.permute.xlu0 %1130  }
  0xdd   :  { %v1656_v20 = vsel %vm4_vm0, %v5978_v17, %v5977_v16  ;;  %v5986_v21 = vld [vmem:[%s13126_s0 + $0x586] ss:$8 sm:$0xf]   ;;  %5839 = vst.msk [vmem:[%s13127_s1 + $0x78] sm:$0xff] %vm583_vm2, %v1142_v59   ;;  %5836 = vst.msk [vmem:[%s13127_s1 + $0x58] sm:$0xff] %vm583_vm2, %v1131_v63  }
  0xde   :  { %v5987_v22 = vld [vmem:[%s13126_s0 + $0x586] ss:$8 sm:$0xf0]   ;;  %1657 = vrot.lane.b32.xlu0 %v1656_v20, %s7030_s3  ;;  %v1164_v3 = vpop.permute.xlu1 %1163  }
  0xdf   :  { %v5983_v24 = vld [vmem:[%s13126_s0 + $0x486] ss:$8 sm:$0xf]   ;;  %v1689_v26 = vsel %vm4_vm0, %v5987_v22, %v5986_v21  ;;  %5845 = vst.msk [vmem:[%s13127_s1 + $0xb8] sm:$0xff] %vm583_vm2, %v1164_v3  }
  0xe0   :  { %v5984_v25 = vld [vmem:[%s13126_s0 + $0x486] ss:$8 sm:$0xf0]   ;;  %1690 = vrot.lane.b32.xlu1 %v1689_v26, %s7030_s3  ;;  %v1153_v7 = vpop.permute.xlu0 %1152  }
  0xe1   :  { %v1678_v28 = vsel %vm4_vm0, %v5984_v25, %v5983_v24  ;;  %v5992_v29 = vld [vmem:[%s13126_s0 + $0x786] ss:$8 sm:$0xf]   ;;  %5842 = vst.msk [vmem:[%s13127_s1 + $0x98] sm:$0xff] %vm583_vm2, %v1153_v7  }
  0xe2   :  { %v5993_v30 = vld [vmem:[%s13126_s0 + $0x786] ss:$8 sm:$0xf0]   ;;  %1679 = vrot.lane.b32.xlu0 %v1678_v28, %s7030_s3  ;;  %v1186_v11 = vpop.permute.xlu1 %1185  }
  0xe3   :  { %v5989_v32 = vld [vmem:[%s13126_s0 + $0x686] ss:$8 sm:$0xf]   ;;  %v1711_v34 = vsel %vm4_vm0, %v5993_v30, %v5992_v29  ;;  %5851 = vst.msk [vmem:[%s13127_s1 + $0xf8] sm:$0xff] %vm583_vm2, %v1186_v11  }
  0xe4   :  { %v5990_v33 = vld [vmem:[%s13126_s0 + $0x686] ss:$8 sm:$0xf0]   ;;  %1712 = vrot.lane.b32.xlu1 %v1711_v34, %s7030_s3  ;;  %v1175_v15 = vpop.permute.xlu0 %1174  }
  0xe5   :  { %v1700_v36 = vsel %vm4_vm0, %v5990_v33, %v5989_v32  ;;  %v5998_v37 = vld [vmem:[%s13126_s0 + $0x986] ss:$8 sm:$0xf]   ;;  %5848 = vst.msk [vmem:[%s13127_s1 + $0xd8] sm:$0xff] %vm583_vm2, %v1175_v15  }
  0xe6   :  { %v5999_v38 = vld [vmem:[%s13126_s0 + $0x986] ss:$8 sm:$0xf0]   ;;  %1701 = vrot.lane.b32.xlu0 %v1700_v36, %s7030_s3  ;;  %v1208_v19 = vpop.permute.xlu1 %1207  }
  0xe7   :  { %v5995_v40 = vld [vmem:[%s13126_s0 + $0x886] ss:$8 sm:$0xf]   ;;  %v1733_v42 = vsel %vm4_vm0, %v5999_v38, %v5998_v37  ;;  %5857 = vst.msk [vmem:[%s13127_s1 + $0x138] sm:$0xff] %vm583_vm2, %v1208_v19  }
  0xe8   :  { %v5996_v41 = vld [vmem:[%s13126_s0 + $0x886] ss:$8 sm:$0xf0]   ;;  %1734 = vrot.lane.b32.xlu1 %v1733_v42, %s7030_s3  ;;  %v1197_v23 = vpop.permute.xlu0 %1196  }
  0xe9   :  { %v1722_v44 = vsel %vm4_vm0, %v5996_v41, %v5995_v40  ;;  %v6004_v45 = vld [vmem:[%s13126_s0 + $0xb86] ss:$8 sm:$0xf]   ;;  %5854 = vst.msk [vmem:[%s13127_s1 + $0x118] sm:$0xff] %vm583_vm2, %v1197_v23  }
  0xea   :  { %v6005_v46 = vld [vmem:[%s13126_s0 + $0xb86] ss:$8 sm:$0xf0]   ;;  %1723 = vrot.lane.b32.xlu0 %v1722_v44, %s7030_s3  ;;  %v1230_v27 = vpop.permute.xlu1 %1229  }
  0xeb   :  { %v6001_v48 = vld [vmem:[%s13126_s0 + $0xa86] ss:$8 sm:$0xf]   ;;  %v1755_v50 = vsel %vm4_vm0, %v6005_v46, %v6004_v45  ;;  %5863 = vst.msk [vmem:[%s13127_s1 + $0x178] sm:$0xff] %vm583_vm2, %v1230_v27  }
  0xec   :  { %v6002_v49 = vld [vmem:[%s13126_s0 + $0xa86] ss:$8 sm:$0xf0]   ;;  %1756 = vrot.lane.b32.xlu1 %v1755_v50, %s7030_s3  ;;  %v1219_v31 = vpop.permute.xlu0 %1218  }
  0xed   :  { %v1744_v52 = vsel %vm4_vm0, %v6002_v49, %v6001_v48  ;;  %v6010_v53 = vld [vmem:[%s13126_s0 + $0xd86] ss:$8 sm:$0xf]   ;;  %5860 = vst.msk [vmem:[%s13127_s1 + $0x158] sm:$0xff] %vm583_vm2, %v1219_v31  }
  0xee   :  { %v6011_v54 = vld [vmem:[%s13126_s0 + $0xd86] ss:$8 sm:$0xf0]   ;;  %1745 = vrot.lane.b32.xlu0 %v1744_v52, %s7030_s3  ;;  %v1252_v35 = vpop.permute.xlu1 %1251  }
  0xef   :  { %v6007_v56 = vld [vmem:[%s13126_s0 + $0xc86] ss:$8 sm:$0xf]   ;;  %v1777_v58 = vsel %vm4_vm0, %v6011_v54, %v6010_v53  ;;  %5869 = vst.msk [vmem:[%s13127_s1 + $0x1b8] sm:$0xff] %vm583_vm2, %v1252_v35  }
  0xf0   :  { %v6008_v57 = vld [vmem:[%s13126_s0 + $0xc86] ss:$8 sm:$0xf0]   ;;  %1778 = vrot.lane.b32.xlu1 %v1777_v58, %s7030_s3  ;;  %v1241_v39 = vpop.permute.xlu0 %1240  }
  0xf1   :  { %v1766_v60 = vsel %vm4_vm0, %v6008_v57, %v6007_v56  ;;  %v6016_v61 = vld [vmem:[%s13126_s0 + $0xf86] ss:$8 sm:$0xf]   ;;  %5866 = vst.msk [vmem:[%s13127_s1 + $0x198] sm:$0xff] %vm583_vm2, %v1241_v39  }
  0xf2   :  { %v6017_v62 = vld [vmem:[%s13126_s0 + $0xf86] ss:$8 sm:$0xf0]   ;;  %1767 = vrot.lane.b32.xlu0 %v1766_v60, %s7030_s3  ;;  %v1274_v43 = vpop.permute.xlu1 %1273  }
  0xf3   :  { %v6013_v0 = vld [vmem:[%s13126_s0 + $0xe86] ss:$8 sm:$0xf]   ;;  %v1799_v2 = vsel %vm4_vm0, %v6017_v62, %v6016_v61  ;;  %5875 = vst.msk [vmem:[%s13127_s1 + $0x1f8] sm:$0xff] %vm583_vm2, %v1274_v43  }
  0xf4   :  { %v6014_v1 = vld [vmem:[%s13126_s0 + $0xe86] ss:$8 sm:$0xf0]   ;;  %1800 = vrot.lane.b32.xlu1 %v1799_v2, %s7030_s3  ;;  %v1263_v47 = vpop.permute.xlu0 %1262  }
  0xf5   :  { %v1788_v4 = vsel %vm4_vm0, %v6014_v1, %v6013_v0  ;;  %v6022_v5 = vld [vmem:[%s13126_s0 + $0x1c6] ss:$8 sm:$0xf]   ;;  %5872 = vst.msk [vmem:[%s13127_s1 + $0x1d8] sm:$0xff] %vm583_vm2, %v1263_v47  }
  0xf6   :  { %v6023_v6 = vld [vmem:[%s13126_s0 + $0x1c6] ss:$8 sm:$0xf0]   ;;  %1789 = vrot.lane.b32.xlu0 %v1788_v4, %s7030_s3  ;;  %v1295_v51 = vpop.permute.xlu1 %1294  }
  0xf7   :  { %v6019_v8 = vld [vmem:[%s13126_s0 + $0xc6] ss:$8 sm:$0xf]   ;;  %v1821_v10 = vsel %vm4_vm0, %v6023_v6, %v6022_v5  ;;  %5880 = vst.msk [vmem:[%s13127_s1 + $0x20] sm:$0xff] %vm1286_vm3, %v1295_v51  }
  0xf8   :  { %v6020_v9 = vld [vmem:[%s13126_s0 + $0xc6] ss:$8 sm:$0xf0]   ;;  %1822 = vrot.lane.b32.xlu1 %v1821_v10, %s7030_s3  ;;  %v1285_v55 = vpop.permute.xlu0 %1284   ;;  %v6069_v5 = vld [vmem:[%s13126_s0 + $0x105] ss:$8 sm:$0xf]  }
  0xf9   :  { %v1810_v12 = vsel %vm4_vm0, %v6020_v9, %v6019_v8  ;;  %v6028_v13 = vld [vmem:[%s13126_s0 + $0x3c6] ss:$8 sm:$0xf]   ;;  %1287 = vst.msk [vmem:[%s13127_s1] sm:$0xff] %vm1286_vm3, %v1285_v55  }
  0xfa   :  { %v6029_v14 = vld [vmem:[%s13126_s0 + $0x3c6] ss:$8 sm:$0xf0]   ;;  %1811 = vrot.lane.b32.xlu0 %v1810_v12, %s7030_s3  ;;  %v1317_v59 = vpop.permute.xlu1 %1316   ;;  %v6070_v6 = vld [vmem:[%s13126_s0 + $0x105] ss:$8 sm:$0xf0]  }
  0xfb   :  { %v6025_v16 = vld [vmem:[%s13126_s0 + $0x2c6] ss:$8 sm:$0xf]   ;;  %v1843_v18 = vsel %vm4_vm0, %v6029_v14, %v6028_v13  ;;  %5886 = vst.msk [vmem:[%s13127_s1 + $0x60] sm:$0xff] %vm1286_vm3, %v1317_v59   ;;  %v1996_v10 = vsel %vm4_vm0, %v6070_v6, %v6069_v5 }
  0xfc   :  { %v6026_v17 = vld [vmem:[%s13126_s0 + $0x2c6] ss:$8 sm:$0xf0]   ;;  %1844 = vrot.lane.b32.xlu1 %v1843_v18, %s7030_s3  ;;  %v1306_v63 = vpop.permute.xlu0 %1305   ;;  %v6067_v8 = vld [vmem:[%s13126_s0 + $0x5] ss:$8 sm:$0xf]  }
  0xfd   :  { %v1832_v20 = vsel %vm4_vm0, %v6026_v17, %v6025_v16  ;;  %v6034_v21 = vld [vmem:[%s13126_s0 + $0x5c6] ss:$8 sm:$0xf]   ;;  %5883 = vst.msk [vmem:[%s13127_s1 + $0x40] sm:$0xff] %vm1286_vm3, %v1306_v63  }
  0xfe   :  { %v6035_v22 = vld [vmem:[%s13126_s0 + $0x5c6] ss:$8 sm:$0xf0]   ;;  %1833 = vrot.lane.b32.xlu0 %v1832_v20, %s7030_s3  ;;  %v1339_v3 = vpop.permute.xlu1 %1338   ;;  %v6068_v9 = vld [vmem:[%s13126_s0 + $0x5] ss:$8 sm:$0xf0]  }
  0xff   :  { %v6031_v24 = vld [vmem:[%s13126_s0 + $0x4c6] ss:$8 sm:$0xf]   ;;  %v1865_v26 = vsel %vm4_vm0, %v6035_v22, %v6034_v21  ;;  %5892 = vst.msk [vmem:[%s13127_s1 + $0xa0] sm:$0xff] %vm1286_vm3, %v1339_v3   ;;  %v1986_v12 = vsel %vm4_vm0, %v6068_v9, %v6067_v8 }
 0x100   :  { %v6032_v25 = vld [vmem:[%s13126_s0 + $0x4c6] ss:$8 sm:$0xf0]   ;;  %1866 = vrot.lane.b32.xlu1 %v1865_v26, %s7030_s3  ;;  %v1328_v7 = vpop.permute.xlu0 %1327   ;;  %v6075_v13 = vld [vmem:[%s13126_s0 + $0x305] ss:$8 sm:$0xf]  }
 0x101   :  { %v1854_v28 = vsel %vm4_vm0, %v6032_v25, %v6031_v24  ;;  %v6040_v29 = vld [vmem:[%s13126_s0 + $0x7c6] ss:$8 sm:$0xf]   ;;  %5889 = vst.msk [vmem:[%s13127_s1 + $0x80] sm:$0xff] %vm1286_vm3, %v1328_v7  }
 0x102   :  { %v6041_v30 = vld [vmem:[%s13126_s0 + $0x7c6] ss:$8 sm:$0xf0]   ;;  %1855 = vrot.lane.b32.xlu0 %v1854_v28, %s7030_s3  ;;  %v6076_v14 = vld [vmem:[%s13126_s0 + $0x305] ss:$8 sm:$0xf0]  }
 0x103   :  { %v6037_v32 = vld [vmem:[%s13126_s0 + $0x6c6] ss:$8 sm:$0xf]   ;;  %v1887_v34 = vsel %vm4_vm0, %v6041_v30, %v6040_v29  ;;  %v1361_v11 = vpop.permute.xlu1 %1360   ;;  %v6072_v16 = vld [vmem:[%s13126_s0 + $0x205] ss:$8 sm:$0xf]   ;;  %v2018_v18 = vsel %vm4_vm0, %v6076_v14, %v6075_v13 }
 0x104   :  { %v6038_v33 = vld [vmem:[%s13126_s0 + $0x6c6] ss:$8 sm:$0xf0]   ;;  %1888 = vrot.lane.b32.xlu1 %v1887_v34, %s7030_s3  ;;  %5898 = vst.msk [vmem:[%s13127_s1 + $0xe0] sm:$0xff] %vm1286_vm3, %v1361_v11  }
 0x105   :  { %v1876_v36 = vsel %vm4_vm0, %v6038_v33, %v6037_v32  ;;  %v6046_v37 = vld [vmem:[%s13126_s0 + $0x9c6] ss:$8 sm:$0xf]   ;;  %v6073_v17 = vld [vmem:[%s13126_s0 + $0x205] ss:$8 sm:$0xf0]  }
 0x106   :  { %v6047_v38 = vld [vmem:[%s13126_s0 + $0x9c6] ss:$8 sm:$0xf0]   ;;  %1877 = vrot.lane.b32.xlu0 %v1876_v36, %s7030_s3  ;;  %v1350_v15 = vpop.permute.xlu0 %1349   ;;  %v2007_v20 = vsel %vm4_vm0, %v6073_v17, %v6072_v16  ;;  %v6081_v21 = vld [vmem:[%s13126_s0 + $0x505] ss:$8 sm:$0xf]  }
 0x107   :  { %v6043_v40 = vld [vmem:[%s13126_s0 + $0x8c6] ss:$8 sm:$0xf]   ;;  %v1909_v42 = vsel %vm4_vm0, %v6047_v38, %v6046_v37  ;;  %5895 = vst.msk [vmem:[%s13127_s1 + $0xc0] sm:$0xff] %vm1286_vm3, %v1350_v15  }
 0x108   :  { %v6044_v41 = vld [vmem:[%s13126_s0 + $0x8c6] ss:$8 sm:$0xf0]   ;;  %1910 = vrot.lane.b32.xlu1 %v1909_v42, %s7030_s3  ;;  %v1383_v19 = vpop.permute.xlu1 %1382   ;;  %v6082_v22 = vld [vmem:[%s13126_s0 + $0x505] ss:$8 sm:$0xf0]  }
 0x109   :  { %v1898_v44 = vsel %vm4_vm0, %v6044_v41, %v6043_v40  ;;  %v6052_v45 = vld [vmem:[%s13126_s0 + $0xbc6] ss:$8 sm:$0xf]   ;;  %5904 = vst.msk [vmem:[%s13127_s1 + $0x120] sm:$0xff] %vm1286_vm3, %v1383_v19   ;;  %v2040_v26 = vsel %vm4_vm0, %v6082_v22, %v6081_v21 }
 0x10a   :  { %v6053_v46 = vld [vmem:[%s13126_s0 + $0xbc6] ss:$8 sm:$0xf0]   ;;  %1899 = vrot.lane.b32.xlu0 %v1898_v44, %s7030_s3  ;;  %v6078_v24 = vld [vmem:[%s13126_s0 + $0x405] ss:$8 sm:$0xf]  }
 0x10b   :  { %v6049_v48 = vld [vmem:[%s13126_s0 + $0xac6] ss:$8 sm:$0xf]   ;;  %v1931_v50 = vsel %vm4_vm0, %v6053_v46, %v6052_v45  ;;  %v1372_v23 = vpop.permute.xlu0 %1371   ;;  %v6079_v25 = vld [vmem:[%s13126_s0 + $0x405] ss:$8 sm:$0xf0]  }
 0x10c   :  { %v6050_v49 = vld [vmem:[%s13126_s0 + $0xac6] ss:$8 sm:$0xf0]   ;;  %1932 = vrot.lane.b32.xlu1 %v1931_v50, %s7030_s3  ;;  %5901 = vst.msk [vmem:[%s13127_s1 + $0x100] sm:$0xff] %vm1286_vm3, %v1372_v23   ;;  %v2029_v28 = vsel %vm4_vm0, %v6079_v25, %v6078_v24 }
 0x10d   :  { %v1920_v52 = vsel %vm4_vm0, %v6050_v49, %v6049_v48  ;;  %v6058_v53 = vld [vmem:[%s13126_s0 + $0xdc6] ss:$8 sm:$0xf]   ;;  %v6087_v29 = vld [vmem:[%s13126_s0 + $0x705] ss:$8 sm:$0xf]  }
 0x10e   :  { %v6059_v54 = vld [vmem:[%s13126_s0 + $0xdc6] ss:$8 sm:$0xf0]   ;;  %1921 = vrot.lane.b32.xlu0 %v1920_v52, %s7030_s3  ;;  %v1405_v27 = vpop.permute.xlu1 %1404   ;;  %v6088_v30 = vld [vmem:[%s13126_s0 + $0x705] ss:$8 sm:$0xf0]  }
 0x10f   :  { %v6055_v56 = vld [vmem:[%s13126_s0 + $0xcc6] ss:$8 sm:$0xf]   ;;  %v1953_v58 = vsel %vm4_vm0, %v6059_v54, %v6058_v53  ;;  %5910 = vst.msk [vmem:[%s13127_s1 + $0x160] sm:$0xff] %vm1286_vm3, %v1405_v27   ;;  %v2062_v34 = vsel %vm4_vm0, %v6088_v30, %v6087_v29 }
 0x110   :  { %v6056_v57 = vld [vmem:[%s13126_s0 + $0xcc6] ss:$8 sm:$0xf0]   ;;  %1954 = vrot.lane.b32.xlu1 %v1953_v58, %s7030_s3  ;;  %v6084_v32 = vld [vmem:[%s13126_s0 + $0x605] ss:$8 sm:$0xf]  }
 0x111   :  { %v1942_v60 = vsel %vm4_vm0, %v6056_v57, %v6055_v56  ;;  %v6064_v61 = vld [vmem:[%s13126_s0 + $0xfc6] ss:$8 sm:$0xf]   ;;  %v1394_v31 = vpop.permute.xlu0 %1393   ;;  %v6085_v33 = vld [vmem:[%s13126_s0 + $0x605] ss:$8 sm:$0xf0]  }
 0x112   :  { %v6065_v62 = vld [vmem:[%s13126_s0 + $0xfc6] ss:$8 sm:$0xf0]   ;;  %1943 = vrot.lane.b32.xlu0 %v1942_v60, %s7030_s3  ;;  %5907 = vst.msk [vmem:[%s13127_s1 + $0x140] sm:$0xff] %vm1286_vm3, %v1394_v31   ;;  %v2051_v36 = vsel %vm4_vm0, %v6085_v33, %v6084_v32 }
 0x113   :  { %v6061_v0 = vld [vmem:[%s13126_s0 + $0xec6] ss:$8 sm:$0xf]   ;;  %v1975_v2 = vsel %vm4_vm0, %v6065_v62, %v6064_v61  ;;  %v1427_v35 = vpop.permute.xlu1 %1426   ;;  %v6093_v37 = vld [vmem:[%s13126_s0 + $0x905] ss:$8 sm:$0xf]  }
 0x114   :  { %v6062_v1 = vld [vmem:[%s13126_s0 + $0xec6] ss:$8 sm:$0xf0]   ;;  %1976 = vrot.lane.b32.xlu1 %v1975_v2, %s7030_s3  ;;  %v6094_v38 = vld [vmem:[%s13126_s0 + $0x905] ss:$8 sm:$0xf0]  }
 0x115   :  { %v1964_v4 = vsel %vm4_vm0, %v6062_v1, %v6061_v0  ;;  %5916 = vst.msk [vmem:[%s13127_s1 + $0x1a0] sm:$0xff] %vm1286_vm3, %v1427_v35   ;;  %v6090_v40 = vld [vmem:[%s13126_s0 + $0x805] ss:$8 sm:$0xf]   ;;  %v2084_v42 = vsel %vm4_vm0, %v6094_v38, %v6093_v37 }
 0x116   :  { %1965 = vrot.lane.b32.xlu0 %v1964_v4, %s7030_s3  ;;  %v1416_v39 = vpop.permute.xlu0 %1415   ;;  %v6091_v41 = vld [vmem:[%s13126_s0 + $0x805] ss:$8 sm:$0xf0]  }
 0x117   :  { %5913 = vst.msk [vmem:[%s13127_s1 + $0x180] sm:$0xff] %vm1286_vm3, %v1416_v39   ;;  %v2073_v44 = vsel %vm4_vm0, %v6091_v41, %v6090_v40  ;;  %v6099_v45 = vld [vmem:[%s13126_s0 + $0xb05] ss:$8 sm:$0xf]  }
 0x118   :  { %1997 = vrot.lane.b32.xlu1 %v1996_v10, %s7031_s25  ;;  %v6100_v46 = vld [vmem:[%s13126_s0 + $0xb05] ss:$8 sm:$0xf0]  }
 0x119   :  { %v1449_v43 = vpop.permute.xlu1 %1448   ;;  %v6096_v48 = vld [vmem:[%s13126_s0 + $0xa05] ss:$8 sm:$0xf]   ;;  %v2106_v50 = vsel %vm4_vm0, %v6100_v46, %v6099_v45 }
 0x11a   :  { %1987 = vrot.lane.b32.xlu0 %v1986_v12, %s7031_s25  ;;  %5922 = vst.msk [vmem:[%s13127_s1 + $0x1e0] sm:$0xff] %vm1286_vm3, %v1449_v43   ;;  %v6097_v49 = vld [vmem:[%s13126_s0 + $0xa05] ss:$8 sm:$0xf0]  }
 0x11b   :  { %v2095_v52 = vsel %vm4_vm0, %v6097_v49, %v6096_v48  ;;  %v6105_v53 = vld [vmem:[%s13126_s0 + $0xd05] ss:$8 sm:$0xf]  }
 0x11c   :  { %2019 = vrot.lane.b32.xlu1 %v2018_v18, %s7031_s25  ;;  %v1438_v47 = vpop.permute.xlu0 %1437   ;;  %v6106_v54 = vld [vmem:[%s13126_s0 + $0xd05] ss:$8 sm:$0xf0]  }
 0x11d   :  { %5919 = vst.msk [vmem:[%s13127_s1 + $0x1c0] sm:$0xff] %vm1286_vm3, %v1438_v47   ;;  %v6102_v56 = vld [vmem:[%s13126_s0 + $0xc05] ss:$8 sm:$0xf]   ;;  %v2128_v58 = vsel %vm4_vm0, %v6106_v54, %v6105_v53 }
 0x11e   :  { %2008 = vrot.lane.b32.xlu0 %v2007_v20, %s7031_s25  ;;  %v1471_v51 = vpop.permute.xlu1 %1470   ;;  %v6103_v57 = vld [vmem:[%s13126_s0 + $0xc05] ss:$8 sm:$0xf0]  }
 0x11f   :  { %5928 = vst.msk [vmem:[%s13127_s1 + $0x28] sm:$0xff] %vm1286_vm3, %v1471_v51   ;;  %v2117_v60 = vsel %vm4_vm0, %v6103_v57, %v6102_v56  ;;  %v6111_v61 = vld [vmem:[%s13126_s0 + $0xf05] ss:$8 sm:$0xf]  }
 0x120   :  { %2041 = vrot.lane.b32.xlu1 %v2040_v26, %s7031_s25  ;;  %v6112_v62 = vld [vmem:[%s13126_s0 + $0xf05] ss:$8 sm:$0xf0]  }
 0x121   :  { %v1460_v55 = vpop.permute.xlu0 %1459   ;;  %v6108_v0 = vld [vmem:[%s13126_s0 + $0xe05] ss:$8 sm:$0xf]   ;;  %v2150_v2 = vsel %vm4_vm0, %v6112_v62, %v6111_v61 }
 0x122   :  { %2030 = vrot.lane.b32.xlu0 %v2029_v28, %s7031_s25  ;;  %5925 = vst.msk [vmem:[%s13127_s1 + $0x8] sm:$0xff] %vm1286_vm3, %v1460_v55   ;;  %v6109_v1 = vld [vmem:[%s13126_s0 + $0xe05] ss:$8 sm:$0xf0]  }
 0x123   :  { %v2139_v4 = vsel %vm4_vm0, %v6109_v1, %v6108_v0  ;;  %v6117_v5 = vld [vmem:[%s13126_s0 + $0x145] ss:$8 sm:$0xf]  }
 0x124   :  { %2063 = vrot.lane.b32.xlu1 %v2062_v34, %s7031_s25  ;;  %v1493_v59 = vpop.permute.xlu1 %1492   ;;  %v6118_v6 = vld [vmem:[%s13126_s0 + $0x145] ss:$8 sm:$0xf0]  }
 0x125   :  { %5934 = vst.msk [vmem:[%s13127_s1 + $0x68] sm:$0xff] %vm1286_vm3, %v1493_v59   ;;  %v6114_v8 = vld [vmem:[%s13126_s0 + $0x45] ss:$8 sm:$0xf]   ;;  %v2172_v10 = vsel %vm4_vm0, %v6118_v6, %v6117_v5 }
 0x126   :  { %2052 = vrot.lane.b32.xlu0 %v2051_v36, %s7031_s25  ;;  %v6115_v9 = vld [vmem:[%s13126_s0 + $0x45] ss:$8 sm:$0xf0]  }
 0x127   :  { %v1482_v63 = vpop.permute.xlu0 %1481   ;;  %v2161_v12 = vsel %vm4_vm0, %v6115_v9, %v6114_v8  ;;  %v6123_v13 = vld [vmem:[%s13126_s0 + $0x345] ss:$8 sm:$0xf]  }
 0x128   :  { %2085 = vrot.lane.b32.xlu1 %v2084_v42, %s7031_s25  ;;  %5931 = vst.msk [vmem:[%s13127_s1 + $0x48] sm:$0xff] %vm1286_vm3, %v1482_v63   ;;  %v6124_v14 = vld [vmem:[%s13126_s0 + $0x345] ss:$8 sm:$0xf0]  }
 0x129   :  { %v1515_v3 = vpop.permute.xlu1 %1514   ;;  %v6120_v16 = vld [vmem:[%s13126_s0 + $0x245] ss:$8 sm:$0xf]   ;;  %v2194_v18 = vsel %vm4_vm0, %v6124_v14, %v6123_v13 }
 0x12a   :  { %2074 = vrot.lane.b32.xlu0 %v2073_v44, %s7031_s25  ;;  %5940 = vst.msk [vmem:[%s13127_s1 + $0xa8] sm:$0xff] %vm1286_vm3, %v1515_v3   ;;  %v6121_v17 = vld [vmem:[%s13126_s0 + $0x245] ss:$8 sm:$0xf0]  }
 0x12b   :  { %v2183_v20 = vsel %vm4_vm0, %v6121_v17, %v6120_v16  ;;  %v6129_v21 = vld [vmem:[%s13126_s0 + $0x545] ss:$8 sm:$0xf]  }
 0x12c   :  { %2107 = vrot.lane.b32.xlu1 %v2106_v50, %s7031_s25  ;;  %v1504_v7 = vpop.permute.xlu0 %1503   ;;  %v6130_v22 = vld [vmem:[%s13126_s0 + $0x545] ss:$8 sm:$0xf0]  }
 0x12d   :  { %5937 = vst.msk [vmem:[%s13127_s1 + $0x88] sm:$0xff] %vm1286_vm3, %v1504_v7   ;;  %v6126_v24 = vld [vmem:[%s13126_s0 + $0x445] ss:$8 sm:$0xf]   ;;  %v2216_v26 = vsel %vm4_vm0, %v6130_v22, %v6129_v21 }
 0x12e   :  { %2096 = vrot.lane.b32.xlu0 %v2095_v52, %s7031_s25  ;;  %v6127_v25 = vld [vmem:[%s13126_s0 + $0x445] ss:$8 sm:$0xf0]  }
 0x12f   :  { %v1537_v11 = vpop.permute.xlu1 %1536   ;;  %v2205_v28 = vsel %vm4_vm0, %v6127_v25, %v6126_v24  ;;  %v6135_v29 = vld [vmem:[%s13126_s0 + $0x745] ss:$8 sm:$0xf]  }
 0x130   :  { %2129 = vrot.lane.b32.xlu1 %v2128_v58, %s7031_s25  ;;  %5946 = vst.msk [vmem:[%s13127_s1 + $0xe8] sm:$0xff] %vm1286_vm3, %v1537_v11   ;;  %v6136_v30 = vld [vmem:[%s13126_s0 + $0x745] ss:$8 sm:$0xf0]  }
 0x131   :  { %v6132_v32 = vld [vmem:[%s13126_s0 + $0x645] ss:$8 sm:$0xf]   ;;  %v2238_v34 = vsel %vm4_vm0, %v6136_v30, %v6135_v29 }
 0x132   :  { %2118 = vrot.lane.b32.xlu0 %v2117_v60, %s7031_s25  ;;  %v1526_v15 = vpop.permute.xlu0 %1525   ;;  %v6133_v33 = vld [vmem:[%s13126_s0 + $0x645] ss:$8 sm:$0xf0]  }
 0x133   :  { %5943 = vst.msk [vmem:[%s13127_s1 + $0xc8] sm:$0xff] %vm1286_vm3, %v1526_v15   ;;  %v2227_v36 = vsel %vm4_vm0, %v6133_v33, %v6132_v32  ;;  %v6141_v37 = vld [vmem:[%s13126_s0 + $0x945] ss:$8 sm:$0xf]  }
 0x134   :  { %2151 = vrot.lane.b32.xlu1 %v2150_v2, %s7031_s25  ;;  %v1559_v19 = vpop.permute.xlu1 %1558   ;;  %v6142_v38 = vld [vmem:[%s13126_s0 + $0x945] ss:$8 sm:$0xf0]  }
 0x135   :  { %5952 = vst.msk [vmem:[%s13127_s1 + $0x128] sm:$0xff] %vm1286_vm3, %v1559_v19   ;;  %v6138_v40 = vld [vmem:[%s13126_s0 + $0x845] ss:$8 sm:$0xf]   ;;  %v2260_v42 = vsel %vm4_vm0, %v6142_v38, %v6141_v37 }
 0x136   :  { %2140 = vrot.lane.b32.xlu0 %v2139_v4, %s7031_s25  ;;  %v6139_v41 = vld [vmem:[%s13126_s0 + $0x845] ss:$8 sm:$0xf0]  }
 0x137   :  { %v1548_v23 = vpop.permute.xlu0 %1547   ;;  %v2249_v44 = vsel %vm4_vm0, %v6139_v41, %v6138_v40  ;;  %v6147_v45 = vld [vmem:[%s13126_s0 + $0xb45] ss:$8 sm:$0xf]  }
 0x138   :  { %2173 = vrot.lane.b32.xlu1 %v2172_v10, %s7031_s25  ;;  %5949 = vst.msk [vmem:[%s13127_s1 + $0x108] sm:$0xff] %vm1286_vm3, %v1548_v23   ;;  %v6148_v46 = vld [vmem:[%s13126_s0 + $0xb45] ss:$8 sm:$0xf0]  }
 0x139   :  { %v6144_v48 = vld [vmem:[%s13126_s0 + $0xa45] ss:$8 sm:$0xf]   ;;  %v2282_v50 = vsel %vm4_vm0, %v6148_v46, %v6147_v45 }
 0x13a   :  { %2162 = vrot.lane.b32.xlu0 %v2161_v12, %s7031_s25  ;;  %v1581_v27 = vpop.permute.xlu1 %1580   ;;  %v6145_v49 = vld [vmem:[%s13126_s0 + $0xa45] ss:$8 sm:$0xf0]  }
 0x13b   :  { %5958 = vst.msk [vmem:[%s13127_s1 + $0x168] sm:$0xff] %vm1286_vm3, %v1581_v27   ;;  %v2271_v52 = vsel %vm4_vm0, %v6145_v49, %v6144_v48  ;;  %v6153_v53 = vld [vmem:[%s13126_s0 + $0xd45] ss:$8 sm:$0xf]  }
 0x13c   :  { %2195 = vrot.lane.b32.xlu1 %v2194_v18, %s7031_s25  ;;  %v6154_v54 = vld [vmem:[%s13126_s0 + $0xd45] ss:$8 sm:$0xf0]  }
 0x13d   :  { %v1570_v31 = vpop.permute.xlu0 %1569   ;;  %v6150_v56 = vld [vmem:[%s13126_s0 + $0xc45] ss:$8 sm:$0xf]   ;;  %v2304_v58 = vsel %vm4_vm0, %v6154_v54, %v6153_v53 }
 0x13e   :  { %2184 = vrot.lane.b32.xlu0 %v2183_v20, %s7031_s25  ;;  %5955 = vst.msk [vmem:[%s13127_s1 + $0x148] sm:$0xff] %vm1286_vm3, %v1570_v31   ;;  %v6151_v57 = vld [vmem:[%s13126_s0 + $0xc45] ss:$8 sm:$0xf0]  }
 0x13f   :  { %v1603_v35 = vpop.permute.xlu1 %1602   ;;  %v2293_v60 = vsel %vm4_vm0, %v6151_v57, %v6150_v56  ;;  %v6159_v61 = vld [vmem:[%s13126_s0 + $0xf45] ss:$8 sm:$0xf]  }
 0x140   :  { %2217 = vrot.lane.b32.xlu1 %v2216_v26, %s7031_s25  ;;  %5964 = vst.msk [vmem:[%s13127_s1 + $0x1a8] sm:$0xff] %vm1286_vm3, %v1603_v35   ;;  %v6160_v62 = vld [vmem:[%s13126_s0 + $0xf45] ss:$8 sm:$0xf0]  }
 0x141   :  { %v6156_v0 = vld [vmem:[%s13126_s0 + $0xe45] ss:$8 sm:$0xf]   ;;  %v2326_v2 = vsel %vm4_vm0, %v6160_v62, %v6159_v61 }
 0x142   :  { %2206 = vrot.lane.b32.xlu0 %v2205_v28, %s7031_s25  ;;  %v1592_v39 = vpop.permute.xlu0 %1591   ;;  %v6157_v1 = vld [vmem:[%s13126_s0 + $0xe45] ss:$8 sm:$0xf0]  }
 0x143   :  { %5961 = vst.msk [vmem:[%s13127_s1 + $0x188] sm:$0xff] %vm1286_vm3, %v1592_v39   ;;  %v2315_v4 = vsel %vm4_vm0, %v6157_v1, %v6156_v0  ;;  %v6165_v5 = vld [vmem:[%s13126_s0 + $0x185] ss:$8 sm:$0xf]  }
 0x144   :  { %2239 = vrot.lane.b32.xlu1 %v2238_v34, %s7031_s25  ;;  %v6166_v6 = vld [vmem:[%s13126_s0 + $0x185] ss:$8 sm:$0xf0]  }
 0x145   :  { %v1625_v43 = vpop.permute.xlu1 %1624   ;;  %v6162_v8 = vld [vmem:[%s13126_s0 + $0x85] ss:$8 sm:$0xf]   ;;  %v2348_v10 = vsel %vm4_vm0, %v6166_v6, %v6165_v5 }
 0x146   :  { %2228 = vrot.lane.b32.xlu0 %v2227_v36, %s7031_s25  ;;  %5970 = vst.msk [vmem:[%s13127_s1 + $0x1e8] sm:$0xff] %vm1286_vm3, %v1625_v43   ;;  %v6163_v9 = vld [vmem:[%s13126_s0 + $0x85] ss:$8 sm:$0xf0]  }
 0x147   :  { %v2337_v12 = vsel %vm4_vm0, %v6163_v9, %v6162_v8  ;;  %v6171_v13 = vld [vmem:[%s13126_s0 + $0x385] ss:$8 sm:$0xf]  }
 0x148   :  { %v1614_v47 = vpop.permute.xlu0 %1613   ;;  %2261 = vrot.lane.b32.xlu1 %v2260_v42, %s7031_s25  ;;  %v6172_v14 = vld [vmem:[%s13126_s0 + $0x385] ss:$8 sm:$0xf0]  }
 0x149   :  { %5967 = vst.msk [vmem:[%s13127_s1 + $0x1c8] sm:$0xff] %vm1286_vm3, %v1614_v47   ;;  %v6168_v16 = vld [vmem:[%s13126_s0 + $0x285] ss:$8 sm:$0xf]   ;;  %v2370_v18 = vsel %vm4_vm0, %v6172_v14, %v6171_v13 }
 0x14a   :  { %2250 = vrot.lane.b32.xlu0 %v2249_v44, %s7031_s25  ;;  %v1647_v51 = vpop.permute.xlu1 %1646   ;;  %v6169_v17 = vld [vmem:[%s13126_s0 + $0x285] ss:$8 sm:$0xf0]  }
 0x14b   :  { %5976 = vst.msk [vmem:[%s13127_s1 + $0x30] sm:$0xff] %vm1286_vm3, %v1647_v51   ;;  %v2359_v20 = vsel %vm4_vm0, %v6169_v17, %v6168_v16  ;;  %v6177_v21 = vld [vmem:[%s13126_s0 + $0x585] ss:$8 sm:$0xf]  }
 0x14c   :  { %v1636_v55 = vpop.permute.xlu0 %1635   ;;  %2283 = vrot.lane.b32.xlu1 %v2282_v50, %s7031_s25  ;;  %v6178_v22 = vld [vmem:[%s13126_s0 + $0x585] ss:$8 sm:$0xf0]  }
 0x14d   :  { %5973 = vst.msk [vmem:[%s13127_s1 + $0x10] sm:$0xff] %vm1286_vm3, %v1636_v55   ;;  %v6174_v24 = vld [vmem:[%s13126_s0 + $0x485] ss:$8 sm:$0xf]   ;;  %v2392_v26 = vsel %vm4_vm0, %v6178_v22, %v6177_v21 }
 0x14e   :  { %2272 = vrot.lane.b32.xlu0 %v2271_v52, %s7031_s25  ;;  %v1669_v59 = vpop.permute.xlu1 %1668   ;;  %v6175_v25 = vld [vmem:[%s13126_s0 + $0x485] ss:$8 sm:$0xf0]  }
 0x14f   :  { %5982 = vst.msk [vmem:[%s13127_s1 + $0x70] sm:$0xff] %vm1286_vm3, %v1669_v59   ;;  %v2381_v28 = vsel %vm4_vm0, %v6175_v25, %v6174_v24  ;;  %v6183_v29 = vld [vmem:[%s13126_s0 + $0x785] ss:$8 sm:$0xf]  }
 0x150   :  { %v1658_v63 = vpop.permute.xlu0 %1657   ;;  %2305 = vrot.lane.b32.xlu1 %v2304_v58, %s7031_s25  ;;  %v6184_v30 = vld [vmem:[%s13126_s0 + $0x785] ss:$8 sm:$0xf0]  }
 0x151   :  { %5979 = vst.msk [vmem:[%s13127_s1 + $0x50] sm:$0xff] %vm1286_vm3, %v1658_v63   ;;  %v6180_v32 = vld [vmem:[%s13126_s0 + $0x685] ss:$8 sm:$0xf]   ;;  %v2414_v34 = vsel %vm4_vm0, %v6184_v30, %v6183_v29 }
 0x152   :  { %2294 = vrot.lane.b32.xlu0 %v2293_v60, %s7031_s25  ;;  %v1691_v3 = vpop.permute.xlu1 %1690   ;;  %v6181_v33 = vld [vmem:[%s13126_s0 + $0x685] ss:$8 sm:$0xf0]  }
 0x153   :  { %5988 = vst.msk [vmem:[%s13127_s1 + $0xb0] sm:$0xff] %vm1286_vm3, %v1691_v3   ;;  %v2403_v36 = vsel %vm4_vm0, %v6181_v33, %v6180_v32  ;;  %v6189_v37 = vld [vmem:[%s13126_s0 + $0x985] ss:$8 sm:$0xf]  }
 0x154   :  { %v1680_v7 = vpop.permute.xlu0 %1679   ;;  %2327 = vrot.lane.b32.xlu1 %v2326_v2, %s7031_s25  ;;  %v6190_v38 = vld [vmem:[%s13126_s0 + $0x985] ss:$8 sm:$0xf0]  }
 0x155   :  { %5985 = vst.msk [vmem:[%s13127_s1 + $0x90] sm:$0xff] %vm1286_vm3, %v1680_v7   ;;  %v6186_v40 = vld [vmem:[%s13126_s0 + $0x885] ss:$8 sm:$0xf]   ;;  %v2436_v42 = vsel %vm4_vm0, %v6190_v38, %v6189_v37 }
 0x156   :  { %2316 = vrot.lane.b32.xlu0 %v2315_v4, %s7031_s25  ;;  %v1713_v11 = vpop.permute.xlu1 %1712   ;;  %v6187_v41 = vld [vmem:[%s13126_s0 + $0x885] ss:$8 sm:$0xf0]  }
 0x157   :  { %5994 = vst.msk [vmem:[%s13127_s1 + $0xf0] sm:$0xff] %vm1286_vm3, %v1713_v11   ;;  %v2425_v44 = vsel %vm4_vm0, %v6187_v41, %v6186_v40  ;;  %v6195_v45 = vld [vmem:[%s13126_s0 + $0xb85] ss:$8 sm:$0xf]  }
 0x158   :  { %v1702_v15 = vpop.permute.xlu0 %1701   ;;  %2349 = vrot.lane.b32.xlu1 %v2348_v10, %s7031_s25  ;;  %v6196_v46 = vld [vmem:[%s13126_s0 + $0xb85] ss:$8 sm:$0xf0]  }
 0x159   :  { %5991 = vst.msk [vmem:[%s13127_s1 + $0xd0] sm:$0xff] %vm1286_vm3, %v1702_v15   ;;  %v6192_v48 = vld [vmem:[%s13126_s0 + $0xa85] ss:$8 sm:$0xf]   ;;  %v2458_v50 = vsel %vm4_vm0, %v6196_v46, %v6195_v45 }
 0x15a   :  { %2338 = vrot.lane.b32.xlu0 %v2337_v12, %s7031_s25  ;;  %v1735_v19 = vpop.permute.xlu1 %1734   ;;  %v6193_v49 = vld [vmem:[%s13126_s0 + $0xa85] ss:$8 sm:$0xf0]  }
 0x15b   :  { %6000 = vst.msk [vmem:[%s13127_s1 + $0x130] sm:$0xff] %vm1286_vm3, %v1735_v19   ;;  %v2447_v52 = vsel %vm4_vm0, %v6193_v49, %v6192_v48  ;;  %v6201_v53 = vld [vmem:[%s13126_s0 + $0xd85] ss:$8 sm:$0xf]  }
 0x15c   :  { %v1724_v23 = vpop.permute.xlu0 %1723   ;;  %2371 = vrot.lane.b32.xlu1 %v2370_v18, %s7031_s25  ;;  %v6202_v54 = vld [vmem:[%s13126_s0 + $0xd85] ss:$8 sm:$0xf0]  }
 0x15d   :  { %5997 = vst.msk [vmem:[%s13127_s1 + $0x110] sm:$0xff] %vm1286_vm3, %v1724_v23   ;;  %v6198_v56 = vld [vmem:[%s13126_s0 + $0xc85] ss:$8 sm:$0xf]   ;;  %v2480_v58 = vsel %vm4_vm0, %v6202_v54, %v6201_v53 }
 0x15e   :  { %2360 = vrot.lane.b32.xlu0 %v2359_v20, %s7031_s25  ;;  %v1757_v27 = vpop.permute.xlu1 %1756   ;;  %v6199_v57 = vld [vmem:[%s13126_s0 + $0xc85] ss:$8 sm:$0xf0]  }
 0x15f   :  { %6006 = vst.msk [vmem:[%s13127_s1 + $0x170] sm:$0xff] %vm1286_vm3, %v1757_v27   ;;  %v2469_v60 = vsel %vm4_vm0, %v6199_v57, %v6198_v56  ;;  %v6207_v61 = vld [vmem:[%s13126_s0 + $0xf85] ss:$8 sm:$0xf]  }
 0x160   :  { %v1746_v31 = vpop.permute.xlu0 %1745   ;;  %2393 = vrot.lane.b32.xlu1 %v2392_v26, %s7031_s25  ;;  %v6208_v62 = vld [vmem:[%s13126_s0 + $0xf85] ss:$8 sm:$0xf0]  }
 0x161   :  { %6003 = vst.msk [vmem:[%s13127_s1 + $0x150] sm:$0xff] %vm1286_vm3, %v1746_v31   ;;  %v6204_v0 = vld [vmem:[%s13126_s0 + $0xe85] ss:$8 sm:$0xf]   ;;  %v2502_v2 = vsel %vm4_vm0, %v6208_v62, %v6207_v61 }
 0x162   :  { %2382 = vrot.lane.b32.xlu0 %v2381_v28, %s7031_s25  ;;  %v1779_v35 = vpop.permute.xlu1 %1778   ;;  %v6205_v1 = vld [vmem:[%s13126_s0 + $0xe85] ss:$8 sm:$0xf0]  }
 0x163   :  { %6012 = vst.msk [vmem:[%s13127_s1 + $0x1b0] sm:$0xff] %vm1286_vm3, %v1779_v35   ;;  %v2491_v4 = vsel %vm4_vm0, %v6205_v1, %v6204_v0  ;;  %v6213_v5 = vld [vmem:[%s13126_s0 + $0x1c5] ss:$8 sm:$0xf]  }
 0x164   :  { %v1768_v39 = vpop.permute.xlu0 %1767   ;;  %2415 = vrot.lane.b32.xlu1 %v2414_v34, %s7031_s25  ;;  %v6214_v6 = vld [vmem:[%s13126_s0 + $0x1c5] ss:$8 sm:$0xf0]  }
 0x165   :  { %6009 = vst.msk [vmem:[%s13127_s1 + $0x190] sm:$0xff] %vm1286_vm3, %v1768_v39   ;;  %v6210_v8 = vld [vmem:[%s13126_s0 + $0xc5] ss:$8 sm:$0xf]   ;;  %v2524_v10 = vsel %vm4_vm0, %v6214_v6, %v6213_v5 }
 0x166   :  { %2404 = vrot.lane.b32.xlu0 %v2403_v36, %s7031_s25  ;;  %v1801_v43 = vpop.permute.xlu1 %1800   ;;  %v6211_v9 = vld [vmem:[%s13126_s0 + $0xc5] ss:$8 sm:$0xf0]   ;;  %v6260_v5 = vld [vmem:[%s13126_s0 + $0x104] ss:$8 sm:$0xf]  }
 0x167   :  { %6018 = vst.msk [vmem:[%s13127_s1 + $0x1f0] sm:$0xff] %vm1286_vm3, %v1801_v43   ;;  %v2513_v12 = vsel %vm4_vm0, %v6211_v9, %v6210_v8  ;;  %v6219_v13 = vld [vmem:[%s13126_s0 + $0x3c5] ss:$8 sm:$0xf]  }
 0x168   :  { %v1790_v47 = vpop.permute.xlu0 %1789   ;;  %2437 = vrot.lane.b32.xlu1 %v2436_v42, %s7031_s25  ;;  %v6220_v14 = vld [vmem:[%s13126_s0 + $0x3c5] ss:$8 sm:$0xf0]   ;;  %v6261_v6 = vld [vmem:[%s13126_s0 + $0x104] ss:$8 sm:$0xf0]  }
 0x169   :  { %6015 = vst.msk [vmem:[%s13127_s1 + $0x1d0] sm:$0xff] %vm1286_vm3, %v1790_v47   ;;  %v6216_v16 = vld [vmem:[%s13126_s0 + $0x2c5] ss:$8 sm:$0xf]   ;;  %v2546_v18 = vsel %vm4_vm0, %v6220_v14, %v6219_v13 }
 0x16a   :  { %2426 = vrot.lane.b32.xlu0 %v2425_v44, %s7031_s25  ;;  %v1823_v51 = vpop.permute.xlu1 %1822   ;;  %v6217_v17 = vld [vmem:[%s13126_s0 + $0x2c5] ss:$8 sm:$0xf0]   ;;  %v6258_v8 = vld [vmem:[%s13126_s0 + $0x4] ss:$8 sm:$0xf]  }
 0x16b   :  { %6024 = vst.msk [vmem:[%s13127_s1 + $0x38] sm:$0xff] %vm1286_vm3, %v1823_v51   ;;  %v2535_v20 = vsel %vm4_vm0, %v6217_v17, %v6216_v16  ;;  %v6225_v21 = vld [vmem:[%s13126_s0 + $0x5c5] ss:$8 sm:$0xf]  }
 0x16c   :  { %v1812_v55 = vpop.permute.xlu0 %1811   ;;  %2459 = vrot.lane.b32.xlu1 %v2458_v50, %s7031_s25  ;;  %v6226_v22 = vld [vmem:[%s13126_s0 + $0x5c5] ss:$8 sm:$0xf0]   ;;  %v6259_v9 = vld [vmem:[%s13126_s0 + $0x4] ss:$8 sm:$0xf0]  }
 0x16d   :  { %6021 = vst.msk [vmem:[%s13127_s1 + $0x18] sm:$0xff] %vm1286_vm3, %v1812_v55   ;;  %v6222_v24 = vld [vmem:[%s13126_s0 + $0x4c5] ss:$8 sm:$0xf]   ;;  %v2568_v26 = vsel %vm4_vm0, %v6226_v22, %v6225_v21 }
 0x16e   :  { %2448 = vrot.lane.b32.xlu0 %v2447_v52, %s7031_s25  ;;  %v1845_v59 = vpop.permute.xlu1 %1844   ;;  %v6223_v25 = vld [vmem:[%s13126_s0 + $0x4c5] ss:$8 sm:$0xf0]   ;;  %v6266_v13 = vld [vmem:[%s13126_s0 + $0x304] ss:$8 sm:$0xf]  }
 0x16f   :  { %6030 = vst.msk [vmem:[%s13127_s1 + $0x78] sm:$0xff] %vm1286_vm3, %v1845_v59   ;;  %v2557_v28 = vsel %vm4_vm0, %v6223_v25, %v6222_v24  ;;  %v6231_v29 = vld [vmem:[%s13126_s0 + $0x7c5] ss:$8 sm:$0xf]  }
 0x170   :  { %v1834_v63 = vpop.permute.xlu0 %1833   ;;  %2481 = vrot.lane.b32.xlu1 %v2480_v58, %s7031_s25  ;;  %v6232_v30 = vld [vmem:[%s13126_s0 + $0x7c5] ss:$8 sm:$0xf0]   ;;  %v6267_v14 = vld [vmem:[%s13126_s0 + $0x304] ss:$8 sm:$0xf0]  }
 0x171   :  { %6027 = vst.msk [vmem:[%s13127_s1 + $0x58] sm:$0xff] %vm1286_vm3, %v1834_v63   ;;  %v6228_v32 = vld [vmem:[%s13126_s0 + $0x6c5] ss:$8 sm:$0xf]   ;;  %v2590_v34 = vsel %vm4_vm0, %v6232_v30, %v6231_v29 }
 0x172   :  { %2470 = vrot.lane.b32.xlu0 %v2469_v60, %s7031_s25  ;;  %v1867_v3 = vpop.permute.xlu1 %1866   ;;  %v6229_v33 = vld [vmem:[%s13126_s0 + $0x6c5] ss:$8 sm:$0xf0]   ;;  %v6263_v16 = vld [vmem:[%s13126_s0 + $0x204] ss:$8 sm:$0xf]  }
 0x173   :  { %6036 = vst.msk [vmem:[%s13127_s1 + $0xb8] sm:$0xff] %vm1286_vm3, %v1867_v3   ;;  %v2579_v36 = vsel %vm4_vm0, %v6229_v33, %v6228_v32  ;;  %v6237_v37 = vld [vmem:[%s13126_s0 + $0x9c5] ss:$8 sm:$0xf]  }
 0x174   :  { %v1856_v7 = vpop.permute.xlu0 %1855   ;;  %2503 = vrot.lane.b32.xlu1 %v2502_v2, %s7031_s25  ;;  %v6238_v38 = vld [vmem:[%s13126_s0 + $0x9c5] ss:$8 sm:$0xf0]   ;;  %v6264_v17 = vld [vmem:[%s13126_s0 + $0x204] ss:$8 sm:$0xf0]  }
 0x175   :  { %6033 = vst.msk [vmem:[%s13127_s1 + $0x98] sm:$0xff] %vm1286_vm3, %v1856_v7   ;;  %v6234_v40 = vld [vmem:[%s13126_s0 + $0x8c5] ss:$8 sm:$0xf]   ;;  %v2612_v42 = vsel %vm4_vm0, %v6238_v38, %v6237_v37 }
 0x176   :  { %2492 = vrot.lane.b32.xlu0 %v2491_v4, %s7031_s25  ;;  %v1889_v11 = vpop.permute.xlu1 %1888   ;;  %v6235_v41 = vld [vmem:[%s13126_s0 + $0x8c5] ss:$8 sm:$0xf0]   ;;  %v6272_v21 = vld [vmem:[%s13126_s0 + $0x504] ss:$8 sm:$0xf]  }
 0x177   :  { %6042 = vst.msk [vmem:[%s13127_s1 + $0xf8] sm:$0xff] %vm1286_vm3, %v1889_v11   ;;  %v2601_v44 = vsel %vm4_vm0, %v6235_v41, %v6234_v40  ;;  %v6243_v45 = vld [vmem:[%s13126_s0 + $0xbc5] ss:$8 sm:$0xf]  }
 0x178   :  { %v1878_v15 = vpop.permute.xlu0 %1877   ;;  %2525 = vrot.lane.b32.xlu1 %v2524_v10, %s7031_s25  ;;  %v6244_v46 = vld [vmem:[%s13126_s0 + $0xbc5] ss:$8 sm:$0xf0]   ;;  %v2699_v10 = vsel %vm4_vm0, %v6261_v6, %v6260_v5  ;;  %v6273_v22 = vld [vmem:[%s13126_s0 + $0x504] ss:$8 sm:$0xf0]  }
 0x179   :  { %6039 = vst.msk [vmem:[%s13127_s1 + $0xd8] sm:$0xff] %vm1286_vm3, %v1878_v15   ;;  %v6240_v48 = vld [vmem:[%s13126_s0 + $0xac5] ss:$8 sm:$0xf]   ;;  %v2634_v50 = vsel %vm4_vm0, %v6244_v46, %v6243_v45 }
 0x17a   :  { %2514 = vrot.lane.b32.xlu0 %v2513_v12, %s7031_s25  ;;  %v1911_v19 = vpop.permute.xlu1 %1910   ;;  %v6241_v49 = vld [vmem:[%s13126_s0 + $0xac5] ss:$8 sm:$0xf0]   ;;  %v2689_v12 = vsel %vm4_vm0, %v6259_v9, %v6258_v8  ;;  %v6269_v24 = vld [vmem:[%s13126_s0 + $0x404] ss:$8 sm:$0xf]  }
 0x17b   :  { %6048 = vst.msk [vmem:[%s13127_s1 + $0x138] sm:$0xff] %vm1286_vm3, %v1911_v19   ;;  %v2623_v52 = vsel %vm4_vm0, %v6241_v49, %v6240_v48  ;;  %v6249_v53 = vld [vmem:[%s13126_s0 + $0xdc5] ss:$8 sm:$0xf]  }
 0x17c   :  { %v1900_v23 = vpop.permute.xlu0 %1899   ;;  %2547 = vrot.lane.b32.xlu1 %v2546_v18, %s7031_s25  ;;  %v6250_v54 = vld [vmem:[%s13126_s0 + $0xdc5] ss:$8 sm:$0xf0]   ;;  %v2721_v18 = vsel %vm4_vm0, %v6267_v14, %v6266_v13  ;;  %v6270_v25 = vld [vmem:[%s13126_s0 + $0x404] ss:$8 sm:$0xf0]  }
 0x17d   :  { %6045 = vst.msk [vmem:[%s13127_s1 + $0x118] sm:$0xff] %vm1286_vm3, %v1900_v23   ;;  %v6246_v56 = vld [vmem:[%s13126_s0 + $0xcc5] ss:$8 sm:$0xf]   ;;  %v2656_v58 = vsel %vm4_vm0, %v6250_v54, %v6249_v53 }
 0x17e   :  { %2536 = vrot.lane.b32.xlu0 %v2535_v20, %s7031_s25  ;;  %v1933_v27 = vpop.permute.xlu1 %1932   ;;  %v6247_v57 = vld [vmem:[%s13126_s0 + $0xcc5] ss:$8 sm:$0xf0]   ;;  %v2710_v20 = vsel %vm4_vm0, %v6264_v17, %v6263_v16  ;;  %v6278_v29 = vld [vmem:[%s13126_s0 + $0x704] ss:$8 sm:$0xf]  }
 0x17f   :  { %6054 = vst.msk [vmem:[%s13127_s1 + $0x178] sm:$0xff] %vm1286_vm3, %v1933_v27   ;;  %v2645_v60 = vsel %vm4_vm0, %v6247_v57, %v6246_v56  ;;  %v6255_v61 = vld [vmem:[%s13126_s0 + $0xfc5] ss:$8 sm:$0xf]  }
 0x180   :  { %v1922_v31 = vpop.permute.xlu0 %1921   ;;  %2569 = vrot.lane.b32.xlu1 %v2568_v26, %s7031_s25  ;;  %v6256_v62 = vld [vmem:[%s13126_s0 + $0xfc5] ss:$8 sm:$0xf0]   ;;  %v2743_v26 = vsel %vm4_vm0, %v6273_v22, %v6272_v21  ;;  %v6279_v30 = vld [vmem:[%s13126_s0 + $0x704] ss:$8 sm:$0xf0]  }
 0x181   :  { %6051 = vst.msk [vmem:[%s13127_s1 + $0x158] sm:$0xff] %vm1286_vm3, %v1922_v31   ;;  %v6252_v0 = vld [vmem:[%s13126_s0 + $0xec5] ss:$8 sm:$0xf]   ;;  %v2678_v2 = vsel %vm4_vm0, %v6256_v62, %v6255_v61 }
 0x182   :  { %2558 = vrot.lane.b32.xlu0 %v2557_v28, %s7031_s25  ;;  %v1955_v35 = vpop.permute.xlu1 %1954   ;;  %v6253_v1 = vld [vmem:[%s13126_s0 + $0xec5] ss:$8 sm:$0xf0]   ;;  %v2732_v28 = vsel %vm4_vm0, %v6270_v25, %v6269_v24  ;;  %v6275_v32 = vld [vmem:[%s13126_s0 + $0x604] ss:$8 sm:$0xf]  }
 0x183   :  { %6060 = vst.msk [vmem:[%s13127_s1 + $0x1b8] sm:$0xff] %vm1286_vm3, %v1955_v35   ;;  %v2667_v4 = vsel %vm4_vm0, %v6253_v1, %v6252_v0  ;;  %v6276_v33 = vld [vmem:[%s13126_s0 + $0x604] ss:$8 sm:$0xf0]  }
 0x184   :  { %v1944_v39 = vpop.permute.xlu0 %1943   ;;  %2591 = vrot.lane.b32.xlu1 %v2590_v34, %s7031_s25  ;;  %v2765_v34 = vsel %vm4_vm0, %v6279_v30, %v6278_v29  ;;  %v6284_v37 = vld [vmem:[%s13126_s0 + $0x904] ss:$8 sm:$0xf]  }
 0x185   :  { %6057 = vst.msk [vmem:[%s13127_s1 + $0x198] sm:$0xff] %vm1286_vm3, %v1944_v39   ;;  %v6285_v38 = vld [vmem:[%s13126_s0 + $0x904] ss:$8 sm:$0xf0]  }
 0x186   :  { %2580 = vrot.lane.b32.xlu0 %v2579_v36, %s7031_s25  ;;  %v1977_v43 = vpop.permute.xlu1 %1976   ;;  %v2754_v36 = vsel %vm4_vm0, %v6276_v33, %v6275_v32  ;;  %v6281_v40 = vld [vmem:[%s13126_s0 + $0x804] ss:$8 sm:$0xf]  }
 0x187   :  { %6066 = vst.msk [vmem:[%s13127_s1 + $0x1f8] sm:$0xff] %vm1286_vm3, %v1977_v43   ;;  %v6282_v41 = vld [vmem:[%s13126_s0 + $0x804] ss:$8 sm:$0xf0]  }
 0x188   :  { %v1966_v47 = vpop.permute.xlu0 %1965   ;;  %2613 = vrot.lane.b32.xlu1 %v2612_v42, %s7031_s25  ;;  %v2787_v42 = vsel %vm4_vm0, %v6285_v38, %v6284_v37  ;;  %v6290_v45 = vld [vmem:[%s13126_s0 + $0xb04] ss:$8 sm:$0xf]  }
 0x189   :  { %6063 = vst.msk [vmem:[%s13127_s1 + $0x1d8] sm:$0xff] %vm1286_vm3, %v1966_v47   ;;  %v6291_v46 = vld [vmem:[%s13126_s0 + $0xb04] ss:$8 sm:$0xf0]  }
 0x18a   :  { %2602 = vrot.lane.b32.xlu0 %v2601_v44, %s7031_s25  ;;  %v1998_v51 = vpop.permute.xlu1 %1997   ;;  %v2776_v44 = vsel %vm4_vm0, %v6282_v41, %v6281_v40  ;;  %v6287_v48 = vld [vmem:[%s13126_s0 + $0xa04] ss:$8 sm:$0xf]  }
 0x18b   :  { %6071 = vst.msk [vmem:[%s13127_s1 + $0x20] sm:$0xff] %vm1989_vm4, %v1998_v51   ;;  %v6288_v49 = vld [vmem:[%s13126_s0 + $0xa04] ss:$8 sm:$0xf0]  }
 0x18c   :  { %v1988_v55 = vpop.permute.xlu0 %1987   ;;  %2635 = vrot.lane.b32.xlu1 %v2634_v50, %s7031_s25  ;;  %v2809_v50 = vsel %vm4_vm0, %v6291_v46, %v6290_v45  ;;  %v6296_v53 = vld [vmem:[%s13126_s0 + $0xd04] ss:$8 sm:$0xf]  }
 0x18d   :  { %1990 = vst.msk [vmem:[%s13127_s1] sm:$0xff] %vm1989_vm4, %v1988_v55   ;;  %v6297_v54 = vld [vmem:[%s13126_s0 + $0xd04] ss:$8 sm:$0xf0]  }
 0x18e   :  { %2624 = vrot.lane.b32.xlu0 %v2623_v52, %s7031_s25  ;;  %v2020_v59 = vpop.permute.xlu1 %2019   ;;  %v2798_v52 = vsel %vm4_vm0, %v6288_v49, %v6287_v48  ;;  %v6293_v56 = vld [vmem:[%s13126_s0 + $0xc04] ss:$8 sm:$0xf]  }
 0x18f   :  { %6077 = vst.msk [vmem:[%s13127_s1 + $0x60] sm:$0xff] %vm1989_vm4, %v2020_v59   ;;  %v6294_v57 = vld [vmem:[%s13126_s0 + $0xc04] ss:$8 sm:$0xf0]  }
 0x190   :  { %v2009_v63 = vpop.permute.xlu0 %2008   ;;  %2657 = vrot.lane.b32.xlu1 %v2656_v58, %s7031_s25  ;;  %v2831_v58 = vsel %vm4_vm0, %v6297_v54, %v6296_v53  ;;  %v6302_v61 = vld [vmem:[%s13126_s0 + $0xf04] ss:$8 sm:$0xf]  }
 0x191   :  { %6074 = vst.msk [vmem:[%s13127_s1 + $0x40] sm:$0xff] %vm1989_vm4, %v2009_v63   ;;  %v6303_v62 = vld [vmem:[%s13126_s0 + $0xf04] ss:$8 sm:$0xf0]  }
 0x192   :  { %2646 = vrot.lane.b32.xlu0 %v2645_v60, %s7031_s25  ;;  %v2042_v3 = vpop.permute.xlu1 %2041   ;;  %v2820_v60 = vsel %vm4_vm0, %v6294_v57, %v6293_v56  ;;  %v6299_v0 = vld [vmem:[%s13126_s0 + $0xe04] ss:$8 sm:$0xf]  }
 0x193   :  { %6083 = vst.msk [vmem:[%s13127_s1 + $0xa0] sm:$0xff] %vm1989_vm4, %v2042_v3   ;;  %v6300_v1 = vld [vmem:[%s13126_s0 + $0xe04] ss:$8 sm:$0xf0]  }
 0x194   :  { %v2031_v7 = vpop.permute.xlu0 %2030   ;;  %2679 = vrot.lane.b32.xlu1 %v2678_v2, %s7031_s25  ;;  %v2853_v2 = vsel %vm4_vm0, %v6303_v62, %v6302_v61  ;;  %v6308_v5 = vld [vmem:[%s13126_s0 + $0x144] ss:$8 sm:$0xf]  }
 0x195   :  { %6080 = vst.msk [vmem:[%s13127_s1 + $0x80] sm:$0xff] %vm1989_vm4, %v2031_v7   ;;  %v6309_v6 = vld [vmem:[%s13126_s0 + $0x144] ss:$8 sm:$0xf0]  }
 0x196   :  { %2668 = vrot.lane.b32.xlu0 %v2667_v4, %s7031_s25  ;;  %v2064_v11 = vpop.permute.xlu1 %2063   ;;  %v2842_v4 = vsel %vm4_vm0, %v6300_v1, %v6299_v0  ;;  %v6305_v8 = vld [vmem:[%s13126_s0 + $0x44] ss:$8 sm:$0xf]  }
 0x197   :  { %6089 = vst.msk [vmem:[%s13127_s1 + $0xe0] sm:$0xff] %vm1989_vm4, %v2064_v11   ;;  %v6306_v9 = vld [vmem:[%s13126_s0 + $0x44] ss:$8 sm:$0xf0]  }
 0x198   :  { %v2053_v15 = vpop.permute.xlu0 %2052   ;;  %2700 = vrot.lane.b32.xlu1 %v2699_v10, %s7032_s16  ;;  %v2875_v10 = vsel %vm4_vm0, %v6309_v6, %v6308_v5  ;;  %v6314_v13 = vld [vmem:[%s13126_s0 + $0x344] ss:$8 sm:$0xf]  }
 0x199   :  { %6086 = vst.msk [vmem:[%s13127_s1 + $0xc0] sm:$0xff] %vm1989_vm4, %v2053_v15   ;;  %v6315_v14 = vld [vmem:[%s13126_s0 + $0x344] ss:$8 sm:$0xf0]  }
 0x19a   :  { %2690 = vrot.lane.b32.xlu0 %v2689_v12, %s7032_s16  ;;  %v2086_v19 = vpop.permute.xlu1 %2085   ;;  %v2864_v12 = vsel %vm4_vm0, %v6306_v9, %v6305_v8  ;;  %v6311_v16 = vld [vmem:[%s13126_s0 + $0x244] ss:$8 sm:$0xf]  }
 0x19b   :  { %6095 = vst.msk [vmem:[%s13127_s1 + $0x120] sm:$0xff] %vm1989_vm4, %v2086_v19   ;;  %v6312_v17 = vld [vmem:[%s13126_s0 + $0x244] ss:$8 sm:$0xf0]  }
 0x19c   :  { %v2075_v23 = vpop.permute.xlu0 %2074   ;;  %2722 = vrot.lane.b32.xlu1 %v2721_v18, %s7032_s16  ;;  %v2897_v18 = vsel %vm4_vm0, %v6315_v14, %v6314_v13  ;;  %v6320_v21 = vld [vmem:[%s13126_s0 + $0x544] ss:$8 sm:$0xf]  }
 0x19d   :  { %6092 = vst.msk [vmem:[%s13127_s1 + $0x100] sm:$0xff] %vm1989_vm4, %v2075_v23   ;;  %v6321_v22 = vld [vmem:[%s13126_s0 + $0x544] ss:$8 sm:$0xf0]  }
 0x19e   :  { %2711 = vrot.lane.b32.xlu0 %v2710_v20, %s7032_s16  ;;  %v2108_v27 = vpop.permute.xlu1 %2107   ;;  %v2886_v20 = vsel %vm4_vm0, %v6312_v17, %v6311_v16  ;;  %v6317_v24 = vld [vmem:[%s13126_s0 + $0x444] ss:$8 sm:$0xf]  }
 0x19f   :  { %6101 = vst.msk [vmem:[%s13127_s1 + $0x160] sm:$0xff] %vm1989_vm4, %v2108_v27   ;;  %v6318_v25 = vld [vmem:[%s13126_s0 + $0x444] ss:$8 sm:$0xf0]  }
 0x1a0   :  { %v2097_v31 = vpop.permute.xlu0 %2096   ;;  %2744 = vrot.lane.b32.xlu1 %v2743_v26, %s7032_s16  ;;  %v2919_v26 = vsel %vm4_vm0, %v6321_v22, %v6320_v21  ;;  %v6326_v29 = vld [vmem:[%s13126_s0 + $0x744] ss:$8 sm:$0xf]  }
 0x1a1   :  { %6098 = vst.msk [vmem:[%s13127_s1 + $0x140] sm:$0xff] %vm1989_vm4, %v2097_v31   ;;  %v6327_v30 = vld [vmem:[%s13126_s0 + $0x744] ss:$8 sm:$0xf0]  }
 0x1a2   :  { %2733 = vrot.lane.b32.xlu0 %v2732_v28, %s7032_s16  ;;  %v2130_v35 = vpop.permute.xlu1 %2129   ;;  %v2908_v28 = vsel %vm4_vm0, %v6318_v25, %v6317_v24  ;;  %v6323_v32 = vld [vmem:[%s13126_s0 + $0x644] ss:$8 sm:$0xf]  }
 0x1a3   :  { %6107 = vst.msk [vmem:[%s13127_s1 + $0x1a0] sm:$0xff] %vm1989_vm4, %v2130_v35   ;;  %v6324_v33 = vld [vmem:[%s13126_s0 + $0x644] ss:$8 sm:$0xf0]  }
 0x1a4   :  { %v2119_v39 = vpop.permute.xlu0 %2118   ;;  %2766 = vrot.lane.b32.xlu1 %v2765_v34, %s7032_s16  ;;  %v2941_v34 = vsel %vm4_vm0, %v6327_v30, %v6326_v29  ;;  %v6332_v37 = vld [vmem:[%s13126_s0 + $0x944] ss:$8 sm:$0xf]  }
 0x1a5   :  { %6104 = vst.msk [vmem:[%s13127_s1 + $0x180] sm:$0xff] %vm1989_vm4, %v2119_v39   ;;  %v6333_v38 = vld [vmem:[%s13126_s0 + $0x944] ss:$8 sm:$0xf0]  }
 0x1a6   :  { %2755 = vrot.lane.b32.xlu0 %v2754_v36, %s7032_s16  ;;  %v2152_v43 = vpop.permute.xlu1 %2151   ;;  %v2930_v36 = vsel %vm4_vm0, %v6324_v33, %v6323_v32  ;;  %v6329_v40 = vld [vmem:[%s13126_s0 + $0x844] ss:$8 sm:$0xf]  }
 0x1a7   :  { %6113 = vst.msk [vmem:[%s13127_s1 + $0x1e0] sm:$0xff] %vm1989_vm4, %v2152_v43   ;;  %v6330_v41 = vld [vmem:[%s13126_s0 + $0x844] ss:$8 sm:$0xf0]  }
 0x1a8   :  { %v2141_v47 = vpop.permute.xlu0 %2140   ;;  %2788 = vrot.lane.b32.xlu1 %v2787_v42, %s7032_s16  ;;  %v2963_v42 = vsel %vm4_vm0, %v6333_v38, %v6332_v37  ;;  %v6338_v45 = vld [vmem:[%s13126_s0 + $0xb44] ss:$8 sm:$0xf]  }
 0x1a9   :  { %6110 = vst.msk [vmem:[%s13127_s1 + $0x1c0] sm:$0xff] %vm1989_vm4, %v2141_v47   ;;  %v6339_v46 = vld [vmem:[%s13126_s0 + $0xb44] ss:$8 sm:$0xf0]  }
 0x1aa   :  { %2777 = vrot.lane.b32.xlu0 %v2776_v44, %s7032_s16  ;;  %v2174_v51 = vpop.permute.xlu1 %2173   ;;  %v2952_v44 = vsel %vm4_vm0, %v6330_v41, %v6329_v40  ;;  %v6335_v48 = vld [vmem:[%s13126_s0 + $0xa44] ss:$8 sm:$0xf]  }
 0x1ab   :  { %6119 = vst.msk [vmem:[%s13127_s1 + $0x28] sm:$0xff] %vm1989_vm4, %v2174_v51   ;;  %v6336_v49 = vld [vmem:[%s13126_s0 + $0xa44] ss:$8 sm:$0xf0]  }
 0x1ac   :  { %v2163_v55 = vpop.permute.xlu0 %2162   ;;  %2810 = vrot.lane.b32.xlu1 %v2809_v50, %s7032_s16  ;;  %v2985_v50 = vsel %vm4_vm0, %v6339_v46, %v6338_v45  ;;  %v6344_v53 = vld [vmem:[%s13126_s0 + $0xd44] ss:$8 sm:$0xf]  }
 0x1ad   :  { %6116 = vst.msk [vmem:[%s13127_s1 + $0x8] sm:$0xff] %vm1989_vm4, %v2163_v55   ;;  %v6345_v54 = vld [vmem:[%s13126_s0 + $0xd44] ss:$8 sm:$0xf0]  }
 0x1ae   :  { %2799 = vrot.lane.b32.xlu0 %v2798_v52, %s7032_s16  ;;  %v2196_v59 = vpop.permute.xlu1 %2195   ;;  %v2974_v52 = vsel %vm4_vm0, %v6336_v49, %v6335_v48  ;;  %v6341_v56 = vld [vmem:[%s13126_s0 + $0xc44] ss:$8 sm:$0xf]  }
 0x1af   :  { %6125 = vst.msk [vmem:[%s13127_s1 + $0x68] sm:$0xff] %vm1989_vm4, %v2196_v59   ;;  %v6342_v57 = vld [vmem:[%s13126_s0 + $0xc44] ss:$8 sm:$0xf0]  }
 0x1b0   :  { %v2185_v63 = vpop.permute.xlu0 %2184   ;;  %2832 = vrot.lane.b32.xlu1 %v2831_v58, %s7032_s16  ;;  %v3007_v58 = vsel %vm4_vm0, %v6345_v54, %v6344_v53  ;;  %v6350_v61 = vld [vmem:[%s13126_s0 + $0xf44] ss:$8 sm:$0xf]  }
 0x1b1   :  { %6122 = vst.msk [vmem:[%s13127_s1 + $0x48] sm:$0xff] %vm1989_vm4, %v2185_v63   ;;  %v6351_v62 = vld [vmem:[%s13126_s0 + $0xf44] ss:$8 sm:$0xf0]  }
 0x1b2   :  { %2821 = vrot.lane.b32.xlu0 %v2820_v60, %s7032_s16  ;;  %v2218_v3 = vpop.permute.xlu1 %2217   ;;  %v2996_v60 = vsel %vm4_vm0, %v6342_v57, %v6341_v56  ;;  %v6347_v0 = vld [vmem:[%s13126_s0 + $0xe44] ss:$8 sm:$0xf]  }
 0x1b3   :  { %6131 = vst.msk [vmem:[%s13127_s1 + $0xa8] sm:$0xff] %vm1989_vm4, %v2218_v3   ;;  %v6348_v1 = vld [vmem:[%s13126_s0 + $0xe44] ss:$8 sm:$0xf0]  }
 0x1b4   :  { %v2207_v7 = vpop.permute.xlu0 %2206   ;;  %2854 = vrot.lane.b32.xlu1 %v2853_v2, %s7032_s16  ;;  %v3029_v2 = vsel %vm4_vm0, %v6351_v62, %v6350_v61  ;;  %v6356_v5 = vld [vmem:[%s13126_s0 + $0x184] ss:$8 sm:$0xf]  }
 0x1b5   :  { %6128 = vst.msk [vmem:[%s13127_s1 + $0x88] sm:$0xff] %vm1989_vm4, %v2207_v7   ;;  %v6357_v6 = vld [vmem:[%s13126_s0 + $0x184] ss:$8 sm:$0xf0]  }
 0x1b6   :  { %2843 = vrot.lane.b32.xlu0 %v2842_v4, %s7032_s16  ;;  %v2240_v11 = vpop.permute.xlu1 %2239   ;;  %v3018_v4 = vsel %vm4_vm0, %v6348_v1, %v6347_v0  ;;  %v6353_v8 = vld [vmem:[%s13126_s0 + $0x84] ss:$8 sm:$0xf]  }
 0x1b7   :  { %6137 = vst.msk [vmem:[%s13127_s1 + $0xe8] sm:$0xff] %vm1989_vm4, %v2240_v11   ;;  %v6354_v9 = vld [vmem:[%s13126_s0 + $0x84] ss:$8 sm:$0xf0]  }
 0x1b8   :  { %v2229_v15 = vpop.permute.xlu0 %2228   ;;  %2876 = vrot.lane.b32.xlu1 %v2875_v10, %s7032_s16  ;;  %v3051_v10 = vsel %vm4_vm0, %v6357_v6, %v6356_v5  ;;  %v6362_v13 = vld [vmem:[%s13126_s0 + $0x384] ss:$8 sm:$0xf]  }
 0x1b9   :  { %6134 = vst.msk [vmem:[%s13127_s1 + $0xc8] sm:$0xff] %vm1989_vm4, %v2229_v15   ;;  %v6363_v14 = vld [vmem:[%s13126_s0 + $0x384] ss:$8 sm:$0xf0]  }
 0x1ba   :  { %2865 = vrot.lane.b32.xlu0 %v2864_v12, %s7032_s16  ;;  %v2262_v19 = vpop.permute.xlu1 %2261   ;;  %v3040_v12 = vsel %vm4_vm0, %v6354_v9, %v6353_v8  ;;  %v6359_v16 = vld [vmem:[%s13126_s0 + $0x284] ss:$8 sm:$0xf]  }
 0x1bb   :  { %6143 = vst.msk [vmem:[%s13127_s1 + $0x128] sm:$0xff] %vm1989_vm4, %v2262_v19   ;;  %v6360_v17 = vld [vmem:[%s13126_s0 + $0x284] ss:$8 sm:$0xf0]  }
 0x1bc   :  { %v2251_v23 = vpop.permute.xlu0 %2250   ;;  %2898 = vrot.lane.b32.xlu1 %v2897_v18, %s7032_s16  ;;  %v3073_v18 = vsel %vm4_vm0, %v6363_v14, %v6362_v13  ;;  %v6368_v21 = vld [vmem:[%s13126_s0 + $0x584] ss:$8 sm:$0xf]  }
 0x1bd   :  { %6140 = vst.msk [vmem:[%s13127_s1 + $0x108] sm:$0xff] %vm1989_vm4, %v2251_v23   ;;  %v6369_v22 = vld [vmem:[%s13126_s0 + $0x584] ss:$8 sm:$0xf0]  }
 0x1be   :  { %2887 = vrot.lane.b32.xlu0 %v2886_v20, %s7032_s16  ;;  %v2284_v27 = vpop.permute.xlu1 %2283   ;;  %v3062_v20 = vsel %vm4_vm0, %v6360_v17, %v6359_v16  ;;  %v6365_v24 = vld [vmem:[%s13126_s0 + $0x484] ss:$8 sm:$0xf]  }
 0x1bf   :  { %6149 = vst.msk [vmem:[%s13127_s1 + $0x168] sm:$0xff] %vm1989_vm4, %v2284_v27   ;;  %v6366_v25 = vld [vmem:[%s13126_s0 + $0x484] ss:$8 sm:$0xf0]  }
 0x1c0   :  { %v2273_v31 = vpop.permute.xlu0 %2272   ;;  %2920 = vrot.lane.b32.xlu1 %v2919_v26, %s7032_s16  ;;  %v3095_v26 = vsel %vm4_vm0, %v6369_v22, %v6368_v21  ;;  %v6374_v29 = vld [vmem:[%s13126_s0 + $0x784] ss:$8 sm:$0xf]  }
 0x1c1   :  { %6146 = vst.msk [vmem:[%s13127_s1 + $0x148] sm:$0xff] %vm1989_vm4, %v2273_v31   ;;  %v6375_v30 = vld [vmem:[%s13126_s0 + $0x784] ss:$8 sm:$0xf0]  }
 0x1c2   :  { %2909 = vrot.lane.b32.xlu0 %v2908_v28, %s7032_s16  ;;  %v2306_v35 = vpop.permute.xlu1 %2305   ;;  %v3084_v28 = vsel %vm4_vm0, %v6366_v25, %v6365_v24  ;;  %v6371_v32 = vld [vmem:[%s13126_s0 + $0x684] ss:$8 sm:$0xf]  }
 0x1c3   :  { %6155 = vst.msk [vmem:[%s13127_s1 + $0x1a8] sm:$0xff] %vm1989_vm4, %v2306_v35   ;;  %v6372_v33 = vld [vmem:[%s13126_s0 + $0x684] ss:$8 sm:$0xf0]  }
 0x1c4   :  { %v2295_v39 = vpop.permute.xlu0 %2294   ;;  %2942 = vrot.lane.b32.xlu1 %v2941_v34, %s7032_s16  ;;  %v3117_v34 = vsel %vm4_vm0, %v6375_v30, %v6374_v29  ;;  %v6380_v37 = vld [vmem:[%s13126_s0 + $0x984] ss:$8 sm:$0xf]  }
 0x1c5   :  { %6152 = vst.msk [vmem:[%s13127_s1 + $0x188] sm:$0xff] %vm1989_vm4, %v2295_v39   ;;  %v6381_v38 = vld [vmem:[%s13126_s0 + $0x984] ss:$8 sm:$0xf0]  }
 0x1c6   :  { %2931 = vrot.lane.b32.xlu0 %v2930_v36, %s7032_s16  ;;  %v2328_v43 = vpop.permute.xlu1 %2327   ;;  %v3106_v36 = vsel %vm4_vm0, %v6372_v33, %v6371_v32  ;;  %v6377_v40 = vld [vmem:[%s13126_s0 + $0x884] ss:$8 sm:$0xf]  }
 0x1c7   :  { %6161 = vst.msk [vmem:[%s13127_s1 + $0x1e8] sm:$0xff] %vm1989_vm4, %v2328_v43   ;;  %v6378_v41 = vld [vmem:[%s13126_s0 + $0x884] ss:$8 sm:$0xf0]  }
 0x1c8   :  { %v2317_v47 = vpop.permute.xlu0 %2316   ;;  %2964 = vrot.lane.b32.xlu1 %v2963_v42, %s7032_s16  ;;  %v3139_v42 = vsel %vm4_vm0, %v6381_v38, %v6380_v37  ;;  %v6386_v45 = vld [vmem:[%s13126_s0 + $0xb84] ss:$8 sm:$0xf]  }
 0x1c9   :  { %6158 = vst.msk [vmem:[%s13127_s1 + $0x1c8] sm:$0xff] %vm1989_vm4, %v2317_v47   ;;  %v6387_v46 = vld [vmem:[%s13126_s0 + $0xb84] ss:$8 sm:$0xf0]  }
 0x1ca   :  { %2953 = vrot.lane.b32.xlu0 %v2952_v44, %s7032_s16  ;;  %v2350_v51 = vpop.permute.xlu1 %2349   ;;  %v3128_v44 = vsel %vm4_vm0, %v6378_v41, %v6377_v40  ;;  %v6383_v48 = vld [vmem:[%s13126_s0 + $0xa84] ss:$8 sm:$0xf]  }
 0x1cb   :  { %6167 = vst.msk [vmem:[%s13127_s1 + $0x30] sm:$0xff] %vm1989_vm4, %v2350_v51   ;;  %v6384_v49 = vld [vmem:[%s13126_s0 + $0xa84] ss:$8 sm:$0xf0]  }
 0x1cc   :  { %v2339_v55 = vpop.permute.xlu0 %2338   ;;  %2986 = vrot.lane.b32.xlu1 %v2985_v50, %s7032_s16  ;;  %v3161_v50 = vsel %vm4_vm0, %v6387_v46, %v6386_v45  ;;  %v6392_v53 = vld [vmem:[%s13126_s0 + $0xd84] ss:$8 sm:$0xf]  }
 0x1cd   :  { %6164 = vst.msk [vmem:[%s13127_s1 + $0x10] sm:$0xff] %vm1989_vm4, %v2339_v55   ;;  %v6393_v54 = vld [vmem:[%s13126_s0 + $0xd84] ss:$8 sm:$0xf0]  }
 0x1ce   :  { %2975 = vrot.lane.b32.xlu0 %v2974_v52, %s7032_s16  ;;  %v2372_v59 = vpop.permute.xlu1 %2371   ;;  %v3150_v52 = vsel %vm4_vm0, %v6384_v49, %v6383_v48  ;;  %v6389_v56 = vld [vmem:[%s13126_s0 + $0xc84] ss:$8 sm:$0xf]  }
 0x1cf   :  { %6173 = vst.msk [vmem:[%s13127_s1 + $0x70] sm:$0xff] %vm1989_vm4, %v2372_v59   ;;  %v6390_v57 = vld [vmem:[%s13126_s0 + $0xc84] ss:$8 sm:$0xf0]  }
 0x1d0   :  { %v2361_v63 = vpop.permute.xlu0 %2360   ;;  %3008 = vrot.lane.b32.xlu1 %v3007_v58, %s7032_s16  ;;  %v3183_v58 = vsel %vm4_vm0, %v6393_v54, %v6392_v53  ;;  %v6398_v61 = vld [vmem:[%s13126_s0 + $0xf84] ss:$8 sm:$0xf]  }
 0x1d1   :  { %6170 = vst.msk [vmem:[%s13127_s1 + $0x50] sm:$0xff] %vm1989_vm4, %v2361_v63   ;;  %v6399_v62 = vld [vmem:[%s13126_s0 + $0xf84] ss:$8 sm:$0xf0]  }
 0x1d2   :  { %2997 = vrot.lane.b32.xlu0 %v2996_v60, %s7032_s16  ;;  %v2394_v3 = vpop.permute.xlu1 %2393   ;;  %v3172_v60 = vsel %vm4_vm0, %v6390_v57, %v6389_v56  ;;  %v6395_v0 = vld [vmem:[%s13126_s0 + $0xe84] ss:$8 sm:$0xf]  }
 0x1d3   :  { %6179 = vst.msk [vmem:[%s13127_s1 + $0xb0] sm:$0xff] %vm1989_vm4, %v2394_v3   ;;  %v6396_v1 = vld [vmem:[%s13126_s0 + $0xe84] ss:$8 sm:$0xf0]  }
 0x1d4   :  { %v2383_v7 = vpop.permute.xlu0 %2382   ;;  %3030 = vrot.lane.b32.xlu1 %v3029_v2, %s7032_s16  ;;  %v3205_v2 = vsel %vm4_vm0, %v6399_v62, %v6398_v61  ;;  %v6404_v5 = vld [vmem:[%s13126_s0 + $0x1c4] ss:$8 sm:$0xf]  }
 0x1d5   :  { %6176 = vst.msk [vmem:[%s13127_s1 + $0x90] sm:$0xff] %vm1989_vm4, %v2383_v7   ;;  %v6405_v6 = vld [vmem:[%s13126_s0 + $0x1c4] ss:$8 sm:$0xf0]  }
 0x1d6   :  { %3019 = vrot.lane.b32.xlu0 %v3018_v4, %s7032_s16  ;;  %v2416_v11 = vpop.permute.xlu1 %2415   ;;  %v3194_v4 = vsel %vm4_vm0, %v6396_v1, %v6395_v0  ;;  %v6401_v8 = vld [vmem:[%s13126_s0 + $0xc4] ss:$8 sm:$0xf]  }
 0x1d7   :  { %6185 = vst.msk [vmem:[%s13127_s1 + $0xf0] sm:$0xff] %vm1989_vm4, %v2416_v11   ;;  %v6402_v9 = vld [vmem:[%s13126_s0 + $0xc4] ss:$8 sm:$0xf0]  }
 0x1d8   :  { %v2405_v15 = vpop.permute.xlu0 %2404   ;;  %3052 = vrot.lane.b32.xlu1 %v3051_v10, %s7032_s16  ;;  %v3227_v10 = vsel %vm4_vm0, %v6405_v6, %v6404_v5  ;;  %v6410_v13 = vld [vmem:[%s13126_s0 + $0x3c4] ss:$8 sm:$0xf]   ;;  %v6451_v5 = vld [vmem:[%s13126_s0 + $0x103] ss:$8 sm:$0xf]  }
 0x1d9   :  { %6182 = vst.msk [vmem:[%s13127_s1 + $0xd0] sm:$0xff] %vm1989_vm4, %v2405_v15   ;;  %v6411_v14 = vld [vmem:[%s13126_s0 + $0x3c4] ss:$8 sm:$0xf0]  }
 0x1da   :  { %3041 = vrot.lane.b32.xlu0 %v3040_v12, %s7032_s16  ;;  %v2438_v19 = vpop.permute.xlu1 %2437   ;;  %v3216_v12 = vsel %vm4_vm0, %v6402_v9, %v6401_v8  ;;  %v6407_v16 = vld [vmem:[%s13126_s0 + $0x2c4] ss:$8 sm:$0xf]   ;;  %v6452_v6 = vld [vmem:[%s13126_s0 + $0x103] ss:$8 sm:$0xf0]  }
 0x1db   :  { %6191 = vst.msk [vmem:[%s13127_s1 + $0x130] sm:$0xff] %vm1989_vm4, %v2438_v19   ;;  %v6408_v17 = vld [vmem:[%s13126_s0 + $0x2c4] ss:$8 sm:$0xf0]  }
 0x1dc   :  { %v2427_v23 = vpop.permute.xlu0 %2426   ;;  %3074 = vrot.lane.b32.xlu1 %v3073_v18, %s7032_s16  ;;  %v3249_v18 = vsel %vm4_vm0, %v6411_v14, %v6410_v13  ;;  %v6416_v21 = vld [vmem:[%s13126_s0 + $0x5c4] ss:$8 sm:$0xf]   ;;  %v6449_v8 = vld [vmem:[%s13126_s0 + $0x3] ss:$8 sm:$0xf]  }
 0x1dd   :  { %6188 = vst.msk [vmem:[%s13127_s1 + $0x110] sm:$0xff] %vm1989_vm4, %v2427_v23   ;;  %v6417_v22 = vld [vmem:[%s13126_s0 + $0x5c4] ss:$8 sm:$0xf0]  }
 0x1de   :  { %3063 = vrot.lane.b32.xlu0 %v3062_v20, %s7032_s16  ;;  %v2460_v27 = vpop.permute.xlu1 %2459   ;;  %v3238_v20 = vsel %vm4_vm0, %v6408_v17, %v6407_v16  ;;  %v6413_v24 = vld [vmem:[%s13126_s0 + $0x4c4] ss:$8 sm:$0xf]   ;;  %v6450_v9 = vld [vmem:[%s13126_s0 + $0x3] ss:$8 sm:$0xf0]  }
 0x1df   :  { %6197 = vst.msk [vmem:[%s13127_s1 + $0x170] sm:$0xff] %vm1989_vm4, %v2460_v27   ;;  %v6414_v25 = vld [vmem:[%s13126_s0 + $0x4c4] ss:$8 sm:$0xf0]  }
 0x1e0   :  { %v2449_v31 = vpop.permute.xlu0 %2448   ;;  %3096 = vrot.lane.b32.xlu1 %v3095_v26, %s7032_s16  ;;  %v3271_v26 = vsel %vm4_vm0, %v6417_v22, %v6416_v21  ;;  %v6422_v29 = vld [vmem:[%s13126_s0 + $0x7c4] ss:$8 sm:$0xf]   ;;  %v6457_v13 = vld [vmem:[%s13126_s0 + $0x303] ss:$8 sm:$0xf]  }
 0x1e1   :  { %6194 = vst.msk [vmem:[%s13127_s1 + $0x150] sm:$0xff] %vm1989_vm4, %v2449_v31   ;;  %v6423_v30 = vld [vmem:[%s13126_s0 + $0x7c4] ss:$8 sm:$0xf0]  }
 0x1e2   :  { %3085 = vrot.lane.b32.xlu0 %v3084_v28, %s7032_s16  ;;  %v2482_v35 = vpop.permute.xlu1 %2481   ;;  %v3260_v28 = vsel %vm4_vm0, %v6414_v25, %v6413_v24  ;;  %v6419_v32 = vld [vmem:[%s13126_s0 + $0x6c4] ss:$8 sm:$0xf]   ;;  %v6458_v14 = vld [vmem:[%s13126_s0 + $0x303] ss:$8 sm:$0xf0]  }
 0x1e3   :  { %6203 = vst.msk [vmem:[%s13127_s1 + $0x1b0] sm:$0xff] %vm1989_vm4, %v2482_v35   ;;  %v6420_v33 = vld [vmem:[%s13126_s0 + $0x6c4] ss:$8 sm:$0xf0]  }
 0x1e4   :  { %v2471_v39 = vpop.permute.xlu0 %2470   ;;  %3118 = vrot.lane.b32.xlu1 %v3117_v34, %s7032_s16  ;;  %v3293_v34 = vsel %vm4_vm0, %v6423_v30, %v6422_v29  ;;  %v6428_v37 = vld [vmem:[%s13126_s0 + $0x9c4] ss:$8 sm:$0xf]   ;;  %v6454_v16 = vld [vmem:[%s13126_s0 + $0x203] ss:$8 sm:$0xf]  }
 0x1e5   :  { %6200 = vst.msk [vmem:[%s13127_s1 + $0x190] sm:$0xff] %vm1989_vm4, %v2471_v39   ;;  %v6429_v38 = vld [vmem:[%s13126_s0 + $0x9c4] ss:$8 sm:$0xf0]  }
 0x1e6   :  { %3107 = vrot.lane.b32.xlu0 %v3106_v36, %s7032_s16  ;;  %v2504_v43 = vpop.permute.xlu1 %2503   ;;  %v3282_v36 = vsel %vm4_vm0, %v6420_v33, %v6419_v32  ;;  %v6425_v40 = vld [vmem:[%s13126_s0 + $0x8c4] ss:$8 sm:$0xf]   ;;  %v6455_v17 = vld [vmem:[%s13126_s0 + $0x203] ss:$8 sm:$0xf0]  }
 0x1e7   :  { %6209 = vst.msk [vmem:[%s13127_s1 + $0x1f0] sm:$0xff] %vm1989_vm4, %v2504_v43   ;;  %v6426_v41 = vld [vmem:[%s13126_s0 + $0x8c4] ss:$8 sm:$0xf0]  }
 0x1e8   :  { %v2493_v47 = vpop.permute.xlu0 %2492   ;;  %3140 = vrot.lane.b32.xlu1 %v3139_v42, %s7032_s16  ;;  %v3315_v42 = vsel %vm4_vm0, %v6429_v38, %v6428_v37  ;;  %v6434_v45 = vld [vmem:[%s13126_s0 + $0xbc4] ss:$8 sm:$0xf]   ;;  %v6463_v21 = vld [vmem:[%s13126_s0 + $0x503] ss:$8 sm:$0xf]  }
 0x1e9   :  { %6206 = vst.msk [vmem:[%s13127_s1 + $0x1d0] sm:$0xff] %vm1989_vm4, %v2493_v47   ;;  %v6435_v46 = vld [vmem:[%s13126_s0 + $0xbc4] ss:$8 sm:$0xf0]  }
 0x1ea   :  { %3129 = vrot.lane.b32.xlu0 %v3128_v44, %s7032_s16  ;;  %v2526_v51 = vpop.permute.xlu1 %2525   ;;  %v3304_v44 = vsel %vm4_vm0, %v6426_v41, %v6425_v40  ;;  %v6431_v48 = vld [vmem:[%s13126_s0 + $0xac4] ss:$8 sm:$0xf]   ;;  %v6464_v22 = vld [vmem:[%s13126_s0 + $0x503] ss:$8 sm:$0xf0]  }
 0x1eb   :  { %6215 = vst.msk [vmem:[%s13127_s1 + $0x38] sm:$0xff] %vm1989_vm4, %v2526_v51   ;;  %v6432_v49 = vld [vmem:[%s13126_s0 + $0xac4] ss:$8 sm:$0xf0]  }
 0x1ec   :  { %v2515_v55 = vpop.permute.xlu0 %2514   ;;  %3162 = vrot.lane.b32.xlu1 %v3161_v50, %s7032_s16  ;;  %v3337_v50 = vsel %vm4_vm0, %v6435_v46, %v6434_v45  ;;  %v6440_v53 = vld [vmem:[%s13126_s0 + $0xdc4] ss:$8 sm:$0xf]   ;;  %v6460_v24 = vld [vmem:[%s13126_s0 + $0x403] ss:$8 sm:$0xf]  }
 0x1ed   :  { %6212 = vst.msk [vmem:[%s13127_s1 + $0x18] sm:$0xff] %vm1989_vm4, %v2515_v55   ;;  %v6441_v54 = vld [vmem:[%s13126_s0 + $0xdc4] ss:$8 sm:$0xf0]  }
 0x1ee   :  { %3151 = vrot.lane.b32.xlu0 %v3150_v52, %s7032_s16  ;;  %v2548_v59 = vpop.permute.xlu1 %2547   ;;  %v3326_v52 = vsel %vm4_vm0, %v6432_v49, %v6431_v48  ;;  %v6437_v56 = vld [vmem:[%s13126_s0 + $0xcc4] ss:$8 sm:$0xf]   ;;  %v6461_v25 = vld [vmem:[%s13126_s0 + $0x403] ss:$8 sm:$0xf0]  }
 0x1ef   :  { %6221 = vst.msk [vmem:[%s13127_s1 + $0x78] sm:$0xff] %vm1989_vm4, %v2548_v59   ;;  %v6438_v57 = vld [vmem:[%s13126_s0 + $0xcc4] ss:$8 sm:$0xf0]  }
 0x1f0   :  { %v2537_v63 = vpop.permute.xlu0 %2536   ;;  %3184 = vrot.lane.b32.xlu1 %v3183_v58, %s7032_s16  ;;  %v3359_v58 = vsel %vm4_vm0, %v6441_v54, %v6440_v53  ;;  %v6446_v61 = vld [vmem:[%s13126_s0 + $0xfc4] ss:$8 sm:$0xf]   ;;  %v6469_v29 = vld [vmem:[%s13126_s0 + $0x703] ss:$8 sm:$0xf]  }
 0x1f1   :  { %6218 = vst.msk [vmem:[%s13127_s1 + $0x58] sm:$0xff] %vm1989_vm4, %v2537_v63   ;;  %v6447_v62 = vld [vmem:[%s13126_s0 + $0xfc4] ss:$8 sm:$0xf0]  }
 0x1f2   :  { %3173 = vrot.lane.b32.xlu0 %v3172_v60, %s7032_s16  ;;  %v2570_v3 = vpop.permute.xlu1 %2569   ;;  %v3348_v60 = vsel %vm4_vm0, %v6438_v57, %v6437_v56  ;;  %v6443_v0 = vld [vmem:[%s13126_s0 + $0xec4] ss:$8 sm:$0xf]   ;;  %v6470_v30 = vld [vmem:[%s13126_s0 + $0x703] ss:$8 sm:$0xf0]  }
 0x1f3   :  { %6227 = vst.msk [vmem:[%s13127_s1 + $0xb8] sm:$0xff] %vm1989_vm4, %v2570_v3   ;;  %v6444_v1 = vld [vmem:[%s13126_s0 + $0xec4] ss:$8 sm:$0xf0]  }
 0x1f4   :  { %v2559_v7 = vpop.permute.xlu0 %2558   ;;  %3206 = vrot.lane.b32.xlu1 %v3205_v2, %s7032_s16  ;;  %v3381_v2 = vsel %vm4_vm0, %v6447_v62, %v6446_v61  ;;  %v6466_v32 = vld [vmem:[%s13126_s0 + $0x603] ss:$8 sm:$0xf]  }
 0x1f5   :  { %6224 = vst.msk [vmem:[%s13127_s1 + $0x98] sm:$0xff] %vm1989_vm4, %v2559_v7   ;;  %v6467_v33 = vld [vmem:[%s13126_s0 + $0x603] ss:$8 sm:$0xf0]  }
 0x1f6   :  { %3195 = vrot.lane.b32.xlu0 %v3194_v4, %s7032_s16  ;;  %v2592_v11 = vpop.permute.xlu1 %2591   ;;  %v3370_v4 = vsel %vm4_vm0, %v6444_v1, %v6443_v0  ;;  %v6475_v37 = vld [vmem:[%s13126_s0 + $0x903] ss:$8 sm:$0xf]  }
 0x1f7   :  { %6233 = vst.msk [vmem:[%s13127_s1 + $0xf8] sm:$0xff] %vm1989_vm4, %v2592_v11   ;;  %v6476_v38 = vld [vmem:[%s13126_s0 + $0x903] ss:$8 sm:$0xf0]  }
 0x1f8   :  { %v2581_v15 = vpop.permute.xlu0 %2580   ;;  %3228 = vrot.lane.b32.xlu1 %v3227_v10, %s7032_s16  ;;  %v3402_v10 = vsel %vm4_vm0, %v6452_v6, %v6451_v5  ;;  %v6472_v40 = vld [vmem:[%s13126_s0 + $0x803] ss:$8 sm:$0xf]  }
 0x1f9   :  { %6230 = vst.msk [vmem:[%s13127_s1 + $0xd8] sm:$0xff] %vm1989_vm4, %v2581_v15   ;;  %v6473_v41 = vld [vmem:[%s13126_s0 + $0x803] ss:$8 sm:$0xf0]  }
 0x1fa   :  { %3217 = vrot.lane.b32.xlu0 %v3216_v12, %s7032_s16  ;;  %v2614_v19 = vpop.permute.xlu1 %2613   ;;  %v3392_v12 = vsel %vm4_vm0, %v6450_v9, %v6449_v8  ;;  %v6481_v45 = vld [vmem:[%s13126_s0 + $0xb03] ss:$8 sm:$0xf]  }
 0x1fb   :  { %6239 = vst.msk [vmem:[%s13127_s1 + $0x138] sm:$0xff] %vm1989_vm4, %v2614_v19   ;;  %v6482_v46 = vld [vmem:[%s13126_s0 + $0xb03] ss:$8 sm:$0xf0]  }
 0x1fc   :  { %v2603_v23 = vpop.permute.xlu0 %2602   ;;  %3250 = vrot.lane.b32.xlu1 %v3249_v18, %s7032_s16  ;;  %v3424_v18 = vsel %vm4_vm0, %v6458_v14, %v6457_v13  ;;  %v6478_v48 = vld [vmem:[%s13126_s0 + $0xa03] ss:$8 sm:$0xf]  }
 0x1fd   :  { %6236 = vst.msk [vmem:[%s13127_s1 + $0x118] sm:$0xff] %vm1989_vm4, %v2603_v23   ;;  %v6479_v49 = vld [vmem:[%s13126_s0 + $0xa03] ss:$8 sm:$0xf0]  }
 0x1fe   :  { %3239 = vrot.lane.b32.xlu0 %v3238_v20, %s7032_s16  ;;  %v2636_v27 = vpop.permute.xlu1 %2635   ;;  %v3413_v20 = vsel %vm4_vm0, %v6455_v17, %v6454_v16  ;;  %v6487_v53 = vld [vmem:[%s13126_s0 + $0xd03] ss:$8 sm:$0xf]  }
 0x1ff   :  { %6245 = vst.msk [vmem:[%s13127_s1 + $0x178] sm:$0xff] %vm1989_vm4, %v2636_v27   ;;  %v6488_v54 = vld [vmem:[%s13126_s0 + $0xd03] ss:$8 sm:$0xf0]  }
 0x200   :  { %v2625_v31 = vpop.permute.xlu0 %2624   ;;  %3272 = vrot.lane.b32.xlu1 %v3271_v26, %s7032_s16  ;;  %v3446_v26 = vsel %vm4_vm0, %v6464_v22, %v6463_v21  ;;  %v6484_v56 = vld [vmem:[%s13126_s0 + $0xc03] ss:$8 sm:$0xf]  }
 0x201   :  { %6242 = vst.msk [vmem:[%s13127_s1 + $0x158] sm:$0xff] %vm1989_vm4, %v2625_v31   ;;  %v6485_v57 = vld [vmem:[%s13126_s0 + $0xc03] ss:$8 sm:$0xf0]  }
 0x202   :  { %3261 = vrot.lane.b32.xlu0 %v3260_v28, %s7032_s16  ;;  %v2658_v35 = vpop.permute.xlu1 %2657   ;;  %v3435_v28 = vsel %vm4_vm0, %v6461_v25, %v6460_v24  ;;  %v6493_v61 = vld [vmem:[%s13126_s0 + $0xf03] ss:$8 sm:$0xf]  }
 0x203   :  { %6251 = vst.msk [vmem:[%s13127_s1 + $0x1b8] sm:$0xff] %vm1989_vm4, %v2658_v35   ;;  %v6494_v62 = vld [vmem:[%s13126_s0 + $0xf03] ss:$8 sm:$0xf0]  }
 0x204   :  { %v2647_v39 = vpop.permute.xlu0 %2646   ;;  %3294 = vrot.lane.b32.xlu1 %v3293_v34, %s7032_s16  ;;  %v3468_v34 = vsel %vm4_vm0, %v6470_v30, %v6469_v29  ;;  %v6490_v0 = vld [vmem:[%s13126_s0 + $0xe03] ss:$8 sm:$0xf]  }
 0x205   :  { %6248 = vst.msk [vmem:[%s13127_s1 + $0x198] sm:$0xff] %vm1989_vm4, %v2647_v39   ;;  %v6491_v1 = vld [vmem:[%s13126_s0 + $0xe03] ss:$8 sm:$0xf0]  }
 0x206   :  { %3283 = vrot.lane.b32.xlu0 %v3282_v36, %s7032_s16  ;;  %v2680_v43 = vpop.permute.xlu1 %2679   ;;  %v3457_v36 = vsel %vm4_vm0, %v6467_v33, %v6466_v32  ;;  %v6499_v5 = vld [vmem:[%s13126_s0 + $0x143] ss:$8 sm:$0xf]  }
 0x207   :  { %6257 = vst.msk [vmem:[%s13127_s1 + $0x1f8] sm:$0xff] %vm1989_vm4, %v2680_v43   ;;  %v6500_v6 = vld [vmem:[%s13126_s0 + $0x143] ss:$8 sm:$0xf0]  }
 0x208   :  { %v2669_v47 = vpop.permute.xlu0 %2668   ;;  %3316 = vrot.lane.b32.xlu1 %v3315_v42, %s7032_s16  ;;  %v3490_v42 = vsel %vm4_vm0, %v6476_v38, %v6475_v37  ;;  %v6496_v8 = vld [vmem:[%s13126_s0 + $0x43] ss:$8 sm:$0xf]  }
 0x209   :  { %6254 = vst.msk [vmem:[%s13127_s1 + $0x1d8] sm:$0xff] %vm1989_vm4, %v2669_v47   ;;  %v6497_v9 = vld [vmem:[%s13126_s0 + $0x43] ss:$8 sm:$0xf0]  }
 0x20a   :  { %3305 = vrot.lane.b32.xlu0 %v3304_v44, %s7032_s16  ;;  %v2701_v51 = vpop.permute.xlu1 %2700   ;;  %v3479_v44 = vsel %vm4_vm0, %v6473_v41, %v6472_v40  ;;  %v6505_v13 = vld [vmem:[%s13126_s0 + $0x343] ss:$8 sm:$0xf]  }
 0x20b   :  { %6262 = vst.msk [vmem:[%s13127_s1 + $0x20] sm:$0xff] %vm2692_vm5, %v2701_v51   ;;  %v6506_v14 = vld [vmem:[%s13126_s0 + $0x343] ss:$8 sm:$0xf0]  }
 0x20c   :  { %v2691_v55 = vpop.permute.xlu0 %2690   ;;  %3338 = vrot.lane.b32.xlu1 %v3337_v50, %s7032_s16  ;;  %v3512_v50 = vsel %vm4_vm0, %v6482_v46, %v6481_v45  ;;  %v6502_v16 = vld [vmem:[%s13126_s0 + $0x243] ss:$8 sm:$0xf]  }
 0x20d   :  { %2693 = vst.msk [vmem:[%s13127_s1] sm:$0xff] %vm2692_vm5, %v2691_v55   ;;  %v6503_v17 = vld [vmem:[%s13126_s0 + $0x243] ss:$8 sm:$0xf0]  }
 0x20e   :  { %3327 = vrot.lane.b32.xlu0 %v3326_v52, %s7032_s16  ;;  %v2723_v59 = vpop.permute.xlu1 %2722   ;;  %v3501_v52 = vsel %vm4_vm0, %v6479_v49, %v6478_v48  ;;  %v6511_v21 = vld [vmem:[%s13126_s0 + $0x543] ss:$8 sm:$0xf]  }
 0x20f   :  { %6268 = vst.msk [vmem:[%s13127_s1 + $0x60] sm:$0xff] %vm2692_vm5, %v2723_v59   ;;  %v6512_v22 = vld [vmem:[%s13126_s0 + $0x543] ss:$8 sm:$0xf0]  }
 0x210   :  { %v2712_v63 = vpop.permute.xlu0 %2711   ;;  %3360 = vrot.lane.b32.xlu1 %v3359_v58, %s7032_s16  ;;  %v3534_v58 = vsel %vm4_vm0, %v6488_v54, %v6487_v53  ;;  %v6508_v24 = vld [vmem:[%s13126_s0 + $0x443] ss:$8 sm:$0xf]  }
 0x211   :  { %6265 = vst.msk [vmem:[%s13127_s1 + $0x40] sm:$0xff] %vm2692_vm5, %v2712_v63   ;;  %v6509_v25 = vld [vmem:[%s13126_s0 + $0x443] ss:$8 sm:$0xf0]  }
 0x212   :  { %3349 = vrot.lane.b32.xlu0 %v3348_v60, %s7032_s16  ;;  %v2745_v3 = vpop.permute.xlu1 %2744   ;;  %v3523_v60 = vsel %vm4_vm0, %v6485_v57, %v6484_v56  ;;  %v6517_v29 = vld [vmem:[%s13126_s0 + $0x743] ss:$8 sm:$0xf]  }
 0x213   :  { %6274 = vst.msk [vmem:[%s13127_s1 + $0xa0] sm:$0xff] %vm2692_vm5, %v2745_v3   ;;  %v6518_v30 = vld [vmem:[%s13126_s0 + $0x743] ss:$8 sm:$0xf0]  }
 0x214   :  { %v2734_v7 = vpop.permute.xlu0 %2733   ;;  %3382 = vrot.lane.b32.xlu1 %v3381_v2, %s7032_s16  ;;  %v3556_v2 = vsel %vm4_vm0, %v6494_v62, %v6493_v61  ;;  %v6514_v32 = vld [vmem:[%s13126_s0 + $0x643] ss:$8 sm:$0xf]  }
 0x215   :  { %6271 = vst.msk [vmem:[%s13127_s1 + $0x80] sm:$0xff] %vm2692_vm5, %v2734_v7   ;;  %v6515_v33 = vld [vmem:[%s13126_s0 + $0x643] ss:$8 sm:$0xf0]  }
 0x216   :  { %3371 = vrot.lane.b32.xlu0 %v3370_v4, %s7032_s16  ;;  %v2767_v11 = vpop.permute.xlu1 %2766   ;;  %v3545_v4 = vsel %vm4_vm0, %v6491_v1, %v6490_v0  ;;  %v6523_v37 = vld [vmem:[%s13126_s0 + $0x943] ss:$8 sm:$0xf]  }
 0x217   :  { %6280 = vst.msk [vmem:[%s13127_s1 + $0xe0] sm:$0xff] %vm2692_vm5, %v2767_v11   ;;  %v6524_v38 = vld [vmem:[%s13126_s0 + $0x943] ss:$8 sm:$0xf0]  }
 0x218   :  { %v2756_v15 = vpop.permute.xlu0 %2755   ;;  %3403 = vrot.lane.b32.xlu1 %v3402_v10, %s7033_s8  ;;  %v3578_v10 = vsel %vm4_vm0, %v6500_v6, %v6499_v5  ;;  %v6520_v40 = vld [vmem:[%s13126_s0 + $0x843] ss:$8 sm:$0xf]  }
 0x219   :  { %6277 = vst.msk [vmem:[%s13127_s1 + $0xc0] sm:$0xff] %vm2692_vm5, %v2756_v15   ;;  %v6521_v41 = vld [vmem:[%s13126_s0 + $0x843] ss:$8 sm:$0xf0]  }
 0x21a   :  { %3393 = vrot.lane.b32.xlu0 %v3392_v12, %s7033_s8  ;;  %v2789_v19 = vpop.permute.xlu1 %2788   ;;  %v3567_v12 = vsel %vm4_vm0, %v6497_v9, %v6496_v8  ;;  %v6529_v45 = vld [vmem:[%s13126_s0 + $0xb43] ss:$8 sm:$0xf]  }
 0x21b   :  { %6286 = vst.msk [vmem:[%s13127_s1 + $0x120] sm:$0xff] %vm2692_vm5, %v2789_v19   ;;  %v6530_v46 = vld [vmem:[%s13126_s0 + $0xb43] ss:$8 sm:$0xf0]  }
 0x21c   :  { %v2778_v23 = vpop.permute.xlu0 %2777   ;;  %3425 = vrot.lane.b32.xlu1 %v3424_v18, %s7033_s8  ;;  %v3600_v18 = vsel %vm4_vm0, %v6506_v14, %v6505_v13  ;;  %v6526_v48 = vld [vmem:[%s13126_s0 + $0xa43] ss:$8 sm:$0xf]  }
 0x21d   :  { %6283 = vst.msk [vmem:[%s13127_s1 + $0x100] sm:$0xff] %vm2692_vm5, %v2778_v23   ;;  %v6527_v49 = vld [vmem:[%s13126_s0 + $0xa43] ss:$8 sm:$0xf0]  }
 0x21e   :  { %3414 = vrot.lane.b32.xlu0 %v3413_v20, %s7033_s8  ;;  %v2811_v27 = vpop.permute.xlu1 %2810   ;;  %v3589_v20 = vsel %vm4_vm0, %v6503_v17, %v6502_v16  ;;  %v6535_v53 = vld [vmem:[%s13126_s0 + $0xd43] ss:$8 sm:$0xf]  }
 0x21f   :  { %6292 = vst.msk [vmem:[%s13127_s1 + $0x160] sm:$0xff] %vm2692_vm5, %v2811_v27   ;;  %v6536_v54 = vld [vmem:[%s13126_s0 + $0xd43] ss:$8 sm:$0xf0]  }
 0x220   :  { %v2800_v31 = vpop.permute.xlu0 %2799   ;;  %3447 = vrot.lane.b32.xlu1 %v3446_v26, %s7033_s8  ;;  %v3622_v26 = vsel %vm4_vm0, %v6512_v22, %v6511_v21  ;;  %v6532_v56 = vld [vmem:[%s13126_s0 + $0xc43] ss:$8 sm:$0xf]  }
 0x221   :  { %6289 = vst.msk [vmem:[%s13127_s1 + $0x140] sm:$0xff] %vm2692_vm5, %v2800_v31   ;;  %v6533_v57 = vld [vmem:[%s13126_s0 + $0xc43] ss:$8 sm:$0xf0]  }
 0x222   :  { %3436 = vrot.lane.b32.xlu0 %v3435_v28, %s7033_s8  ;;  %v2833_v35 = vpop.permute.xlu1 %2832   ;;  %v3611_v28 = vsel %vm4_vm0, %v6509_v25, %v6508_v24  ;;  %v6541_v61 = vld [vmem:[%s13126_s0 + $0xf43] ss:$8 sm:$0xf]  }
 0x223   :  { %6298 = vst.msk [vmem:[%s13127_s1 + $0x1a0] sm:$0xff] %vm2692_vm5, %v2833_v35   ;;  %v6542_v62 = vld [vmem:[%s13126_s0 + $0xf43] ss:$8 sm:$0xf0]  }
 0x224   :  { %v2822_v39 = vpop.permute.xlu0 %2821   ;;  %3469 = vrot.lane.b32.xlu1 %v3468_v34, %s7033_s8  ;;  %v3644_v34 = vsel %vm4_vm0, %v6518_v30, %v6517_v29  ;;  %v6538_v0 = vld [vmem:[%s13126_s0 + $0xe43] ss:$8 sm:$0xf]  }
 0x225   :  { %6295 = vst.msk [vmem:[%s13127_s1 + $0x180] sm:$0xff] %vm2692_vm5, %v2822_v39   ;;  %v6539_v1 = vld [vmem:[%s13126_s0 + $0xe43] ss:$8 sm:$0xf0]  }
 0x226   :  { %3458 = vrot.lane.b32.xlu0 %v3457_v36, %s7033_s8  ;;  %v2855_v43 = vpop.permute.xlu1 %2854   ;;  %v3633_v36 = vsel %vm4_vm0, %v6515_v33, %v6514_v32  ;;  %v6547_v5 = vld [vmem:[%s13126_s0 + $0x183] ss:$8 sm:$0xf]  }
 0x227   :  { %6304 = vst.msk [vmem:[%s13127_s1 + $0x1e0] sm:$0xff] %vm2692_vm5, %v2855_v43   ;;  %v6548_v6 = vld [vmem:[%s13126_s0 + $0x183] ss:$8 sm:$0xf0]  }
 0x228   :  { %v2844_v47 = vpop.permute.xlu0 %2843   ;;  %3491 = vrot.lane.b32.xlu1 %v3490_v42, %s7033_s8  ;;  %v3666_v42 = vsel %vm4_vm0, %v6524_v38, %v6523_v37  ;;  %v6544_v8 = vld [vmem:[%s13126_s0 + $0x83] ss:$8 sm:$0xf]  }
 0x229   :  { %6301 = vst.msk [vmem:[%s13127_s1 + $0x1c0] sm:$0xff] %vm2692_vm5, %v2844_v47   ;;  %v6545_v9 = vld [vmem:[%s13126_s0 + $0x83] ss:$8 sm:$0xf0]  }
 0x22a   :  { %3480 = vrot.lane.b32.xlu0 %v3479_v44, %s7033_s8  ;;  %v2877_v51 = vpop.permute.xlu1 %2876   ;;  %v3655_v44 = vsel %vm4_vm0, %v6521_v41, %v6520_v40  ;;  %v6553_v13 = vld [vmem:[%s13126_s0 + $0x383] ss:$8 sm:$0xf]  }
 0x22b   :  { %6310 = vst.msk [vmem:[%s13127_s1 + $0x28] sm:$0xff] %vm2692_vm5, %v2877_v51   ;;  %v6554_v14 = vld [vmem:[%s13126_s0 + $0x383] ss:$8 sm:$0xf0]  }
 0x22c   :  { %v2866_v55 = vpop.permute.xlu0 %2865   ;;  %3513 = vrot.lane.b32.xlu1 %v3512_v50, %s7033_s8  ;;  %v3688_v50 = vsel %vm4_vm0, %v6530_v46, %v6529_v45  ;;  %v6550_v16 = vld [vmem:[%s13126_s0 + $0x283] ss:$8 sm:$0xf]  }
 0x22d   :  { %6307 = vst.msk [vmem:[%s13127_s1 + $0x8] sm:$0xff] %vm2692_vm5, %v2866_v55   ;;  %v6551_v17 = vld [vmem:[%s13126_s0 + $0x283] ss:$8 sm:$0xf0]  }
 0x22e   :  { %3502 = vrot.lane.b32.xlu0 %v3501_v52, %s7033_s8  ;;  %v2899_v59 = vpop.permute.xlu1 %2898   ;;  %v3677_v52 = vsel %vm4_vm0, %v6527_v49, %v6526_v48  ;;  %v6559_v21 = vld [vmem:[%s13126_s0 + $0x583] ss:$8 sm:$0xf]  }
 0x22f   :  { %6316 = vst.msk [vmem:[%s13127_s1 + $0x68] sm:$0xff] %vm2692_vm5, %v2899_v59   ;;  %v6560_v22 = vld [vmem:[%s13126_s0 + $0x583] ss:$8 sm:$0xf0]  }
 0x230   :  { %v2888_v63 = vpop.permute.xlu0 %2887   ;;  %3535 = vrot.lane.b32.xlu1 %v3534_v58, %s7033_s8  ;;  %v3710_v58 = vsel %vm4_vm0, %v6536_v54, %v6535_v53  ;;  %v6556_v24 = vld [vmem:[%s13126_s0 + $0x483] ss:$8 sm:$0xf]  }
 0x231   :  { %6313 = vst.msk [vmem:[%s13127_s1 + $0x48] sm:$0xff] %vm2692_vm5, %v2888_v63   ;;  %v6557_v25 = vld [vmem:[%s13126_s0 + $0x483] ss:$8 sm:$0xf0]  }
 0x232   :  { %3524 = vrot.lane.b32.xlu0 %v3523_v60, %s7033_s8  ;;  %v2921_v3 = vpop.permute.xlu1 %2920   ;;  %v3699_v60 = vsel %vm4_vm0, %v6533_v57, %v6532_v56  ;;  %v6565_v29 = vld [vmem:[%s13126_s0 + $0x783] ss:$8 sm:$0xf]  }
 0x233   :  { %6322 = vst.msk [vmem:[%s13127_s1 + $0xa8] sm:$0xff] %vm2692_vm5, %v2921_v3   ;;  %v6566_v30 = vld [vmem:[%s13126_s0 + $0x783] ss:$8 sm:$0xf0]  }
 0x234   :  { %v2910_v7 = vpop.permute.xlu0 %2909   ;;  %3557 = vrot.lane.b32.xlu1 %v3556_v2, %s7033_s8  ;;  %v3732_v2 = vsel %vm4_vm0, %v6542_v62, %v6541_v61  ;;  %v6562_v32 = vld [vmem:[%s13126_s0 + $0x683] ss:$8 sm:$0xf]  }
 0x235   :  { %6319 = vst.msk [vmem:[%s13127_s1 + $0x88] sm:$0xff] %vm2692_vm5, %v2910_v7   ;;  %v6563_v33 = vld [vmem:[%s13126_s0 + $0x683] ss:$8 sm:$0xf0]  }
 0x236   :  { %3546 = vrot.lane.b32.xlu0 %v3545_v4, %s7033_s8  ;;  %v2943_v11 = vpop.permute.xlu1 %2942   ;;  %v3721_v4 = vsel %vm4_vm0, %v6539_v1, %v6538_v0  ;;  %v6571_v37 = vld [vmem:[%s13126_s0 + $0x983] ss:$8 sm:$0xf]  }
 0x237   :  { %6328 = vst.msk [vmem:[%s13127_s1 + $0xe8] sm:$0xff] %vm2692_vm5, %v2943_v11   ;;  %v6572_v38 = vld [vmem:[%s13126_s0 + $0x983] ss:$8 sm:$0xf0]  }
 0x238   :  { %v2932_v15 = vpop.permute.xlu0 %2931   ;;  %3579 = vrot.lane.b32.xlu1 %v3578_v10, %s7033_s8  ;;  %v3754_v10 = vsel %vm4_vm0, %v6548_v6, %v6547_v5  ;;  %v6568_v40 = vld [vmem:[%s13126_s0 + $0x883] ss:$8 sm:$0xf]  }
 0x239   :  { %6325 = vst.msk [vmem:[%s13127_s1 + $0xc8] sm:$0xff] %vm2692_vm5, %v2932_v15   ;;  %v6569_v41 = vld [vmem:[%s13126_s0 + $0x883] ss:$8 sm:$0xf0]  }
 0x23a   :  { %3568 = vrot.lane.b32.xlu0 %v3567_v12, %s7033_s8  ;;  %v2965_v19 = vpop.permute.xlu1 %2964   ;;  %v3743_v12 = vsel %vm4_vm0, %v6545_v9, %v6544_v8  ;;  %v6577_v45 = vld [vmem:[%s13126_s0 + $0xb83] ss:$8 sm:$0xf]  }
 0x23b   :  { %6334 = vst.msk [vmem:[%s13127_s1 + $0x128] sm:$0xff] %vm2692_vm5, %v2965_v19   ;;  %v6578_v46 = vld [vmem:[%s13126_s0 + $0xb83] ss:$8 sm:$0xf0]  }
 0x23c   :  { %v2954_v23 = vpop.permute.xlu0 %2953   ;;  %3601 = vrot.lane.b32.xlu1 %v3600_v18, %s7033_s8  ;;  %v3776_v18 = vsel %vm4_vm0, %v6554_v14, %v6553_v13  ;;  %v6574_v48 = vld [vmem:[%s13126_s0 + $0xa83] ss:$8 sm:$0xf]  }
 0x23d   :  { %6331 = vst.msk [vmem:[%s13127_s1 + $0x108] sm:$0xff] %vm2692_vm5, %v2954_v23   ;;  %v6575_v49 = vld [vmem:[%s13126_s0 + $0xa83] ss:$8 sm:$0xf0]  }
 0x23e   :  { %3590 = vrot.lane.b32.xlu0 %v3589_v20, %s7033_s8  ;;  %v2987_v27 = vpop.permute.xlu1 %2986   ;;  %v3765_v20 = vsel %vm4_vm0, %v6551_v17, %v6550_v16  ;;  %v6583_v53 = vld [vmem:[%s13126_s0 + $0xd83] ss:$8 sm:$0xf]  }
 0x23f   :  { %6340 = vst.msk [vmem:[%s13127_s1 + $0x168] sm:$0xff] %vm2692_vm5, %v2987_v27   ;;  %v6584_v54 = vld [vmem:[%s13126_s0 + $0xd83] ss:$8 sm:$0xf0]  }
 0x240   :  { %v2976_v31 = vpop.permute.xlu0 %2975   ;;  %3623 = vrot.lane.b32.xlu1 %v3622_v26, %s7033_s8  ;;  %v3798_v26 = vsel %vm4_vm0, %v6560_v22, %v6559_v21  ;;  %v6580_v56 = vld [vmem:[%s13126_s0 + $0xc83] ss:$8 sm:$0xf]  }
 0x241   :  { %6337 = vst.msk [vmem:[%s13127_s1 + $0x148] sm:$0xff] %vm2692_vm5, %v2976_v31   ;;  %v6581_v57 = vld [vmem:[%s13126_s0 + $0xc83] ss:$8 sm:$0xf0]  }
 0x242   :  { %3612 = vrot.lane.b32.xlu0 %v3611_v28, %s7033_s8  ;;  %v3009_v35 = vpop.permute.xlu1 %3008   ;;  %v3787_v28 = vsel %vm4_vm0, %v6557_v25, %v6556_v24  ;;  %v6589_v61 = vld [vmem:[%s13126_s0 + $0xf83] ss:$8 sm:$0xf]  }
 0x243   :  { %6346 = vst.msk [vmem:[%s13127_s1 + $0x1a8] sm:$0xff] %vm2692_vm5, %v3009_v35   ;;  %v6590_v62 = vld [vmem:[%s13126_s0 + $0xf83] ss:$8 sm:$0xf0]  }
 0x244   :  { %v2998_v39 = vpop.permute.xlu0 %2997   ;;  %3645 = vrot.lane.b32.xlu1 %v3644_v34, %s7033_s8  ;;  %v3820_v34 = vsel %vm4_vm0, %v6566_v30, %v6565_v29  ;;  %v6586_v0 = vld [vmem:[%s13126_s0 + $0xe83] ss:$8 sm:$0xf]  }
 0x245   :  { %6343 = vst.msk [vmem:[%s13127_s1 + $0x188] sm:$0xff] %vm2692_vm5, %v2998_v39   ;;  %v6587_v1 = vld [vmem:[%s13126_s0 + $0xe83] ss:$8 sm:$0xf0]  }
 0x246   :  { %3634 = vrot.lane.b32.xlu0 %v3633_v36, %s7033_s8  ;;  %v3031_v43 = vpop.permute.xlu1 %3030   ;;  %v3809_v36 = vsel %vm4_vm0, %v6563_v33, %v6562_v32  ;;  %v6595_v5 = vld [vmem:[%s13126_s0 + $0x1c3] ss:$8 sm:$0xf]  }
 0x247   :  { %6352 = vst.msk [vmem:[%s13127_s1 + $0x1e8] sm:$0xff] %vm2692_vm5, %v3031_v43   ;;  %v6596_v6 = vld [vmem:[%s13126_s0 + $0x1c3] ss:$8 sm:$0xf0]  }
 0x248   :  { %v3020_v47 = vpop.permute.xlu0 %3019   ;;  %3667 = vrot.lane.b32.xlu1 %v3666_v42, %s7033_s8  ;;  %v3842_v42 = vsel %vm4_vm0, %v6572_v38, %v6571_v37  ;;  %v6592_v8 = vld [vmem:[%s13126_s0 + $0xc3] ss:$8 sm:$0xf]  }
 0x249   :  { %6349 = vst.msk [vmem:[%s13127_s1 + $0x1c8] sm:$0xff] %vm2692_vm5, %v3020_v47   ;;  %v6593_v9 = vld [vmem:[%s13126_s0 + $0xc3] ss:$8 sm:$0xf0]  }
 0x24a   :  { %3656 = vrot.lane.b32.xlu0 %v3655_v44, %s7033_s8  ;;  %v3053_v51 = vpop.permute.xlu1 %3052   ;;  %v3831_v44 = vsel %vm4_vm0, %v6569_v41, %v6568_v40  ;;  %v6601_v13 = vld [vmem:[%s13126_s0 + $0x3c3] ss:$8 sm:$0xf]  }
 0x24b   :  { %6358 = vst.msk [vmem:[%s13127_s1 + $0x30] sm:$0xff] %vm2692_vm5, %v3053_v51   ;;  %v6602_v14 = vld [vmem:[%s13126_s0 + $0x3c3] ss:$8 sm:$0xf0]  }
 0x24c   :  { %v3042_v55 = vpop.permute.xlu0 %3041   ;;  %3689 = vrot.lane.b32.xlu1 %v3688_v50, %s7033_s8  ;;  %v3864_v50 = vsel %vm4_vm0, %v6578_v46, %v6577_v45  ;;  %v6598_v16 = vld [vmem:[%s13126_s0 + $0x2c3] ss:$8 sm:$0xf]  }
 0x24d   :  { %6355 = vst.msk [vmem:[%s13127_s1 + $0x10] sm:$0xff] %vm2692_vm5, %v3042_v55   ;;  %v6599_v17 = vld [vmem:[%s13126_s0 + $0x2c3] ss:$8 sm:$0xf0]  }
 0x24e   :  { %3678 = vrot.lane.b32.xlu0 %v3677_v52, %s7033_s8  ;;  %v3075_v59 = vpop.permute.xlu1 %3074   ;;  %v3853_v52 = vsel %vm4_vm0, %v6575_v49, %v6574_v48  ;;  %v6607_v21 = vld [vmem:[%s13126_s0 + $0x5c3] ss:$8 sm:$0xf]  }
 0x24f   :  { %6364 = vst.msk [vmem:[%s13127_s1 + $0x70] sm:$0xff] %vm2692_vm5, %v3075_v59   ;;  %v6608_v22 = vld [vmem:[%s13126_s0 + $0x5c3] ss:$8 sm:$0xf0]  }
 0x250   :  { %v3064_v63 = vpop.permute.xlu0 %3063   ;;  %3711 = vrot.lane.b32.xlu1 %v3710_v58, %s7033_s8  ;;  %v3886_v58 = vsel %vm4_vm0, %v6584_v54, %v6583_v53  ;;  %v6604_v24 = vld [vmem:[%s13126_s0 + $0x4c3] ss:$8 sm:$0xf]  }
 0x251   :  { %6361 = vst.msk [vmem:[%s13127_s1 + $0x50] sm:$0xff] %vm2692_vm5, %v3064_v63   ;;  %v6605_v25 = vld [vmem:[%s13126_s0 + $0x4c3] ss:$8 sm:$0xf0]  }
 0x252   :  { %3700 = vrot.lane.b32.xlu0 %v3699_v60, %s7033_s8  ;;  %v3097_v3 = vpop.permute.xlu1 %3096   ;;  %v3875_v60 = vsel %vm4_vm0, %v6581_v57, %v6580_v56  ;;  %v6613_v29 = vld [vmem:[%s13126_s0 + $0x7c3] ss:$8 sm:$0xf]  }
 0x253   :  { %6370 = vst.msk [vmem:[%s13127_s1 + $0xb0] sm:$0xff] %vm2692_vm5, %v3097_v3   ;;  %v6614_v30 = vld [vmem:[%s13126_s0 + $0x7c3] ss:$8 sm:$0xf0]  }
 0x254   :  { %v3086_v7 = vpop.permute.xlu0 %3085   ;;  %3733 = vrot.lane.b32.xlu1 %v3732_v2, %s7033_s8  ;;  %v3908_v2 = vsel %vm4_vm0, %v6590_v62, %v6589_v61  ;;  %v6610_v32 = vld [vmem:[%s13126_s0 + $0x6c3] ss:$8 sm:$0xf]  }
 0x255   :  { %6367 = vst.msk [vmem:[%s13127_s1 + $0x90] sm:$0xff] %vm2692_vm5, %v3086_v7   ;;  %v6611_v33 = vld [vmem:[%s13126_s0 + $0x6c3] ss:$8 sm:$0xf0]  }
 0x256   :  { %3722 = vrot.lane.b32.xlu0 %v3721_v4, %s7033_s8  ;;  %v3119_v11 = vpop.permute.xlu1 %3118   ;;  %v3897_v4 = vsel %vm4_vm0, %v6587_v1, %v6586_v0  ;;  %v6619_v37 = vld [vmem:[%s13126_s0 + $0x9c3] ss:$8 sm:$0xf]  }
 0x257   :  { %6376 = vst.msk [vmem:[%s13127_s1 + $0xf0] sm:$0xff] %vm2692_vm5, %v3119_v11   ;;  %v6620_v38 = vld [vmem:[%s13126_s0 + $0x9c3] ss:$8 sm:$0xf0]  }
 0x258   :  { %v3108_v15 = vpop.permute.xlu0 %3107   ;;  %3755 = vrot.lane.b32.xlu1 %v3754_v10, %s7033_s8  ;;  %v3930_v10 = vsel %vm4_vm0, %v6596_v6, %v6595_v5  ;;  %v6616_v40 = vld [vmem:[%s13126_s0 + $0x8c3] ss:$8 sm:$0xf]   ;;  %v6642_v5 = vld [vmem:[%s13126_s0 + $0x102] ss:$8 sm:$0xf]  }
 0x259   :  { %6373 = vst.msk [vmem:[%s13127_s1 + $0xd0] sm:$0xff] %vm2692_vm5, %v3108_v15   ;;  %v6617_v41 = vld [vmem:[%s13126_s0 + $0x8c3] ss:$8 sm:$0xf0]  }
 0x25a   :  { %3744 = vrot.lane.b32.xlu0 %v3743_v12, %s7033_s8  ;;  %v3141_v19 = vpop.permute.xlu1 %3140   ;;  %v3919_v12 = vsel %vm4_vm0, %v6593_v9, %v6592_v8  ;;  %v6625_v45 = vld [vmem:[%s13126_s0 + $0xbc3] ss:$8 sm:$0xf]   ;;  %v6643_v6 = vld [vmem:[%s13126_s0 + $0x102] ss:$8 sm:$0xf0]  }
 0x25b   :  { %6382 = vst.msk [vmem:[%s13127_s1 + $0x130] sm:$0xff] %vm2692_vm5, %v3141_v19   ;;  %v6626_v46 = vld [vmem:[%s13126_s0 + $0xbc3] ss:$8 sm:$0xf0]  }
 0x25c   :  { %v3130_v23 = vpop.permute.xlu0 %3129   ;;  %3777 = vrot.lane.b32.xlu1 %v3776_v18, %s7033_s8  ;;  %v3952_v18 = vsel %vm4_vm0, %v6602_v14, %v6601_v13  ;;  %v6622_v48 = vld [vmem:[%s13126_s0 + $0xac3] ss:$8 sm:$0xf]   ;;  %v6640_v8 = vld [vmem:[%s13126_s0 + $0x2] ss:$8 sm:$0xf]  }
 0x25d   :  { %6379 = vst.msk [vmem:[%s13127_s1 + $0x110] sm:$0xff] %vm2692_vm5, %v3130_v23   ;;  %v6623_v49 = vld [vmem:[%s13126_s0 + $0xac3] ss:$8 sm:$0xf0]  }
 0x25e   :  { %3766 = vrot.lane.b32.xlu0 %v3765_v20, %s7033_s8  ;;  %v3163_v27 = vpop.permute.xlu1 %3162   ;;  %v3941_v20 = vsel %vm4_vm0, %v6599_v17, %v6598_v16  ;;  %v6631_v53 = vld [vmem:[%s13126_s0 + $0xdc3] ss:$8 sm:$0xf]   ;;  %v6641_v9 = vld [vmem:[%s13126_s0 + $0x2] ss:$8 sm:$0xf0]  }
 0x25f   :  { %6388 = vst.msk [vmem:[%s13127_s1 + $0x170] sm:$0xff] %vm2692_vm5, %v3163_v27   ;;  %v6632_v54 = vld [vmem:[%s13126_s0 + $0xdc3] ss:$8 sm:$0xf0]  }
 0x260   :  { %v3152_v31 = vpop.permute.xlu0 %3151   ;;  %3799 = vrot.lane.b32.xlu1 %v3798_v26, %s7033_s8  ;;  %v3974_v26 = vsel %vm4_vm0, %v6608_v22, %v6607_v21  ;;  %v6628_v56 = vld [vmem:[%s13126_s0 + $0xcc3] ss:$8 sm:$0xf]   ;;  %v6648_v13 = vld [vmem:[%s13126_s0 + $0x302] ss:$8 sm:$0xf]  }
 0x261   :  { %6385 = vst.msk [vmem:[%s13127_s1 + $0x150] sm:$0xff] %vm2692_vm5, %v3152_v31   ;;  %v6629_v57 = vld [vmem:[%s13126_s0 + $0xcc3] ss:$8 sm:$0xf0]  }
 0x262   :  { %3788 = vrot.lane.b32.xlu0 %v3787_v28, %s7033_s8  ;;  %v3185_v35 = vpop.permute.xlu1 %3184   ;;  %v3963_v28 = vsel %vm4_vm0, %v6605_v25, %v6604_v24  ;;  %v6637_v61 = vld [vmem:[%s13126_s0 + $0xfc3] ss:$8 sm:$0xf]   ;;  %v6649_v14 = vld [vmem:[%s13126_s0 + $0x302] ss:$8 sm:$0xf0]  }
 0x263   :  { %6394 = vst.msk [vmem:[%s13127_s1 + $0x1b0] sm:$0xff] %vm2692_vm5, %v3185_v35   ;;  %v6638_v62 = vld [vmem:[%s13126_s0 + $0xfc3] ss:$8 sm:$0xf0]  }
 0x264   :  { %v3174_v39 = vpop.permute.xlu0 %3173   ;;  %3821 = vrot.lane.b32.xlu1 %v3820_v34, %s7033_s8  ;;  %v3996_v34 = vsel %vm4_vm0, %v6614_v30, %v6613_v29  ;;  %v6634_v0 = vld [vmem:[%s13126_s0 + $0xec3] ss:$8 sm:$0xf]   ;;  %v6645_v16 = vld [vmem:[%s13126_s0 + $0x202] ss:$8 sm:$0xf]  }
 0x265   :  { %6391 = vst.msk [vmem:[%s13127_s1 + $0x190] sm:$0xff] %vm2692_vm5, %v3174_v39   ;;  %v6635_v1 = vld [vmem:[%s13126_s0 + $0xec3] ss:$8 sm:$0xf0]  }
 0x266   :  { %3810 = vrot.lane.b32.xlu0 %v3809_v36, %s7033_s8  ;;  %v3207_v43 = vpop.permute.xlu1 %3206   ;;  %v3985_v36 = vsel %vm4_vm0, %v6611_v33, %v6610_v32  ;;  %v6646_v17 = vld [vmem:[%s13126_s0 + $0x202] ss:$8 sm:$0xf0]  }
 0x267   :  { %6400 = vst.msk [vmem:[%s13127_s1 + $0x1f0] sm:$0xff] %vm2692_vm5, %v3207_v43   ;;  %v6654_v21 = vld [vmem:[%s13126_s0 + $0x502] ss:$8 sm:$0xf]  }
 0x268   :  { %v3196_v47 = vpop.permute.xlu0 %3195   ;;  %3843 = vrot.lane.b32.xlu1 %v3842_v42, %s7033_s8  ;;  %v4018_v42 = vsel %vm4_vm0, %v6620_v38, %v6619_v37  ;;  %v6655_v22 = vld [vmem:[%s13126_s0 + $0x502] ss:$8 sm:$0xf0]  }
 0x269   :  { %6397 = vst.msk [vmem:[%s13127_s1 + $0x1d0] sm:$0xff] %vm2692_vm5, %v3196_v47   ;;  %v6651_v24 = vld [vmem:[%s13126_s0 + $0x402] ss:$8 sm:$0xf]  }
 0x26a   :  { %3832 = vrot.lane.b32.xlu0 %v3831_v44, %s7033_s8  ;;  %v3229_v51 = vpop.permute.xlu1 %3228   ;;  %v4007_v44 = vsel %vm4_vm0, %v6617_v41, %v6616_v40  ;;  %v6652_v25 = vld [vmem:[%s13126_s0 + $0x402] ss:$8 sm:$0xf0]  }
 0x26b   :  { %6406 = vst.msk [vmem:[%s13127_s1 + $0x38] sm:$0xff] %vm2692_vm5, %v3229_v51   ;;  %v6660_v29 = vld [vmem:[%s13126_s0 + $0x702] ss:$8 sm:$0xf]  }
 0x26c   :  { %v3218_v55 = vpop.permute.xlu0 %3217   ;;  %3865 = vrot.lane.b32.xlu1 %v3864_v50, %s7033_s8  ;;  %v4040_v50 = vsel %vm4_vm0, %v6626_v46, %v6625_v45  ;;  %v6661_v30 = vld [vmem:[%s13126_s0 + $0x702] ss:$8 sm:$0xf0]  }
 0x26d   :  { %6403 = vst.msk [vmem:[%s13127_s1 + $0x18] sm:$0xff] %vm2692_vm5, %v3218_v55   ;;  %v6657_v32 = vld [vmem:[%s13126_s0 + $0x602] ss:$8 sm:$0xf]  }
 0x26e   :  { %3854 = vrot.lane.b32.xlu0 %v3853_v52, %s7033_s8  ;;  %v3251_v59 = vpop.permute.xlu1 %3250   ;;  %v4029_v52 = vsel %vm4_vm0, %v6623_v49, %v6622_v48  ;;  %v6658_v33 = vld [vmem:[%s13126_s0 + $0x602] ss:$8 sm:$0xf0]  }
 0x26f   :  { %6412 = vst.msk [vmem:[%s13127_s1 + $0x78] sm:$0xff] %vm2692_vm5, %v3251_v59   ;;  %v6666_v37 = vld [vmem:[%s13126_s0 + $0x902] ss:$8 sm:$0xf]  }
 0x270   :  { %v3240_v63 = vpop.permute.xlu0 %3239   ;;  %3887 = vrot.lane.b32.xlu1 %v3886_v58, %s7033_s8  ;;  %v4062_v58 = vsel %vm4_vm0, %v6632_v54, %v6631_v53  ;;  %v6667_v38 = vld [vmem:[%s13126_s0 + $0x902] ss:$8 sm:$0xf0]  }
 0x271   :  { %6409 = vst.msk [vmem:[%s13127_s1 + $0x58] sm:$0xff] %vm2692_vm5, %v3240_v63   ;;  %v6663_v40 = vld [vmem:[%s13126_s0 + $0x802] ss:$8 sm:$0xf]  }
 0x272   :  { %3876 = vrot.lane.b32.xlu0 %v3875_v60, %s7033_s8  ;;  %v3273_v3 = vpop.permute.xlu1 %3272   ;;  %v4051_v60 = vsel %vm4_vm0, %v6629_v57, %v6628_v56  ;;  %v6664_v41 = vld [vmem:[%s13126_s0 + $0x802] ss:$8 sm:$0xf0]  }
 0x273   :  { %6418 = vst.msk [vmem:[%s13127_s1 + $0xb8] sm:$0xff] %vm2692_vm5, %v3273_v3   ;;  %v6672_v45 = vld [vmem:[%s13126_s0 + $0xb02] ss:$8 sm:$0xf]  }
 0x274   :  { %v3262_v7 = vpop.permute.xlu0 %3261   ;;  %3909 = vrot.lane.b32.xlu1 %v3908_v2, %s7033_s8  ;;  %v4084_v2 = vsel %vm4_vm0, %v6638_v62, %v6637_v61  ;;  %v6673_v46 = vld [vmem:[%s13126_s0 + $0xb02] ss:$8 sm:$0xf0]  }
 0x275   :  { %6415 = vst.msk [vmem:[%s13127_s1 + $0x98] sm:$0xff] %vm2692_vm5, %v3262_v7   ;;  %v6669_v48 = vld [vmem:[%s13126_s0 + $0xa02] ss:$8 sm:$0xf]  }
 0x276   :  { %3898 = vrot.lane.b32.xlu0 %v3897_v4, %s7033_s8  ;;  %v3295_v11 = vpop.permute.xlu1 %3294   ;;  %v4073_v4 = vsel %vm4_vm0, %v6635_v1, %v6634_v0  ;;  %v6670_v49 = vld [vmem:[%s13126_s0 + $0xa02] ss:$8 sm:$0xf0]  }
 0x277   :  { %6424 = vst.msk [vmem:[%s13127_s1 + $0xf8] sm:$0xff] %vm2692_vm5, %v3295_v11   ;;  %v6678_v53 = vld [vmem:[%s13126_s0 + $0xd02] ss:$8 sm:$0xf]  }
 0x278   :  { %v3284_v15 = vpop.permute.xlu0 %3283   ;;  %3931 = vrot.lane.b32.xlu1 %v3930_v10, %s7033_s8  ;;  %v4105_v10 = vsel %vm4_vm0, %v6643_v6, %v6642_v5  ;;  %v6679_v54 = vld [vmem:[%s13126_s0 + $0xd02] ss:$8 sm:$0xf0]  }
 0x279   :  { %6421 = vst.msk [vmem:[%s13127_s1 + $0xd8] sm:$0xff] %vm2692_vm5, %v3284_v15   ;;  %v6675_v56 = vld [vmem:[%s13126_s0 + $0xc02] ss:$8 sm:$0xf]  }
 0x27a   :  { %3920 = vrot.lane.b32.xlu0 %v3919_v12, %s7033_s8  ;;  %v3317_v19 = vpop.permute.xlu1 %3316   ;;  %v4095_v12 = vsel %vm4_vm0, %v6641_v9, %v6640_v8  ;;  %v6676_v57 = vld [vmem:[%s13126_s0 + $0xc02] ss:$8 sm:$0xf0]  }
 0x27b   :  { %6430 = vst.msk [vmem:[%s13127_s1 + $0x138] sm:$0xff] %vm2692_vm5, %v3317_v19   ;;  %v6684_v61 = vld [vmem:[%s13126_s0 + $0xf02] ss:$8 sm:$0xf]  }
 0x27c   :  { %v3306_v23 = vpop.permute.xlu0 %3305   ;;  %3953 = vrot.lane.b32.xlu1 %v3952_v18, %s7033_s8  ;;  %v4127_v18 = vsel %vm4_vm0, %v6649_v14, %v6648_v13  ;;  %v6685_v62 = vld [vmem:[%s13126_s0 + $0xf02] ss:$8 sm:$0xf0]  }
 0x27d   :  { %6427 = vst.msk [vmem:[%s13127_s1 + $0x118] sm:$0xff] %vm2692_vm5, %v3306_v23   ;;  %v6681_v0 = vld [vmem:[%s13126_s0 + $0xe02] ss:$8 sm:$0xf]  }
 0x27e   :  { %3942 = vrot.lane.b32.xlu0 %v3941_v20, %s7033_s8  ;;  %v3339_v27 = vpop.permute.xlu1 %3338   ;;  %v4116_v20 = vsel %vm4_vm0, %v6646_v17, %v6645_v16  ;;  %v6682_v1 = vld [vmem:[%s13126_s0 + $0xe02] ss:$8 sm:$0xf0]  }
 0x27f   :  { %6436 = vst.msk [vmem:[%s13127_s1 + $0x178] sm:$0xff] %vm2692_vm5, %v3339_v27   ;;  %v6690_v5 = vld [vmem:[%s13126_s0 + $0x142] ss:$8 sm:$0xf]  }
 0x280   :  { %v3328_v31 = vpop.permute.xlu0 %3327   ;;  %3975 = vrot.lane.b32.xlu1 %v3974_v26, %s7033_s8  ;;  %v4149_v26 = vsel %vm4_vm0, %v6655_v22, %v6654_v21  ;;  %v6691_v6 = vld [vmem:[%s13126_s0 + $0x142] ss:$8 sm:$0xf0]  }
 0x281   :  { %6433 = vst.msk [vmem:[%s13127_s1 + $0x158] sm:$0xff] %vm2692_vm5, %v3328_v31   ;;  %v6687_v8 = vld [vmem:[%s13126_s0 + $0x42] ss:$8 sm:$0xf]  }
 0x282   :  { %3964 = vrot.lane.b32.xlu0 %v3963_v28, %s7033_s8  ;;  %v3361_v35 = vpop.permute.xlu1 %3360   ;;  %v4138_v28 = vsel %vm4_vm0, %v6652_v25, %v6651_v24  ;;  %v6688_v9 = vld [vmem:[%s13126_s0 + $0x42] ss:$8 sm:$0xf0]  }
 0x283   :  { %6442 = vst.msk [vmem:[%s13127_s1 + $0x1b8] sm:$0xff] %vm2692_vm5, %v3361_v35   ;;  %v6696_v13 = vld [vmem:[%s13126_s0 + $0x342] ss:$8 sm:$0xf]  }
 0x284   :  { %v3350_v39 = vpop.permute.xlu0 %3349   ;;  %3997 = vrot.lane.b32.xlu1 %v3996_v34, %s7033_s8  ;;  %v4171_v34 = vsel %vm4_vm0, %v6661_v30, %v6660_v29  ;;  %v6697_v14 = vld [vmem:[%s13126_s0 + $0x342] ss:$8 sm:$0xf0]  }
 0x285   :  { %6439 = vst.msk [vmem:[%s13127_s1 + $0x198] sm:$0xff] %vm2692_vm5, %v3350_v39   ;;  %v6693_v16 = vld [vmem:[%s13126_s0 + $0x242] ss:$8 sm:$0xf]  }
 0x286   :  { %3986 = vrot.lane.b32.xlu0 %v3985_v36, %s7033_s8  ;;  %v3383_v43 = vpop.permute.xlu1 %3382   ;;  %v4160_v36 = vsel %vm4_vm0, %v6658_v33, %v6657_v32  ;;  %v6694_v17 = vld [vmem:[%s13126_s0 + $0x242] ss:$8 sm:$0xf0]  }
 0x287   :  { %6448 = vst.msk [vmem:[%s13127_s1 + $0x1f8] sm:$0xff] %vm2692_vm5, %v3383_v43   ;;  %v6702_v21 = vld [vmem:[%s13126_s0 + $0x542] ss:$8 sm:$0xf]  }
 0x288   :  { %v3372_v47 = vpop.permute.xlu0 %3371   ;;  %4019 = vrot.lane.b32.xlu1 %v4018_v42, %s7033_s8  ;;  %v4193_v42 = vsel %vm4_vm0, %v6667_v38, %v6666_v37  ;;  %v6703_v22 = vld [vmem:[%s13126_s0 + $0x542] ss:$8 sm:$0xf0]  }
 0x289   :  { %6445 = vst.msk [vmem:[%s13127_s1 + $0x1d8] sm:$0xff] %vm2692_vm5, %v3372_v47   ;;  %v6699_v24 = vld [vmem:[%s13126_s0 + $0x442] ss:$8 sm:$0xf]  }
 0x28a   :  { %4008 = vrot.lane.b32.xlu0 %v4007_v44, %s7033_s8  ;;  %v3404_v51 = vpop.permute.xlu1 %3403   ;;  %v4182_v44 = vsel %vm4_vm0, %v6664_v41, %v6663_v40  ;;  %v6700_v25 = vld [vmem:[%s13126_s0 + $0x442] ss:$8 sm:$0xf0]  }
 0x28b   :  { %6453 = vst.msk [vmem:[%s13127_s1 + $0x20] sm:$0xff] %vm3395_vm6, %v3404_v51   ;;  %v6708_v29 = vld [vmem:[%s13126_s0 + $0x742] ss:$8 sm:$0xf]  }
 0x28c   :  { %v3394_v55 = vpop.permute.xlu0 %3393   ;;  %4041 = vrot.lane.b32.xlu1 %v4040_v50, %s7033_s8  ;;  %v4215_v50 = vsel %vm4_vm0, %v6673_v46, %v6672_v45  ;;  %v6709_v30 = vld [vmem:[%s13126_s0 + $0x742] ss:$8 sm:$0xf0]  }
 0x28d   :  { %3396 = vst.msk [vmem:[%s13127_s1] sm:$0xff] %vm3395_vm6, %v3394_v55   ;;  %v6705_v32 = vld [vmem:[%s13126_s0 + $0x642] ss:$8 sm:$0xf]  }
 0x28e   :  { %4030 = vrot.lane.b32.xlu0 %v4029_v52, %s7033_s8  ;;  %v3426_v59 = vpop.permute.xlu1 %3425   ;;  %v4204_v52 = vsel %vm4_vm0, %v6670_v49, %v6669_v48  ;;  %v6706_v33 = vld [vmem:[%s13126_s0 + $0x642] ss:$8 sm:$0xf0]  }
 0x28f   :  { %6459 = vst.msk [vmem:[%s13127_s1 + $0x60] sm:$0xff] %vm3395_vm6, %v3426_v59   ;;  %v6714_v37 = vld [vmem:[%s13126_s0 + $0x942] ss:$8 sm:$0xf]  }
 0x290   :  { %v3415_v63 = vpop.permute.xlu0 %3414   ;;  %4063 = vrot.lane.b32.xlu1 %v4062_v58, %s7033_s8  ;;  %v4237_v58 = vsel %vm4_vm0, %v6679_v54, %v6678_v53  ;;  %v6715_v38 = vld [vmem:[%s13126_s0 + $0x942] ss:$8 sm:$0xf0]  }
 0x291   :  { %6456 = vst.msk [vmem:[%s13127_s1 + $0x40] sm:$0xff] %vm3395_vm6, %v3415_v63   ;;  %v6711_v40 = vld [vmem:[%s13126_s0 + $0x842] ss:$8 sm:$0xf]  }
 0x292   :  { %4052 = vrot.lane.b32.xlu0 %v4051_v60, %s7033_s8  ;;  %v3448_v3 = vpop.permute.xlu1 %3447   ;;  %v4226_v60 = vsel %vm4_vm0, %v6676_v57, %v6675_v56  ;;  %v6712_v41 = vld [vmem:[%s13126_s0 + $0x842] ss:$8 sm:$0xf0]  }
 0x293   :  { %6465 = vst.msk [vmem:[%s13127_s1 + $0xa0] sm:$0xff] %vm3395_vm6, %v3448_v3   ;;  %v6720_v45 = vld [vmem:[%s13126_s0 + $0xb42] ss:$8 sm:$0xf]  }
 0x294   :  { %v3437_v7 = vpop.permute.xlu0 %3436   ;;  %4085 = vrot.lane.b32.xlu1 %v4084_v2, %s7033_s8  ;;  %v4259_v2 = vsel %vm4_vm0, %v6685_v62, %v6684_v61  ;;  %v6721_v46 = vld [vmem:[%s13126_s0 + $0xb42] ss:$8 sm:$0xf0]  }
 0x295   :  { %6462 = vst.msk [vmem:[%s13127_s1 + $0x80] sm:$0xff] %vm3395_vm6, %v3437_v7   ;;  %v6717_v48 = vld [vmem:[%s13126_s0 + $0xa42] ss:$8 sm:$0xf]  }
 0x296   :  { %4074 = vrot.lane.b32.xlu0 %v4073_v4, %s7033_s8  ;;  %v3470_v11 = vpop.permute.xlu1 %3469   ;;  %v4248_v4 = vsel %vm4_vm0, %v6682_v1, %v6681_v0  ;;  %v6718_v49 = vld [vmem:[%s13126_s0 + $0xa42] ss:$8 sm:$0xf0]  }
 0x297   :  { %6471 = vst.msk [vmem:[%s13127_s1 + $0xe0] sm:$0xff] %vm3395_vm6, %v3470_v11   ;;  %v6726_v53 = vld [vmem:[%s13126_s0 + $0xd42] ss:$8 sm:$0xf]  }
 0x298   :  { %v3459_v15 = vpop.permute.xlu0 %3458   ;;  %4106 = vrot.lane.b32.xlu1 %v4105_v10, %s7034_s28  ;;  %v4281_v10 = vsel %vm4_vm0, %v6691_v6, %v6690_v5  ;;  %v6727_v54 = vld [vmem:[%s13126_s0 + $0xd42] ss:$8 sm:$0xf0]  }
 0x299   :  { %6468 = vst.msk [vmem:[%s13127_s1 + $0xc0] sm:$0xff] %vm3395_vm6, %v3459_v15   ;;  %v6723_v56 = vld [vmem:[%s13126_s0 + $0xc42] ss:$8 sm:$0xf]  }
 0x29a   :  { %4096 = vrot.lane.b32.xlu0 %v4095_v12, %s7034_s28  ;;  %v3492_v19 = vpop.permute.xlu1 %3491   ;;  %v4270_v12 = vsel %vm4_vm0, %v6688_v9, %v6687_v8  ;;  %v6724_v57 = vld [vmem:[%s13126_s0 + $0xc42] ss:$8 sm:$0xf0]  }
 0x29b   :  { %6477 = vst.msk [vmem:[%s13127_s1 + $0x120] sm:$0xff] %vm3395_vm6, %v3492_v19   ;;  %v6732_v61 = vld [vmem:[%s13126_s0 + $0xf42] ss:$8 sm:$0xf]  }
 0x29c   :  { %v3481_v23 = vpop.permute.xlu0 %3480   ;;  %4128 = vrot.lane.b32.xlu1 %v4127_v18, %s7034_s28  ;;  %v4303_v18 = vsel %vm4_vm0, %v6697_v14, %v6696_v13  ;;  %v6733_v62 = vld [vmem:[%s13126_s0 + $0xf42] ss:$8 sm:$0xf0]  }
 0x29d   :  { %6474 = vst.msk [vmem:[%s13127_s1 + $0x100] sm:$0xff] %vm3395_vm6, %v3481_v23   ;;  %v6729_v0 = vld [vmem:[%s13126_s0 + $0xe42] ss:$8 sm:$0xf]  }
 0x29e   :  { %4117 = vrot.lane.b32.xlu0 %v4116_v20, %s7034_s28  ;;  %v3514_v27 = vpop.permute.xlu1 %3513   ;;  %v4292_v20 = vsel %vm4_vm0, %v6694_v17, %v6693_v16  ;;  %v6730_v1 = vld [vmem:[%s13126_s0 + $0xe42] ss:$8 sm:$0xf0]  }
 0x29f   :  { %6483 = vst.msk [vmem:[%s13127_s1 + $0x160] sm:$0xff] %vm3395_vm6, %v3514_v27   ;;  %v6738_v5 = vld [vmem:[%s13126_s0 + $0x182] ss:$8 sm:$0xf]  }
 0x2a0   :  { %v3503_v31 = vpop.permute.xlu0 %3502   ;;  %4150 = vrot.lane.b32.xlu1 %v4149_v26, %s7034_s28  ;;  %v4325_v26 = vsel %vm4_vm0, %v6703_v22, %v6702_v21  ;;  %v6739_v6 = vld [vmem:[%s13126_s0 + $0x182] ss:$8 sm:$0xf0]  }
 0x2a1   :  { %6480 = vst.msk [vmem:[%s13127_s1 + $0x140] sm:$0xff] %vm3395_vm6, %v3503_v31   ;;  %v6735_v8 = vld [vmem:[%s13126_s0 + $0x82] ss:$8 sm:$0xf]  }
 0x2a2   :  { %4139 = vrot.lane.b32.xlu0 %v4138_v28, %s7034_s28  ;;  %v3536_v35 = vpop.permute.xlu1 %3535   ;;  %v4314_v28 = vsel %vm4_vm0, %v6700_v25, %v6699_v24  ;;  %v6736_v9 = vld [vmem:[%s13126_s0 + $0x82] ss:$8 sm:$0xf0]  }
 0x2a3   :  { %6489 = vst.msk [vmem:[%s13127_s1 + $0x1a0] sm:$0xff] %vm3395_vm6, %v3536_v35   ;;  %v6744_v13 = vld [vmem:[%s13126_s0 + $0x382] ss:$8 sm:$0xf]  }
 0x2a4   :  { %v3525_v39 = vpop.permute.xlu0 %3524   ;;  %4172 = vrot.lane.b32.xlu1 %v4171_v34, %s7034_s28  ;;  %v4347_v34 = vsel %vm4_vm0, %v6709_v30, %v6708_v29  ;;  %v6745_v14 = vld [vmem:[%s13126_s0 + $0x382] ss:$8 sm:$0xf0]  }
 0x2a5   :  { %6486 = vst.msk [vmem:[%s13127_s1 + $0x180] sm:$0xff] %vm3395_vm6, %v3525_v39   ;;  %v6741_v16 = vld [vmem:[%s13126_s0 + $0x282] ss:$8 sm:$0xf]  }
 0x2a6   :  { %4161 = vrot.lane.b32.xlu0 %v4160_v36, %s7034_s28  ;;  %v3558_v43 = vpop.permute.xlu1 %3557   ;;  %v4336_v36 = vsel %vm4_vm0, %v6706_v33, %v6705_v32  ;;  %v6742_v17 = vld [vmem:[%s13126_s0 + $0x282] ss:$8 sm:$0xf0]  }
 0x2a7   :  { %6495 = vst.msk [vmem:[%s13127_s1 + $0x1e0] sm:$0xff] %vm3395_vm6, %v3558_v43   ;;  %v6750_v21 = vld [vmem:[%s13126_s0 + $0x582] ss:$8 sm:$0xf]  }
 0x2a8   :  { %v3547_v47 = vpop.permute.xlu0 %3546   ;;  %4194 = vrot.lane.b32.xlu1 %v4193_v42, %s7034_s28  ;;  %v4369_v42 = vsel %vm4_vm0, %v6715_v38, %v6714_v37  ;;  %v6751_v22 = vld [vmem:[%s13126_s0 + $0x582] ss:$8 sm:$0xf0]  }
 0x2a9   :  { %6492 = vst.msk [vmem:[%s13127_s1 + $0x1c0] sm:$0xff] %vm3395_vm6, %v3547_v47   ;;  %v6747_v24 = vld [vmem:[%s13126_s0 + $0x482] ss:$8 sm:$0xf]  }
 0x2aa   :  { %4183 = vrot.lane.b32.xlu0 %v4182_v44, %s7034_s28  ;;  %v3580_v51 = vpop.permute.xlu1 %3579   ;;  %v4358_v44 = vsel %vm4_vm0, %v6712_v41, %v6711_v40  ;;  %v6748_v25 = vld [vmem:[%s13126_s0 + $0x482] ss:$8 sm:$0xf0]  }
 0x2ab   :  { %6501 = vst.msk [vmem:[%s13127_s1 + $0x28] sm:$0xff] %vm3395_vm6, %v3580_v51   ;;  %v6756_v29 = vld [vmem:[%s13126_s0 + $0x782] ss:$8 sm:$0xf]  }
 0x2ac   :  { %v3569_v55 = vpop.permute.xlu0 %3568   ;;  %4216 = vrot.lane.b32.xlu1 %v4215_v50, %s7034_s28  ;;  %v4391_v50 = vsel %vm4_vm0, %v6721_v46, %v6720_v45  ;;  %v6757_v30 = vld [vmem:[%s13126_s0 + $0x782] ss:$8 sm:$0xf0]  }
 0x2ad   :  { %6498 = vst.msk [vmem:[%s13127_s1 + $0x8] sm:$0xff] %vm3395_vm6, %v3569_v55   ;;  %v6753_v32 = vld [vmem:[%s13126_s0 + $0x682] ss:$8 sm:$0xf]  }
 0x2ae   :  { %4205 = vrot.lane.b32.xlu0 %v4204_v52, %s7034_s28  ;;  %v3602_v59 = vpop.permute.xlu1 %3601   ;;  %v4380_v52 = vsel %vm4_vm0, %v6718_v49, %v6717_v48  ;;  %v6754_v33 = vld [vmem:[%s13126_s0 + $0x682] ss:$8 sm:$0xf0]  }
 0x2af   :  { %6507 = vst.msk [vmem:[%s13127_s1 + $0x68] sm:$0xff] %vm3395_vm6, %v3602_v59   ;;  %v6762_v37 = vld [vmem:[%s13126_s0 + $0x982] ss:$8 sm:$0xf]  }
 0x2b0   :  { %v3591_v63 = vpop.permute.xlu0 %3590   ;;  %4238 = vrot.lane.b32.xlu1 %v4237_v58, %s7034_s28  ;;  %v4413_v58 = vsel %vm4_vm0, %v6727_v54, %v6726_v53  ;;  %v6763_v38 = vld [vmem:[%s13126_s0 + $0x982] ss:$8 sm:$0xf0]  }
 0x2b1   :  { %6504 = vst.msk [vmem:[%s13127_s1 + $0x48] sm:$0xff] %vm3395_vm6, %v3591_v63   ;;  %v6759_v40 = vld [vmem:[%s13126_s0 + $0x882] ss:$8 sm:$0xf]  }
 0x2b2   :  { %4227 = vrot.lane.b32.xlu0 %v4226_v60, %s7034_s28  ;;  %v3624_v3 = vpop.permute.xlu1 %3623   ;;  %v4402_v60 = vsel %vm4_vm0, %v6724_v57, %v6723_v56  ;;  %v6760_v41 = vld [vmem:[%s13126_s0 + $0x882] ss:$8 sm:$0xf0]  }
 0x2b3   :  { %6513 = vst.msk [vmem:[%s13127_s1 + $0xa8] sm:$0xff] %vm3395_vm6, %v3624_v3   ;;  %v6768_v45 = vld [vmem:[%s13126_s0 + $0xb82] ss:$8 sm:$0xf]  }
 0x2b4   :  { %v3613_v7 = vpop.permute.xlu0 %3612   ;;  %4260 = vrot.lane.b32.xlu1 %v4259_v2, %s7034_s28  ;;  %v4435_v2 = vsel %vm4_vm0, %v6733_v62, %v6732_v61  ;;  %v6769_v46 = vld [vmem:[%s13126_s0 + $0xb82] ss:$8 sm:$0xf0]  }
 0x2b5   :  { %6510 = vst.msk [vmem:[%s13127_s1 + $0x88] sm:$0xff] %vm3395_vm6, %v3613_v7   ;;  %v6765_v48 = vld [vmem:[%s13126_s0 + $0xa82] ss:$8 sm:$0xf]  }
 0x2b6   :  { %4249 = vrot.lane.b32.xlu0 %v4248_v4, %s7034_s28  ;;  %v3646_v11 = vpop.permute.xlu1 %3645   ;;  %v4424_v4 = vsel %vm4_vm0, %v6730_v1, %v6729_v0  ;;  %v6766_v49 = vld [vmem:[%s13126_s0 + $0xa82] ss:$8 sm:$0xf0]  }
 0x2b7   :  { %6519 = vst.msk [vmem:[%s13127_s1 + $0xe8] sm:$0xff] %vm3395_vm6, %v3646_v11   ;;  %v6774_v53 = vld [vmem:[%s13126_s0 + $0xd82] ss:$8 sm:$0xf]  }
 0x2b8   :  { %v3635_v15 = vpop.permute.xlu0 %3634   ;;  %4282 = vrot.lane.b32.xlu1 %v4281_v10, %s7034_s28  ;;  %v4457_v10 = vsel %vm4_vm0, %v6739_v6, %v6738_v5  ;;  %v6775_v54 = vld [vmem:[%s13126_s0 + $0xd82] ss:$8 sm:$0xf0]  }
 0x2b9   :  { %6516 = vst.msk [vmem:[%s13127_s1 + $0xc8] sm:$0xff] %vm3395_vm6, %v3635_v15   ;;  %v6771_v56 = vld [vmem:[%s13126_s0 + $0xc82] ss:$8 sm:$0xf]  }
 0x2ba   :  { %4271 = vrot.lane.b32.xlu0 %v4270_v12, %s7034_s28  ;;  %v3668_v19 = vpop.permute.xlu1 %3667   ;;  %v4446_v12 = vsel %vm4_vm0, %v6736_v9, %v6735_v8  ;;  %v6772_v57 = vld [vmem:[%s13126_s0 + $0xc82] ss:$8 sm:$0xf0]  }
 0x2bb   :  { %6525 = vst.msk [vmem:[%s13127_s1 + $0x128] sm:$0xff] %vm3395_vm6, %v3668_v19   ;;  %v6780_v61 = vld [vmem:[%s13126_s0 + $0xf82] ss:$8 sm:$0xf]  }
 0x2bc   :  { %v3657_v23 = vpop.permute.xlu0 %3656   ;;  %4304 = vrot.lane.b32.xlu1 %v4303_v18, %s7034_s28  ;;  %v4479_v18 = vsel %vm4_vm0, %v6745_v14, %v6744_v13  ;;  %v6781_v62 = vld [vmem:[%s13126_s0 + $0xf82] ss:$8 sm:$0xf0]  }
 0x2bd   :  { %6522 = vst.msk [vmem:[%s13127_s1 + $0x108] sm:$0xff] %vm3395_vm6, %v3657_v23   ;;  %v6777_v0 = vld [vmem:[%s13126_s0 + $0xe82] ss:$8 sm:$0xf]  }
 0x2be   :  { %4293 = vrot.lane.b32.xlu0 %v4292_v20, %s7034_s28  ;;  %v3690_v27 = vpop.permute.xlu1 %3689   ;;  %v4468_v20 = vsel %vm4_vm0, %v6742_v17, %v6741_v16  ;;  %v6778_v1 = vld [vmem:[%s13126_s0 + $0xe82] ss:$8 sm:$0xf0]  }
 0x2bf   :  { %6531 = vst.msk [vmem:[%s13127_s1 + $0x168] sm:$0xff] %vm3395_vm6, %v3690_v27   ;;  %v6786_v5 = vld [vmem:[%s13126_s0 + $0x1c2] ss:$8 sm:$0xf]  }
 0x2c0   :  { %v3679_v31 = vpop.permute.xlu0 %3678   ;;  %4326 = vrot.lane.b32.xlu1 %v4325_v26, %s7034_s28  ;;  %v4501_v26 = vsel %vm4_vm0, %v6751_v22, %v6750_v21  ;;  %v6787_v6 = vld [vmem:[%s13126_s0 + $0x1c2] ss:$8 sm:$0xf0]  }
 0x2c1   :  { %6528 = vst.msk [vmem:[%s13127_s1 + $0x148] sm:$0xff] %vm3395_vm6, %v3679_v31   ;;  %v6783_v8 = vld [vmem:[%s13126_s0 + $0xc2] ss:$8 sm:$0xf]  }
 0x2c2   :  { %4315 = vrot.lane.b32.xlu0 %v4314_v28, %s7034_s28  ;;  %v3712_v35 = vpop.permute.xlu1 %3711   ;;  %v4490_v28 = vsel %vm4_vm0, %v6748_v25, %v6747_v24  ;;  %v6784_v9 = vld [vmem:[%s13126_s0 + $0xc2] ss:$8 sm:$0xf0]  }
 0x2c3   :  { %6537 = vst.msk [vmem:[%s13127_s1 + $0x1a8] sm:$0xff] %vm3395_vm6, %v3712_v35   ;;  %v6792_v13 = vld [vmem:[%s13126_s0 + $0x3c2] ss:$8 sm:$0xf]  }
 0x2c4   :  { %v3701_v39 = vpop.permute.xlu0 %3700   ;;  %4348 = vrot.lane.b32.xlu1 %v4347_v34, %s7034_s28  ;;  %v4523_v34 = vsel %vm4_vm0, %v6757_v30, %v6756_v29  ;;  %v6793_v14 = vld [vmem:[%s13126_s0 + $0x3c2] ss:$8 sm:$0xf0]  }
 0x2c5   :  { %6534 = vst.msk [vmem:[%s13127_s1 + $0x188] sm:$0xff] %vm3395_vm6, %v3701_v39   ;;  %v6789_v16 = vld [vmem:[%s13126_s0 + $0x2c2] ss:$8 sm:$0xf]  }
 0x2c6   :  { %4337 = vrot.lane.b32.xlu0 %v4336_v36, %s7034_s28  ;;  %v3734_v43 = vpop.permute.xlu1 %3733   ;;  %v4512_v36 = vsel %vm4_vm0, %v6754_v33, %v6753_v32  ;;  %v6790_v17 = vld [vmem:[%s13126_s0 + $0x2c2] ss:$8 sm:$0xf0]  }
 0x2c7   :  { %6543 = vst.msk [vmem:[%s13127_s1 + $0x1e8] sm:$0xff] %vm3395_vm6, %v3734_v43   ;;  %v6798_v21 = vld [vmem:[%s13126_s0 + $0x5c2] ss:$8 sm:$0xf]  }
 0x2c8   :  { %v3723_v47 = vpop.permute.xlu0 %3722   ;;  %4370 = vrot.lane.b32.xlu1 %v4369_v42, %s7034_s28  ;;  %v4545_v42 = vsel %vm4_vm0, %v6763_v38, %v6762_v37  ;;  %v6799_v22 = vld [vmem:[%s13126_s0 + $0x5c2] ss:$8 sm:$0xf0]  }
 0x2c9   :  { %6540 = vst.msk [vmem:[%s13127_s1 + $0x1c8] sm:$0xff] %vm3395_vm6, %v3723_v47   ;;  %v6795_v24 = vld [vmem:[%s13126_s0 + $0x4c2] ss:$8 sm:$0xf]  }
 0x2ca   :  { %4359 = vrot.lane.b32.xlu0 %v4358_v44, %s7034_s28  ;;  %v3756_v51 = vpop.permute.xlu1 %3755   ;;  %v4534_v44 = vsel %vm4_vm0, %v6760_v41, %v6759_v40  ;;  %v6796_v25 = vld [vmem:[%s13126_s0 + $0x4c2] ss:$8 sm:$0xf0]  }
 0x2cb   :  { %6549 = vst.msk [vmem:[%s13127_s1 + $0x30] sm:$0xff] %vm3395_vm6, %v3756_v51   ;;  %v6804_v29 = vld [vmem:[%s13126_s0 + $0x7c2] ss:$8 sm:$0xf]  }
 0x2cc   :  { %v3745_v55 = vpop.permute.xlu0 %3744   ;;  %4392 = vrot.lane.b32.xlu1 %v4391_v50, %s7034_s28  ;;  %v4567_v50 = vsel %vm4_vm0, %v6769_v46, %v6768_v45  ;;  %v6805_v30 = vld [vmem:[%s13126_s0 + $0x7c2] ss:$8 sm:$0xf0]  }
 0x2cd   :  { %6546 = vst.msk [vmem:[%s13127_s1 + $0x10] sm:$0xff] %vm3395_vm6, %v3745_v55   ;;  %v6801_v32 = vld [vmem:[%s13126_s0 + $0x6c2] ss:$8 sm:$0xf]  }
 0x2ce   :  { %4381 = vrot.lane.b32.xlu0 %v4380_v52, %s7034_s28  ;;  %v3778_v59 = vpop.permute.xlu1 %3777   ;;  %v4556_v52 = vsel %vm4_vm0, %v6766_v49, %v6765_v48  ;;  %v6802_v33 = vld [vmem:[%s13126_s0 + $0x6c2] ss:$8 sm:$0xf0]  }
 0x2cf   :  { %6555 = vst.msk [vmem:[%s13127_s1 + $0x70] sm:$0xff] %vm3395_vm6, %v3778_v59   ;;  %v6810_v37 = vld [vmem:[%s13126_s0 + $0x9c2] ss:$8 sm:$0xf]  }
 0x2d0   :  { %v3767_v63 = vpop.permute.xlu0 %3766   ;;  %4414 = vrot.lane.b32.xlu1 %v4413_v58, %s7034_s28  ;;  %v4589_v58 = vsel %vm4_vm0, %v6775_v54, %v6774_v53  ;;  %v6811_v38 = vld [vmem:[%s13126_s0 + $0x9c2] ss:$8 sm:$0xf0]  }
 0x2d1   :  { %6552 = vst.msk [vmem:[%s13127_s1 + $0x50] sm:$0xff] %vm3395_vm6, %v3767_v63   ;;  %v6807_v40 = vld [vmem:[%s13126_s0 + $0x8c2] ss:$8 sm:$0xf]  }
 0x2d2   :  { %4403 = vrot.lane.b32.xlu0 %v4402_v60, %s7034_s28  ;;  %v3800_v3 = vpop.permute.xlu1 %3799   ;;  %v4578_v60 = vsel %vm4_vm0, %v6772_v57, %v6771_v56  ;;  %v6808_v41 = vld [vmem:[%s13126_s0 + $0x8c2] ss:$8 sm:$0xf0]  }
 0x2d3   :  { %6561 = vst.msk [vmem:[%s13127_s1 + $0xb0] sm:$0xff] %vm3395_vm6, %v3800_v3   ;;  %v6816_v45 = vld [vmem:[%s13126_s0 + $0xbc2] ss:$8 sm:$0xf]  }
 0x2d4   :  { %v3789_v7 = vpop.permute.xlu0 %3788   ;;  %4436 = vrot.lane.b32.xlu1 %v4435_v2, %s7034_s28  ;;  %v4611_v2 = vsel %vm4_vm0, %v6781_v62, %v6780_v61  ;;  %v6817_v46 = vld [vmem:[%s13126_s0 + $0xbc2] ss:$8 sm:$0xf0]  }
 0x2d5   :  { %6558 = vst.msk [vmem:[%s13127_s1 + $0x90] sm:$0xff] %vm3395_vm6, %v3789_v7   ;;  %v6813_v48 = vld [vmem:[%s13126_s0 + $0xac2] ss:$8 sm:$0xf]  }
 0x2d6   :  { %4425 = vrot.lane.b32.xlu0 %v4424_v4, %s7034_s28  ;;  %v3822_v11 = vpop.permute.xlu1 %3821   ;;  %v4600_v4 = vsel %vm4_vm0, %v6778_v1, %v6777_v0  ;;  %v6814_v49 = vld [vmem:[%s13126_s0 + $0xac2] ss:$8 sm:$0xf0]  }
 0x2d7   :  { %6567 = vst.msk [vmem:[%s13127_s1 + $0xf0] sm:$0xff] %vm3395_vm6, %v3822_v11   ;;  %v6822_v53 = vld [vmem:[%s13126_s0 + $0xdc2] ss:$8 sm:$0xf]  }
 0x2d8   :  { %v3811_v15 = vpop.permute.xlu0 %3810   ;;  %4458 = vrot.lane.b32.xlu1 %v4457_v10, %s7034_s28  ;;  %v4633_v10 = vsel %vm4_vm0, %v6787_v6, %v6786_v5  ;;  %v6823_v54 = vld [vmem:[%s13126_s0 + $0xdc2] ss:$8 sm:$0xf0]   ;;  %v6833_v5 = vld [vmem:[%s13126_s0 + $0x101] ss:$8 sm:$0xf]  }
 0x2d9   :  { %6564 = vst.msk [vmem:[%s13127_s1 + $0xd0] sm:$0xff] %vm3395_vm6, %v3811_v15   ;;  %v6819_v56 = vld [vmem:[%s13126_s0 + $0xcc2] ss:$8 sm:$0xf]  }
 0x2da   :  { %4447 = vrot.lane.b32.xlu0 %v4446_v12, %s7034_s28  ;;  %v3844_v19 = vpop.permute.xlu1 %3843   ;;  %v4622_v12 = vsel %vm4_vm0, %v6784_v9, %v6783_v8  ;;  %v6820_v57 = vld [vmem:[%s13126_s0 + $0xcc2] ss:$8 sm:$0xf0]   ;;  %v6834_v6 = vld [vmem:[%s13126_s0 + $0x101] ss:$8 sm:$0xf0]  }
 0x2db   :  { %6573 = vst.msk [vmem:[%s13127_s1 + $0x130] sm:$0xff] %vm3395_vm6, %v3844_v19   ;;  %v6828_v61 = vld [vmem:[%s13126_s0 + $0xfc2] ss:$8 sm:$0xf]  }
 0x2dc   :  { %v3833_v23 = vpop.permute.xlu0 %3832   ;;  %4480 = vrot.lane.b32.xlu1 %v4479_v18, %s7034_s28  ;;  %v4655_v18 = vsel %vm4_vm0, %v6793_v14, %v6792_v13  ;;  %v6829_v62 = vld [vmem:[%s13126_s0 + $0xfc2] ss:$8 sm:$0xf0]   ;;  %v6831_v8 = vld [vmem:[%s13126_s0 + $0x1] ss:$8 sm:$0xf]  }
 0x2dd   :  { %6570 = vst.msk [vmem:[%s13127_s1 + $0x110] sm:$0xff] %vm3395_vm6, %v3833_v23   ;;  %v6825_v0 = vld [vmem:[%s13126_s0 + $0xec2] ss:$8 sm:$0xf]  }
 0x2de   :  { %4469 = vrot.lane.b32.xlu0 %v4468_v20, %s7034_s28  ;;  %v3866_v27 = vpop.permute.xlu1 %3865   ;;  %v4644_v20 = vsel %vm4_vm0, %v6790_v17, %v6789_v16  ;;  %v6826_v1 = vld [vmem:[%s13126_s0 + $0xec2] ss:$8 sm:$0xf0]   ;;  %v6832_v9 = vld [vmem:[%s13126_s0 + $0x1] ss:$8 sm:$0xf0]  }
 0x2df   :  { %6579 = vst.msk [vmem:[%s13127_s1 + $0x170] sm:$0xff] %vm3395_vm6, %v3866_v27   ;;  %v6839_v13 = vld [vmem:[%s13126_s0 + $0x301] ss:$8 sm:$0xf]  }
 0x2e0   :  { %v3855_v31 = vpop.permute.xlu0 %3854   ;;  %4502 = vrot.lane.b32.xlu1 %v4501_v26, %s7034_s28  ;;  %v4677_v26 = vsel %vm4_vm0, %v6799_v22, %v6798_v21  ;;  %v6840_v14 = vld [vmem:[%s13126_s0 + $0x301] ss:$8 sm:$0xf0]  }
 0x2e1   :  { %6576 = vst.msk [vmem:[%s13127_s1 + $0x150] sm:$0xff] %vm3395_vm6, %v3855_v31   ;;  %v6836_v16 = vld [vmem:[%s13126_s0 + $0x201] ss:$8 sm:$0xf]  }
 0x2e2   :  { %4491 = vrot.lane.b32.xlu0 %v4490_v28, %s7034_s28  ;;  %v3888_v35 = vpop.permute.xlu1 %3887   ;;  %v4666_v28 = vsel %vm4_vm0, %v6796_v25, %v6795_v24  ;;  %v6837_v17 = vld [vmem:[%s13126_s0 + $0x201] ss:$8 sm:$0xf0]  }
 0x2e3   :  { %6585 = vst.msk [vmem:[%s13127_s1 + $0x1b0] sm:$0xff] %vm3395_vm6, %v3888_v35   ;;  %v6845_v21 = vld [vmem:[%s13126_s0 + $0x501] ss:$8 sm:$0xf]  }
 0x2e4   :  { %v3877_v39 = vpop.permute.xlu0 %3876   ;;  %4524 = vrot.lane.b32.xlu1 %v4523_v34, %s7034_s28  ;;  %v4699_v34 = vsel %vm4_vm0, %v6805_v30, %v6804_v29  ;;  %v6846_v22 = vld [vmem:[%s13126_s0 + $0x501] ss:$8 sm:$0xf0]  }
 0x2e5   :  { %6582 = vst.msk [vmem:[%s13127_s1 + $0x190] sm:$0xff] %vm3395_vm6, %v3877_v39   ;;  %v6842_v24 = vld [vmem:[%s13126_s0 + $0x401] ss:$8 sm:$0xf]  }
 0x2e6   :  { %4513 = vrot.lane.b32.xlu0 %v4512_v36, %s7034_s28  ;;  %v3910_v43 = vpop.permute.xlu1 %3909   ;;  %v4688_v36 = vsel %vm4_vm0, %v6802_v33, %v6801_v32  ;;  %v6843_v25 = vld [vmem:[%s13126_s0 + $0x401] ss:$8 sm:$0xf0]  }
 0x2e7   :  { %6591 = vst.msk [vmem:[%s13127_s1 + $0x1f0] sm:$0xff] %vm3395_vm6, %v3910_v43   ;;  %v6851_v29 = vld [vmem:[%s13126_s0 + $0x701] ss:$8 sm:$0xf]  }
 0x2e8   :  { %v3899_v47 = vpop.permute.xlu0 %3898   ;;  %4546 = vrot.lane.b32.xlu1 %v4545_v42, %s7034_s28  ;;  %v4721_v42 = vsel %vm4_vm0, %v6811_v38, %v6810_v37  ;;  %v6852_v30 = vld [vmem:[%s13126_s0 + $0x701] ss:$8 sm:$0xf0]  }
 0x2e9   :  { %6588 = vst.msk [vmem:[%s13127_s1 + $0x1d0] sm:$0xff] %vm3395_vm6, %v3899_v47   ;;  %v6848_v32 = vld [vmem:[%s13126_s0 + $0x601] ss:$8 sm:$0xf]  }
 0x2ea   :  { %4535 = vrot.lane.b32.xlu0 %v4534_v44, %s7034_s28  ;;  %v3932_v51 = vpop.permute.xlu1 %3931   ;;  %v4710_v44 = vsel %vm4_vm0, %v6808_v41, %v6807_v40  ;;  %v6849_v33 = vld [vmem:[%s13126_s0 + $0x601] ss:$8 sm:$0xf0]  }
 0x2eb   :  { %6597 = vst.msk [vmem:[%s13127_s1 + $0x38] sm:$0xff] %vm3395_vm6, %v3932_v51   ;;  %v6857_v37 = vld [vmem:[%s13126_s0 + $0x901] ss:$8 sm:$0xf]  }
 0x2ec   :  { %v3921_v55 = vpop.permute.xlu0 %3920   ;;  %4568 = vrot.lane.b32.xlu1 %v4567_v50, %s7034_s28  ;;  %v4743_v50 = vsel %vm4_vm0, %v6817_v46, %v6816_v45  ;;  %v6858_v38 = vld [vmem:[%s13126_s0 + $0x901] ss:$8 sm:$0xf0]  }
 0x2ed   :  { %6594 = vst.msk [vmem:[%s13127_s1 + $0x18] sm:$0xff] %vm3395_vm6, %v3921_v55   ;;  %v6854_v40 = vld [vmem:[%s13126_s0 + $0x801] ss:$8 sm:$0xf]  }
 0x2ee   :  { %4557 = vrot.lane.b32.xlu0 %v4556_v52, %s7034_s28  ;;  %v3954_v59 = vpop.permute.xlu1 %3953   ;;  %v4732_v52 = vsel %vm4_vm0, %v6814_v49, %v6813_v48  ;;  %v6855_v41 = vld [vmem:[%s13126_s0 + $0x801] ss:$8 sm:$0xf0]  }
 0x2ef   :  { %6603 = vst.msk [vmem:[%s13127_s1 + $0x78] sm:$0xff] %vm3395_vm6, %v3954_v59   ;;  %v6863_v45 = vld [vmem:[%s13126_s0 + $0xb01] ss:$8 sm:$0xf]  }
 0x2f0   :  { %v3943_v63 = vpop.permute.xlu0 %3942   ;;  %4590 = vrot.lane.b32.xlu1 %v4589_v58, %s7034_s28  ;;  %v4765_v58 = vsel %vm4_vm0, %v6823_v54, %v6822_v53  ;;  %v6864_v46 = vld [vmem:[%s13126_s0 + $0xb01] ss:$8 sm:$0xf0]  }
 0x2f1   :  { %6600 = vst.msk [vmem:[%s13127_s1 + $0x58] sm:$0xff] %vm3395_vm6, %v3943_v63   ;;  %v6860_v48 = vld [vmem:[%s13126_s0 + $0xa01] ss:$8 sm:$0xf]  }
 0x2f2   :  { %4579 = vrot.lane.b32.xlu0 %v4578_v60, %s7034_s28  ;;  %v3976_v3 = vpop.permute.xlu1 %3975   ;;  %v4754_v60 = vsel %vm4_vm0, %v6820_v57, %v6819_v56  ;;  %v6861_v49 = vld [vmem:[%s13126_s0 + $0xa01] ss:$8 sm:$0xf0]  }
 0x2f3   :  { %6609 = vst.msk [vmem:[%s13127_s1 + $0xb8] sm:$0xff] %vm3395_vm6, %v3976_v3   ;;  %v6869_v53 = vld [vmem:[%s13126_s0 + $0xd01] ss:$8 sm:$0xf]  }
 0x2f4   :  { %v3965_v7 = vpop.permute.xlu0 %3964   ;;  %4612 = vrot.lane.b32.xlu1 %v4611_v2, %s7034_s28  ;;  %v4787_v2 = vsel %vm4_vm0, %v6829_v62, %v6828_v61  ;;  %v6870_v54 = vld [vmem:[%s13126_s0 + $0xd01] ss:$8 sm:$0xf0]  }
 0x2f5   :  { %6606 = vst.msk [vmem:[%s13127_s1 + $0x98] sm:$0xff] %vm3395_vm6, %v3965_v7   ;;  %v6866_v56 = vld [vmem:[%s13126_s0 + $0xc01] ss:$8 sm:$0xf]  }
 0x2f6   :  { %4601 = vrot.lane.b32.xlu0 %v4600_v4, %s7034_s28  ;;  %v3998_v11 = vpop.permute.xlu1 %3997   ;;  %v4776_v4 = vsel %vm4_vm0, %v6826_v1, %v6825_v0  ;;  %v6867_v57 = vld [vmem:[%s13126_s0 + $0xc01] ss:$8 sm:$0xf0]  }
 0x2f7   :  { %6615 = vst.msk [vmem:[%s13127_s1 + $0xf8] sm:$0xff] %vm3395_vm6, %v3998_v11   ;;  %v6875_v61 = vld [vmem:[%s13126_s0 + $0xf01] ss:$8 sm:$0xf]  }
 0x2f8   :  { %v3987_v15 = vpop.permute.xlu0 %3986   ;;  %4634 = vrot.lane.b32.xlu1 %v4633_v10, %s7034_s28  ;;  %v4808_v10 = vsel %vm4_vm0, %v6834_v6, %v6833_v5  ;;  %v6876_v62 = vld [vmem:[%s13126_s0 + $0xf01] ss:$8 sm:$0xf0]  }
 0x2f9   :  { %6612 = vst.msk [vmem:[%s13127_s1 + $0xd8] sm:$0xff] %vm3395_vm6, %v3987_v15   ;;  %v6872_v0 = vld [vmem:[%s13126_s0 + $0xe01] ss:$8 sm:$0xf]  }
 0x2fa   :  { %4623 = vrot.lane.b32.xlu0 %v4622_v12, %s7034_s28  ;;  %v4020_v19 = vpop.permute.xlu1 %4019   ;;  %v4798_v12 = vsel %vm4_vm0, %v6832_v9, %v6831_v8  ;;  %v6873_v1 = vld [vmem:[%s13126_s0 + $0xe01] ss:$8 sm:$0xf0]  }
 0x2fb   :  { %6621 = vst.msk [vmem:[%s13127_s1 + $0x138] sm:$0xff] %vm3395_vm6, %v4020_v19   ;;  %v6881_v5 = vld [vmem:[%s13126_s0 + $0x141] ss:$8 sm:$0xf]  }
 0x2fc   :  { %v4009_v23 = vpop.permute.xlu0 %4008   ;;  %4656 = vrot.lane.b32.xlu1 %v4655_v18, %s7034_s28  ;;  %v4830_v18 = vsel %vm4_vm0, %v6840_v14, %v6839_v13  ;;  %v6882_v6 = vld [vmem:[%s13126_s0 + $0x141] ss:$8 sm:$0xf0]  }
 0x2fd   :  { %6618 = vst.msk [vmem:[%s13127_s1 + $0x118] sm:$0xff] %vm3395_vm6, %v4009_v23   ;;  %v6878_v8 = vld [vmem:[%s13126_s0 + $0x41] ss:$8 sm:$0xf]  }
 0x2fe   :  { %4645 = vrot.lane.b32.xlu0 %v4644_v20, %s7034_s28  ;;  %v4042_v27 = vpop.permute.xlu1 %4041   ;;  %v4819_v20 = vsel %vm4_vm0, %v6837_v17, %v6836_v16  ;;  %v6879_v9 = vld [vmem:[%s13126_s0 + $0x41] ss:$8 sm:$0xf0]  }
 0x2ff   :  { %6627 = vst.msk [vmem:[%s13127_s1 + $0x178] sm:$0xff] %vm3395_vm6, %v4042_v27   ;;  %v6887_v13 = vld [vmem:[%s13126_s0 + $0x341] ss:$8 sm:$0xf]  }
 0x300   :  { %v4031_v31 = vpop.permute.xlu0 %4030   ;;  %4678 = vrot.lane.b32.xlu1 %v4677_v26, %s7034_s28  ;;  %v4852_v26 = vsel %vm4_vm0, %v6846_v22, %v6845_v21  ;;  %v6888_v14 = vld [vmem:[%s13126_s0 + $0x341] ss:$8 sm:$0xf0]  }
 0x301   :  { %6624 = vst.msk [vmem:[%s13127_s1 + $0x158] sm:$0xff] %vm3395_vm6, %v4031_v31   ;;  %v6884_v16 = vld [vmem:[%s13126_s0 + $0x241] ss:$8 sm:$0xf]  }
 0x302   :  { %4667 = vrot.lane.b32.xlu0 %v4666_v28, %s7034_s28  ;;  %v4064_v35 = vpop.permute.xlu1 %4063   ;;  %v4841_v28 = vsel %vm4_vm0, %v6843_v25, %v6842_v24  ;;  %v6885_v17 = vld [vmem:[%s13126_s0 + $0x241] ss:$8 sm:$0xf0]  }
 0x303   :  { %6633 = vst.msk [vmem:[%s13127_s1 + $0x1b8] sm:$0xff] %vm3395_vm6, %v4064_v35   ;;  %v6893_v21 = vld [vmem:[%s13126_s0 + $0x541] ss:$8 sm:$0xf]  }
 0x304   :  { %v4053_v39 = vpop.permute.xlu0 %4052   ;;  %4700 = vrot.lane.b32.xlu1 %v4699_v34, %s7034_s28  ;;  %v4874_v34 = vsel %vm4_vm0, %v6852_v30, %v6851_v29  ;;  %v6894_v22 = vld [vmem:[%s13126_s0 + $0x541] ss:$8 sm:$0xf0]  }
 0x305   :  { %6630 = vst.msk [vmem:[%s13127_s1 + $0x198] sm:$0xff] %vm3395_vm6, %v4053_v39   ;;  %v6890_v24 = vld [vmem:[%s13126_s0 + $0x441] ss:$8 sm:$0xf]  }
 0x306   :  { %4689 = vrot.lane.b32.xlu0 %v4688_v36, %s7034_s28  ;;  %v4086_v43 = vpop.permute.xlu1 %4085   ;;  %v4863_v36 = vsel %vm4_vm0, %v6849_v33, %v6848_v32  ;;  %v6891_v25 = vld [vmem:[%s13126_s0 + $0x441] ss:$8 sm:$0xf0]  }
 0x307   :  { %6639 = vst.msk [vmem:[%s13127_s1 + $0x1f8] sm:$0xff] %vm3395_vm6, %v4086_v43   ;;  %v6899_v29 = vld [vmem:[%s13126_s0 + $0x741] ss:$8 sm:$0xf]  }
 0x308   :  { %v4075_v47 = vpop.permute.xlu0 %4074   ;;  %4722 = vrot.lane.b32.xlu1 %v4721_v42, %s7034_s28  ;;  %v4896_v42 = vsel %vm4_vm0, %v6858_v38, %v6857_v37  ;;  %v6900_v30 = vld [vmem:[%s13126_s0 + $0x741] ss:$8 sm:$0xf0]  }
 0x309   :  { %6636 = vst.msk [vmem:[%s13127_s1 + $0x1d8] sm:$0xff] %vm3395_vm6, %v4075_v47   ;;  %v6896_v32 = vld [vmem:[%s13126_s0 + $0x641] ss:$8 sm:$0xf]  }
 0x30a   :  { %4711 = vrot.lane.b32.xlu0 %v4710_v44, %s7034_s28  ;;  %v4107_v51 = vpop.permute.xlu1 %4106   ;;  %v4885_v44 = vsel %vm4_vm0, %v6855_v41, %v6854_v40  ;;  %v6897_v33 = vld [vmem:[%s13126_s0 + $0x641] ss:$8 sm:$0xf0]  }
 0x30b   :  { %6644 = vst.msk [vmem:[%s13127_s1 + $0x20] sm:$0xff] %vm4098_vm7, %v4107_v51   ;;  %v6905_v37 = vld [vmem:[%s13126_s0 + $0x941] ss:$8 sm:$0xf]  }
 0x30c   :  { %v4097_v55 = vpop.permute.xlu0 %4096   ;;  %4744 = vrot.lane.b32.xlu1 %v4743_v50, %s7034_s28  ;;  %v4918_v50 = vsel %vm4_vm0, %v6864_v46, %v6863_v45  ;;  %v6906_v38 = vld [vmem:[%s13126_s0 + $0x941] ss:$8 sm:$0xf0]  }
 0x30d   :  { %4099 = vst.msk [vmem:[%s13127_s1] sm:$0xff] %vm4098_vm7, %v4097_v55   ;;  %v6902_v40 = vld [vmem:[%s13126_s0 + $0x841] ss:$8 sm:$0xf]  }
 0x30e   :  { %4733 = vrot.lane.b32.xlu0 %v4732_v52, %s7034_s28  ;;  %v4129_v59 = vpop.permute.xlu1 %4128   ;;  %v4907_v52 = vsel %vm4_vm0, %v6861_v49, %v6860_v48  ;;  %v6903_v41 = vld [vmem:[%s13126_s0 + $0x841] ss:$8 sm:$0xf0]  }
 0x30f   :  { %6650 = vst.msk [vmem:[%s13127_s1 + $0x60] sm:$0xff] %vm4098_vm7, %v4129_v59   ;;  %v6911_v45 = vld [vmem:[%s13126_s0 + $0xb41] ss:$8 sm:$0xf]  }
 0x310   :  { %v4118_v63 = vpop.permute.xlu0 %4117   ;;  %4766 = vrot.lane.b32.xlu1 %v4765_v58, %s7034_s28  ;;  %v4940_v58 = vsel %vm4_vm0, %v6870_v54, %v6869_v53  ;;  %v6912_v46 = vld [vmem:[%s13126_s0 + $0xb41] ss:$8 sm:$0xf0]  }
 0x311   :  { %6647 = vst.msk [vmem:[%s13127_s1 + $0x40] sm:$0xff] %vm4098_vm7, %v4118_v63   ;;  %v6908_v48 = vld [vmem:[%s13126_s0 + $0xa41] ss:$8 sm:$0xf]  }
 0x312   :  { %4755 = vrot.lane.b32.xlu0 %v4754_v60, %s7034_s28  ;;  %v4151_v3 = vpop.permute.xlu1 %4150   ;;  %v4929_v60 = vsel %vm4_vm0, %v6867_v57, %v6866_v56  ;;  %v6909_v49 = vld [vmem:[%s13126_s0 + $0xa41] ss:$8 sm:$0xf0]  }
 0x313   :  { %6656 = vst.msk [vmem:[%s13127_s1 + $0xa0] sm:$0xff] %vm4098_vm7, %v4151_v3   ;;  %v6917_v53 = vld [vmem:[%s13126_s0 + $0xd41] ss:$8 sm:$0xf]  }
 0x314   :  { %v4140_v7 = vpop.permute.xlu0 %4139   ;;  %4788 = vrot.lane.b32.xlu1 %v4787_v2, %s7034_s28  ;;  %v4962_v2 = vsel %vm4_vm0, %v6876_v62, %v6875_v61  ;;  %v6918_v54 = vld [vmem:[%s13126_s0 + $0xd41] ss:$8 sm:$0xf0]  }
 0x315   :  { %6653 = vst.msk [vmem:[%s13127_s1 + $0x80] sm:$0xff] %vm4098_vm7, %v4140_v7   ;;  %v6914_v56 = vld [vmem:[%s13126_s0 + $0xc41] ss:$8 sm:$0xf]  }
 0x316   :  { %4777 = vrot.lane.b32.xlu0 %v4776_v4, %s7034_s28  ;;  %v4173_v11 = vpop.permute.xlu1 %4172   ;;  %v4951_v4 = vsel %vm4_vm0, %v6873_v1, %v6872_v0  ;;  %v6915_v57 = vld [vmem:[%s13126_s0 + $0xc41] ss:$8 sm:$0xf0]  }
 0x317   :  { %6662 = vst.msk [vmem:[%s13127_s1 + $0xe0] sm:$0xff] %vm4098_vm7, %v4173_v11   ;;  %v6923_v61 = vld [vmem:[%s13126_s0 + $0xf41] ss:$8 sm:$0xf]  }
 0x318   :  { %v4162_v15 = vpop.permute.xlu0 %4161   ;;  %4809 = vrot.lane.b32.xlu1 %v4808_v10, %s7035_s19  ;;  %v4984_v10 = vsel %vm4_vm0, %v6882_v6, %v6881_v5  ;;  %v6924_v62 = vld [vmem:[%s13126_s0 + $0xf41] ss:$8 sm:$0xf0]  }
 0x319   :  { %6659 = vst.msk [vmem:[%s13127_s1 + $0xc0] sm:$0xff] %vm4098_vm7, %v4162_v15   ;;  %v6920_v0 = vld [vmem:[%s13126_s0 + $0xe41] ss:$8 sm:$0xf]  }
 0x31a   :  { %4799 = vrot.lane.b32.xlu0 %v4798_v12, %s7035_s19  ;;  %v4195_v19 = vpop.permute.xlu1 %4194   ;;  %v4973_v12 = vsel %vm4_vm0, %v6879_v9, %v6878_v8  ;;  %v6921_v1 = vld [vmem:[%s13126_s0 + $0xe41] ss:$8 sm:$0xf0]  }
 0x31b   :  { %6668 = vst.msk [vmem:[%s13127_s1 + $0x120] sm:$0xff] %vm4098_vm7, %v4195_v19   ;;  %v6929_v5 = vld [vmem:[%s13126_s0 + $0x181] ss:$8 sm:$0xf]  }
 0x31c   :  { %v4184_v23 = vpop.permute.xlu0 %4183   ;;  %4831 = vrot.lane.b32.xlu1 %v4830_v18, %s7035_s19  ;;  %v5006_v18 = vsel %vm4_vm0, %v6888_v14, %v6887_v13  ;;  %v6930_v6 = vld [vmem:[%s13126_s0 + $0x181] ss:$8 sm:$0xf0]  }
 0x31d   :  { %6665 = vst.msk [vmem:[%s13127_s1 + $0x100] sm:$0xff] %vm4098_vm7, %v4184_v23   ;;  %v6926_v8 = vld [vmem:[%s13126_s0 + $0x81] ss:$8 sm:$0xf]  }
 0x31e   :  { %4820 = vrot.lane.b32.xlu0 %v4819_v20, %s7035_s19  ;;  %v4217_v27 = vpop.permute.xlu1 %4216   ;;  %v4995_v20 = vsel %vm4_vm0, %v6885_v17, %v6884_v16  ;;  %v6927_v9 = vld [vmem:[%s13126_s0 + $0x81] ss:$8 sm:$0xf0]  }
 0x31f   :  { %6674 = vst.msk [vmem:[%s13127_s1 + $0x160] sm:$0xff] %vm4098_vm7, %v4217_v27   ;;  %v6935_v13 = vld [vmem:[%s13126_s0 + $0x381] ss:$8 sm:$0xf]  }
 0x320   :  { %v4206_v31 = vpop.permute.xlu0 %4205   ;;  %4853 = vrot.lane.b32.xlu1 %v4852_v26, %s7035_s19  ;;  %v5028_v26 = vsel %vm4_vm0, %v6894_v22, %v6893_v21  ;;  %v6936_v14 = vld [vmem:[%s13126_s0 + $0x381] ss:$8 sm:$0xf0]  }
 0x321   :  { %6671 = vst.msk [vmem:[%s13127_s1 + $0x140] sm:$0xff] %vm4098_vm7, %v4206_v31   ;;  %v6932_v16 = vld [vmem:[%s13126_s0 + $0x281] ss:$8 sm:$0xf]  }
 0x322   :  { %4842 = vrot.lane.b32.xlu0 %v4841_v28, %s7035_s19  ;;  %v4239_v35 = vpop.permute.xlu1 %4238   ;;  %v5017_v28 = vsel %vm4_vm0, %v6891_v25, %v6890_v24  ;;  %v6933_v17 = vld [vmem:[%s13126_s0 + $0x281] ss:$8 sm:$0xf0]  }
 0x323   :  { %6680 = vst.msk [vmem:[%s13127_s1 + $0x1a0] sm:$0xff] %vm4098_vm7, %v4239_v35   ;;  %v6941_v21 = vld [vmem:[%s13126_s0 + $0x581] ss:$8 sm:$0xf]  }
 0x324   :  { %v4228_v39 = vpop.permute.xlu0 %4227   ;;  %4875 = vrot.lane.b32.xlu1 %v4874_v34, %s7035_s19  ;;  %v5050_v34 = vsel %vm4_vm0, %v6900_v30, %v6899_v29  ;;  %v6942_v22 = vld [vmem:[%s13126_s0 + $0x581] ss:$8 sm:$0xf0]  }
 0x325   :  { %6677 = vst.msk [vmem:[%s13127_s1 + $0x180] sm:$0xff] %vm4098_vm7, %v4228_v39   ;;  %v6938_v24 = vld [vmem:[%s13126_s0 + $0x481] ss:$8 sm:$0xf]  }
 0x326   :  { %4864 = vrot.lane.b32.xlu0 %v4863_v36, %s7035_s19  ;;  %v4261_v43 = vpop.permute.xlu1 %4260   ;;  %v5039_v36 = vsel %vm4_vm0, %v6897_v33, %v6896_v32  ;;  %v6939_v25 = vld [vmem:[%s13126_s0 + $0x481] ss:$8 sm:$0xf0]  }
 0x327   :  { %6686 = vst.msk [vmem:[%s13127_s1 + $0x1e0] sm:$0xff] %vm4098_vm7, %v4261_v43   ;;  %v6947_v29 = vld [vmem:[%s13126_s0 + $0x781] ss:$8 sm:$0xf]  }
 0x328   :  { %v4250_v47 = vpop.permute.xlu0 %4249   ;;  %4897 = vrot.lane.b32.xlu1 %v4896_v42, %s7035_s19  ;;  %v5072_v42 = vsel %vm4_vm0, %v6906_v38, %v6905_v37  ;;  %v6948_v30 = vld [vmem:[%s13126_s0 + $0x781] ss:$8 sm:$0xf0]  }
 0x329   :  { %6683 = vst.msk [vmem:[%s13127_s1 + $0x1c0] sm:$0xff] %vm4098_vm7, %v4250_v47   ;;  %v6944_v32 = vld [vmem:[%s13126_s0 + $0x681] ss:$8 sm:$0xf]  }
 0x32a   :  { %4886 = vrot.lane.b32.xlu0 %v4885_v44, %s7035_s19  ;;  %v4283_v51 = vpop.permute.xlu1 %4282   ;;  %v5061_v44 = vsel %vm4_vm0, %v6903_v41, %v6902_v40  ;;  %v6945_v33 = vld [vmem:[%s13126_s0 + $0x681] ss:$8 sm:$0xf0]  }
 0x32b   :  { %6692 = vst.msk [vmem:[%s13127_s1 + $0x28] sm:$0xff] %vm4098_vm7, %v4283_v51   ;;  %v6953_v37 = vld [vmem:[%s13126_s0 + $0x981] ss:$8 sm:$0xf]  }
 0x32c   :  { %v4272_v55 = vpop.permute.xlu0 %4271   ;;  %4919 = vrot.lane.b32.xlu1 %v4918_v50, %s7035_s19  ;;  %v5094_v50 = vsel %vm4_vm0, %v6912_v46, %v6911_v45  ;;  %v6954_v38 = vld [vmem:[%s13126_s0 + $0x981] ss:$8 sm:$0xf0]  }
 0x32d   :  { %6689 = vst.msk [vmem:[%s13127_s1 + $0x8] sm:$0xff] %vm4098_vm7, %v4272_v55   ;;  %v6950_v40 = vld [vmem:[%s13126_s0 + $0x881] ss:$8 sm:$0xf]  }
 0x32e   :  { %4908 = vrot.lane.b32.xlu0 %v4907_v52, %s7035_s19  ;;  %v4305_v59 = vpop.permute.xlu1 %4304   ;;  %v5083_v52 = vsel %vm4_vm0, %v6909_v49, %v6908_v48  ;;  %v6951_v41 = vld [vmem:[%s13126_s0 + $0x881] ss:$8 sm:$0xf0]  }
 0x32f   :  { %6698 = vst.msk [vmem:[%s13127_s1 + $0x68] sm:$0xff] %vm4098_vm7, %v4305_v59   ;;  %v6959_v45 = vld [vmem:[%s13126_s0 + $0xb81] ss:$8 sm:$0xf]  }
 0x330   :  { %v4294_v63 = vpop.permute.xlu0 %4293   ;;  %4941 = vrot.lane.b32.xlu1 %v4940_v58, %s7035_s19  ;;  %v5116_v58 = vsel %vm4_vm0, %v6918_v54, %v6917_v53  ;;  %v6960_v46 = vld [vmem:[%s13126_s0 + $0xb81] ss:$8 sm:$0xf0]  }
 0x331   :  { %6695 = vst.msk [vmem:[%s13127_s1 + $0x48] sm:$0xff] %vm4098_vm7, %v4294_v63   ;;  %v6956_v48 = vld [vmem:[%s13126_s0 + $0xa81] ss:$8 sm:$0xf]  }
 0x332   :  { %4930 = vrot.lane.b32.xlu0 %v4929_v60, %s7035_s19  ;;  %v4327_v3 = vpop.permute.xlu1 %4326   ;;  %v5105_v60 = vsel %vm4_vm0, %v6915_v57, %v6914_v56  ;;  %v6957_v49 = vld [vmem:[%s13126_s0 + $0xa81] ss:$8 sm:$0xf0]  }
 0x333   :  { %6704 = vst.msk [vmem:[%s13127_s1 + $0xa8] sm:$0xff] %vm4098_vm7, %v4327_v3   ;;  %v6965_v53 = vld [vmem:[%s13126_s0 + $0xd81] ss:$8 sm:$0xf]  }
 0x334   :  { %v4316_v7 = vpop.permute.xlu0 %4315   ;;  %4963 = vrot.lane.b32.xlu1 %v4962_v2, %s7035_s19  ;;  %v5138_v2 = vsel %vm4_vm0, %v6924_v62, %v6923_v61  ;;  %v6966_v54 = vld [vmem:[%s13126_s0 + $0xd81] ss:$8 sm:$0xf0]  }
 0x335   :  { %6701 = vst.msk [vmem:[%s13127_s1 + $0x88] sm:$0xff] %vm4098_vm7, %v4316_v7   ;;  %v6962_v56 = vld [vmem:[%s13126_s0 + $0xc81] ss:$8 sm:$0xf]  }
 0x336   :  { %4952 = vrot.lane.b32.xlu0 %v4951_v4, %s7035_s19  ;;  %v4349_v11 = vpop.permute.xlu1 %4348   ;;  %v5127_v4 = vsel %vm4_vm0, %v6921_v1, %v6920_v0  ;;  %v6963_v57 = vld [vmem:[%s13126_s0 + $0xc81] ss:$8 sm:$0xf0]  }
 0x337   :  { %6710 = vst.msk [vmem:[%s13127_s1 + $0xe8] sm:$0xff] %vm4098_vm7, %v4349_v11   ;;  %v6971_v61 = vld [vmem:[%s13126_s0 + $0xf81] ss:$8 sm:$0xf]  }
 0x338   :  { %v4338_v15 = vpop.permute.xlu0 %4337   ;;  %4985 = vrot.lane.b32.xlu1 %v4984_v10, %s7035_s19  ;;  %v5160_v10 = vsel %vm4_vm0, %v6930_v6, %v6929_v5  ;;  %v6972_v62 = vld [vmem:[%s13126_s0 + $0xf81] ss:$8 sm:$0xf0]  }
 0x339   :  { %6707 = vst.msk [vmem:[%s13127_s1 + $0xc8] sm:$0xff] %vm4098_vm7, %v4338_v15   ;;  %v6968_v0 = vld [vmem:[%s13126_s0 + $0xe81] ss:$8 sm:$0xf]  }
 0x33a   :  { %4974 = vrot.lane.b32.xlu0 %v4973_v12, %s7035_s19  ;;  %v4371_v19 = vpop.permute.xlu1 %4370   ;;  %v5149_v12 = vsel %vm4_vm0, %v6927_v9, %v6926_v8  ;;  %v6969_v1 = vld [vmem:[%s13126_s0 + $0xe81] ss:$8 sm:$0xf0]  }
 0x33b   :  { %6716 = vst.msk [vmem:[%s13127_s1 + $0x128] sm:$0xff] %vm4098_vm7, %v4371_v19   ;;  %v6977_v5 = vld [vmem:[%s13126_s0 + $0x1c1] ss:$8 sm:$0xf]  }
 0x33c   :  { %v4360_v23 = vpop.permute.xlu0 %4359   ;;  %5007 = vrot.lane.b32.xlu1 %v5006_v18, %s7035_s19  ;;  %v5182_v18 = vsel %vm4_vm0, %v6936_v14, %v6935_v13  ;;  %v6978_v6 = vld [vmem:[%s13126_s0 + $0x1c1] ss:$8 sm:$0xf0]  }
 0x33d   :  { %6713 = vst.msk [vmem:[%s13127_s1 + $0x108] sm:$0xff] %vm4098_vm7, %v4360_v23   ;;  %v6974_v8 = vld [vmem:[%s13126_s0 + $0xc1] ss:$8 sm:$0xf]  }
 0x33e   :  { %4996 = vrot.lane.b32.xlu0 %v4995_v20, %s7035_s19  ;;  %v4393_v27 = vpop.permute.xlu1 %4392   ;;  %v5171_v20 = vsel %vm4_vm0, %v6933_v17, %v6932_v16  ;;  %v6975_v9 = vld [vmem:[%s13126_s0 + $0xc1] ss:$8 sm:$0xf0]  }
 0x33f   :  { %6722 = vst.msk [vmem:[%s13127_s1 + $0x168] sm:$0xff] %vm4098_vm7, %v4393_v27   ;;  %v6983_v13 = vld [vmem:[%s13126_s0 + $0x3c1] ss:$8 sm:$0xf]  }
 0x340   :  { %v4382_v31 = vpop.permute.xlu0 %4381   ;;  %5029 = vrot.lane.b32.xlu1 %v5028_v26, %s7035_s19  ;;  %v5204_v26 = vsel %vm4_vm0, %v6942_v22, %v6941_v21  ;;  %v6984_v14 = vld [vmem:[%s13126_s0 + $0x3c1] ss:$8 sm:$0xf0]  }
 0x341   :  { %6719 = vst.msk [vmem:[%s13127_s1 + $0x148] sm:$0xff] %vm4098_vm7, %v4382_v31   ;;  %v6980_v16 = vld [vmem:[%s13126_s0 + $0x2c1] ss:$8 sm:$0xf]  }
 0x342   :  { %5018 = vrot.lane.b32.xlu0 %v5017_v28, %s7035_s19  ;;  %v4415_v35 = vpop.permute.xlu1 %4414   ;;  %v5193_v28 = vsel %vm4_vm0, %v6939_v25, %v6938_v24  ;;  %v6981_v17 = vld [vmem:[%s13126_s0 + $0x2c1] ss:$8 sm:$0xf0]  }
 0x343   :  { %6728 = vst.msk [vmem:[%s13127_s1 + $0x1a8] sm:$0xff] %vm4098_vm7, %v4415_v35   ;;  %v6989_v21 = vld [vmem:[%s13126_s0 + $0x5c1] ss:$8 sm:$0xf]  }
 0x344   :  { %v4404_v39 = vpop.permute.xlu0 %4403   ;;  %5051 = vrot.lane.b32.xlu1 %v5050_v34, %s7035_s19  ;;  %v5226_v34 = vsel %vm4_vm0, %v6948_v30, %v6947_v29  ;;  %v6990_v22 = vld [vmem:[%s13126_s0 + $0x5c1] ss:$8 sm:$0xf0]  }
 0x345   :  { %6725 = vst.msk [vmem:[%s13127_s1 + $0x188] sm:$0xff] %vm4098_vm7, %v4404_v39   ;;  %v6986_v24 = vld [vmem:[%s13126_s0 + $0x4c1] ss:$8 sm:$0xf]  }
 0x346   :  { %5040 = vrot.lane.b32.xlu0 %v5039_v36, %s7035_s19  ;;  %v4437_v43 = vpop.permute.xlu1 %4436   ;;  %v5215_v36 = vsel %vm4_vm0, %v6945_v33, %v6944_v32  ;;  %v6987_v25 = vld [vmem:[%s13126_s0 + $0x4c1] ss:$8 sm:$0xf0]  }
 0x347   :  { %6734 = vst.msk [vmem:[%s13127_s1 + $0x1e8] sm:$0xff] %vm4098_vm7, %v4437_v43   ;;  %v6995_v29 = vld [vmem:[%s13126_s0 + $0x7c1] ss:$8 sm:$0xf]  }
 0x348   :  { %v4426_v47 = vpop.permute.xlu0 %4425   ;;  %5073 = vrot.lane.b32.xlu1 %v5072_v42, %s7035_s19  ;;  %v5248_v42 = vsel %vm4_vm0, %v6954_v38, %v6953_v37  ;;  %v6996_v30 = vld [vmem:[%s13126_s0 + $0x7c1] ss:$8 sm:$0xf0]  }
 0x349   :  { %6731 = vst.msk [vmem:[%s13127_s1 + $0x1c8] sm:$0xff] %vm4098_vm7, %v4426_v47   ;;  %v6992_v32 = vld [vmem:[%s13126_s0 + $0x6c1] ss:$8 sm:$0xf]  }
 0x34a   :  { %5062 = vrot.lane.b32.xlu0 %v5061_v44, %s7035_s19  ;;  %v4459_v51 = vpop.permute.xlu1 %4458   ;;  %v5237_v44 = vsel %vm4_vm0, %v6951_v41, %v6950_v40  ;;  %v6993_v33 = vld [vmem:[%s13126_s0 + $0x6c1] ss:$8 sm:$0xf0]  }
 0x34b   :  { %6740 = vst.msk [vmem:[%s13127_s1 + $0x30] sm:$0xff] %vm4098_vm7, %v4459_v51   ;;  %v7001_v37 = vld [vmem:[%s13126_s0 + $0x9c1] ss:$8 sm:$0xf]  }
 0x34c   :  { %v4448_v55 = vpop.permute.xlu0 %4447   ;;  %5095 = vrot.lane.b32.xlu1 %v5094_v50, %s7035_s19  ;;  %v5270_v50 = vsel %vm4_vm0, %v6960_v46, %v6959_v45  ;;  %v7002_v38 = vld [vmem:[%s13126_s0 + $0x9c1] ss:$8 sm:$0xf0]  }
 0x34d   :  { %6737 = vst.msk [vmem:[%s13127_s1 + $0x10] sm:$0xff] %vm4098_vm7, %v4448_v55   ;;  %v6998_v40 = vld [vmem:[%s13126_s0 + $0x8c1] ss:$8 sm:$0xf]  }
 0x34e   :  { %5084 = vrot.lane.b32.xlu0 %v5083_v52, %s7035_s19  ;;  %v4481_v59 = vpop.permute.xlu1 %4480   ;;  %v5259_v52 = vsel %vm4_vm0, %v6957_v49, %v6956_v48  ;;  %v6999_v41 = vld [vmem:[%s13126_s0 + $0x8c1] ss:$8 sm:$0xf0]  }
 0x34f   :  { %6746 = vst.msk [vmem:[%s13127_s1 + $0x70] sm:$0xff] %vm4098_vm7, %v4481_v59   ;;  %v7007_v45 = vld [vmem:[%s13126_s0 + $0xbc1] ss:$8 sm:$0xf]  }
 0x350   :  { %v4470_v63 = vpop.permute.xlu0 %4469   ;;  %5117 = vrot.lane.b32.xlu1 %v5116_v58, %s7035_s19  ;;  %v5292_v58 = vsel %vm4_vm0, %v6966_v54, %v6965_v53  ;;  %v7008_v46 = vld [vmem:[%s13126_s0 + $0xbc1] ss:$8 sm:$0xf0]  }
 0x351   :  { %6743 = vst.msk [vmem:[%s13127_s1 + $0x50] sm:$0xff] %vm4098_vm7, %v4470_v63   ;;  %v7004_v48 = vld [vmem:[%s13126_s0 + $0xac1] ss:$8 sm:$0xf]  }
 0x352   :  { %5106 = vrot.lane.b32.xlu0 %v5105_v60, %s7035_s19  ;;  %v4503_v3 = vpop.permute.xlu1 %4502   ;;  %v5281_v60 = vsel %vm4_vm0, %v6963_v57, %v6962_v56  ;;  %v7005_v49 = vld [vmem:[%s13126_s0 + $0xac1] ss:$8 sm:$0xf0]  }
 0x353   :  { %6752 = vst.msk [vmem:[%s13127_s1 + $0xb0] sm:$0xff] %vm4098_vm7, %v4503_v3   ;;  %v7013_v53 = vld [vmem:[%s13126_s0 + $0xdc1] ss:$8 sm:$0xf]  }
 0x354   :  { %v4492_v7 = vpop.permute.xlu0 %4491   ;;  %5139 = vrot.lane.b32.xlu1 %v5138_v2, %s7035_s19  ;;  %v5314_v2 = vsel %vm4_vm0, %v6972_v62, %v6971_v61  ;;  %v7014_v54 = vld [vmem:[%s13126_s0 + $0xdc1] ss:$8 sm:$0xf0]  }
 0x355   :  { %6749 = vst.msk [vmem:[%s13127_s1 + $0x90] sm:$0xff] %vm4098_vm7, %v4492_v7   ;;  %v7010_v56 = vld [vmem:[%s13126_s0 + $0xcc1] ss:$8 sm:$0xf]  }
 0x356   :  { %5128 = vrot.lane.b32.xlu0 %v5127_v4, %s7035_s19  ;;  %v4525_v11 = vpop.permute.xlu1 %4524   ;;  %v5303_v4 = vsel %vm4_vm0, %v6969_v1, %v6968_v0  ;;  %v7011_v57 = vld [vmem:[%s13126_s0 + $0xcc1] ss:$8 sm:$0xf0]  }
 0x357   :  { %6758 = vst.msk [vmem:[%s13127_s1 + $0xf0] sm:$0xff] %vm4098_vm7, %v4525_v11   ;;  %v7019_v61 = vld [vmem:[%s13126_s0 + $0xfc1] ss:$8 sm:$0xf]  }
 0x358   :  { %v4514_v15 = vpop.permute.xlu0 %4513   ;;  %5161 = vrot.lane.b32.xlu1 %v5160_v10, %s7035_s19  ;;  %v5336_v10 = vsel %vm4_vm0, %v6978_v6, %v6977_v5  ;;  %v7020_v62 = vld [vmem:[%s13126_s0 + $0xfc1] ss:$8 sm:$0xf0]  }
 0x359   :  { %6755 = vst.msk [vmem:[%s13127_s1 + $0xd0] sm:$0xff] %vm4098_vm7, %v4514_v15   ;;  %v7016_v0 = vld [vmem:[%s13126_s0 + $0xec1] ss:$8 sm:$0xf]  }
 0x35a   :  { %5150 = vrot.lane.b32.xlu0 %v5149_v12, %s7035_s19  ;;  %v4547_v19 = vpop.permute.xlu1 %4546   ;;  %v5325_v12 = vsel %vm4_vm0, %v6975_v9, %v6974_v8  ;;  %v7017_v1 = vld [vmem:[%s13126_s0 + $0xec1] ss:$8 sm:$0xf0]  }
 0x35b   :  { %6764 = vst.msk [vmem:[%s13127_s1 + $0x130] sm:$0xff] %vm4098_vm7, %v4547_v19  }
 0x35c   :  { %v4536_v23 = vpop.permute.xlu0 %4535   ;;  %5183 = vrot.lane.b32.xlu1 %v5182_v18, %s7035_s19  ;;  %v5358_v18 = vsel %vm4_vm0, %v6984_v14, %v6983_v13 }
 0x35d   :  { %6761 = vst.msk [vmem:[%s13127_s1 + $0x110] sm:$0xff] %vm4098_vm7, %v4536_v23  }
 0x35e   :  { %5172 = vrot.lane.b32.xlu0 %v5171_v20, %s7035_s19  ;;  %v4569_v27 = vpop.permute.xlu1 %4568   ;;  %v5347_v20 = vsel %vm4_vm0, %v6981_v17, %v6980_v16 }
 0x35f   :  { %6770 = vst.msk [vmem:[%s13127_s1 + $0x170] sm:$0xff] %vm4098_vm7, %v4569_v27  }
 0x360   :  { %v4558_v31 = vpop.permute.xlu0 %4557   ;;  %5205 = vrot.lane.b32.xlu1 %v5204_v26, %s7035_s19  ;;  %v5380_v26 = vsel %vm4_vm0, %v6990_v22, %v6989_v21 }
 0x361   :  { %6767 = vst.msk [vmem:[%s13127_s1 + $0x150] sm:$0xff] %vm4098_vm7, %v4558_v31  }
 0x362   :  { %5194 = vrot.lane.b32.xlu0 %v5193_v28, %s7035_s19  ;;  %v4591_v35 = vpop.permute.xlu1 %4590   ;;  %v5369_v28 = vsel %vm4_vm0, %v6987_v25, %v6986_v24 }
 0x363   :  { %6776 = vst.msk [vmem:[%s13127_s1 + $0x1b0] sm:$0xff] %vm4098_vm7, %v4591_v35  }
 0x364   :  { %v4580_v39 = vpop.permute.xlu0 %4579   ;;  %5227 = vrot.lane.b32.xlu1 %v5226_v34, %s7035_s19  ;;  %v5402_v34 = vsel %vm4_vm0, %v6996_v30, %v6995_v29 }
 0x365   :  { %6773 = vst.msk [vmem:[%s13127_s1 + $0x190] sm:$0xff] %vm4098_vm7, %v4580_v39  }
 0x366   :  { %5216 = vrot.lane.b32.xlu0 %v5215_v36, %s7035_s19  ;;  %v4613_v43 = vpop.permute.xlu1 %4612   ;;  %v5391_v36 = vsel %vm4_vm0, %v6993_v33, %v6992_v32 }
 0x367   :  { %6782 = vst.msk [vmem:[%s13127_s1 + $0x1f0] sm:$0xff] %vm4098_vm7, %v4613_v43  }
 0x368   :  { %v4602_v47 = vpop.permute.xlu0 %4601   ;;  %5249 = vrot.lane.b32.xlu1 %v5248_v42, %s7035_s19  ;;  %v5424_v42 = vsel %vm4_vm0, %v7002_v38, %v7001_v37 }
 0x369   :  { %6779 = vst.msk [vmem:[%s13127_s1 + $0x1d0] sm:$0xff] %vm4098_vm7, %v4602_v47  }
 0x36a   :  { %5238 = vrot.lane.b32.xlu0 %v5237_v44, %s7035_s19  ;;  %v4635_v51 = vpop.permute.xlu1 %4634   ;;  %v5413_v44 = vsel %vm4_vm0, %v6999_v41, %v6998_v40 }
 0x36b   :  { %6788 = vst.msk [vmem:[%s13127_s1 + $0x38] sm:$0xff] %vm4098_vm7, %v4635_v51  }
 0x36c   :  { %v4624_v55 = vpop.permute.xlu0 %4623   ;;  %5271 = vrot.lane.b32.xlu1 %v5270_v50, %s7035_s19  ;;  %v5446_v50 = vsel %vm4_vm0, %v7008_v46, %v7007_v45 }
 0x36d   :  { %6785 = vst.msk [vmem:[%s13127_s1 + $0x18] sm:$0xff] %vm4098_vm7, %v4624_v55  }
 0x36e   :  { %5260 = vrot.lane.b32.xlu0 %v5259_v52, %s7035_s19  ;;  %v4657_v59 = vpop.permute.xlu1 %4656   ;;  %v5435_v52 = vsel %vm4_vm0, %v7005_v49, %v7004_v48 }
 0x36f   :  { %6794 = vst.msk [vmem:[%s13127_s1 + $0x78] sm:$0xff] %vm4098_vm7, %v4657_v59  }
 0x370   :  { %v4646_v63 = vpop.permute.xlu0 %4645   ;;  %5293 = vrot.lane.b32.xlu1 %v5292_v58, %s7035_s19  ;;  %v5468_v58 = vsel %vm4_vm0, %v7014_v54, %v7013_v53 }
 0x371   :  { %6791 = vst.msk [vmem:[%s13127_s1 + $0x58] sm:$0xff] %vm4098_vm7, %v4646_v63  }
 0x372   :  { %5282 = vrot.lane.b32.xlu0 %v5281_v60, %s7035_s19  ;;  %v4679_v3 = vpop.permute.xlu1 %4678   ;;  %v5457_v60 = vsel %vm4_vm0, %v7011_v57, %v7010_v56 }
 0x373   :  { %6800 = vst.msk [vmem:[%s13127_s1 + $0xb8] sm:$0xff] %vm4098_vm7, %v4679_v3  }
 0x374   :  { %v4668_v7 = vpop.permute.xlu0 %4667   ;;  %5315 = vrot.lane.b32.xlu1 %v5314_v2, %s7035_s19  ;;  %v5490_v2 = vsel %vm4_vm0, %v7020_v62, %v7019_v61 }
 0x375   :  { %6797 = vst.msk [vmem:[%s13127_s1 + $0x98] sm:$0xff] %vm4098_vm7, %v4668_v7  }
 0x376   :  { %5304 = vrot.lane.b32.xlu0 %v5303_v4, %s7035_s19  ;;  %v4701_v11 = vpop.permute.xlu1 %4700   ;;  %v5479_v4 = vsel %vm4_vm0, %v7017_v1, %v7016_v0 }
 0x377   :  { %6806 = vst.msk [vmem:[%s13127_s1 + $0xf8] sm:$0xff] %vm4098_vm7, %v4701_v11  }
 0x378   :  { %v4690_v15 = vpop.permute.xlu0 %4689   ;;  %5337 = vrot.lane.b32.xlu1 %v5336_v10, %s7035_s19 }
 0x379   :  { %6803 = vst.msk [vmem:[%s13127_s1 + $0xd8] sm:$0xff] %vm4098_vm7, %v4690_v15  }
 0x37a   :  { %5326 = vrot.lane.b32.xlu0 %v5325_v12, %s7035_s19  ;;  %v4723_v19 = vpop.permute.xlu1 %4722  }
 0x37b   :  { %6812 = vst.msk [vmem:[%s13127_s1 + $0x138] sm:$0xff] %vm4098_vm7, %v4723_v19  }
 0x37c   :  { %v4712_v23 = vpop.permute.xlu0 %4711   ;;  %5359 = vrot.lane.b32.xlu1 %v5358_v18, %s7035_s19 }
 0x37d   :  { %6809 = vst.msk [vmem:[%s13127_s1 + $0x118] sm:$0xff] %vm4098_vm7, %v4712_v23  }
 0x37e   :  { %5348 = vrot.lane.b32.xlu0 %v5347_v20, %s7035_s19  ;;  %v4745_v27 = vpop.permute.xlu1 %4744  }
 0x37f   :  { %6818 = vst.msk [vmem:[%s13127_s1 + $0x178] sm:$0xff] %vm4098_vm7, %v4745_v27  }
 0x380   :  { %v4734_v31 = vpop.permute.xlu0 %4733   ;;  %5381 = vrot.lane.b32.xlu1 %v5380_v26, %s7035_s19 }
 0x381   :  { %6815 = vst.msk [vmem:[%s13127_s1 + $0x158] sm:$0xff] %vm4098_vm7, %v4734_v31  }
 0x382   :  { %5370 = vrot.lane.b32.xlu0 %v5369_v28, %s7035_s19  ;;  %v4767_v35 = vpop.permute.xlu1 %4766  }
 0x383   :  { %6824 = vst.msk [vmem:[%s13127_s1 + $0x1b8] sm:$0xff] %vm4098_vm7, %v4767_v35  }
 0x384   :  { %v4756_v39 = vpop.permute.xlu0 %4755   ;;  %5403 = vrot.lane.b32.xlu1 %v5402_v34, %s7035_s19 }
 0x385   :  { %6821 = vst.msk [vmem:[%s13127_s1 + $0x198] sm:$0xff] %vm4098_vm7, %v4756_v39  }
 0x386   :  { %5392 = vrot.lane.b32.xlu0 %v5391_v36, %s7035_s19  ;;  %v4789_v43 = vpop.permute.xlu1 %4788  }
 0x387   :  { %6830 = vst.msk [vmem:[%s13127_s1 + $0x1f8] sm:$0xff] %vm4098_vm7, %v4789_v43  }
 0x388   :  { %v4778_v47 = vpop.permute.xlu0 %4777   ;;  %5425 = vrot.lane.b32.xlu1 %v5424_v42, %s7035_s19 }
 0x389   :  { %6827 = vst.msk [vmem:[%s13127_s1 + $0x1d8] sm:$0xff] %vm4098_vm7, %v4778_v47  }
 0x38a   :  { %5414 = vrot.lane.b32.xlu0 %v5413_v44, %s7035_s19  ;;  %v4810_v51 = vpop.permute.xlu1 %4809  }
 0x38b   :  { %6835 = vst.msk [vmem:[%s13127_s1 + $0x20] sm:$0xff] %vm4801_vm8, %v4810_v51  }
 0x38c   :  { %v4800_v55 = vpop.permute.xlu0 %4799   ;;  %5447 = vrot.lane.b32.xlu1 %v5446_v50, %s7035_s19 }
 0x38d   :  { %4802 = vst.msk [vmem:[%s13127_s1] sm:$0xff] %vm4801_vm8, %v4800_v55  }
 0x38e   :  { %5436 = vrot.lane.b32.xlu0 %v5435_v52, %s7035_s19  ;;  %v4832_v59 = vpop.permute.xlu1 %4831  }
 0x38f   :  { %6841 = vst.msk [vmem:[%s13127_s1 + $0x60] sm:$0xff] %vm4801_vm8, %v4832_v59  }
 0x390   :  { %v4821_v63 = vpop.permute.xlu0 %4820   ;;  %5469 = vrot.lane.b32.xlu1 %v5468_v58, %s7035_s19 }
 0x391   :  { %6838 = vst.msk [vmem:[%s13127_s1 + $0x40] sm:$0xff] %vm4801_vm8, %v4821_v63  }
 0x392   :  { %5458 = vrot.lane.b32.xlu0 %v5457_v60, %s7035_s19  ;;  %v4854_v3 = vpop.permute.xlu1 %4853  }
 0x393   :  { %6847 = vst.msk [vmem:[%s13127_s1 + $0xa0] sm:$0xff] %vm4801_vm8, %v4854_v3  }
 0x394   :  { %v4843_v5 = vpop.permute.xlu0 %4842   ;;  %5491 = vrot.lane.b32.xlu1 %v5490_v2, %s7035_s19 }
 0x395   :  { %6844 = vst.msk [vmem:[%s13127_s1 + $0x80] sm:$0xff] %vm4801_vm8, %v4843_v5  }
 0x396   :  { %5480 = vrot.lane.b32.xlu0 %v5479_v4, %s7035_s19  ;;  %v4876_v6 = vpop.permute.xlu1 %4875  }
 0x397   :  { %6853 = vst.msk [vmem:[%s13127_s1 + $0xe0] sm:$0xff] %vm4801_vm8, %v4876_v6  }
 0x398   :  { %v4865_v7 = vpop.permute.xlu0 %4864  }
 0x399   :  { %6850 = vst.msk [vmem:[%s13127_s1 + $0xc0] sm:$0xff] %vm4801_vm8, %v4865_v7  }
 0x39a   :  { %v4898_v8 = vpop.permute.xlu1 %4897  }
 0x39b   :  { %6859 = vst.msk [vmem:[%s13127_s1 + $0x120] sm:$0xff] %vm4801_vm8, %v4898_v8  }
 0x39c   :  { %v4887_v9 = vpop.permute.xlu0 %4886  }
 0x39d   :  { %6856 = vst.msk [vmem:[%s13127_s1 + $0x100] sm:$0xff] %vm4801_vm8, %v4887_v9  }
 0x39e   :  { %v4920_v10 = vpop.permute.xlu1 %4919  }
 0x39f   :  { %6865 = vst.msk [vmem:[%s13127_s1 + $0x160] sm:$0xff] %vm4801_vm8, %v4920_v10  }
 0x3a0   :  { %v4909_v11 = vpop.permute.xlu0 %4908  }
 0x3a1   :  { %6862 = vst.msk [vmem:[%s13127_s1 + $0x140] sm:$0xff] %vm4801_vm8, %v4909_v11  }
 0x3a2   :  { %v4942_v12 = vpop.permute.xlu1 %4941  }
 0x3a3   :  { %6871 = vst.msk [vmem:[%s13127_s1 + $0x1a0] sm:$0xff] %vm4801_vm8, %v4942_v12  }
 0x3a4   :  { %v4931_v13 = vpop.permute.xlu0 %4930  }
 0x3a5   :  { %6868 = vst.msk [vmem:[%s13127_s1 + $0x180] sm:$0xff] %vm4801_vm8, %v4931_v13  }
 0x3a6   :  { %v4964_v14 = vpop.permute.xlu1 %4963  }
 0x3a7   :  { %6877 = vst.msk [vmem:[%s13127_s1 + $0x1e0] sm:$0xff] %vm4801_vm8, %v4964_v14  }
 0x3a8   :  { %v4953_v15 = vpop.permute.xlu0 %4952  }
 0x3a9   :  { %6874 = vst.msk [vmem:[%s13127_s1 + $0x1c0] sm:$0xff] %vm4801_vm8, %v4953_v15  }
 0x3aa   :  { %v4986_v16 = vpop.permute.xlu1 %4985  }
 0x3ab   :  { %6883 = vst.msk [vmem:[%s13127_s1 + $0x28] sm:$0xff] %vm4801_vm8, %v4986_v16  }
 0x3ac   :  { %v4975_v17 = vpop.permute.xlu0 %4974  }
 0x3ad   :  { %6880 = vst.msk [vmem:[%s13127_s1 + $0x8] sm:$0xff] %vm4801_vm8, %v4975_v17  }
 0x3ae   :  { %v5008_v18 = vpop.permute.xlu1 %5007  }
 0x3af   :  { %6889 = vst.msk [vmem:[%s13127_s1 + $0x68] sm:$0xff] %vm4801_vm8, %v5008_v18  }
 0x3b0   :  { %v4997_v19 = vpop.permute.xlu0 %4996  }
 0x3b1   :  { %6886 = vst.msk [vmem:[%s13127_s1 + $0x48] sm:$0xff] %vm4801_vm8, %v4997_v19  }
 0x3b2   :  { %v5030_v20 = vpop.permute.xlu1 %5029  }
 0x3b3   :  { %6895 = vst.msk [vmem:[%s13127_s1 + $0xa8] sm:$0xff] %vm4801_vm8, %v5030_v20  }
 0x3b4   :  { %v5019_v21 = vpop.permute.xlu0 %5018  }
 0x3b5   :  { %6892 = vst.msk [vmem:[%s13127_s1 + $0x88] sm:$0xff] %vm4801_vm8, %v5019_v21  }
 0x3b6   :  { %v5052_v22 = vpop.permute.xlu1 %5051  }
 0x3b7   :  { %6901 = vst.msk [vmem:[%s13127_s1 + $0xe8] sm:$0xff] %vm4801_vm8, %v5052_v22  }
 0x3b8   :  { %v5041_v23 = vpop.permute.xlu0 %5040  }
 0x3b9   :  { %6898 = vst.msk [vmem:[%s13127_s1 + $0xc8] sm:$0xff] %vm4801_vm8, %v5041_v23  }
 0x3ba   :  { %v5074_v24 = vpop.permute.xlu1 %5073  }
 0x3bb   :  { %6907 = vst.msk [vmem:[%s13127_s1 + $0x128] sm:$0xff] %vm4801_vm8, %v5074_v24  }
 0x3bc   :  { %v5063_v25 = vpop.permute.xlu0 %5062  }
 0x3bd   :  { %6904 = vst.msk [vmem:[%s13127_s1 + $0x108] sm:$0xff] %vm4801_vm8, %v5063_v25  }
 0x3be   :  { %v5096_v26 = vpop.permute.xlu1 %5095  }
 0x3bf   :  { %6913 = vst.msk [vmem:[%s13127_s1 + $0x168] sm:$0xff] %vm4801_vm8, %v5096_v26  }
 0x3c0   :  { %v5085_v27 = vpop.permute.xlu0 %5084  }
 0x3c1   :  { %6910 = vst.msk [vmem:[%s13127_s1 + $0x148] sm:$0xff] %vm4801_vm8, %v5085_v27  }
 0x3c2   :  { %v5118_v28 = vpop.permute.xlu1 %5117  }
 0x3c3   :  { %6919 = vst.msk [vmem:[%s13127_s1 + $0x1a8] sm:$0xff] %vm4801_vm8, %v5118_v28  }
 0x3c4   :  { %v5107_v29 = vpop.permute.xlu0 %5106  }
 0x3c5   :  { %6916 = vst.msk [vmem:[%s13127_s1 + $0x188] sm:$0xff] %vm4801_vm8, %v5107_v29  }
 0x3c6   :  { %v5140_v30 = vpop.permute.xlu1 %5139  }
 0x3c7   :  { %6925 = vst.msk [vmem:[%s13127_s1 + $0x1e8] sm:$0xff] %vm4801_vm8, %v5140_v30  }
 0x3c8   :  { %v5129_v31 = vpop.permute.xlu0 %5128  }
 0x3c9   :  { %6922 = vst.msk [vmem:[%s13127_s1 + $0x1c8] sm:$0xff] %vm4801_vm8, %v5129_v31  }
 0x3ca   :  { %v5162_v32 = vpop.permute.xlu1 %5161  }
 0x3cb   :  { %6931 = vst.msk [vmem:[%s13127_s1 + $0x30] sm:$0xff] %vm4801_vm8, %v5162_v32  }
 0x3cc   :  { %v5151_v33 = vpop.permute.xlu0 %5150  }
 0x3cd   :  { %6928 = vst.msk [vmem:[%s13127_s1 + $0x10] sm:$0xff] %vm4801_vm8, %v5151_v33  }
 0x3ce   :  { %v5184_v34 = vpop.permute.xlu1 %5183  }
 0x3cf   :  { %6937 = vst.msk [vmem:[%s13127_s1 + $0x70] sm:$0xff] %vm4801_vm8, %v5184_v34  }
 0x3d0   :  { %v5173_v35 = vpop.permute.xlu0 %5172  }
 0x3d1   :  { %6934 = vst.msk [vmem:[%s13127_s1 + $0x50] sm:$0xff] %vm4801_vm8, %v5173_v35  }
 0x3d2   :  { %v5206_v36 = vpop.permute.xlu1 %5205  }
 0x3d3   :  { %6943 = vst.msk [vmem:[%s13127_s1 + $0xb0] sm:$0xff] %vm4801_vm8, %v5206_v36  }
 0x3d4   :  { %v5195_v37 = vpop.permute.xlu0 %5194  }
 0x3d5   :  { %6940 = vst.msk [vmem:[%s13127_s1 + $0x90] sm:$0xff] %vm4801_vm8, %v5195_v37  }
 0x3d6   :  { %v5228_v38 = vpop.permute.xlu1 %5227  }
 0x3d7   :  { %6949 = vst.msk [vmem:[%s13127_s1 + $0xf0] sm:$0xff] %vm4801_vm8, %v5228_v38  }
 0x3d8   :  { %v5217_v39 = vpop.permute.xlu0 %5216  }
 0x3d9   :  { %6946 = vst.msk [vmem:[%s13127_s1 + $0xd0] sm:$0xff] %vm4801_vm8, %v5217_v39  }
 0x3da   :  { %v5250_v40 = vpop.permute.xlu1 %5249  }
 0x3db   :  { %6955 = vst.msk [vmem:[%s13127_s1 + $0x130] sm:$0xff] %vm4801_vm8, %v5250_v40  }
 0x3dc   :  { %v5239_v41 = vpop.permute.xlu0 %5238  }
 0x3dd   :  { %6952 = vst.msk [vmem:[%s13127_s1 + $0x110] sm:$0xff] %vm4801_vm8, %v5239_v41  }
 0x3de   :  { %v5272_v42 = vpop.permute.xlu1 %5271  }
 0x3df   :  { %6961 = vst.msk [vmem:[%s13127_s1 + $0x170] sm:$0xff] %vm4801_vm8, %v5272_v42  }
 0x3e0   :  { %v5261_v43 = vpop.permute.xlu0 %5260  }
 0x3e1   :  { %6958 = vst.msk [vmem:[%s13127_s1 + $0x150] sm:$0xff] %vm4801_vm8, %v5261_v43  }
 0x3e2   :  { %v5294_v44 = vpop.permute.xlu1 %5293  }
 0x3e3   :  { %6967 = vst.msk [vmem:[%s13127_s1 + $0x1b0] sm:$0xff] %vm4801_vm8, %v5294_v44  }
 0x3e4   :  { %v5283_v45 = vpop.permute.xlu0 %5282  }
 0x3e5   :  { %6964 = vst.msk [vmem:[%s13127_s1 + $0x190] sm:$0xff] %vm4801_vm8, %v5283_v45  }
 0x3e6   :  { %v5316_v46 = vpop.permute.xlu1 %5315  }
 0x3e7   :  { %6973 = vst.msk [vmem:[%s13127_s1 + $0x1f0] sm:$0xff] %vm4801_vm8, %v5316_v46  }
 0x3e8   :  { %v5305_v47 = vpop.permute.xlu0 %5304  }
 0x3e9   :  { %6970 = vst.msk [vmem:[%s13127_s1 + $0x1d0] sm:$0xff] %vm4801_vm8, %v5305_v47  }
 0x3ea   :  { %v5338_v48 = vpop.permute.xlu1 %5337  }
 0x3eb   :  { %6979 = vst.msk [vmem:[%s13127_s1 + $0x38] sm:$0xff] %vm4801_vm8, %v5338_v48  }
 0x3ec   :  { %v5327_v49 = vpop.permute.xlu0 %5326  }
 0x3ed   :  { %6976 = vst.msk [vmem:[%s13127_s1 + $0x18] sm:$0xff] %vm4801_vm8, %v5327_v49  }
 0x3ee   :  { %v5360_v50 = vpop.permute.xlu1 %5359  }
 0x3ef   :  { %6985 = vst.msk [vmem:[%s13127_s1 + $0x78] sm:$0xff] %vm4801_vm8, %v5360_v50  }
 0x3f0   :  { %v5349_v51 = vpop.permute.xlu0 %5348  }
 0x3f1   :  { %6982 = vst.msk [vmem:[%s13127_s1 + $0x58] sm:$0xff] %vm4801_vm8, %v5349_v51  }
 0x3f2   :  { %v5382_v52 = vpop.permute.xlu1 %5381  }
 0x3f3   :  { %6991 = vst.msk [vmem:[%s13127_s1 + $0xb8] sm:$0xff] %vm4801_vm8, %v5382_v52  }
 0x3f4   :  { %v5371_v53 = vpop.permute.xlu0 %5370  }
 0x3f5   :  { %6988 = vst.msk [vmem:[%s13127_s1 + $0x98] sm:$0xff] %vm4801_vm8, %v5371_v53  }
 0x3f6   :  { %v5404_v54 = vpop.permute.xlu1 %5403  }
 0x3f7   :  { %6997 = vst.msk [vmem:[%s13127_s1 + $0xf8] sm:$0xff] %vm4801_vm8, %v5404_v54  }
 0x3f8   :  { %v5393_v55 = vpop.permute.xlu0 %5392  }
 0x3f9   :  { %6994 = vst.msk [vmem:[%s13127_s1 + $0xd8] sm:$0xff] %vm4801_vm8, %v5393_v55  }
 0x3fa   :  { %v5426_v56 = vpop.permute.xlu1 %5425  }
 0x3fb   :  { %7003 = vst.msk [vmem:[%s13127_s1 + $0x138] sm:$0xff] %vm4801_vm8, %v5426_v56  }
 0x3fc   :  { %v5415_v57 = vpop.permute.xlu0 %5414  }
 0x3fd   :  { %7000 = vst.msk [vmem:[%s13127_s1 + $0x118] sm:$0xff] %vm4801_vm8, %v5415_v57  }
 0x3fe   :  { %v5448_v58 = vpop.permute.xlu1 %5447  }
 0x3ff   :  { %7009 = vst.msk [vmem:[%s13127_s1 + $0x178] sm:$0xff] %vm4801_vm8, %v5448_v58  }
 0x400   :  { %v5437_v59 = vpop.permute.xlu0 %5436  }
 0x401   :  { %7006 = vst.msk [vmem:[%s13127_s1 + $0x158] sm:$0xff] %vm4801_vm8, %v5437_v59  }
 0x402   :  { %v5470_v60 = vpop.permute.xlu1 %5469  }
 0x403   :  { %7015 = vst.msk [vmem:[%s13127_s1 + $0x1b8] sm:$0xff] %vm4801_vm8, %v5470_v60  }
 0x404   :  { %v5459_v61 = vpop.permute.xlu0 %5458  }
 0x405   :  { %7012 = vst.msk [vmem:[%s13127_s1 + $0x198] sm:$0xff] %vm4801_vm8, %v5459_v61  }
 0x406   :  { %v5492_v62 = vpop.permute.xlu1 %5491  }
 0x407   :  { %7021 = vst.msk [vmem:[%s13127_s1 + $0x1f8] sm:$0xff] %vm4801_vm8, %v5492_v62  }
 0x408   :  { %v5481_v63 = vpop.permute.xlu0 %5480  }
 0x409   :  { %7018 = vst.msk [vmem:[%s13127_s1 + $0x1d8] sm:$0xff] %vm4801_vm8, %v5481_v63  }

// kernel: window_attention.1
= control target key start
LH: loop header
LB: loop body
LE: loop exit
PB: predicated region body
PF: predicated region fallthrough
CT: control target
= control target key end

     0   :  { %vm72_vm0 = vcmask 261120   ;;  %s5084_s0 = inlined_call_operand.vmem [shape: f32[128,32], index: 0, kind: input, shape index: {}]   ;;  %s5085_s1 = inlined_call_operand.vmem [shape: bf16[32,96], index: 1, kind: input, shape index: {}]   ;;  %s5086_s2 = inlined_call_operand.vmem [shape: f32[1,96], index: 2, kind: input, shape index: {}]   ;;  %s5087_s3 = inlined_call_operand.vmem [shape: bf16[32,32], index: 3, kind: input, shape index: {}]   ;;  %s5088_s4 = inlined_call_operand.vmem [shape: f32[1,32], index: 4, kind: input, shape index: {}]   ;;  %s5089_s5 = inlined_call_operand.vmem [shape: f32[4,128,128], index: 5, kind: input, shape index: {}]   ;;  %s5090_s6 = inlined_call_operand.hbm [shape: f32[128,32], index: 6, kind: output, shape index: {}]  }
   0x1   :  { %v3490_v0 = vld [vmem:[%s5085_s1] sm:$0xff]   ;;  %v3491_v1 = vld [vmem:[%s5085_s1 + $0x8] sm:$0xff]   ;;  %v27_v5 = vld [vmem:[%s5084_s0 + $0x10] sm:$0xff] }
   0x2   :  { %3044 = vmatprep.subr.bf16.mxu0 %v3490_v0  ;;  %v25_v2 = vld [vmem:[%s5084_s0] sm:$0xff]  ;;  %v26_v3 = vld [vmem:[%s5084_s0 + $0x8] sm:$0xff]  ;;  %v28_v6 = vld [vmem:[%s5084_s0 + $0x18] sm:$0xff] }
   0x3   :  { %3045 = vmatpush3.bf16.msra.mxu0 %v3490_v0  ;;  %v41_v4 = vpack.c.bf16 %v26_v3, %v25_v2  ;;  %v29_v7 = vld [vmem:[%s5084_s0 + $0x20] sm:$0xff]  ;;  %v30_v8 = vld [vmem:[%s5084_s0 + $0x28] sm:$0xff]  ;;  %v42_v9 = vpack.c.bf16 %v28_v6, %v27_v5 }
   0x4   :  { %3046 = vmatprep.subr.bf16.mxu0 %v3491_v1  ;;  %v43_v10 = vpack.c.bf16 %v30_v8, %v29_v7 }
   0x5   :  { %3048 = vmatprep.mubr.msk.bf16.mxu0 %vm72_vm0, %v41_v4 }
   0x7   :  { %3047 = vmatpush3.bf16.msra.mxu0 %v3491_v1 }
   0x8   :  { %11 = vsyncpa [#allocation3], 0  ;;  %v31_v11 = vld [vmem:[%s5084_s0 + $0x30] sm:$0xff]  ;;  %v32_v12 = vld [vmem:[%s5084_s0 + $0x38] sm:$0xff]  ;;  %vm247_vm1 = vcmask 64512   ;;  %s3774_s17 = smov 88  }
   0x9   :  { %v33_v13 = vld [vmem:[%s5084_s0 + $0x40] sm:$0xff]  ;;  %v34_v14 = vld [vmem:[%s5084_s0 + $0x48] sm:$0xff]  ;;  %v44_v15 = vpack.c.bf16 %v32_v12, %v31_v11  ;;  %v35_v17 = vld [vmem:[%s5084_s0 + $0x50] sm:$0xff]  ;;  %s3775_s15 = smov 120   ;;  %s3776_s16 = smov 56   ;;  %vm1205_vm2 = vcmask 1043456  }
   0xa   :  { %3049 = vmatmul.mubr.msk.bf16.vlgmr.msra.gmra.mrb[0].mxu0 %vm72_vm0, %v42_v9  ;;  %v45_v16 = vpack.c.bf16 %v34_v14, %v33_v13  ;;  %v36_v18 = vld [vmem:[%s5084_s0 + $0x58] sm:$0xff]  ;;  %v37_v19 = vld [vmem:[%s5084_s0 + $0x60] sm:$0xff]  ;;  %v38_v20 = vld [vmem:[%s5084_s0 + $0x68] sm:$0xff]  ;;  %s3777_s23 = smov 80   ;;  %s3778_s24 = smov 112  }
   0xb   :  { %3052 = vmatprep.mubr.msk.bf16.mxu0 %vm72_vm0, %v43_v10  ;;  %v46_v21 = vpack.c.bf16 %v36_v18, %v35_v17  ;;  %v47_v22 = vpack.c.bf16 %v38_v20, %v37_v19  ;;  %v39_v23 = vld [vmem:[%s5084_s0 + $0x70] sm:$0xff]  ;;  %v40_v24 = vld [vmem:[%s5084_s0 + $0x78] sm:$0xff]  ;;  %v2746_v27 = vld [vmem:[%s5086_s2] ss:$0 sm:$0xff]  ;;  %s3772_s0 = smov 96   ;;  %s3773_s2 = smov 64  }
   0xc   :  { %v48_v25 = vpack.c.bf16 %v40_v24, %v39_v23  ;;  %s3779_s25 = smov 72   ;;  %s3780_s26 = smov 104  }
   0xd   :  { %s3781_s27 = smov 48  }
  0x12   :  { %3053 = vmatmul.mubr.msk.bf16.gmra.mrb[4].mxu0 %vm72_vm0, %v44_v15 }
  0x13   :  { %3056 = vmatprep.mubr.msk.bf16.mxu0 %vm72_vm0, %v45_v16 }
  0x1a   :  { %3057 = vmatmul.mubr.msk.bf16.gmra.mrb[8].mxu0 %vm72_vm0, %v46_v21 }
  0x1b   :  { %3060 = vmatprep.mubr.msk.bf16.mxu0 %vm72_vm0, %v47_v22 }
  0x22   :  { %3061 = vmatmul.mubr.msk.bf16.gmra.mrb[12].mxu0 %vm72_vm0, %v48_v25 }
  0xdd   :  { %v3050_v26 = vpop.f32.mrb[0].mxu0 }
  0xde   :  { %v131_v28 = vpop.f32.mrb[1].mxu0  ;;  %v140_v30 = vadd.f32 %v3050_v26, %v2746_v27 }
  0xdf   :  { %v3051_v29 = vpop.f32.mrb[2].mxu0  ;;  %v132_v33 = vadd.f32 %v2746_v27, %v131_v28 }
  0xe0   :  { %v143_v31 = vadd.f32 %v3051_v29, %v2746_v27  ;;  %v134_v32 = vpop.f32.mrb[3].mxu0 }
  0xe1   :  { %v135_v34 = vadd.f32 %v2746_v27, %v134_v32  ;;  %v207_v32 = vld [vmem:[%s5089_s5] sm:$0xff] }
  0xe2   :  { %v3886_v35 = vpack.c.bf16 %v143_v31, %v140_v30  ;;  %v208_v31 = vld [vmem:[%s5089_s5 + $0x8] sm:$0xff] }
  0xe3   :  { %v3888_v36 = vpack.c.bf16 %v135_v34, %v132_v33 }
  0xe5   :  { %231 = vrot.lane.b32.xlu0 %v3888_v36, %s3772_s0  ;;  %3080 = vmatprep.mubr.msk.bf16.mxu1 %vm247_vm1, %v3888_v36  ;;  %v3054_v37 = vpop.f32.mrb[4].mxu0 }
  0xe6   :  { %v156_v38 = vadd.f32 %v3054_v37, %v2746_v27  ;;  %v147_v39 = vpop.f32.mrb[5].mxu0 }
  0xe7   :  { %v148_v40 = vadd.f32 %v2746_v27, %v147_v39  ;;  %v3055_v41 = vpop.f32.mrb[6].mxu0  ;;  %v210_v39 = vld [vmem:[%s5089_s5 + $0x18] sm:$0xff] }
  0xe8   :  { %v159_v42 = vadd.f32 %v3055_v41, %v2746_v27  ;;  %v150_v43 = vpop.f32.mrb[7].mxu0 }
  0xe9   :  { %v151_v44 = vadd.f32 %v2746_v27, %v150_v43  ;;  %233 = vrot.lane.b32.xlu0 %v3886_v35, %s3772_s0 }
  0xea   :  { %v3896_v45 = vpack.c.bf16 %v159_v42, %v156_v38 }
  0xeb   :  { %v3898_v46 = vpack.c.bf16 %v151_v44, %v148_v40 }
  0xed   :  { %235 = vrot.lane.b32.xlu1 %v3898_v46, %s3772_s0  ;;  %v3058_v47 = vpop.f32.mrb[8].mxu0 }
  0xee   :  { %v172_v48 = vadd.f32 %v3058_v47, %v2746_v27  ;;  %v163_v49 = vpop.f32.mrb[9].mxu0 }
  0xef   :  { %v164_v50 = vadd.f32 %v2746_v27, %v163_v49  ;;  %v3059_v51 = vpop.f32.mrb[10].mxu0 }
  0xf0   :  { %v175_v52 = vadd.f32 %v3059_v51, %v2746_v27  ;;  %v166_v53 = vpop.f32.mrb[11].mxu0 }
  0xf1   :  { %237 = vrot.lane.b32.xlu1 %v3896_v45, %s3772_s0  ;;  %v167_v54 = vadd.f32 %v2746_v27, %v166_v53 }
  0xf2   :  { %v3904_v55 = vpack.c.bf16 %v175_v52, %v172_v48 }
  0xf3   :  { %v3906_v56 = vpack.c.bf16 %v167_v54, %v164_v50 }
  0xf5   :  { %v3062_v57 = vpop.f32.mrb[12].mxu0  ;;  %241 = vrot.lane.b32.xlu1 %v3904_v55, %s3772_s0  ;;  %239 = vrot.lane.b32.xlu0 %v3906_v56, %s3772_s0 }
  0xf6   :  { %v188_v58 = vadd.f32 %v3062_v57, %v2746_v27  ;;  %v179_v59 = vpop.f32.mrb[13].mxu0  ;;  %v213_v57 = vld [vmem:[%s5089_s5 + $0x30] sm:$0xff] }
  0xf7   :  { %v180_v60 = vadd.f32 %v2746_v27, %v179_v59  ;;  %v3063_v61 = vpop.f32.mrb[14].mxu0  ;;  %v211_v59 = vld [vmem:[%s5089_s5 + $0x20] sm:$0xff] }
  0xf8   :  { %v191_v62 = vadd.f32 %v3063_v61, %v2746_v27  ;;  %v182_v63 = vpop.f32.mrb[15].mxu0 }
  0xf9   :  { %v183_v0 = vadd.f32 %v2746_v27, %v182_v63  ;;  %v209_v27 = vld [vmem:[%s5089_s5 + $0x10] sm:$0xff] }
  0xfa   :  { %v3912_v1 = vpack.c.bf16 %v191_v62, %v188_v58  ;;  %v217_v63 = vld [vmem:[%s5089_s5 + $0x50] sm:$0xff] }
  0xfb   :  { %v3914_v2 = vpack.c.bf16 %v183_v0, %v180_v60  ;;  %v214_v60 = vld [vmem:[%s5089_s5 + $0x38] sm:$0xff]  ;;  %v212_v0 = vld [vmem:[%s5089_s5 + $0x28] sm:$0xff] }
  0xfc   :  { %245 = vrot.lane.b32.xlu1 %v3912_v1, %s3772_s0 }
  0xfd   :  { %243 = vrot.lane.b32.xlu0 %v3914_v2, %s3772_s0 }
 0x100   :  { %561 = vrot.lane.b32.xlu1 %v3888_v36, %s3773_s2 }
 0x101   :  { %563 = vrot.lane.b32.xlu0 %v3886_v35, %s3773_s2 }
 0x104   :  { %565 = vrot.lane.b32.xlu1 %v3898_v46, %s3773_s2 }
 0x105   :  { %567 = vrot.lane.b32.xlu0 %v3896_v45, %s3773_s2 }
 0x108   :  { %569 = vrot.lane.b32.xlu1 %v3906_v56, %s3773_s2 }
 0x10c   :  { %571 = vrot.lane.b32.xlu1 %v3904_v55, %s3773_s2 }
 0x110   :  { %575 = vrot.lane.b32.xlu1 %v3912_v1, %s3773_s2 }
 0x114   :  { %573 = vrot.lane.b32.xlu1 %v3914_v2, %s3773_s2 }
 0x157   :  { %v232_v3 = vpop.permute.xlu0 %231 }
 0x158   :  { %3440 = vmatprep.subr.msk.bf16.mxu1 %vm247_vm1, %v232_v3  ;;  %v273_v4 = vsel %vm247_vm1, %v232_v3, 0 }
 0x159   :  { %3065 = vmatpush3.bf16.xpose.msra.mxu1 %v273_v4 }
 0x15b   :  { %v234_v5 = vpop.permute.xlu0 %233 }
 0x15c   :  { %3441 = vmatprep.subr.msk.bf16.mxu1 %vm247_vm1, %v234_v5  ;;  %v276_v7 = vsel %vm247_vm1, %v234_v5, 0  ;;  %v215_v5 = vld [vmem:[%s5089_s5 + $0x40] sm:$0xff] }
 0x15f   :  { %v236_v6 = vpop.permute.xlu1 %235 }
 0x160   :  { %v279_v9 = vsel %vm247_vm1, %v236_v6, 0 }
 0x161   :  { %3067 = vmatpush3.bf16.xpose.msra.mxu1 %v276_v7 }
 0x162   :  { %3442 = vmatprep.subr.msk.bf16.mxu1 %vm247_vm1, %v236_v6  ;;  %v218_v6 = vld [vmem:[%s5089_s5 + $0x58] sm:$0xff] }
 0x163   :  { %v238_v8 = vpop.permute.xlu1 %237 }
 0x164   :  { %v282_v14 = vsel %vm247_vm1, %v238_v8, 0 }
 0x167   :  { %v242_v10 = vpop.permute.xlu1 %241  ;;  %v240_v11 = vpop.permute.xlu0 %239 }
 0x168   :  { %v285_v18 = vsel %vm247_vm1, %v240_v11, 0  ;;  %v288_v22 = vsel %vm247_vm1, %v242_v10, 0 }
 0x169   :  { %3069 = vmatpush3.bf16.xpose.msra.mxu1 %v279_v9  ;;  %v221_v9 = vld [vmem:[%s5089_s5 + $0x70] sm:$0xff] }
 0x16a   :  { %3443 = vmatprep.subr.msk.bf16.mxu1 %vm247_vm1, %v238_v8 }
 0x16e   :  { %v246_v12 = vpop.permute.xlu1 %245 }
 0x16f   :  { %v244_v13 = vpop.permute.xlu0 %243  ;;  %v294_v26 = vsel %vm247_vm1, %v246_v12, 0 }
 0x170   :  { %v291_v25 = vsel %vm247_vm1, %v244_v13, 0 }
 0x171   :  { %3071 = vmatpush3.bf16.xpose.msra.mxu1 %v282_v14  ;;  %v222_v14 = vld [vmem:[%s5089_s5 + $0x78] sm:$0xff] }
 0x172   :  { %v562_v15 = vpop.permute.xlu1 %561  ;;  %3444 = vmatprep.subr.msk.bf16.mxu1 %vm247_vm1, %v240_v11 }
 0x173   :  { %3096 = vmatprep.subr.bf16.mxu0 %v562_v15  ;;  %v564_v16 = vpop.permute.xlu0 %563 }
 0x174   :  { %3097 = vmatpush3.bf16.msra.mxu0 %v562_v15 }
 0x175   :  { %3098 = vmatprep.subr.bf16.mxu0 %v564_v16 }
 0x176   :  { %v566_v17 = vpop.permute.xlu1 %565 }
 0x177   :  { %v568_v20 = vpop.permute.xlu0 %567 }
 0x178   :  { %3099 = vmatpush3.bf16.msra.mxu0 %v564_v16 }
 0x179   :  { %3073 = vmatpush3.bf16.xpose.msra.mxu1 %v285_v18  ;;  %3100 = vmatprep.subr.bf16.mxu0 %v566_v17 }
 0x17a   :  { %v570_v19 = vpop.permute.xlu1 %569  ;;  %3445 = vmatprep.subr.msk.bf16.mxu1 %vm247_vm1, %v242_v10  ;;  %v216_v10 = vld [vmem:[%s5089_s5 + $0x48] sm:$0xff] }
 0x17c   :  { %3101 = vmatpush3.bf16.msra.mxu0 %v566_v17  ;;  %v220_v17 = vld [vmem:[%s5089_s5 + $0x68] sm:$0xff] }
 0x17d   :  { %3102 = vmatprep.subr.bf16.mxu0 %v568_v20 }
 0x17e   :  { %v572_v21 = vpop.permute.xlu1 %571 }
 0x180   :  { %3103 = vmatpush3.bf16.msra.mxu0 %v568_v20 }
 0x181   :  { %3075 = vmatpush3.bf16.xpose.msra.mxu1 %v288_v22  ;;  %3104 = vmatprep.subr.bf16.mxu0 %v570_v19 }
 0x182   :  { %v576_v23 = vpop.permute.xlu1 %575  ;;  %3446 = vmatprep.subr.msk.bf16.mxu1 %vm247_vm1, %v244_v13  ;;  %v219_v13 = vld [vmem:[%s5089_s5 + $0x60] sm:$0xff] }
 0x184   :  { %3105 = vmatpush3.bf16.msra.mxu0 %v570_v19 }
 0x185   :  { %3106 = vmatprep.subr.bf16.mxu0 %v572_v21 }
 0x186   :  { %v574_v24 = vpop.permute.xlu1 %573 }
 0x188   :  { %3107 = vmatpush3.bf16.msra.mxu0 %v572_v21 }
 0x189   :  { %3077 = vmatpush3.bf16.xpose.msra.mxu1 %v291_v25  ;;  %3108 = vmatprep.subr.bf16.mxu0 %v574_v24 }
 0x18a   :  { %3447 = vmatprep.subr.msk.bf16.mxu1 %vm247_vm1, %v246_v12 }
 0x18c   :  { %3109 = vmatpush3.bf16.msra.mxu0 %v574_v24 }
 0x18d   :  { %3110 = vmatprep.subr.bf16.mxu0 %v576_v23 }
 0x190   :  { %3111 = vmatpush3.bf16.msra.mxu0 %v576_v23 }
 0x191   :  { %3079 = vmatpush3.bf16.xpose.msra.mxu1 %v294_v26 }
 0x198   :  { %3081 = vmatmul.mubr.msk.bf16.vlgmr.msra.gmra.mrb[0].mxu1 %vm247_vm1, %v3886_v35 }
 0x199   :  { %3084 = vmatprep.mubr.msk.bf16.mxu1 %vm247_vm1, %v3898_v46 }
 0x1a0   :  { %3085 = vmatmul.mubr.msk.bf16.gmra.mrb[4].mxu1 %vm247_vm1, %v3896_v45 }
 0x1a1   :  { %3088 = vmatprep.mubr.msk.bf16.mxu1 %vm247_vm1, %v3906_v56 }
 0x1a8   :  { %3089 = vmatmul.mubr.msk.bf16.gmra.mrb[8].mxu1 %vm247_vm1, %v3904_v55 }
 0x1a9   :  { %3092 = vmatprep.mubr.msk.bf16.mxu1 %vm247_vm1, %v3914_v2 }
 0x1b0   :  { %3093 = vmatmul.mubr.msk.bf16.gmra.mrb[12].mxu1 %vm247_vm1, %v3912_v1 }
 0x26b   :  { %v3082_v28 = vpop.f32.mrb[0].mxu1 }
 0x26c   :  { %v3961_v29 = vadd.f32 %v3082_v28, %v209_v27  ;;  %v330_v30 = vpop.f32.mrb[1].mxu1 }
 0x26d   :  { %v3083_v33 = vpop.f32.mrb[2].mxu1  ;;  %v3972_v38 = vadd.f32 %v330_v30, %v207_v32 }
 0x26e   :  { %397 = vmax.xlane.f32.xlu0 %v3961_v29  ;;  %v333_v34 = vpop.f32.mrb[3].mxu1  ;;  %v3979_v41 = vadd.f32 %v3083_v33, %v210_v39 }
 0x26f   :  { %v3970_v37 = vadd.f32 %v333_v34, %v208_v31 }
 0x271   :  { %395 = vmax.xlane.f32.xlu1 %v3970_v37 }
 0x272   :  { %393 = vmax.xlane.f32.xlu0 %v3972_v38 }
 0x273   :  { %v3086_v40 = vpop.f32.mrb[4].mxu1 }
 0x274   :  { %v346_v42 = vpop.f32.mrb[5].mxu1  ;;  %v3989_v58 = vadd.f32 %v3086_v40, %v213_v57 }
 0x275   :  { %v3087_v43 = vpop.f32.mrb[6].mxu1  ;;  %v3998_v61 = vadd.f32 %v346_v42, %v211_v59 }
 0x276   :  { %v349_v44 = vpop.f32.mrb[7].mxu1  ;;  %399 = vmax.xlane.f32.xlu0 %v3979_v41  ;;  %v4000_v62 = vadd.f32 %v3087_v43, %v214_v60 }
 0x277   :  { %v4012_v4 = vadd.f32 %v349_v44, %v212_v0 }
 0x27b   :  { %v3090_v47 = vpop.f32.mrb[8].mxu1 }
 0x27c   :  { %v362_v48 = vpop.f32.mrb[9].mxu1  ;;  %v4010_v3 = vadd.f32 %v3090_v47, %v217_v63 }
 0x27d   :  { %v3091_v49 = vpop.f32.mrb[10].mxu1  ;;  %v4022_v7 = vadd.f32 %v362_v48, %v215_v5 }
 0x27e   :  { %v365_v50 = vpop.f32.mrb[11].mxu1  ;;  %v4024_v8 = vadd.f32 %v3091_v49, %v218_v6 }
 0x27f   :  { %v4036_v12 = vadd.f32 %v365_v50, %v216_v10 }
 0x282   :  { %725 = vrot.lane.b32.xlu1 %v3886_v35, %s3774_s17 }
 0x283   :  { %v3094_v51 = vpop.f32.mrb[12].mxu1 }
 0x284   :  { %v378_v52 = vpop.f32.mrb[13].mxu1  ;;  %v4034_v11 = vadd.f32 %v3094_v51, %v221_v9 }
 0x285   :  { %v3095_v53 = vpop.f32.mrb[14].mxu1  ;;  %v4046_v15 = vadd.f32 %v378_v52, %v219_v13 }
 0x286   :  { %v381_v54 = vpop.f32.mrb[15].mxu1  ;;  %v4048_v16 = vadd.f32 %v3095_v53, %v222_v14 }
 0x287   :  { %v4055_v18 = vadd.f32 %v381_v54, %v220_v17 }
 0x28c   :  { %723 = vrot.lane.b32.xlu0 %v3888_v36, %s3774_s17 }
 0x2a6   :  { %405 = vmax.xlane.f32.xlu1 %v3989_v58 }
 0x2aa   :  { %401 = vmax.xlane.f32.xlu1 %v3998_v61 }
 0x2ab   :  { %407 = vmax.xlane.f32.xlu0 %v4000_v62 }
 0x2ae   :  { %413 = vmax.xlane.f32.xlu1 %v4010_v3 }
 0x2af   :  { %403 = vmax.xlane.f32.xlu0 %v4012_v4 }
 0x2b2   :  { %409 = vmax.xlane.f32.xlu1 %v4022_v7 }
 0x2b3   :  { %415 = vmax.xlane.f32.xlu0 %v4024_v8 }
 0x2b6   :  { %421 = vmax.xlane.f32.xlu1 %v4034_v11 }
 0x2b7   :  { %411 = vmax.xlane.f32.xlu0 %v4036_v12 }
 0x2ba   :  { %417 = vmax.xlane.f32.xlu1 %v4046_v15 }
 0x2bb   :  { %423 = vmax.xlane.f32.xlu0 %v4048_v16 }
 0x2bf   :  { %419 = vmax.xlane.f32.xlu0 %v4055_v18 }
 0x2cb   :  { %727 = vrot.lane.b32.xlu1 %v3898_v46, %s3774_s17 }
 0x2fb   :  { %v398_v19 = vpop.xlane.xlu0 %397 }
 0x2fc   :  { %v427_v20 = vsub.f32 %v3961_v29, %v398_v19 }
 0x2fe   :  { %v445_v21 = vmul.f32 1.442695, %v427_v20  ;;  %v396_v24 = vpop.xlane.xlu1 %395 }
 0x2ff   :  { %v394_v22 = vpop.xlane.xlu0 %393  ;;  %v426_v27 = vsub.f32 %v3970_v37, %v396_v24 }
 0x300   :  { %3492 = vpow2.f32 %v445_v21  ;;  %v425_v23 = vsub.f32 %v3972_v38, %v394_v22 }
 0x301   :  { %v443_v32 = vmul.f32 1.442695, %v426_v27 }
 0x302   :  { %v441_v25 = vmul.f32 1.442695, %v425_v23  ;;  %v4080_v38 = vpop.permute.xlu1 %725 }
 0x303   :  { %v400_v26 = vpop.xlane.xlu0 %399 }
 0x304   :  { %3494 = vpow2.f32 %v441_v25  ;;  %v428_v28 = vsub.f32 %v3979_v41, %v400_v26 }
 0x306   :  { %v447_v30 = vmul.f32 1.442695, %v428_v28 }
 0x307   :  { %v4064_v31 = vpop.permute.xlu0 %723 }
 0x308   :  { %3496 = vpow2.f32 %v447_v30  ;;  %3448 = vmatprep.subr.msk.bf16.mxu0 %vm247_vm1, %v4064_v31 }
 0x309   :  { %3498 = vpow2.f32 %v443_v32 }
 0x30a   :  { %v4068_v29 = vpop.eup %3492 }
 0x30b   :  { %477 = vadd.xlane.f32.xlu0 %v4068_v29 }
 0x30e   :  { %v4071_v33 = vpop.eup %3494 }
 0x30f   :  { %473 = vadd.xlane.f32.xlu1 %v4071_v33 }
 0x312   :  { %v4074_v34 = vpop.eup %3496 }
 0x313   :  { %479 = vadd.xlane.f32.xlu0 %v4074_v34  ;;  %v4077_v37 = vpop.eup %3498 }
 0x317   :  { %475 = vadd.xlane.f32.xlu0 %v4077_v37 }
 0x333   :  { %v406_v39 = vpop.xlane.xlu1 %405 }
 0x334   :  { %v431_v40 = vsub.f32 %v3989_v58, %v406_v39 }
 0x336   :  { %v453_v41 = vmul.f32 1.442695, %v431_v40 }
 0x337   :  { %v402_v42 = vpop.xlane.xlu1 %401 }
 0x338   :  { %3500 = vpow2.f32 %v453_v41  ;;  %v429_v43 = vsub.f32 %v3998_v61, %v402_v42  ;;  %v408_v44 = vpop.xlane.xlu0 %407 }
 0x339   :  { %v432_v47 = vsub.f32 %v4000_v62, %v408_v44 }
 0x33a   :  { %v449_v48 = vmul.f32 1.442695, %v429_v43 }
 0x33b   :  { %v455_v49 = vmul.f32 1.442695, %v432_v47  ;;  %v414_v63 = vpop.xlane.xlu1 %413 }
 0x33c   :  { %3502 = vpow2.f32 %v449_v48  ;;  %v404_v50 = vpop.xlane.xlu0 %403 }
 0x33d   :  { %v430_v51 = vsub.f32 %v4012_v4, %v404_v50  ;;  %3504 = vpow2.f32 %v455_v49  ;;  %v435_v4 = vsub.f32 %v4010_v3, %v414_v63 }
 0x33f   :  { %v451_v52 = vmul.f32 1.442695, %v430_v51  ;;  %v410_v5 = vpop.xlane.xlu1 %409  ;;  %v461_v9 = vmul.f32 1.442695, %v435_v4 }
 0x340   :  { %v416_v59 = vpop.xlane.xlu0 %415  ;;  %v433_v10 = vsub.f32 %v4022_v7, %v410_v5 }
 0x341   :  { %3506 = vpow2.f32 %v451_v52  ;;  %v436_v14 = vsub.f32 %v4024_v8, %v416_v59 }
 0x342   :  { %v4086_v53 = vpop.eup %3500  ;;  %v457_v13 = vmul.f32 1.442695, %v433_v10 }
 0x343   :  { %485 = vadd.xlane.f32.xlu0 %v4086_v53  ;;  %v422_v17 = vpop.xlane.xlu1 %421  ;;  %v463_v19 = vmul.f32 1.442695, %v436_v14 }
 0x344   :  { %v412_v60 = vpop.xlane.xlu0 %411  ;;  %v439_v3 = vsub.f32 %v4034_v11, %v422_v17 }
 0x345   :  { %v434_v20 = vsub.f32 %v4036_v12, %v412_v60  ;;  %v764_v60 = vsel %vm247_vm1, %v4064_v31, 0 }
 0x346   :  { %v4089_v54 = vpop.eup %3502  ;;  %v469_v23 = vmul.f32 1.442695, %v439_v3 }
 0x347   :  { %481 = vadd.xlane.f32.xlu0 %v4089_v54  ;;  %v4092_v57 = vpop.eup %3504  ;;  %v418_v22 = vpop.xlane.xlu1 %417 }
 0x348   :  { %v424_v61 = vpop.xlane.xlu0 %423  ;;  %v437_v8 = vsub.f32 %v4046_v15, %v418_v22 }
 0x349   :  { %v440_v11 = vsub.f32 %v4048_v16, %v424_v61 }
 0x34a   :  { %v465_v12 = vmul.f32 1.442695, %v437_v8 }
 0x34b   :  { %v4094_v58 = vpop.eup %3506  ;;  %487 = vadd.xlane.f32.xlu0 %v4092_v57  ;;  %v471_v26 = vmul.f32 1.442695, %v440_v11  ;;  %v728_v30 = vpop.permute.xlu1 %727 }
 0x34c   :  { %483 = vadd.xlane.f32.xlu1 %v4094_v58  ;;  %v420_v62 = vpop.xlane.xlu0 %419  ;;  %v770_v31 = vsel %vm247_vm1, %v728_v30, 0 }
 0x34d   :  { %v438_v0 = vsub.f32 %v4055_v18, %v420_v62  ;;  %v459_v18 = vmul.f32 1.442695, %v434_v20 }
 0x34f   :  { %v467_v6 = vmul.f32 1.442695, %v438_v0 }
 0x351   :  { %3508 = vpow2.f32 %v467_v6 }
 0x352   :  { %3510 = vpow2.f32 %v461_v9 }
 0x353   :  { %3512 = vpow2.f32 %v457_v13 }
 0x354   :  { %3514 = vpow2.f32 %v463_v19 }
 0x355   :  { %3516 = vpow2.f32 %v459_v18 }
 0x356   :  { %3518 = vpow2.f32 %v469_v23 }
 0x357   :  { %3520 = vpow2.f32 %v465_v12 }
 0x358   :  { %3522 = vpow2.f32 %v471_v26 }
 0x35b   :  { %v4109_v21 = vpop.eup %3508 }
 0x35c   :  { %v4113_v7 = vpop.eup %3510 }
 0x35d   :  { %729 = vrot.lane.b32.xlu1 %v3896_v45, %s3774_s17  ;;  %v4117_v24 = vpop.eup %3512 }
 0x35e   :  { %v4121_v25 = vpop.eup %3514 }
 0x35f   :  { %v4124_v27 = vpop.eup %3516 }
 0x360   :  { %v4129_v15 = vpop.eup %3518 }
 0x361   :  { %731 = vrot.lane.b32.xlu0 %v3906_v56, %s3774_s17  ;;  %v4134_v16 = vpop.eup %3520 }
 0x362   :  { %v4139_v28 = vpop.eup %3522 }
 0x365   :  { %733 = vrot.lane.b32.xlu0 %v3904_v55, %s3774_s17 }
 0x381   :  { %499 = vadd.xlane.f32.xlu1 %v4109_v21 }
 0x384   :  { %493 = vadd.xlane.f32.xlu0 %v4113_v7 }
 0x388   :  { %489 = vadd.xlane.f32.xlu0 %v4117_v24 }
 0x38c   :  { %495 = vadd.xlane.f32.xlu0 %v4121_v25 }
 0x390   :  { %491 = vadd.xlane.f32.xlu0 %v4124_v27 }
 0x392   :  { %737 = vrot.lane.b32.xlu1 %v3912_v1, %s3774_s17 }
 0x394   :  { %501 = vadd.xlane.f32.xlu0 %v4129_v15 }
 0x396   :  { %715 = vrot.lane.b32.xlu1 %v3906_v56, %s3775_s15 }
 0x398   :  { %497 = vadd.xlane.f32.xlu0 %v4134_v16  ;;  %v478_v32 = vpop.xlane.xlu0 %477 }
 0x39a   :  { %719 = vrot.lane.b32.xlu1 %v3914_v2, %s3775_s15 }
 0x39c   :  { %503 = vadd.xlane.f32.xlu0 %v4139_v28  ;;  %v474_v39 = vpop.xlane.xlu1 %473 }
 0x39e   :  { %1054 = vrot.lane.b32.xlu1 %v3886_v35, %s3776_s16 }
 0x3a0   :  { %v480_v40 = vpop.xlane.xlu0 %479 }
 0x3a1   :  { %3524 = vrcp.f32 %v480_v40 }
 0x3a2   :  { %1058 = vrot.lane.b32.xlu1 %v3896_v45, %s3776_s16  ;;  %3526 = vrcp.f32 %v474_v39 }
 0x3a3   :  { %3528 = vrcp.f32 %v478_v32 }
 0x3a4   :  { %v476_v41 = vpop.xlane.xlu0 %475 }
 0x3a5   :  { %3530 = vrcp.f32 %v476_v41 }
 0x3a6   :  { %1064 = vrot.lane.b32.xlu1 %v3914_v2, %s3776_s16 }
 0x3ab   :  { %v3525_v42 = vpop.eup %3524 }
 0x3ac   :  { %v3527_v43 = vpop.eup %3526  ;;  %v540_v48 = vmul.f32 %v3525_v42, %v4074_v34 }
 0x3ad   :  { %v3529_v44 = vpop.eup %3528  ;;  %v537_v49 = vmul.f32 %v3527_v43, %v4071_v33 }
 0x3ae   :  { %v539_v51 = vmul.f32 %v3529_v44, %v4068_v29  ;;  %v767_v29 = vsel %vm247_vm1, %v4080_v38, 0 }
 0x3af   :  { %v3531_v47 = vpop.eup %3530 }
 0x3b0   :  { %v538_v50 = vmul.f32 %v3531_v47, %v4077_v37  ;;  %v554_v59 = vpack.c.bf16 %v540_v48, %v539_v51 }
 0x3b2   :  { %735 = vrot.lane.b32.xlu0 %v3914_v2, %s3774_s17  ;;  %v553_v52 = vpack.c.bf16 %v538_v50, %v537_v49 }
 0x3b4   :  { %3112 = vmatprep.mubr.bf16.mxu0 %v553_v52 }
 0x3b5   :  { %3113 = vmatmul.mubr.bf16.vlgmr.msra.gmra.mrb[16].mxu0 %v554_v59 }
 0x3b6   :  { %3129 = vmatpush3.bf16.xpose.msra.mxu0 %v764_v60  ;;  %707 = vrot.lane.b32.xlu0 %v3888_v36, %s3775_s15 }
 0x3b7   :  { %3449 = vmatprep.subr.msk.bf16.mxu0 %vm247_vm1, %v4080_v38 }
 0x3ba   :  { %709 = vrot.lane.b32.xlu0 %v3886_v35, %s3775_s15 }
 0x3be   :  { %3131 = vmatpush3.bf16.xpose.msra.mxu0 %v767_v29  ;;  %711 = vrot.lane.b32.xlu0 %v3898_v46, %s3775_s15 }
 0x3bf   :  { %3450 = vmatprep.subr.msk.bf16.mxu0 %vm247_vm1, %v728_v30 }
 0x3c2   :  { %713 = vrot.lane.b32.xlu0 %v3896_v45, %s3775_s15 }
 0x3c6   :  { %3133 = vmatpush3.bf16.xpose.msra.mxu0 %v770_v31  ;;  %717 = vrot.lane.b32.xlu0 %v3904_v55, %s3775_s15 }
 0x3ca   :  { %721 = vrot.lane.b32.xlu0 %v3912_v1, %s3775_s15 }
 0x3ce   :  { %1052 = vrot.lane.b32.xlu0 %v3888_v36, %s3776_s16 }
 0x3d0   :  { %v486_v33 = vpop.xlane.xlu0 %485 }
 0x3d1   :  { %3532 = vrcp.f32 %v486_v33 }
 0x3d2   :  { %1056 = vrot.lane.b32.xlu0 %v3898_v46, %s3776_s16 }
 0x3d4   :  { %v482_v34 = vpop.xlane.xlu0 %481 }
 0x3d5   :  { %3534 = vrcp.f32 %v482_v34 }
 0x3d6   :  { %1060 = vrot.lane.b32.xlu0 %v3906_v56, %s3776_s16 }
 0x3d8   :  { %v488_v37 = vpop.xlane.xlu0 %487 }
 0x3d9   :  { %3536 = vrcp.f32 %v488_v37  ;;  %v484_v38 = vpop.xlane.xlu1 %483 }
 0x3da   :  { %3538 = vrcp.f32 %v484_v38  ;;  %1062 = vrot.lane.b32.xlu0 %v3904_v55, %s3776_s16 }
 0x3db   :  { %v3533_v0 = vpop.eup %3532 }
 0x3dc   :  { %v732_v63 = vpop.permute.xlu0 %731  ;;  %v543_v17 = vmul.f32 %v3533_v0, %v4086_v53 }
 0x3dd   :  { %v730_v61 = vpop.permute.xlu1 %729  ;;  %v776_v14 = vsel %vm247_vm1, %v732_v63, 0 }
 0x3de   :  { %1066 = vrot.lane.b32.xlu0 %v3912_v1, %s3776_s16  ;;  %3451 = vmatprep.subr.msk.bf16.mxu0 %vm247_vm1, %v730_v61  ;;  %v773_v62 = vsel %vm247_vm1, %v730_v61, 0 }
 0x3df   :  { %3135 = vmatpush3.bf16.xpose.msra.mxu0 %v773_v62  ;;  %v3535_v4 = vpop.eup %3534 }
 0x3e0   :  { %3452 = vmatprep.subr.msk.bf16.mxu0 %vm247_vm1, %v732_v63  ;;  %v541_v10 = vmul.f32 %v3535_v4, %v4089_v54  ;;  %v734_v19 = vpop.permute.xlu0 %733 }
 0x3e1   :  { %v779_v18 = vsel %vm247_vm1, %v734_v19, 0 }
 0x3e3   :  { %v3537_v5 = vpop.eup %3536 }
 0x3e4   :  { %v3539_v6 = vpop.eup %3538  ;;  %v544_v9 = vmul.f32 %v3537_v5, %v4092_v57 }
 0x3e5   :  { %v542_v13 = vmul.f32 %v3539_v6, %v4094_v58 }
 0x3e6   :  { %v556_v3 = vpack.c.bf16 %v544_v9, %v543_v17 }
 0x3e7   :  { %3137 = vmatpush3.bf16.xpose.msra.mxu0 %v776_v14  ;;  %v555_v20 = vpack.c.bf16 %v542_v13, %v541_v10 }
 0x3e8   :  { %3453 = vmatprep.subr.msk.bf16.mxu0 %vm247_vm1, %v734_v19 }
 0x3e9   :  { %3116 = vmatprep.mubr.bf16.mxu0 %v555_v20 }
 0x3ea   :  { %3117 = vmatmul.mubr.bf16.gmra.mrb[20].mxu0 %v556_v3 }
 0x3ef   :  { %3139 = vmatpush3.bf16.xpose.msra.mxu0 %v779_v18 }
 0x40e   :  { %v500_v53 = vpop.xlane.xlu1 %499 }
 0x411   :  { %v494_v57 = vpop.xlane.xlu0 %493 }
 0x412   :  { %v738_v50 = vpop.permute.xlu1 %737 }
 0x413   :  { %v785_v33 = vsel %vm247_vm1, %v738_v50, 0 }
 0x415   :  { %v490_v22 = vpop.xlane.xlu0 %489 }
 0x416   :  { %v716_v38 = vpop.permute.xlu1 %715 }
 0x419   :  { %v496_v54 = vpop.xlane.xlu0 %495 }
 0x41a   :  { %3540 = vrcp.f32 %v496_v54  ;;  %v720_v61 = vpop.permute.xlu1 %719 }
 0x41b   :  { %3542 = vrcp.f32 %v490_v22 }
 0x41c   :  { %3544 = vrcp.f32 %v494_v57 }
 0x41d   :  { %v492_v58 = vpop.xlane.xlu0 %491 }
 0x41e   :  { %3546 = vrcp.f32 %v492_v58 }
 0x41f   :  { %3548 = vrcp.f32 %v500_v53 }
 0x421   :  { %v502_v23 = vpop.xlane.xlu0 %501 }
 0x424   :  { %v3541_v8 = vpop.eup %3540 }
 0x425   :  { %v498_v12 = vpop.xlane.xlu0 %497  ;;  %v3543_v11 = vpop.eup %3542  ;;  %v548_v32 = vmul.f32 %v3541_v8, %v4121_v25 }
 0x426   :  { %3550 = vrcp.f32 %v498_v12  ;;  %v3545_v26 = vpop.eup %3544  ;;  %v545_v40 = vmul.f32 %v3543_v11, %v4117_v24 }
 0x427   :  { %3552 = vrcp.f32 %v502_v23  ;;  %v547_v42 = vmul.f32 %v3545_v26, %v4113_v7 }
 0x428   :  { %v3547_v30 = vpop.eup %3546 }
 0x429   :  { %v504_v39 = vpop.xlane.xlu0 %503  ;;  %v546_v41 = vmul.f32 %v3547_v30, %v4124_v27  ;;  %v558_v44 = vpack.c.bf16 %v548_v32, %v547_v42  ;;  %v3549_v48 = vpop.eup %3548 }
 0x42a   :  { %3554 = vrcp.f32 %v504_v39  ;;  %v550_v7 = vmul.f32 %v3549_v48, %v4109_v21 }
 0x42b   :  { %v557_v43 = vpack.c.bf16 %v546_v41, %v545_v40 }
 0x42d   :  { %3120 = vmatprep.mubr.bf16.mxu0 %v557_v43  ;;  %v736_v47 = vpop.permute.xlu0 %735  ;;  %v2767_v43 = vld [vmem:[%s5089_s5 + $0x90] sm:$0xff] }
 0x42e   :  { %3121 = vmatmul.mubr.bf16.gmra.mrb[24].mxu0 %v558_v44  ;;  %3454 = vmatprep.subr.msk.bf16.mxu0 %vm247_vm1, %v736_v47  ;;  %v782_v49 = vsel %vm247_vm1, %v736_v47, 0  ;;  %v2765_v44 = vld [vmem:[%s5089_s5 + $0x80] sm:$0xff] }
 0x42f   :  { %3141 = vmatpush3.bf16.xpose.msra.mxu0 %v782_v49 }
 0x430   :  { %v3551_v25 = vpop.eup %3550  ;;  %3455 = vmatprep.subr.msk.bf16.mxu0 %vm247_vm1, %v738_v50 }
 0x431   :  { %v708_v24 = vpop.permute.xlu0 %707  ;;  %v549_v27 = vmul.f32 %v3551_v25, %v4134_v16  ;;  %v3553_v51 = vpop.eup %3552 }
 0x432   :  { %v551_v29 = vmul.f32 %v3553_v51, %v4129_v15 }
 0x433   :  { %v559_v52 = vpack.c.bf16 %v550_v7, %v549_v27 }
 0x434   :  { %v3555_v59 = vpop.eup %3554 }
 0x435   :  { %3124 = vmatprep.mubr.bf16.mxu0 %v559_v52  ;;  %v710_v60 = vpop.permute.xlu0 %709  ;;  %v552_v31 = vmul.f32 %v3555_v59, %v4139_v28  ;;  %v1055_v28 = vpop.permute.xlu1 %1054 }
 0x437   :  { %3143 = vmatpush3.bf16.xpose.msra.mxu0 %v785_v33  ;;  %v560_v34 = vpack.c.bf16 %v552_v31, %v551_v29 }
 0x439   :  { %3125 = vmatmul.mubr.bf16.gmra.mrb[28].mxu0 %v560_v34  ;;  %v712_v37 = vpop.permute.xlu0 %711  ;;  %v1059_v0 = vpop.permute.xlu1 %1058 }
 0x43a   :  { %3144 = vmatprep.mubr.msk.bf16.mxu0 %vm247_vm1, %v708_v24  ;;  %v2768_v24 = vld [vmem:[%s5089_s5 + $0x98] sm:$0xff] }
 0x43d   :  { %v714_v16 = vpop.permute.xlu0 %713  ;;  %v1065_v6 = vpop.permute.xlu1 %1064 }
 0x441   :  { %3145 = vmatmul.mubr.msk.bf16.vlgmr.msra.gmra.mrb[32].mxu0 %vm247_vm1, %v710_v60  ;;  %v718_v21 = vpop.permute.xlu0 %717 }
 0x442   :  { %3148 = vmatprep.mubr.msk.bf16.mxu0 %vm247_vm1, %v712_v37 }
 0x445   :  { %v722_v62 = vpop.permute.xlu0 %721 }
 0x449   :  { %3149 = vmatmul.mubr.msk.bf16.gmra.mrb[36].mxu0 %vm247_vm1, %v714_v16  ;;  %v1053_v15 = vpop.permute.xlu0 %1052 }
 0x44a   :  { %3152 = vmatprep.mubr.msk.bf16.mxu0 %vm247_vm1, %v716_v38  ;;  %3160 = vmatprep.subr.bf16.mxu0 %v1053_v15 }
 0x44b   :  { %3161 = vmatpush3.bf16.msra.mxu0 %v1053_v15  ;;  %v2771_v15 = vld [vmem:[%s5089_s5 + $0xb0] sm:$0xff] }
 0x44c   :  { %3162 = vmatprep.subr.bf16.mxu0 %v1055_v28 }
 0x44d   :  { %v1057_v63 = vpop.permute.xlu0 %1056 }
 0x44f   :  { %3163 = vmatpush3.bf16.msra.mxu0 %v1055_v28  ;;  %v2772_v28 = vld [vmem:[%s5089_s5 + $0xb8] sm:$0xff] }
 0x450   :  { %3164 = vmatprep.subr.bf16.mxu0 %v1057_v63 }
 0x451   :  { %3153 = vmatmul.mubr.msk.bf16.gmra.mrb[40].mxu0 %vm247_vm1, %v718_v21  ;;  %v1061_v4 = vpop.permute.xlu0 %1060 }
 0x452   :  { %3156 = vmatprep.mubr.msk.bf16.mxu0 %vm247_vm1, %v720_v61  ;;  %v2766_v61 = vld [vmem:[%s5089_s5 + $0x88] sm:$0xff] }
 0x453   :  { %3165 = vmatpush3.bf16.msra.mxu0 %v1057_v63 }
 0x454   :  { %3166 = vmatprep.subr.bf16.mxu0 %v1059_v0 }
 0x455   :  { %v1063_v5 = vpop.permute.xlu0 %1062 }
 0x457   :  { %3167 = vmatpush3.bf16.msra.mxu0 %v1059_v0  ;;  %v2769_v0 = vld [vmem:[%s5089_s5 + $0xa0] sm:$0xff] }
 0x458   :  { %3168 = vmatprep.subr.bf16.mxu0 %v1061_v4 }
 0x459   :  { %3157 = vmatmul.mubr.msk.bf16.gmra.mrb[44].mxu0 %vm247_vm1, %v722_v62  ;;  %v1067_v9 = vpop.permute.xlu0 %1066 }
 0x45b   :  { %3169 = vmatpush3.bf16.msra.mxu0 %v1061_v4 }
 0x45c   :  { %3170 = vmatprep.subr.bf16.mxu0 %v1063_v5 }
 0x45f   :  { %3171 = vmatpush3.bf16.msra.mxu0 %v1063_v5  ;;  %v2770_v5 = vld [vmem:[%s5089_s5 + $0xa8] sm:$0xff] }
 0x460   :  { %3172 = vmatprep.subr.bf16.mxu0 %v1065_v6 }
 0x463   :  { %3173 = vmatpush3.bf16.msra.mxu0 %v1065_v6 }
 0x464   :  { %3174 = vmatprep.subr.bf16.mxu0 %v1067_v9 }
 0x467   :  { %3175 = vmatpush3.bf16.msra.mxu0 %v1067_v9 }
 0x488   :  { %v4214_v10 = vpop.f32.mrb[16].mxu0 }
 0x489   :  { %v4216_v13 = vpop.f32.mrb[17].mxu0 }
 0x48a   :  { %v4218_v14 = vpop.f32.mrb[18].mxu0 }
 0x48b   :  { %v683_v17 = vpack.c.bf16 %v4218_v14, %v4214_v10  ;;  %v4222_v19 = vpop.f32.mrb[19].mxu0  ;;  %v2809_v14 = vld [vmem:[%s5089_s5 + $0x120] sm:$0xff] }
 0x48c   :  { %v682_v20 = vpack.c.bf16 %v4222_v19, %v4216_v13  ;;  %v2808_v13 = vld [vmem:[%s5089_s5 + $0x118] sm:$0xff] }
 0x4bd   :  { %v4226_v3 = vpop.f32.mrb[20].mxu0 }
 0x4be   :  { %v4228_v18 = vpop.f32.mrb[21].mxu0 }
 0x4bf   :  { %v4230_v57 = vpop.f32.mrb[22].mxu0 }
 0x4c0   :  { %v685_v22 = vpack.c.bf16 %v4230_v57, %v4226_v3  ;;  %v4234_v54 = vpop.f32.mrb[23].mxu0  ;;  %v2813_v3 = vld [vmem:[%s5089_s5 + $0x140] sm:$0xff] }
 0x4c1   :  { %v684_v58 = vpack.c.bf16 %v4234_v54, %v4228_v18  ;;  %v2810_v54 = vld [vmem:[%s5089_s5 + $0x128] sm:$0xff] }
 0x501   :  { %v4238_v53 = vpop.f32.mrb[24].mxu0 }
 0x502   :  { %v4240_v23 = vpop.f32.mrb[25].mxu0 }
 0x503   :  { %v4242_v8 = vpop.f32.mrb[26].mxu0 }
 0x504   :  { %v687_v12 = vpack.c.bf16 %v4242_v8, %v4238_v53  ;;  %v4246_v11 = vpop.f32.mrb[27].mxu0 }
 0x505   :  { %v686_v26 = vpack.c.bf16 %v4246_v11, %v4240_v23  ;;  %v2814_v11 = vld [vmem:[%s5089_s5 + $0x148] sm:$0xff] }
 0x50c   :  { %v4250_v30 = vpop.f32.mrb[28].mxu0 }
 0x50d   :  { %v4252_v32 = vpop.f32.mrb[29].mxu0 }
 0x50e   :  { %v4254_v39 = vpop.f32.mrb[30].mxu0 }
 0x50f   :  { %v4258_v41 = vpop.f32.mrb[31].mxu0 }
 0x514   :  { %v3146_v47 = vpop.f32.mrb[32].mxu0 }
 0x515   :  { %v4268_v48 = vadd.f32 %v3146_v47, %v2767_v43  ;;  %v821_v49 = vpop.f32.mrb[33].mxu0  ;;  %v2775_v43 = vld [vmem:[%s5089_s5 + $0xd0] sm:$0xff] }
 0x516   :  { %v4270_v50 = vadd.f32 %v2765_v44, %v821_v49  ;;  %v3147_v25 = vpop.f32.mrb[34].mxu0  ;;  %v2776_v44 = vld [vmem:[%s5089_s5 + $0xd8] sm:$0xff]  ;;  %v2773_v49 = vld [vmem:[%s5089_s5 + $0xc0] sm:$0xff] }
 0x517   :  { %888 = vmax.xlane.f32.xlu0 %v4268_v48  ;;  %v824_v27 = vpop.f32.mrb[35].mxu0  ;;  %v4277_v7 = vadd.f32 %v3147_v25, %v2768_v24  ;;  %v2774_v24 = vld [vmem:[%s5089_s5 + $0xc8] sm:$0xff] }
 0x518   :  { %884 = vmax.xlane.f32.xlu1 %v4270_v50  ;;  %v4287_v62 = vadd.f32 %v2766_v61, %v824_v27 }
 0x51c   :  { %890 = vmax.xlane.f32.xlu1 %v4277_v7  ;;  %v3150_v51 = vpop.f32.mrb[36].mxu0 }
 0x51d   :  { %v837_v52 = vpop.f32.mrb[37].mxu0  ;;  %v4296_v63 = vadd.f32 %v3150_v51, %v2771_v15 }
 0x51e   :  { %v3151_v59 = vpop.f32.mrb[38].mxu0  ;;  %v838_v6 = vadd.f32 %v2769_v0, %v837_v52  ;;  %v2779_v52 = vld [vmem:[%s5089_s5 + $0xf0] sm:$0xff] }
 0x51f   :  { %v840_v60 = vpop.f32.mrb[39].mxu0  ;;  %v4301_v4 = vadd.f32 %v3151_v59, %v2772_v28  ;;  %v2780_v59 = vld [vmem:[%s5089_s5 + $0xf8] sm:$0xff] }
 0x520   :  { %v4308_v9 = vadd.f32 %v2770_v5, %v840_v60 }
 0x524   :  { %v3154_v29 = vpop.f32.mrb[40].mxu0 }
 0x525   :  { %v853_v31 = vpop.f32.mrb[41].mxu0  ;;  %v4317_v47 = vadd.f32 %v3154_v29, %v2775_v43  ;;  %v2777_v29 = vld [vmem:[%s5089_s5 + $0xe0] sm:$0xff] }
 0x526   :  { %v3155_v33 = vpop.f32.mrb[42].mxu0  ;;  %v4329_v27 = vadd.f32 %v2773_v49, %v853_v31 }
 0x527   :  { %v856_v34 = vpop.f32.mrb[43].mxu0  ;;  %v4322_v25 = vadd.f32 %v3155_v33, %v2776_v44  ;;  %v2778_v33 = vld [vmem:[%s5089_s5 + $0xe8] sm:$0xff] }
 0x528   :  { %v4331_v51 = vadd.f32 %v2774_v24, %v856_v34 }
 0x52c   :  { %v3158_v37 = vpop.f32.mrb[44].mxu0 }
 0x52d   :  { %1465 = vrot.lane.b32.xlu0 %v3886_v35, %s3777_s23  ;;  %1463 = vrot.lane.b32.xlu1 %v3888_v36, %s3777_s23  ;;  %v869_v16 = vpop.f32.mrb[45].mxu0  ;;  %v4341_v60 = vadd.f32 %v3158_v37, %v2779_v52 }
 0x52e   :  { %v3159_v38 = vpop.f32.mrb[46].mxu0  ;;  %v4353_v34 = vadd.f32 %v2777_v29, %v869_v16 }
 0x52f   :  { %v872_v21 = vpop.f32.mrb[47].mxu0  ;;  %v4346_v31 = vadd.f32 %v3159_v38, %v2780_v59 }
 0x530   :  { %v4355_v61 = vadd.f32 %v2778_v33, %v872_v21 }
 0x54c   :  { %886 = vmax.xlane.f32.xlu0 %v4287_v62 }
 0x550   :  { %896 = vmax.xlane.f32.xlu0 %v4296_v63 }
 0x551   :  { %898 = vmax.xlane.f32.xlu1 %v4301_v4 }
 0x554   :  { %892 = vmax.xlane.f32.xlu0 %v838_v6 }
 0x555   :  { %894 = vmax.xlane.f32.xlu1 %v4308_v9 }
 0x558   :  { %904 = vmax.xlane.f32.xlu0 %v4317_v47 }
 0x559   :  { %906 = vmax.xlane.f32.xlu1 %v4322_v25 }
 0x55c   :  { %900 = vmax.xlane.f32.xlu0 %v4329_v27 }
 0x55d   :  { %902 = vmax.xlane.f32.xlu1 %v4331_v51 }
 0x560   :  { %912 = vmax.xlane.f32.xlu0 %v4341_v60 }
 0x561   :  { %914 = vmax.xlane.f32.xlu1 %v4346_v31 }
 0x564   :  { %908 = vmax.xlane.f32.xlu0 %v4353_v34 }
 0x565   :  { %910 = vmax.xlane.f32.xlu1 %v4355_v61 }
 0x57a   :  { %1467 = vrot.lane.b32.xlu0 %v3898_v46, %s3777_s23 }
 0x5a4   :  { %v889_v37 = vpop.xlane.xlu0 %888 }
 0x5a5   :  { %v918_v38 = vsub.f32 %v4268_v48, %v889_v37  ;;  %v885_v15 = vpop.xlane.xlu1 %884 }
 0x5a6   :  { %v916_v28 = vsub.f32 %v4270_v50, %v885_v15 }
 0x5a7   :  { %v936_v0 = vmul.f32 1.442695, %v918_v38 }
 0x5a8   :  { %v932_v5 = vmul.f32 1.442695, %v916_v28 }
 0x5a9   :  { %3556 = vpow2.f32 %v936_v0  ;;  %v891_v16 = vpop.xlane.xlu1 %890 }
 0x5aa   :  { %v919_v21 = vsub.f32 %v4277_v7, %v891_v16  ;;  %3558 = vpow2.f32 %v932_v5  ;;  %v4379_v7 = vpop.permute.xlu0 %1465 }
 0x5ac   :  { %v938_v43 = vmul.f32 1.442695, %v919_v21 }
 0x5ad   :  { %v4364_v44 = vpop.permute.xlu1 %1463 }
 0x5ae   :  { %3458 = vmatprep.subr.msk.bf16.mxu0 %vm247_vm1, %v4364_v44  ;;  %3560 = vpow2.f32 %v938_v43 }
 0x5b3   :  { %v4368_v49 = vpop.eup %3556 }
 0x5b4   :  { %968 = vadd.xlane.f32.xlu1 %v4368_v49  ;;  %v4371_v48 = vpop.eup %3558 }
 0x5b8   :  { %964 = vadd.xlane.f32.xlu1 %v4371_v48  ;;  %v4374_v50 = vpop.eup %3560 }
 0x5bc   :  { %970 = vadd.xlane.f32.xlu1 %v4374_v50 }
 0x5cd   :  { %1469 = vrot.lane.b32.xlu1 %v3896_v45, %s3777_s23 }
 0x5d9   :  { %v887_v24 = vpop.xlane.xlu0 %886 }
 0x5da   :  { %v917_v52 = vsub.f32 %v4287_v62, %v887_v24 }
 0x5dc   :  { %v934_v59 = vmul.f32 1.442695, %v917_v52 }
 0x5dd   :  { %v897_v29 = vpop.xlane.xlu0 %896 }
 0x5de   :  { %3562 = vpow2.f32 %v934_v59  ;;  %v899_v33 = vpop.xlane.xlu1 %898 }
 0x5df   :  { %v923_v38 = vsub.f32 %v4301_v4, %v899_v33 }
 0x5e1   :  { %v893_v37 = vpop.xlane.xlu0 %892  ;;  %v946_v16 = vmul.f32 1.442695, %v923_v38 }
 0x5e2   :  { %v920_v15 = vsub.f32 %v838_v6, %v893_v37  ;;  %v895_v28 = vpop.xlane.xlu1 %894 }
 0x5e4   :  { %v940_v0 = vmul.f32 1.442695, %v920_v15 }
 0x5e5   :  { %v905_v5 = vpop.xlane.xlu0 %904 }
 0x5e6   :  { %3564 = vpow2.f32 %v940_v0  ;;  %v926_v21 = vsub.f32 %v4317_v47, %v905_v5  ;;  %v907_v43 = vpop.xlane.xlu1 %906 }
 0x5e7   :  { %3566 = vpow2.f32 %v946_v16  ;;  %v927_v4 = vsub.f32 %v4322_v25, %v907_v43 }
 0x5e8   :  { %v4384_v40 = vpop.eup %3562  ;;  %v952_v24 = vmul.f32 1.442695, %v926_v21 }
 0x5e9   :  { %966 = vadd.xlane.f32.xlu0 %v4384_v40  ;;  %v901_v62 = vpop.xlane.xlu0 %900  ;;  %v954_v47 = vmul.f32 1.442695, %v927_v4 }
 0x5ea   :  { %v924_v52 = vsub.f32 %v4329_v27, %v901_v62  ;;  %v903_v59 = vpop.xlane.xlu1 %902  ;;  %3568 = vpow2.f32 %v952_v24  ;;  %v922_v62 = vsub.f32 %v4296_v63, %v897_v29 }
 0x5eb   :  { %v925_v38 = vsub.f32 %v4331_v51, %v903_v59  ;;  %v921_v59 = vsub.f32 %v4308_v9, %v895_v28 }
 0x5ec   :  { %v948_v6 = vmul.f32 1.442695, %v924_v52  ;;  %v944_v52 = vmul.f32 1.442695, %v922_v62 }
 0x5ed   :  { %v950_v27 = vmul.f32 1.442695, %v925_v38  ;;  %v913_v24 = vpop.xlane.xlu0 %912  ;;  %v942_v4 = vmul.f32 1.442695, %v921_v59 }
 0x5ee   :  { %v915_v33 = vpop.xlane.xlu1 %914  ;;  %3570 = vpow2.f32 %v948_v6  ;;  %v930_v6 = vsub.f32 %v4341_v60, %v913_v24 }
 0x5ef   :  { %3572 = vpow2.f32 %v954_v47 }
 0x5f0   :  { %v4389_v37 = vpop.eup %3564  ;;  %3574 = vpow2.f32 %v950_v27  ;;  %v960_v38 = vmul.f32 1.442695, %v930_v6  ;;  %v931_v27 = vsub.f32 %v4346_v31, %v915_v33 }
 0x5f1   :  { %972 = vadd.xlane.f32.xlu1 %v4389_v37  ;;  %v4393_v0 = vpop.eup %3566  ;;  %v909_v47 = vpop.xlane.xlu0 %908 }
 0x5f2   :  { %v911_v15 = vpop.xlane.xlu1 %910  ;;  %v962_v9 = vmul.f32 1.442695, %v931_v27 }
 0x5f3   :  { %v929_v5 = vsub.f32 %v4355_v61, %v911_v15  ;;  %v928_v15 = vsub.f32 %v4353_v34, %v909_v47 }
 0x5f4   :  { %v4397_v25 = vpop.eup %3568 }
 0x5f5   :  { %978 = vadd.xlane.f32.xlu1 %v4393_v0  ;;  %v958_v16 = vmul.f32 1.442695, %v929_v5  ;;  %v956_v63 = vmul.f32 1.442695, %v928_v15  ;;  %v1468_v62 = vpop.permute.xlu0 %1467 }
 0x5f7   :  { %3576 = vpow2.f32 %v958_v16 }
 0x5f8   :  { %v4400_v21 = vpop.eup %3570  ;;  %3578 = vpow2.f32 %v944_v52 }
 0x5f9   :  { %984 = vadd.xlane.f32.xlu1 %v4397_v25  ;;  %v4405_v51 = vpop.eup %3572  ;;  %3580 = vpow2.f32 %v942_v4 }
 0x5fa   :  { %v4408_v43 = vpop.eup %3574  ;;  %3582 = vpow2.f32 %v960_v38 }
 0x5fb   :  { %3584 = vpow2.f32 %v956_v63 }
 0x5fc   :  { %3586 = vpow2.f32 %v962_v9 }
 0x5fd   :  { %980 = vadd.xlane.f32.xlu1 %v4400_v21 }
 0x5ff   :  { %1471 = vrot.lane.b32.xlu0 %v3906_v56, %s3777_s23 }
 0x601   :  { %986 = vadd.xlane.f32.xlu1 %v4405_v51  ;;  %v4411_v61 = vpop.eup %3576 }
 0x602   :  { %v4421_v29 = vpop.eup %3578 }
 0x603   :  { %v4426_v60 = vpop.eup %3580 }
 0x604   :  { %v4431_v31 = vpop.eup %3582 }
 0x605   :  { %982 = vadd.xlane.f32.xlu1 %v4408_v43  ;;  %v4436_v34 = vpop.eup %3584 }
 0x606   :  { %v4441_v28 = vpop.eup %3586 }
 0x609   :  { %990 = vadd.xlane.f32.xlu1 %v4411_v61 }
 0x61a   :  { %1473 = vrot.lane.b32.xlu1 %v3904_v55, %s3777_s23 }
 0x61e   :  { %976 = vadd.xlane.f32.xlu0 %v4421_v29  ;;  %1447 = vrot.lane.b32.xlu1 %v3888_v36, %s3778_s24 }
 0x622   :  { %974 = vadd.xlane.f32.xlu0 %v4426_v60  ;;  %1451 = vrot.lane.b32.xlu1 %v3898_v46, %s3778_s24 }
 0x626   :  { %1455 = vrot.lane.b32.xlu1 %v3906_v56, %s3778_s24  ;;  %992 = vadd.xlane.f32.xlu0 %v4431_v31 }
 0x62a   :  { %1459 = vrot.lane.b32.xlu1 %v3914_v2, %s3778_s24  ;;  %988 = vadd.xlane.f32.xlu0 %v4436_v34 }
 0x62e   :  { %2094 = vrot.lane.b32.xlu1 %v3888_v36, %s3779_s25  ;;  %994 = vadd.xlane.f32.xlu0 %v4441_v28 }
 0x632   :  { %2098 = vrot.lane.b32.xlu1 %v3898_v46, %s3779_s25 }
 0x636   :  { %2102 = vrot.lane.b32.xlu1 %v3906_v56, %s3779_s25 }
 0x63a   :  { %2106 = vrot.lane.b32.xlu1 %v3914_v2, %s3779_s25 }
 0x63e   :  { %2078 = vrot.lane.b32.xlu1 %v3888_v36, %s3780_s26 }
 0x641   :  { %v969_v33 = vpop.xlane.xlu1 %968 }
 0x642   :  { %2082 = vrot.lane.b32.xlu1 %v3898_v46, %s3780_s26 }
 0x644   :  { %1475 = vrot.lane.b32.xlu0 %v3914_v2, %s3777_s23 }
 0x645   :  { %v965_v5 = vpop.xlane.xlu1 %964 }
 0x646   :  { %2086 = vrot.lane.b32.xlu1 %v3906_v56, %s3780_s26 }
 0x648   :  { %1477 = vrot.lane.b32.xlu0 %v3912_v1, %s3777_s23 }
 0x649   :  { %v971_v16 = vpop.xlane.xlu1 %970 }
 0x64a   :  { %2090 = vrot.lane.b32.xlu1 %v3914_v2, %s3780_s26  ;;  %3588 = vrcp.f32 %v971_v16 }
 0x64b   :  { %3590 = vrcp.f32 %v965_v5 }
 0x64c   :  { %1449 = vrot.lane.b32.xlu0 %v3886_v35, %s3778_s24  ;;  %3592 = vrcp.f32 %v969_v33 }
 0x64d   :  { %v1470_v52 = vpop.permute.xlu1 %1469 }
 0x64e   :  { %1794 = vrot.lane.b32.xlu1 %v3886_v35, %s3781_s27 }
 0x650   :  { %1453 = vrot.lane.b32.xlu0 %v3896_v45, %s3778_s24 }
 0x654   :  { %1457 = vrot.lane.b32.xlu0 %v3904_v55, %s3778_s24  ;;  %v3589_v59 = vpop.eup %3588 }
 0x655   :  { %v3591_v6 = vpop.eup %3590  ;;  %v1031_v15 = vmul.f32 %v3589_v59, %v4374_v50 }
 0x656   :  { %v3593_v47 = vpop.eup %3592  ;;  %v1028_v27 = vmul.f32 %v3591_v6, %v4371_v48  ;;  %v1507_v48 = vsel %vm247_vm1, %v4379_v7, 0 }
 0x657   :  { %v1030_v9 = vmul.f32 %v3593_v47, %v4368_v49  ;;  %v1510_v49 = vsel %vm247_vm1, %v1468_v62, 0 }
 0x658   :  { %1461 = vrot.lane.b32.xlu0 %v3912_v1, %s3778_s24 }
 0x659   :  { %v1045_v16 = vpack.c.bf16 %v1031_v15, %v1030_v9 }
 0x65c   :  { %2096 = vrot.lane.b32.xlu0 %v3886_v35, %s3779_s25 }
 0x660   :  { %2100 = vrot.lane.b32.xlu0 %v3896_v45, %s3779_s25 }
 0x664   :  { %2104 = vrot.lane.b32.xlu0 %v3904_v55, %s3779_s25 }
 0x668   :  { %2108 = vrot.lane.b32.xlu0 %v3912_v1, %s3779_s25 }
 0x66c   :  { %2080 = vrot.lane.b32.xlu0 %v3886_v35, %s3780_s26 }
 0x670   :  { %2084 = vrot.lane.b32.xlu0 %v3896_v45, %s3780_s26 }
 0x674   :  { %2088 = vrot.lane.b32.xlu0 %v3904_v55, %s3780_s26 }
 0x676   :  { %v967_v24 = vpop.xlane.xlu0 %966 }
 0x677   :  { %3594 = vrcp.f32 %v967_v24  ;;  %v1504_v24 = vsel %vm247_vm1, %v4364_v44, 0  ;;  %v1513_v44 = vsel %vm247_vm1, %v1470_v52, 0 }
 0x678   :  { %2092 = vrot.lane.b32.xlu0 %v3912_v1, %s3780_s26  ;;  %s3782_s26 = smov 40  }
 0x67a   :  { %v1472_v6 = vpop.permute.xlu0 %1471 }
 0x67c   :  { %1792 = vrot.lane.b32.xlu0 %v3888_v36, %s3781_s27 }
 0x67e   :  { %v973_v4 = vpop.xlane.xlu1 %972 }
 0x67f   :  { %3596 = vrcp.f32 %v973_v4 }
 0x681   :  { %v3595_v38 = vpop.eup %3594 }
 0x682   :  { %v1029_v63 = vmul.f32 %v3595_v38, %v4384_v40  ;;  %v979_v33 = vpop.xlane.xlu1 %978 }
 0x683   :  { %3598 = vrcp.f32 %v979_v33 }
 0x684   :  { %v1044_v5 = vpack.c.bf16 %v1029_v63, %v1028_v27 }
 0x686   :  { %3176 = vmatprep.mubr.bf16.mxu0 %v1044_v5  ;;  %v985_v42 = vpop.xlane.xlu1 %984 }
 0x687   :  { %3177 = vmatmul.mubr.bf16.vlgmr.msra.gmra.mrb[48].mxu0 %v1045_v16 }
 0x688   :  { %3229 = vmatpush3.bf16.xpose.msra.mxu0 %v1504_v24 }
 0x689   :  { %3459 = vmatprep.subr.msk.bf16.mxu0 %vm247_vm1, %v4379_v7  ;;  %v1516_v7 = vsel %vm247_vm1, %v1472_v6, 0  ;;  %v3597_v9 = vpop.eup %3596 }
 0x68a   :  { %v981_v50 = vpop.xlane.xlu1 %980 }
 0x68d   :  { %v3599_v5 = vpop.eup %3598 }
 0x68e   :  { %v987_v40 = vpop.xlane.xlu1 %986 }
 0x690   :  { %3231 = vmatpush3.bf16.xpose.msra.mxu0 %v1507_v48 }
 0x691   :  { %3460 = vmatprep.subr.msk.bf16.mxu0 %vm247_vm1, %v1468_v62 }
 0x692   :  { %v983_v59 = vpop.xlane.xlu1 %982 }
 0x696   :  { %v991_v47 = vpop.xlane.xlu1 %990 }
 0x698   :  { %3233 = vmatpush3.bf16.xpose.msra.mxu0 %v1510_v49 }
 0x699   :  { %3461 = vmatprep.subr.msk.bf16.mxu0 %vm247_vm1, %v1470_v52 }
 0x69a   :  { %v1474_v38 = vpop.permute.xlu1 %1473 }
 0x69b   :  { %v1519_v62 = vsel %vm247_vm1, %v1474_v38, 0 }
 0x69e   :  { %v1448_v27 = vpop.permute.xlu1 %1447 }
 0x6a0   :  { %3235 = vmatpush3.bf16.xpose.msra.mxu0 %v1513_v44  ;;  %v1032_v44 = vmul.f32 %v3597_v9, %v4389_v37 }
 0x6a1   :  { %3462 = vmatprep.subr.msk.bf16.mxu0 %vm247_vm1, %v1472_v6 }
 0x6a2   :  { %v1452_v24 = vpop.permute.xlu1 %1451 }
 0x6a8   :  { %3237 = vmatpush3.bf16.xpose.msra.mxu0 %v1516_v7 }
 0x6a9   :  { %3463 = vmatprep.subr.msk.bf16.mxu0 %vm247_vm1, %v1474_v38 }
 0x6ab   :  { %v977_v15 = vpop.xlane.xlu0 %976 }
 0x6ac   :  { %3600 = vrcp.f32 %v977_v15 }
 0x6ad   :  { %3602 = vrcp.f32 %v983_v59 }
 0x6ae   :  { %3604 = vrcp.f32 %v981_v50 }
 0x6af   :  { %v975_v52 = vpop.xlane.xlu0 %974 }
 0x6b0   :  { %3239 = vmatpush3.bf16.xpose.msra.mxu0 %v1519_v62  ;;  %3606 = vrcp.f32 %v975_v52 }
 0x6b1   :  { %3608 = vrcp.f32 %v987_v40  ;;  %v1035_v40 = vmul.f32 %v3599_v5, %v4393_v0 }
 0x6b2   :  { %3610 = vrcp.f32 %v985_v42  ;;  %v1456_v42 = vpop.permute.xlu1 %1455 }
 0x6b3   :  { %v993_v63 = vpop.xlane.xlu0 %992  ;;  %3612 = vrcp.f32 %v991_v47 }
 0x6b6   :  { %v3601_v16 = vpop.eup %3600  ;;  %v1460_v9 = vpop.permute.xlu1 %1459 }
 0x6b7   :  { %v989_v4 = vpop.xlane.xlu0 %988  ;;  %v3603_v48 = vpop.eup %3602  ;;  %v1034_v50 = vmul.f32 %v3601_v16, %v4421_v29 }
 0x6b8   :  { %3614 = vrcp.f32 %v989_v4  ;;  %v3605_v33 = vpop.eup %3604  ;;  %v1037_v7 = vmul.f32 %v3603_v48, %v4408_v43 }
 0x6b9   :  { %v1036_v38 = vmul.f32 %v3605_v33, %v4400_v21  ;;  %v1047_v15 = vpack.c.bf16 %v1035_v40, %v1034_v50 }
 0x6ba   :  { %v3607_v49 = vpop.eup %3606 }
 0x6bb   :  { %v995_v59 = vpop.xlane.xlu0 %994  ;;  %v1033_v6 = vmul.f32 %v3607_v49, %v4426_v60  ;;  %v3609_v62 = vpop.eup %3608  ;;  %v1048_v29 = vpack.c.bf16 %v1037_v7, %v1036_v38 }
 0x6bc   :  { %3616 = vrcp.f32 %v995_v59  ;;  %v3611_v16 = vpop.eup %3610  ;;  %v1039_v60 = vmul.f32 %v3609_v62, %v4405_v51 }
 0x6bd   :  { %v1046_v47 = vpack.c.bf16 %v1033_v6, %v1032_v44  ;;  %3618 = vrcp.f32 %v993_v63  ;;  %v3613_v43 = vpop.eup %3612  ;;  %v1038_v63 = vmul.f32 %v3611_v16, %v4397_v25  ;;  %v2095_v6 = vpop.permute.xlu1 %2094 }
 0x6be   :  { %v1041_v4 = vmul.f32 %v3613_v43, %v4411_v61  ;;  %v2135_v38 = vsel %vm247_vm1, %v2095_v6, 0 }
 0x6bf   :  { %3180 = vmatprep.mubr.bf16.mxu0 %v1046_v47  ;;  %v1476_v52 = vpop.permute.xlu0 %1475  ;;  %v1049_v48 = vpack.c.bf16 %v1039_v60, %v1038_v63 }
 0x6c0   :  { %3181 = vmatmul.mubr.bf16.gmra.mrb[52].mxu0 %v1047_v15  ;;  %3464 = vmatprep.subr.msk.bf16.mxu0 %vm247_vm1, %v1476_v52  ;;  %v1522_v37 = vsel %vm247_vm1, %v1476_v52, 0 }
 0x6c1   :  { %3184 = vmatprep.mubr.bf16.mxu0 %v1048_v29  ;;  %3241 = vmatpush3.bf16.xpose.msra.mxu0 %v1522_v37 }
 0x6c2   :  { %v3615_v0 = vpop.eup %3614 }
 0x6c3   :  { %v1478_v21 = vpop.permute.xlu0 %1477  ;;  %v1040_v5 = vmul.f32 %v3615_v0, %v4436_v34 }
 0x6c4   :  { %3465 = vmatprep.subr.msk.bf16.mxu0 %vm247_vm1, %v1478_v21  ;;  %v1525_v59 = vsel %vm247_vm1, %v1478_v21, 0 }
 0x6c5   :  { %v1050_v50 = vpack.c.bf16 %v1041_v4, %v1040_v5 }
 0x6c6   :  { %v3617_v33 = vpop.eup %3616 }
 0x6c7   :  { %v1450_v49 = vpop.permute.xlu0 %1449  ;;  %v3619_v44 = vpop.eup %3618  ;;  %v1043_v51 = vmul.f32 %v3617_v33, %v4441_v28 }
 0x6c8   :  { %3185 = vmatmul.mubr.bf16.gmra.mrb[56].mxu0 %v1049_v48  ;;  %v1042_v25 = vmul.f32 %v3619_v44, %v4431_v31  ;;  %v203_v31 = vld [vmem:[%s5087_s3 + $0x4] sm:$0xf] }
 0x6c9   :  { %3188 = vmatprep.mubr.bf16.mxu0 %v1050_v50  ;;  %3243 = vmatpush3.bf16.xpose.msra.mxu0 %v1525_v59  ;;  %v1207_v28 = vsel %vm1205_vm2, %v203_v31, 0 }
 0x6ca   :  { %3467 = vmatprep.subr.msk.bf16.mxu0 %vm247_vm1, %v2095_v6  ;;  %v1051_v7 = vpack.c.bf16 %v1043_v51, %v1042_v25  ;;  %3456 = vmatprep.subr.msk.bf16.mxu1 %vm1205_vm2, %v203_v31 }
 0x6cb   :  { %v1454_v34 = vpop.permute.xlu0 %1453  ;;  %3193 = vmatpush3.bf16.msra.mxu1 %v1207_v28 }
 0x6cf   :  { %v1458_v61 = vpop.permute.xlu0 %1457 }
 0x6d0   :  { %3189 = vmatmul.mubr.bf16.gmra.mrb[60].mxu0 %v1051_v7 }
 0x6d1   :  { %3244 = vmatprep.mubr.msk.bf16.mxu0 %vm247_vm1, %v1448_v27  ;;  %v2099_v27 = vpop.permute.xlu1 %2098 }
 0x6d2   :  { %v2141_v52 = vsel %vm247_vm1, %v2099_v27, 0 }
 0x6d3   :  { %v1462_v40 = vpop.permute.xlu0 %1461 }
 0x6d5   :  { %v2103_v62 = vpop.permute.xlu1 %2102 }
 0x6d6   :  { %v2147_v43 = vsel %vm247_vm1, %v2103_v62, 0 }
 0x6d7   :  { %v2097_v47 = vpop.permute.xlu0 %2096 }
 0x6d8   :  { %3245 = vmatmul.mubr.msk.bf16.vlgmr.msra.gmra.mrb[64].mxu0 %vm247_vm1, %v1450_v49  ;;  %v2138_v15 = vsel %vm247_vm1, %v2097_v47, 0 }
 0x6d9   :  { %3311 = vmatpush3.bf16.xpose.msra.mxu0 %v2135_v38  ;;  %3248 = vmatprep.mubr.msk.bf16.mxu0 %vm247_vm1, %v1452_v24  ;;  %v202_v24 = vld [vmem:[%s5087_s3] sm:$0xf]  ;;  %v2107_v16 = vpop.permute.xlu1 %2106 }
 0x6da   :  { %3468 = vmatprep.subr.msk.bf16.mxu0 %vm247_vm1, %v2097_v47  ;;  %3457 = vmatprep.subr.msk.bf16.mxu1 %vm1205_vm2, %v202_v24 }
 0x6db   :  { %v2101_v29 = vpop.permute.xlu0 %2100 }
 0x6dd   :  { %v2079_v37 = vpop.permute.xlu1 %2078 }
 0x6df   :  { %v2105_v0 = vpop.permute.xlu0 %2104 }
 0x6e0   :  { %3249 = vmatmul.mubr.msk.bf16.gmra.mrb[68].mxu0 %vm247_vm1, %v1454_v34  ;;  %v2150_v60 = vsel %vm247_vm1, %v2105_v0, 0 }
 0x6e1   :  { %3313 = vmatpush3.bf16.xpose.msra.mxu0 %v2138_v15  ;;  %3252 = vmatprep.mubr.msk.bf16.mxu0 %vm247_vm1, %v1456_v42  ;;  %v2144_v42 = vsel %vm247_vm1, %v2101_v29, 0  ;;  %v2083_v4 = vpop.permute.xlu1 %2082 }
 0x6e2   :  { %3469 = vmatprep.subr.msk.bf16.mxu0 %vm247_vm1, %v2099_v27 }
 0x6e3   :  { %v2109_v21 = vpop.permute.xlu0 %2108 }
 0x6e4   :  { %v2156_v5 = vsel %vm247_vm1, %v2109_v21, 0 }
 0x6e5   :  { %v2087_v33 = vpop.permute.xlu1 %2086 }
 0x6e7   :  { %v2081_v63 = vpop.permute.xlu0 %2080 }
 0x6e8   :  { %3253 = vmatmul.mubr.msk.bf16.gmra.mrb[72].mxu0 %vm247_vm1, %v1458_v61  ;;  %v1331_v61 = vsel %vm1205_vm2, %v202_v24, 0 }
 0x6e9   :  { %3315 = vmatpush3.bf16.xpose.msra.mxu0 %v2141_v52  ;;  %3256 = vmatprep.mubr.msk.bf16.mxu0 %vm247_vm1, %v1460_v9  ;;  %v2153_v9 = vsel %vm247_vm1, %v2107_v16, 0  ;;  %v2091_v50 = vpop.permute.xlu1 %2090 }
 0x6ea   :  { %3470 = vmatprep.subr.msk.bf16.mxu0 %vm247_vm1, %v2101_v29 }
 0x6eb   :  { %v2085_v48 = vpop.permute.xlu0 %2084 }
 0x6ef   :  { %v2089_v49 = vpop.permute.xlu0 %2088 }
 0x6f0   :  { %3257 = vmatmul.mubr.msk.bf16.gmra.mrb[76].mxu0 %vm247_vm1, %v1462_v40 }
 0x6f1   :  { %3317 = vmatpush3.bf16.xpose.msra.mxu0 %v2144_v42  ;;  %3326 = vmatprep.mubr.msk.bf16.mxu0 %vm247_vm1, %v2079_v37 }
 0x6f2   :  { %3471 = vmatprep.subr.msk.bf16.mxu0 %vm247_vm1, %v2103_v62 }
 0x6f3   :  { %v2093_v59 = vpop.permute.xlu0 %2092 }
 0x6f7   :  { %v1793_v40 = vpop.permute.xlu0 %1792 }
 0x6f9   :  { %3319 = vmatpush3.bf16.xpose.msra.mxu0 %v2147_v43 }
 0x6fa   :  { %3472 = vmatprep.subr.msk.bf16.mxu0 %vm247_vm1, %v2105_v0 }
 0x701   :  { %3321 = vmatpush3.bf16.xpose.msra.mxu0 %v2150_v60 }
 0x702   :  { %3473 = vmatprep.subr.msk.bf16.mxu0 %vm247_vm1, %v2107_v16 }
 0x709   :  { %3323 = vmatpush3.bf16.xpose.msra.mxu0 %v2153_v9 }
 0x70a   :  { %3474 = vmatprep.subr.msk.bf16.mxu0 %vm247_vm1, %v2109_v21 }
 0x711   :  { %3325 = vmatpush3.bf16.xpose.msra.mxu0 %v2156_v5  ;;  %v2807_v5 = vld [vmem:[%s5089_s5 + $0x110] sm:$0xff] }
 0x718   :  { %3327 = vmatmul.mubr.msk.bf16.vlgmr.msra.gmra.mrb[80].mxu0 %vm247_vm1, %v2081_v63  ;;  %v2805_v63 = vld [vmem:[%s5089_s5 + $0x100] sm:$0xff] }
 0x719   :  { %3330 = vmatprep.mubr.msk.bf16.mxu0 %vm247_vm1, %v2083_v4 }
 0x720   :  { %3331 = vmatmul.mubr.msk.bf16.gmra.mrb[84].mxu0 %vm247_vm1, %v2085_v48 }
 0x721   :  { %3334 = vmatprep.mubr.msk.bf16.mxu0 %vm247_vm1, %v2087_v33 }
 0x728   :  { %3335 = vmatmul.mubr.msk.bf16.gmra.mrb[88].mxu0 %vm247_vm1, %v2089_v49  ;;  %v2806_v49 = vld [vmem:[%s5089_s5 + $0x108] sm:$0xff] }
 0x729   :  { %3338 = vmatprep.mubr.msk.bf16.mxu0 %vm247_vm1, %v2091_v50 }
 0x730   :  { %3339 = vmatmul.mubr.msk.bf16.gmra.mrb[92].mxu0 %vm247_vm1, %v2093_v59 }
 0x75a   :  { %v3178_v44 = vpop.f32.mrb[48].mxu0 }
 0x75b   :  { %v1110_v6 = vpop.f32.mrb[49].mxu0 }
 0x75c   :  { %v3179_v51 = vpop.f32.mrb[50].mxu0 }
 0x75d   :  { %v1174_v34 = vpack.c.bf16 %v3179_v51, %v3178_v44  ;;  %v1113_v25 = vpop.f32.mrb[51].mxu0  ;;  %v1795_v51 = vpop.permute.xlu1 %1794 }
 0x75e   :  { %v1173_v7 = vpack.c.bf16 %v1113_v25, %v1110_v6  ;;  %v2812_v25 = vld [vmem:[%s5089_s5 + $0x138] sm:$0xff] }
 0x760   :  { %3194 = vmatprep.mubr.msk.bf16.mxu1 %vm247_vm1, %v1173_v7 }
 0x761   :  { %3195 = vmatmul.mubr.msk.bf16.vlgmr.msra.gmra.mrb[16].mxu1 %vm247_vm1, %v1174_v34 }
 0x762   :  { %3211 = vmatpush3.bf16.msra.mxu1 %v1331_v61 }
 0x763   :  { %3260 = vmatprep.subr.bf16.mxu1 %v1793_v40 }
 0x793   :  { %v3182_v47 = vpop.f32.mrb[52].mxu0 }
 0x794   :  { %v1126_v38 = vpop.f32.mrb[53].mxu0 }
 0x795   :  { %v3183_v31 = vpop.f32.mrb[54].mxu0 }
 0x796   :  { %v1176_v28 = vpack.c.bf16 %v3183_v31, %v3182_v47  ;;  %v1129_v27 = vpop.f32.mrb[55].mxu0  ;;  %v2816_v31 = vld [vmem:[%s5089_s5 + $0x158] sm:$0xff] }
 0x797   :  { %v1175_v15 = vpack.c.bf16 %v1129_v27, %v1126_v38 }
 0x799   :  { %3198 = vmatprep.mubr.msk.bf16.mxu1 %vm247_vm1, %v1175_v15  ;;  %v2819_v15 = vld [vmem:[%s5089_s5 + $0x170] sm:$0xff] }
 0x79a   :  { %3199 = vmatmul.mubr.msk.bf16.gmra.mrb[20].mxu1 %vm247_vm1, %v1176_v28 }
 0x79b   :  { %v3186_v62 = vpop.f32.mrb[56].mxu0 }
 0x79c   :  { %v1142_v52 = vpop.f32.mrb[57].mxu0 }
 0x79d   :  { %v3187_v24 = vpop.f32.mrb[58].mxu0 }
 0x79e   :  { %v1178_v29 = vpack.c.bf16 %v3187_v24, %v3186_v62  ;;  %v1145_v16 = vpop.f32.mrb[59].mxu0 }
 0x79f   :  { %v1177_v37 = vpack.c.bf16 %v1145_v16, %v1142_v52  ;;  %v5091_v52 = vpack.c.bf16 %v4258_v41, %v4252_v32  ;;  %v5092_v32 = vpack.c.bf16 %v4254_v39, %v4250_v30 }
 0x7a1   :  { %3202 = vmatprep.mubr.msk.bf16.mxu1 %vm247_vm1, %v1177_v37  ;;  %v2817_v37 = vld [vmem:[%s5089_s5 + $0x160] sm:$0xff] }
 0x7a2   :  { %3203 = vmatmul.mubr.msk.bf16.gmra.mrb[24].mxu1 %vm247_vm1, %v1178_v29 }
 0x7a3   :  { %v3190_v42 = vpop.f32.mrb[60].mxu0 }
 0x7a4   :  { %v1158_v43 = vpop.f32.mrb[61].mxu0 }
 0x7a5   :  { %v3191_v0 = vpop.f32.mrb[62].mxu0 }
 0x7a6   :  { %v1180_v60 = vpack.c.bf16 %v3191_v0, %v3190_v42  ;;  %v1161_v9 = vpop.f32.mrb[63].mxu0  ;;  %v2820_v0 = vld [vmem:[%s5089_s5 + $0x178] sm:$0xff] }
 0x7a7   :  { %v1179_v21 = vpack.c.bf16 %v1161_v9, %v1158_v43 }
 0x7a9   :  { %3206 = vmatprep.mubr.msk.bf16.mxu1 %vm247_vm1, %v1179_v21 }
 0x7aa   :  { %3207 = vmatmul.mubr.msk.bf16.gmra.mrb[28].mxu1 %vm247_vm1, %v1180_v60 }
 0x7ab   :  { %3212 = vmatprep.mubr.msk.bf16.mxu1 %vm247_vm1, %v682_v20  ;;  %v3246_v4 = vpop.f32.mrb[64].mxu0  ;;  %v2811_v20 = vld [vmem:[%s5089_s5 + $0x130] sm:$0xff] }
 0x7ac   :  { %v4570_v48 = vadd.f32 %v3246_v4, %v2807_v5  ;;  %v1561_v33 = vpop.f32.mrb[65].mxu0 }
 0x7ad   :  { %v4575_v50 = vadd.f32 %v2805_v63, %v1561_v33  ;;  %v3247_v59 = vpop.f32.mrb[66].mxu0  ;;  %v2818_v63 = vld [vmem:[%s5089_s5 + $0x168] sm:$0xff] }
 0x7ae   :  { %1628 = vmax.xlane.f32.xlu0 %v4570_v48  ;;  %v1564_v44 = vpop.f32.mrb[67].mxu0  ;;  %v4587_v6 = vadd.f32 %v3247_v59, %v2808_v13 }
 0x7af   :  { %v4581_v19 = vadd.f32 %v2806_v49, %v1564_v44  ;;  %1624 = vmax.xlane.f32.xlu1 %v4575_v50 }
 0x7b2   :  { %3213 = vmatmul.mubr.msk.bf16.vlgmr.msra.gmra.mrb[16].mxu1 %vm247_vm1, %v683_v17  ;;  %1626 = vmax.xlane.f32.xlu0 %v4581_v19 }
 0x7b3   :  { %3261 = vmatpush3.bf16.msra.mxu1 %v1793_v40  ;;  %3216 = vmatprep.mubr.msk.bf16.mxu1 %vm247_vm1, %v684_v58  ;;  %v3250_v34 = vpop.f32.mrb[68].mxu0  ;;  %v2815_v40 = vld [vmem:[%s5089_s5 + $0x150] sm:$0xff] }
 0x7b4   :  { %1630 = vmax.xlane.f32.xlu1 %v4587_v6  ;;  %v4602_v7 = vadd.f32 %v3250_v34, %v2811_v20  ;;  %3262 = vmatprep.subr.bf16.mxu1 %v1795_v51  ;;  %v1577_v10 = vpop.f32.mrb[69].mxu0 }
 0x7b5   :  { %v3251_v17 = vpop.f32.mrb[70].mxu0  ;;  %v4613_v58 = vadd.f32 %v2809_v14, %v1577_v10 }
 0x7b6   :  { %v4607_v61 = vadd.f32 %v3251_v17, %v2812_v25  ;;  %1636 = vmax.xlane.f32.xlu0 %v4602_v7  ;;  %v1580_v18 = vpop.f32.mrb[71].mxu0 }
 0x7b7   :  { %3263 = vmatpush3.bf16.msra.mxu1 %v1795_v51  ;;  %v4619_v47 = vadd.f32 %v2810_v54, %v1580_v18 }
 0x7b8   :  { %1638 = vmax.xlane.f32.xlu1 %v4607_v61 }
 0x7ba   :  { %3217 = vmatmul.mubr.msk.bf16.gmra.mrb[20].mxu1 %vm247_vm1, %v685_v22  ;;  %1632 = vmax.xlane.f32.xlu0 %v4613_v58 }
 0x7bb   :  { %3220 = vmatprep.mubr.msk.bf16.mxu1 %vm247_vm1, %v686_v26  ;;  %v3254_v38 = vpop.f32.mrb[72].mxu0 }
 0x7bc   :  { %v4633_v28 = vadd.f32 %v3254_v38, %v2815_v40  ;;  %1634 = vmax.xlane.f32.xlu1 %v4619_v47  ;;  %v1593_v27 = vpop.f32.mrb[73].mxu0 }
 0x7bd   :  { %v3255_v57 = vpop.f32.mrb[74].mxu0  ;;  %v4645_v26 = vadd.f32 %v2813_v3, %v1593_v27 }
 0x7be   :  { %v4639_v22 = vadd.f32 %v3255_v57, %v2816_v31  ;;  %1644 = vmax.xlane.f32.xlu0 %v4633_v28  ;;  %v1596_v23 = vpop.f32.mrb[75].mxu0 }
 0x7bf   :  { %v4651_v62 = vadd.f32 %v2814_v11, %v1596_v23 }
 0x7c0   :  { %1646 = vmax.xlane.f32.xlu1 %v4639_v22 }
 0x7c2   :  { %3221 = vmatmul.mubr.msk.bf16.gmra.mrb[24].mxu1 %vm247_vm1, %v687_v12  ;;  %1640 = vmax.xlane.f32.xlu0 %v4645_v26 }
 0x7c3   :  { %3224 = vmatprep.mubr.msk.bf16.mxu1 %vm247_vm1, %v5091_v52  ;;  %v3258_v24 = vpop.f32.mrb[76].mxu0 }
 0x7c4   :  { %v4662_v29 = vadd.f32 %v3258_v24, %v2819_v15  ;;  %1642 = vmax.xlane.f32.xlu1 %v4651_v62  ;;  %v1609_v16 = vpop.f32.mrb[77].mxu0 }
 0x7c5   :  { %v3259_v53 = vpop.f32.mrb[78].mxu0  ;;  %v4669_v12 = vadd.f32 %v2817_v37, %v1609_v16 }
 0x7c6   :  { %1652 = vmax.xlane.f32.xlu0 %v4662_v29  ;;  %v1612_v8 = vpop.f32.mrb[79].mxu0  ;;  %v4703_v5 = vadd.f32 %v3259_v53, %v2820_v0 }
 0x7c7   :  { %v4709_v4 = vadd.f32 %v2818_v63, %v1612_v8 }
 0x7ca   :  { %3225 = vmatmul.mubr.msk.bf16.gmra.mrb[28].mxu1 %vm247_vm1, %v5092_v32  ;;  %1648 = vmax.xlane.f32.xlu0 %v4669_v12 }
 0x7d5   :  { %1800 = vrot.lane.b32.xlu1 %v3906_v56, %s3781_s27 }
 0x7e0   :  { %1796 = vrot.lane.b32.xlu0 %v3898_v46, %s3781_s27 }
 0x7e4   :  { %1798 = vrot.lane.b32.xlu0 %v3896_v45, %s3781_s27 }
 0x7e8   :  { %1804 = vrot.lane.b32.xlu0 %v3914_v2, %s3781_s27 }
 0x7eb   :  { %v4684_v41 = vpop.f32.mrb[80].mxu0 }
 0x7ec   :  { %v4686_v42 = vpop.f32.mrb[81].mxu0 }
 0x7ed   :  { %v4688_v30 = vpop.f32.mrb[82].mxu0 }
 0x7ee   :  { %v4690_v39 = vpop.f32.mrb[83].mxu0 }
 0x7f3   :  { %v4692_v43 = vpop.f32.mrb[84].mxu0 }
 0x7f4   :  { %v4697_v60 = vpop.f32.mrb[85].mxu0 }
 0x7f5   :  { %v4699_v9 = vpop.f32.mrb[86].mxu0 }
 0x7f6   :  { %v4701_v21 = vpop.f32.mrb[87].mxu0 }
 0x7f9   :  { %1654 = vmax.xlane.f32.xlu1 %v4703_v5 }
 0x7fb   :  { %v4711_v33 = vpop.f32.mrb[88].mxu0 }
 0x7fc   :  { %v4713_v49 = vpop.f32.mrb[89].mxu0 }
 0x7fd   :  { %v4715_v59 = vpop.f32.mrb[90].mxu0  ;;  %1650 = vmax.xlane.f32.xlu1 %v4709_v4 }
 0x7fe   :  { %v4718_v44 = vpop.f32.mrb[91].mxu0 }
 0x803   :  { %v4720_v13 = vpop.f32.mrb[92].mxu0 }
 0x804   :  { %v4722_v20 = vpop.f32.mrb[93].mxu0 }
 0x805   :  { %v4724_v51 = vpop.f32.mrb[94].mxu0 }
 0x806   :  { %v4726_v34 = vpop.f32.mrb[95].mxu0 }
 0x80e   :  { %1802 = vrot.lane.b32.xlu1 %v3904_v55, %s3781_s27 }
 0x83b   :  { %v1629_v25 = vpop.xlane.xlu0 %1628 }
 0x83c   :  { %v1658_v10 = vsub.f32 %v4570_v48, %v1629_v25  ;;  %v1625_v14 = vpop.xlane.xlu1 %1624 }
 0x83d   :  { %v1656_v17 = vsub.f32 %v4575_v50, %v1625_v14 }
 0x83e   :  { %v1676_v18 = vmul.f32 1.442695, %v1658_v10 }
 0x83f   :  { %v1627_v54 = vpop.xlane.xlu0 %1626  ;;  %v1672_v40 = vmul.f32 1.442695, %v1656_v17 }
 0x840   :  { %3620 = vpow2.f32 %v1676_v18  ;;  %v1657_v27 = vsub.f32 %v4581_v19, %v1627_v54 }
 0x841   :  { %v1631_v38 = vpop.xlane.xlu1 %1630  ;;  %3622 = vpow2.f32 %v1672_v40 }
 0x842   :  { %v1659_v31 = vsub.f32 %v4587_v6, %v1631_v38  ;;  %v1674_v48 = vmul.f32 1.442695, %v1657_v27 }
 0x843   :  { %v1637_v3 = vpop.xlane.xlu0 %1636 }
 0x844   :  { %v1678_v57 = vmul.f32 1.442695, %v1659_v31  ;;  %v1662_v23 = vsub.f32 %v4602_v7, %v1637_v3 }
 0x845   :  { %v1639_v11 = vpop.xlane.xlu1 %1638 }
 0x846   :  { %v1684_v15 = vmul.f32 1.442695, %v1662_v23  ;;  %3624 = vpow2.f32 %v1678_v57  ;;  %v1663_v50 = vsub.f32 %v4607_v61, %v1639_v11 }
 0x847   :  { %v1633_v52 = vpop.xlane.xlu0 %1632 }
 0x848   :  { %3626 = vpow2.f32 %v1684_v15  ;;  %v1660_v24 = vsub.f32 %v4613_v58, %v1633_v52  ;;  %v1686_v53 = vmul.f32 1.442695, %v1663_v50 }
 0x849   :  { %v1635_v16 = vpop.xlane.xlu1 %1634  ;;  %3628 = vpow2.f32 %v1674_v48 }
 0x84a   :  { %v4737_v37 = vpop.eup %3620  ;;  %v1680_v6 = vmul.f32 1.442695, %v1660_v24  ;;  %v1661_v19 = vsub.f32 %v4619_v47, %v1635_v16 }
 0x84b   :  { %1708 = vadd.xlane.f32.xlu1 %v4737_v37  ;;  %v1645_v7 = vpop.xlane.xlu0 %1644  ;;  %v4742_v0 = vpop.eup %3622 }
 0x84c   :  { %3630 = vpow2.f32 %v1680_v6  ;;  %v1682_v8 = vmul.f32 1.442695, %v1661_v19  ;;  %v1666_v32 = vsub.f32 %v4633_v28, %v1645_v7 }
 0x84d   :  { %v1647_v61 = vpop.xlane.xlu1 %1646  ;;  %3632 = vpow2.f32 %v1686_v53 }
 0x84e   :  { %3634 = vpow2.f32 %v1682_v8  ;;  %v1692_v63 = vmul.f32 1.442695, %v1666_v32  ;;  %v1667_v28 = vsub.f32 %v4639_v22, %v1647_v61 }
 0x84f   :  { %1704 = vadd.xlane.f32.xlu1 %v4742_v0  ;;  %v1641_v58 = vpop.xlane.xlu0 %1640 }
 0x850   :  { %v1664_v47 = vsub.f32 %v4645_v26, %v1641_v58  ;;  %v4746_v25 = vpop.eup %3624  ;;  %3636 = vpow2.f32 %v1692_v63 }
 0x851   :  { %v1643_v10 = vpop.xlane.xlu1 %1642 }
 0x852   :  { %v4748_v14 = vpop.eup %3626  ;;  %v1665_v17 = vsub.f32 %v4651_v62, %v1643_v10  ;;  %v1688_v54 = vmul.f32 1.442695, %v1664_v47  ;;  %v1694_v62 = vmul.f32 1.442695, %v1667_v28  ;;  %v2841_v10 = vld [vmem:[%s5089_s5 + $0x1a0] sm:$0xff]  ;;  %v2851_v28 = vld [vmem:[%s5089_s5 + $0x1f0] sm:$0xff] }
 0x853   :  { %1710 = vadd.xlane.f32.xlu1 %v4746_v25  ;;  %1716 = vadd.xlane.f32.xlu0 %v4748_v14  ;;  %v1653_v18 = vpop.xlane.xlu0 %1652  ;;  %v4755_v26 = vpop.eup %3628 }
 0x854   :  { %v1690_v40 = vmul.f32 1.442695, %v1665_v17  ;;  %v1670_v38 = vsub.f32 %v4662_v29, %v1653_v18  ;;  %v2837_v17 = vld [vmem:[%s5089_s5 + $0x180] sm:$0xff] }
 0x855   :  { %v1801_v50 = vpop.permute.xlu1 %1800  ;;  %v4810_v18 = vadd.f32 %v2837_v17, %v4686_v42 }
 0x856   :  { %v4757_v31 = vpop.eup %3630  ;;  %3638 = vpow2.f32 %v1690_v40  ;;  %v1700_v27 = vmul.f32 1.442695, %v1670_v38  ;;  %v2839_v38 = vld [vmem:[%s5089_s5 + $0x190] sm:$0xff] }
 0x857   :  { %1706 = vadd.xlane.f32.xlu1 %v4755_v26  ;;  %1712 = vadd.xlane.f32.xlu0 %v4757_v31  ;;  %v1649_v22 = vpop.xlane.xlu0 %1648  ;;  %3640 = vpow2.f32 %v1688_v54  ;;  %v4762_v57 = vpop.eup %3632  ;;  %v2838_v54 = vld [vmem:[%s5089_s5 + $0x188] sm:$0xff]  ;;  %v4828_v42 = vadd.f32 %v4684_v41, %v2839_v38  ;;  %v2843_v41 = vld [vmem:[%s5089_s5 + $0x1b0] sm:$0xff] }
 0x858   :  { %v1668_v3 = vsub.f32 %v4669_v12, %v1649_v22  ;;  %v4764_v23 = vpop.eup %3634  ;;  %3642 = vpow2.f32 %v1700_v27  ;;  %v4821_v40 = vadd.f32 %v2838_v54, %v4690_v39  ;;  %v2842_v39 = vld [vmem:[%s5089_s5 + $0x1a8] sm:$0xff] }
 0x859   :  { %3644 = vpow2.f32 %v1694_v62  ;;  %v4842_v22 = vadd.f32 %v2842_v39, %v4701_v21  ;;  %v2844_v62 = vld [vmem:[%s5089_s5 + $0x1b8] sm:$0xff] }
 0x85a   :  { %v1696_v29 = vmul.f32 1.442695, %v1668_v3  ;;  %v4768_v15 = vpop.eup %3636  ;;  %v4860_v21 = vadd.f32 %v4699_v9, %v2844_v62  ;;  %v2845_v3 = vld [vmem:[%s5089_s5 + $0x1c0] sm:$0xff]  ;;  %v2847_v9 = vld [vmem:[%s5089_s5 + $0x1d0] sm:$0xff] }
 0x85b   :  { %1714 = vadd.xlane.f32.xlu1 %v4764_v23  ;;  %1718 = vadd.xlane.f32.xlu0 %v4762_v57  ;;  %v1797_v11 = vpop.permute.xlu0 %1796 }
 0x85c   :  { %3264 = vmatprep.subr.bf16.mxu1 %v1797_v11  ;;  %3646 = vpow2.f32 %v1696_v29 }
 0x85d   :  { %3265 = vmatpush3.bf16.msra.mxu1 %v1797_v11 }
 0x85f   :  { %1724 = vadd.xlane.f32.xlu0 %v4768_v15  ;;  %v1799_v12 = vpop.permute.xlu0 %1798 }
 0x860   :  { %v4771_v48 = vpop.eup %3638  ;;  %3266 = vmatprep.subr.bf16.mxu1 %v1799_v12 }
 0x861   :  { %1722 = vadd.xlane.f32.xlu1 %v4771_v48  ;;  %3267 = vmatpush3.bf16.msra.mxu1 %v1799_v12  ;;  %v4774_v52 = vpop.eup %3640 }
 0x862   :  { %3268 = vmatprep.subr.bf16.mxu1 %v1801_v50  ;;  %v4777_v24 = vpop.eup %3642 }
 0x863   :  { %1720 = vadd.xlane.f32.xlu0 %v4774_v52  ;;  %v4780_v16 = vpop.eup %3644  ;;  %v1805_v63 = vpop.permute.xlu0 %1804 }
 0x865   :  { %1732 = vadd.xlane.f32.xlu1 %v4777_v24  ;;  %3269 = vmatpush3.bf16.msra.mxu1 %v1801_v50 }
 0x866   :  { %v4783_v6 = vpop.eup %3646 }
 0x867   :  { %1726 = vadd.xlane.f32.xlu0 %v4780_v16 }
 0x869   :  { %1728 = vadd.xlane.f32.xlu1 %v4783_v6 }
 0x87a   :  { %1806 = vrot.lane.b32.xlu1 %v3912_v1, %s3781_s27 }
 0x886   :  { %v1655_v19 = vpop.xlane.xlu1 %1654 }
 0x887   :  { %v1671_v7 = vsub.f32 %v4703_v5, %v1655_v19  ;;  %v4797_v5 = vadd.f32 %v2841_v10, %v4697_v60  ;;  %v4813_v60 = vadd.f32 %v4720_v13, %v2851_v28  ;;  %v2840_v13 = vld [vmem:[%s5089_s5 + $0x198] sm:$0xff] }
 0x888   :  { %v4835_v27 = vadd.f32 %v4688_v30, %v2840_v13  ;;  %v4851_v30 = vadd.f32 %v4692_v43, %v2843_v41  ;;  %v2846_v43 = vld [vmem:[%s5089_s5 + $0x1c8] sm:$0xff] }
 0x889   :  { %v1702_v58 = vmul.f32 1.442695, %v1671_v7 }
 0x88a   :  { %v1651_v53 = vpop.xlane.xlu1 %1650 }
 0x88b   :  { %v1669_v8 = vsub.f32 %v4709_v4, %v1651_v53 }
 0x88d   :  { %v1698_v32 = vmul.f32 1.442695, %v1669_v8 }
 0x88e   :  { %v1803_v61 = vpop.permute.xlu1 %1802 }
 0x88f   :  { %3648 = vpow2.f32 %v1698_v32  ;;  %3270 = vmatprep.subr.bf16.mxu1 %v1803_v61 }
 0x890   :  { %3271 = vmatpush3.bf16.msra.mxu1 %v1803_v61  ;;  %3650 = vpow2.f32 %v1702_v58 }
 0x891   :  { %3272 = vmatprep.subr.bf16.mxu1 %v1805_v63 }
 0x894   :  { %3273 = vmatpush3.bf16.msra.mxu1 %v1805_v63 }
 0x899   :  { %v4790_v47 = vpop.eup %3648 }
 0x89a   :  { %1730 = vadd.xlane.f32.xlu0 %v4790_v47  ;;  %v4799_v4 = vpop.eup %3650 }
 0x89e   :  { %1734 = vadd.xlane.f32.xlu0 %v4799_v4  ;;  %2263 = vmax.xlane.f32.xlu1 %v4797_v5 }
 0x8a2   :  { %2255 = vmax.xlane.f32.xlu0 %v4810_v18  ;;  %2283 = vmax.xlane.f32.xlu1 %v4813_v60 }
 0x8a6   :  { %2257 = vmax.xlane.f32.xlu0 %v4821_v40 }
 0x8aa   :  { %2259 = vmax.xlane.f32.xlu0 %v4828_v42 }
 0x8ae   :  { %2261 = vmax.xlane.f32.xlu0 %v4835_v27 }
 0x8b2   :  { %2265 = vmax.xlane.f32.xlu0 %v4842_v22 }
 0x8b3   :  { %2423 = vrot.lane.b32.xlu1 %v3888_v36, %s3782_s26  ;;  %v4869_v36 = vadd.f32 %v2845_v3, %v4713_v49  ;;  %v2848_v49 = vld [vmem:[%s5089_s5 + $0x1d8] sm:$0xff] }
 0x8b6   :  { %2267 = vmax.xlane.f32.xlu0 %v4851_v30 }
 0x8b7   :  { %2427 = vrot.lane.b32.xlu1 %v3898_v46, %s3782_s26  ;;  %v4878_v46 = vadd.f32 %v2846_v43, %v4718_v44  ;;  %v2849_v44 = vld [vmem:[%s5089_s5 + $0x1e0] sm:$0xff]  ;;  %v204_v43 = vld [vmem:[%s5087_s3 + $0x8] sm:$0xf] }
 0x8b8   :  { %v4899_v29 = vadd.f32 %v2849_v44, %v4722_v20 }
 0x8ba   :  { %2269 = vmax.xlane.f32.xlu0 %v4860_v21 }
 0x8bb   :  { %2429 = vrot.lane.b32.xlu1 %v3896_v45, %s3782_s26  ;;  %v4885_v45 = vadd.f32 %v4711_v33, %v2847_v9  ;;  %v2850_v33 = vld [vmem:[%s5089_s5 + $0x1e8] sm:$0xff] }
 0x8bc   :  { %v4906_v11 = vadd.f32 %v2850_v33, %v4726_v34 }
 0x8be   :  { %2271 = vmax.xlane.f32.xlu0 %v4869_v36 }
 0x8bf   :  { %2435 = vrot.lane.b32.xlu1 %v3914_v2, %s3782_s26  ;;  %v4892_v2 = vadd.f32 %v4715_v59, %v2848_v49  ;;  %v2852_v59 = vld [vmem:[%s5089_s5 + $0x1f8] sm:$0xff] }
 0x8c0   :  { %v4913_v12 = vadd.f32 %v4724_v51, %v2852_v59 }
 0x8c2   :  { %2273 = vmax.xlane.f32.xlu0 %v4878_v46 }
 0x8c6   :  { %2275 = vmax.xlane.f32.xlu0 %v4885_v45 }
 0x8ca   :  { %2277 = vmax.xlane.f32.xlu0 %v4892_v2 }
 0x8ce   :  { %2279 = vmax.xlane.f32.xlu0 %v4899_v29 }
 0x8d2   :  { %2281 = vmax.xlane.f32.xlu0 %v4906_v11 }
 0x8d6   :  { %2285 = vmax.xlane.f32.xlu0 %v4913_v12 }
 0x8d8   :  { %v1709_v20 = vpop.xlane.xlu1 %1708 }
 0x8dc   :  { %v1705_v50 = vpop.xlane.xlu1 %1704 }
 0x8dd   :  { %3652 = vrcp.f32 %v1705_v50 }
 0x8e0   :  { %v1711_v19 = vpop.xlane.xlu1 %1710  ;;  %v1717_v53 = vpop.xlane.xlu0 %1716 }
 0x8e4   :  { %v1707_v7 = vpop.xlane.xlu1 %1706  ;;  %v1713_v8 = vpop.xlane.xlu0 %1712 }
 0x8e5   :  { %3654 = vrcp.f32 %v1707_v7 }
 0x8e6   :  { %3656 = vrcp.f32 %v1711_v19 }
 0x8e7   :  { %v3653_v58 = vpop.eup %3652 }
 0x8e8   :  { %v1719_v34 = vpop.xlane.xlu0 %1718  ;;  %v1715_v32 = vpop.xlane.xlu1 %1714  ;;  %v1768_v10 = vmul.f32 %v3653_v58, %v4742_v0 }
 0x8e9   :  { %3658 = vrcp.f32 %v1715_v32 }
 0x8ea   :  { %3660 = vrcp.f32 %v1709_v20 }
 0x8eb   :  { %3662 = vrcp.f32 %v1713_v8 }
 0x8ec   :  { %2425 = vrot.lane.b32.xlu0 %v3886_v35, %s3782_s26  ;;  %v1725_v61 = vpop.xlane.xlu0 %1724  ;;  %3664 = vrcp.f32 %v1719_v34 }
 0x8ee   :  { %v1723_v51 = vpop.xlane.xlu1 %1722 }
 0x8ef   :  { %v3655_v63 = vpop.eup %3654 }
 0x8f0   :  { %2431 = vrot.lane.b32.xlu0 %v3906_v56, %s3782_s26  ;;  %v1769_v17 = vmul.f32 %v3655_v63, %v4755_v26  ;;  %v1721_v28 = vpop.xlane.xlu0 %1720  ;;  %v3657_v35 = vpop.eup %3656 }
 0x8f1   :  { %3666 = vrcp.f32 %v1721_v28  ;;  %v1771_v0 = vmul.f32 %v3657_v35, %v4746_v25  ;;  %v1946_v25 = vsel %vm1205_vm2, %v204_v43, 0 }
 0x8f2   :  { %v1733_v54 = vpop.xlane.xlu1 %1732  ;;  %v1784_v38 = vpack.c.bf16 %v1769_v17, %v1768_v10  ;;  %3668 = vrcp.f32 %v1717_v53 }
 0x8f3   :  { %v3659_v39 = vpop.eup %3658  ;;  %3670 = vrcp.f32 %v1723_v51 }
 0x8f4   :  { %3276 = vmatprep.mubr.bf16.mxu1 %v1784_v38  ;;  %2433 = vrot.lane.b32.xlu0 %v3904_v55, %s3782_s26  ;;  %v3661_v41 = vpop.eup %3660  ;;  %v1727_v62 = vpop.xlane.xlu0 %1726  ;;  %v1773_v3 = vmul.f32 %v3659_v39, %v4764_v23 }
 0x8f5   :  { %v3663_v56 = vpop.eup %3662  ;;  %v1770_v55 = vmul.f32 %v3661_v41, %v4737_v37  ;;  %3672 = vrcp.f32 %v1727_v62 }
 0x8f6   :  { %v1729_v13 = vpop.xlane.xlu1 %1728  ;;  %v1772_v9 = vmul.f32 %v3663_v56, %v4757_v31  ;;  %v3665_v44 = vpop.eup %3664  ;;  %3674 = vrcp.f32 %v1725_v61 }
 0x8f7   :  { %v1785_v49 = vpack.c.bf16 %v1771_v0, %v1770_v55  ;;  %v1775_v37 = vmul.f32 %v3665_v44, %v4762_v57  ;;  %3676 = vrcp.f32 %v1729_v13 }
 0x8f8   :  { %v1786_v33 = vpack.c.bf16 %v1773_v3, %v1772_v9 }
 0x8fa   :  { %v1807_v26 = vpop.permute.xlu1 %1806 }
 0x8fb   :  { %3274 = vmatprep.subr.bf16.mxu1 %v1807_v26  ;;  %v3667_v23 = vpop.eup %3666 }
 0x8fc   :  { %3275 = vmatpush3.bf16.msra.mxu1 %v1807_v26  ;;  %v3669_v59 = vpop.eup %3668  ;;  %v1776_v50 = vmul.f32 %v3667_v23, %v4774_v52 }
 0x8fd   :  { %3466 = vmatprep.subr.msk.bf16.mxu1 %vm1205_vm2, %v204_v43  ;;  %v3671_v20 = vpop.eup %3670  ;;  %v1774_v31 = vmul.f32 %v3669_v59, %v4748_v14 }
 0x8fe   :  { %v1777_v19 = vmul.f32 %v3671_v20, %v4771_v48 }
 0x8ff   :  { %3277 = vmatmul.mubr.bf16.vlgmr.msra.gmra.mrb[32].mxu1 %v1785_v49  ;;  %v1787_v53 = vpack.c.bf16 %v1775_v37, %v1774_v31  ;;  %v3673_v7 = vpop.eup %3672 }
 0x900   :  { %3280 = vmatprep.mubr.bf16.mxu1 %v1786_v33  ;;  %3293 = vmatpush3.bf16.msra.mxu1 %v1946_v25  ;;  %v1788_v8 = vpack.c.bf16 %v1777_v19, %v1776_v50  ;;  %v3675_v34 = vpop.eup %3674  ;;  %v1779_v32 = vmul.f32 %v3673_v7, %v4780_v16 }
 0x901   :  { %v1778_v61 = vmul.f32 %v3675_v34, %v4768_v15  ;;  %v3677_v63 = vpop.eup %3676 }
 0x902   :  { %v1780_v16 = vmul.f32 %v3677_v63, %v4783_v6 }
 0x903   :  { %v1789_v58 = vpack.c.bf16 %v1779_v32, %v1778_v61 }
 0x907   :  { %3281 = vmatmul.mubr.bf16.gmra.mrb[36].mxu1 %v1787_v53 }
 0x908   :  { %3284 = vmatprep.mubr.bf16.mxu1 %v1788_v8 }
 0x90f   :  { %3285 = vmatmul.mubr.bf16.gmra.mrb[40].mxu1 %v1789_v58 }
 0x927   :  { %v1731_v57 = vpop.xlane.xlu0 %1730 }
 0x928   :  { %3678 = vrcp.f32 %v1731_v57 }
 0x929   :  { %3680 = vrcp.f32 %v1733_v54 }
 0x92b   :  { %v2264_v52 = vpop.xlane.xlu1 %2263  ;;  %v1735_v14 = vpop.xlane.xlu0 %1734 }
 0x92c   :  { %3682 = vrcp.f32 %v1735_v14 }
 0x92f   :  { %v2284_v48 = vpop.xlane.xlu1 %2283  ;;  %v2256_v51 = vpop.xlane.xlu0 %2255 }
 0x930   :  { %v2287_v56 = vsub.f32 %v4810_v18, %v2256_v51  ;;  %v2301_v20 = vsub.f32 %v4813_v60, %v2284_v48 }
 0x932   :  { %v3679_v10 = vpop.eup %3678  ;;  %v2331_v53 = vmul.f32 1.442695, %v2301_v20 }
 0x933   :  { %v4939_v17 = vpop.permute.xlu1 %2423  ;;  %v2258_v28 = vpop.xlane.xlu0 %2257  ;;  %v1781_v15 = vmul.f32 %v3679_v10, %v4790_v47  ;;  %v2303_v47 = vmul.f32 1.442695, %v2287_v56 }
 0x934   :  { %v3681_v38 = vpop.eup %3680  ;;  %3342 = vmatprep.subr.bf16.mxu1 %v4939_v17  ;;  %v2288_v43 = vsub.f32 %v4821_v40, %v2258_v28 }
 0x935   :  { %v1790_v35 = vpack.c.bf16 %v1781_v15, %v1780_v16  ;;  %v1782_v39 = vmul.f32 %v3681_v38, %v4777_v24  ;;  %v2291_v24 = vsub.f32 %v4797_v5, %v2264_v52 }
 0x936   :  { %v3683_v13 = vpop.eup %3682 }
 0x937   :  { %3288 = vmatprep.mubr.bf16.mxu1 %v1790_v35  ;;  %v2260_v54 = vpop.xlane.xlu0 %2259  ;;  %v1783_v41 = vmul.f32 %v3683_v13, %v4799_v4  ;;  %v2305_v4 = vmul.f32 1.442695, %v2288_v43  ;;  %v2311_v33 = vmul.f32 1.442695, %v2291_v24 }
 0x938   :  { %v2289_v0 = vsub.f32 %v4828_v42, %v2260_v54 }
 0x939   :  { %v1791_v62 = vpack.c.bf16 %v1783_v41, %v1782_v39 }
 0x93a   :  { %v2307_v26 = vmul.f32 1.442695, %v2289_v0 }
 0x93b   :  { %3289 = vmatmul.mubr.bf16.gmra.mrb[44].mxu1 %v1791_v62  ;;  %v2262_v6 = vpop.xlane.xlu0 %2261 }
 0x93c   :  { %3684 = vpow2.f32 %v2307_v26  ;;  %v2290_v3 = vsub.f32 %v4835_v27, %v2262_v6 }
 0x93d   :  { %3686 = vpow2.f32 %v2303_v47 }
 0x93e   :  { %v2309_v9 = vmul.f32 1.442695, %v2290_v3 }
 0x93f   :  { %v2266_v55 = vpop.xlane.xlu0 %2265 }
 0x940   :  { %3688 = vpow2.f32 %v2309_v9  ;;  %v2292_v18 = vsub.f32 %v4842_v22, %v2266_v55  ;;  %v2428_v9 = vpop.permute.xlu1 %2427 }
 0x941   :  { %3690 = vpow2.f32 %v2305_v4 }
 0x942   :  { %v2313_v27 = vmul.f32 1.442695, %v2292_v18 }
 0x943   :  { %v2268_v49 = vpop.xlane.xlu0 %2267 }
 0x944   :  { %v2293_v42 = vsub.f32 %v4851_v30, %v2268_v49 }
 0x946   :  { %v4953_v25 = vpop.eup %3684  ;;  %v2315_v44 = vmul.f32 1.442695, %v2293_v42 }
 0x947   :  { %2339 = vadd.xlane.f32.xlu0 %v4953_v25  ;;  %v2270_v40 = vpop.xlane.xlu0 %2269  ;;  %v4957_v5 = vpop.eup %3686 }
 0x948   :  { %3692 = vpow2.f32 %v2315_v44  ;;  %v2294_v23 = vsub.f32 %v4860_v21, %v2270_v40  ;;  %v2430_v44 = vpop.permute.xlu1 %2429 }
 0x949   :  { %3694 = vpow2.f32 %v2311_v33 }
 0x94a   :  { %3696 = vpow2.f32 %v2313_v27  ;;  %v2317_v30 = vmul.f32 1.442695, %v2294_v23  ;;  %v4960_v59 = vpop.eup %3688 }
 0x94b   :  { %2335 = vadd.xlane.f32.xlu0 %v4957_v5  ;;  %v2272_v22 = vpop.xlane.xlu0 %2271  ;;  %v4965_v31 = vpop.eup %3690 }
 0x94c   :  { %3698 = vpow2.f32 %v2317_v30  ;;  %v2295_v8 = vsub.f32 %v4869_v36, %v2272_v22 }
 0x94e   :  { %v2319_v58 = vmul.f32 1.442695, %v2295_v8 }
 0x94f   :  { %2341 = vadd.xlane.f32.xlu0 %v4960_v59  ;;  %v2274_v37 = vpop.xlane.xlu0 %2273 }
 0x950   :  { %v2296_v50 = vsub.f32 %v4878_v46, %v2274_v37  ;;  %v2436_v37 = vpop.permute.xlu1 %2435 }
 0x952   :  { %v4967_v21 = vpop.eup %3692  ;;  %v2321_v19 = vmul.f32 1.442695, %v2296_v50 }
 0x953   :  { %2337 = vadd.xlane.f32.xlu0 %v4965_v31  ;;  %2347 = vadd.xlane.f32.xlu1 %v4967_v21  ;;  %v2276_v7 = vpop.xlane.xlu0 %2275  ;;  %v4973_v34 = vpop.eup %3694 }
 0x954   :  { %3700 = vpow2.f32 %v2321_v19  ;;  %v2297_v60 = vsub.f32 %v4885_v45, %v2276_v7  ;;  %v4975_v32 = vpop.eup %3696 }
 0x955   :  { %3702 = vpow2.f32 %v2331_v53 }
 0x956   :  { %v2323_v46 = vmul.f32 1.442695, %v2297_v60  ;;  %v4980_v52 = vpop.eup %3698 }
 0x957   :  { %2345 = vadd.xlane.f32.xlu0 %v4975_v32  ;;  %2343 = vadd.xlane.f32.xlu1 %v4973_v34  ;;  %v2278_v61 = vpop.xlane.xlu0 %2277 }
 0x958   :  { %3704 = vpow2.f32 %v2323_v46  ;;  %v2298_v57 = vsub.f32 %v4892_v2, %v2278_v61  ;;  %v205_v61 = vld [vmem:[%s5087_s3 + $0xc] sm:$0xf] }
 0x959   :  { %3706 = vpow2.f32 %v2319_v58 }
 0x95a   :  { %v2325_v45 = vmul.f32 1.442695, %v2298_v57 }
 0x95b   :  { %2349 = vadd.xlane.f32.xlu1 %v4980_v52  ;;  %v2280_v36 = vpop.xlane.xlu0 %2279 }
 0x95c   :  { %v2299_v14 = vsub.f32 %v4899_v29, %v2280_v36  ;;  %3708 = vpow2.f32 %v2325_v45 }
 0x95e   :  { %v4984_v48 = vpop.eup %3700  ;;  %v2327_v51 = vmul.f32 1.442695, %v2299_v14 }
 0x95f   :  { %2353 = vadd.xlane.f32.xlu0 %v4984_v48  ;;  %v2282_v63 = vpop.xlane.xlu0 %2281  ;;  %v4988_v28 = vpop.eup %3702 }
 0x960   :  { %v2300_v10 = vsub.f32 %v4906_v11, %v2282_v63  ;;  %3710 = vpow2.f32 %v2327_v51 }
 0x962   :  { %v4990_v2 = vpop.eup %3704  ;;  %v2329_v16 = vmul.f32 1.442695, %v2300_v10 }
 0x963   :  { %2363 = vadd.xlane.f32.xlu0 %v4988_v28  ;;  %2355 = vadd.xlane.f32.xlu1 %v4990_v2  ;;  %v2286_v29 = vpop.xlane.xlu0 %2285  ;;  %v4995_v38 = vpop.eup %3706 }
 0x964   :  { %3712 = vpow2.f32 %v2329_v16  ;;  %v2302_v15 = vsub.f32 %v4913_v12, %v2286_v29 }
 0x966   :  { %v2333_v35 = vmul.f32 1.442695, %v2302_v15  ;;  %v4998_v11 = vpop.eup %3708 }
 0x967   :  { %2351 = vadd.xlane.f32.xlu1 %v4995_v38  ;;  %v2426_v12 = vpop.permute.xlu0 %2425 }
 0x968   :  { %3714 = vpow2.f32 %v2333_v35 }
 0x96a   :  { %v5001_v13 = vpop.eup %3710 }
 0x96b   :  { %2357 = vadd.xlane.f32.xlu1 %v4998_v11  ;;  %v2432_v41 = vpop.permute.xlu0 %2431 }
 0x96e   :  { %v5003_v54 = vpop.eup %3712 }
 0x96f   :  { %2359 = vadd.xlane.f32.xlu1 %v5001_v13  ;;  %2361 = vadd.xlane.f32.xlu0 %v5003_v54  ;;  %v2434_v56 = vpop.permute.xlu0 %2433 }
 0x972   :  { %v5007_v39 = vpop.eup %3714 }
 0x973   :  { %2365 = vadd.xlane.f32.xlu1 %v5007_v39 }
 0x985   :  { %2437 = vrot.lane.b32.xlu0 %v3912_v1, %s3782_s26 }
 0x9d2   :  { %v3278_v0 = vpop.f32.mrb[32].mxu1 }
 0x9d3   :  { %v1850_v62 = vpop.f32.mrb[33].mxu1 }
 0x9d4   :  { %v3279_v26 = vpop.f32.mrb[34].mxu1  ;;  %v2340_v3 = vpop.xlane.xlu0 %2339 }
 0x9d5   :  { %v1914_v6 = vpack.c.bf16 %v3279_v26, %v3278_v0  ;;  %v1853_v47 = vpop.f32.mrb[35].mxu1 }
 0x9d6   :  { %v1913_v43 = vpack.c.bf16 %v1853_v47, %v1850_v62 }
 0x9d8   :  { %3294 = vmatprep.mubr.msk.bf16.mxu1 %vm247_vm1, %v1913_v43  ;;  %v2336_v24 = vpop.xlane.xlu0 %2335 }
 0x9d9   :  { %3295 = vmatmul.mubr.msk.bf16.vlgmr.msra.gmra.mrb[16].mxu1 %vm247_vm1, %v1914_v6 }
 0x9da   :  { %3343 = vmatpush3.bf16.msra.mxu1 %v4939_v17  ;;  %v3282_v55 = vpop.f32.mrb[36].mxu1 }
 0x9db   :  { %3344 = vmatprep.subr.bf16.mxu1 %v2426_v12  ;;  %v1866_v1 = vpop.f32.mrb[37].mxu1 }
 0x9dc   :  { %v3283_v4 = vpop.f32.mrb[38].mxu1  ;;  %v2342_v33 = vpop.xlane.xlu0 %2341 }
 0x9dd   :  { %v1916_v49 = vpack.c.bf16 %v3283_v4, %v3282_v55  ;;  %v1869_v18 = vpop.f32.mrb[39].mxu1 }
 0x9de   :  { %v1915_v42 = vpack.c.bf16 %v1869_v18, %v1866_v1  ;;  %3345 = vmatpush3.bf16.msra.mxu1 %v2426_v12 }
 0x9df   :  { %3346 = vmatprep.subr.bf16.mxu1 %v2428_v9 }
 0x9e0   :  { %3298 = vmatprep.mubr.msk.bf16.mxu1 %vm247_vm1, %v1915_v42  ;;  %v2338_v20 = vpop.xlane.xlu0 %2337  ;;  %v2348_v53 = vpop.xlane.xlu1 %2347 }
 0x9e1   :  { %3299 = vmatmul.mubr.msk.bf16.gmra.mrb[20].mxu1 %vm247_vm1, %v1916_v49  ;;  %3716 = vrcp.f32 %v2338_v20 }
 0x9e2   :  { %3347 = vmatpush3.bf16.msra.mxu1 %v2428_v9  ;;  %v3286_v40 = vpop.f32.mrb[40].mxu1  ;;  %3718 = vrcp.f32 %v2336_v24  ;;  %v2577_v9 = vsel %vm1205_vm2, %v205_v61, 0 }
 0x9e3   :  { %3348 = vmatprep.subr.bf16.mxu1 %v2430_v44  ;;  %v1882_v17 = vpop.f32.mrb[41].mxu1  ;;  %3720 = vrcp.f32 %v2342_v33 }
 0x9e4   :  { %v3287_v27 = vpop.f32.mrb[42].mxu1  ;;  %v2346_v50 = vpop.xlane.xlu0 %2345 }
 0x9e5   :  { %v1918_v23 = vpack.c.bf16 %v3287_v27, %v3286_v40  ;;  %v1885_v22 = vpop.f32.mrb[43].mxu1  ;;  %v2344_v8 = vpop.xlane.xlu1 %2343 }
 0x9e6   :  { %v1917_v30 = vpack.c.bf16 %v1885_v22, %v1882_v17  ;;  %3349 = vmatpush3.bf16.msra.mxu1 %v2430_v44  ;;  %3722 = vrcp.f32 %v2344_v8 }
 0x9e7   :  { %3350 = vmatprep.subr.bf16.mxu1 %v2432_v41  ;;  %3724 = vrcp.f32 %v2346_v50 }
 0x9e8   :  { %3302 = vmatprep.mubr.msk.bf16.mxu1 %vm247_vm1, %v1917_v30  ;;  %3726 = vrcp.f32 %v2340_v3 }
 0x9e9   :  { %3303 = vmatmul.mubr.msk.bf16.gmra.mrb[24].mxu1 %vm247_vm1, %v1918_v23  ;;  %v2350_v58 = vpop.xlane.xlu1 %2349 }
 0x9ea   :  { %3351 = vmatpush3.bf16.msra.mxu1 %v2432_v41  ;;  %3728 = vrcp.f32 %v2350_v58 }
 0x9eb   :  { %3352 = vmatprep.subr.bf16.mxu1 %v2434_v56  ;;  %v3717_v45 = vpop.eup %3716 }
 0x9ec   :  { %v2354_v19 = vpop.xlane.xlu0 %2353  ;;  %v3719_v51 = vpop.eup %3718  ;;  %v2400_v16 = vmul.f32 %v3717_v45, %v4965_v31 }
 0x9ed   :  { %v2399_v41 = vmul.f32 %v3719_v51, %v4957_v5 }
 0x9ee   :  { %3353 = vmatpush3.bf16.msra.mxu1 %v2434_v56  ;;  %v3721_v56 = vpop.eup %3720 }
 0x9ef   :  { %3354 = vmatprep.subr.bf16.mxu1 %v2436_v37  ;;  %v2415_v62 = vpack.c.bf16 %v2400_v16, %v2399_v41  ;;  %v2402_v31 = vmul.f32 %v3721_v56, %v4960_v59  ;;  %v2869_v41 = vld [vmem:[%s5088_s4] ss:$0 sm:$0xff]  ;;  %s3783_s4 = smov [#allocation2]  }
 0x9f0   :  { %v5019_v7 = vpop.xlane.xlu0 %2363  ;;  %v2356_v57 = vpop.xlane.xlu1 %2355  ;;  %s2735_s19 = sshll.u32 %s3783_s4, 4  ;;  %s2736_s19 = int_to_ptr.vmem [resolvable:$true] %s2735_s19 }
 0x9f1   :  { %v3723_v0 = vpop.eup %3722  ;;  %s3748_s20 = scalar_lea.vmem %s2736_s19, 2048  ;;  %p3753_p1 = scmp.lt.s32.totalorder %s2736_s19, %s2736_s19 }
 0x9f2   :  { %3355 = vmatpush3.bf16.msra.mxu1 %v2436_v37  ;;  %v3725_v26 = vpop.eup %3724  ;;  %v2403_v3 = vmul.f32 %v3723_v0, %v4973_v34  ;;  %p3749_p0 = scmp.ne.s32.totalorder %s2736_s19, %s3748_s20  ;;  %p3754_p2 = scmp.lt.s32.totalorder %s3748_s20, %s3748_s20 }
 0x9f3   :  { %v3727_v6 = vpop.eup %3726  ;;  %v2404_v5 = vmul.f32 %v3725_v26, %v4975_v32 }
 0x9f4   :  { %v2352_v36 = vpop.xlane.xlu1 %2351  ;;  %v2401_v43 = vmul.f32 %v3727_v6, %v4953_v25  ;;  %v3729_v1 = vpop.eup %3728  ;;  %p3755_p3 = por %p3754_p2, %p3753_p1 }
 0x9f5   :  { %3730 = vrcp.f32 %v2352_v36  ;;  %v2417_v24 = vpack.c.bf16 %v2404_v5, %v2403_v3  ;;  %v2406_v32 = vmul.f32 %v3729_v1, %v4980_v52 }
 0x9f6   :  { %3732 = vrcp.f32 %v2348_v53  ;;  %v2416_v55 = vpack.c.bf16 %v2402_v31, %v2401_v43  ;;  %p3756_p4 = pnand %p3755_p3, %p3749_p0 }
 0x9f7   :  { %3734 = vrcp.f32 %v2354_v19 }
 0x9f8   :  { %v2358_v29 = vpop.xlane.xlu1 %2357 }
 0x9f9   :  { %3736 = vrcp.f32 %v2358_v29 }
 0x9fc   :  { %v2362_v60 = vpop.xlane.xlu0 %2361  ;;  %v2360_v47 = vpop.xlane.xlu1 %2359 }
 0x9fd   :  { %3738 = vrcp.f32 %v2360_v47 }
 0x9fe   :  { %3740 = vrcp.f32 %v2362_v60 }
 0x9ff   :  { %3742 = vrcp.f32 %v2356_v57  ;;  %v3731_v4 = vpop.eup %3730 }
 0xa00   :  { %v2438_v46 = vpop.permute.xlu0 %2437  ;;  %v3733_v49 = vpop.eup %3732  ;;  %v2407_v25 = vmul.f32 %v3731_v4, %v4995_v38 }
 0xa01   :  { %3356 = vmatprep.subr.bf16.mxu1 %v2438_v46  ;;  %v3735_v59 = vpop.eup %3734  ;;  %v2366_v34 = vpop.xlane.xlu1 %2365  ;;  %v2405_v18 = vmul.f32 %v3733_v49, %v4967_v21 }
 0xa02   :  { %3357 = vmatpush3.bf16.msra.mxu1 %v2438_v46  ;;  %3744 = vrcp.f32 %v2366_v34  ;;  %v2408_v42 = vmul.f32 %v3735_v59, %v4984_v48 }
 0xa03   :  { %3475 = vmatprep.subr.msk.bf16.mxu1 %vm1205_vm2, %v205_v61  ;;  %v3737_v44 = vpop.eup %3736  ;;  %v2418_v33 = vpack.c.bf16 %v2406_v32, %v2405_v18  ;;  %3746 = vrcp.f32 %v5019_v7 }
 0xa04   :  { %v2419_v17 = vpack.c.bf16 %v2408_v42, %v2407_v25  ;;  %v2410_v22 = vmul.f32 %v3737_v44, %v4998_v11 }
 0xa07   :  { %v3739_v40 = vpop.eup %3738 }
 0xa08   :  { %v3741_v27 = vpop.eup %3740  ;;  %v2411_v52 = vmul.f32 %v3739_v40, %v5001_v13 }
 0xa09   :  { %v3743_v23 = vpop.eup %3742  ;;  %v2412_v38 = vmul.f32 %v3741_v27, %v5003_v54 }
 0xa0a   :  { %v2409_v21 = vmul.f32 %v3743_v23, %v4990_v2 }
 0xa0b   :  { %v2421_v20 = vpack.c.bf16 %v2412_v38, %v2411_v52 }
 0xa0c   :  { %v2420_v30 = vpack.c.bf16 %v2410_v22, %v2409_v21  ;;  %v3745_v48 = vpop.eup %3744 }
 0xa0d   :  { %v3747_v37 = vpop.eup %3746  ;;  %v2414_v50 = vmul.f32 %v3745_v48, %v5007_v39 }
 0xa0e   :  { %v3290_v14 = vpop.f32.mrb[44].mxu1  ;;  %v2413_v19 = vmul.f32 %v3747_v37, %v4988_v28 }
 0xa0f   :  { %v1898_v63 = vpop.f32.mrb[45].mxu1 }
 0xa10   :  { %v3291_v10 = vpop.f32.mrb[46].mxu1  ;;  %v2422_v53 = vpack.c.bf16 %v2414_v50, %v2413_v19 }
 0xa11   :  { %v1920_v15 = vpack.c.bf16 %v3291_v10, %v3290_v14  ;;  %v1901_v35 = vpop.f32.mrb[47].mxu1 }
 0xa12   :  { %v1919_v12 = vpack.c.bf16 %v1901_v35, %v1898_v63 }
 0xa14   :  { %3306 = vmatprep.mubr.msk.bf16.mxu1 %vm247_vm1, %v1919_v12 }
 0xa15   :  { %3307 = vmatmul.mubr.msk.bf16.gmra.mrb[28].mxu1 %vm247_vm1, %v1920_v15 }
 0xa16   :  { %3358 = vmatprep.mubr.bf16.mxu1 %v2415_v62 }
 0xa1d   :  { %3359 = vmatmul.mubr.bf16.vlgmr.msra.gmra.mrb[48].mxu1 %v2416_v55 }
 0xa1e   :  { %3362 = vmatprep.mubr.bf16.mxu1 %v2417_v24  ;;  %3375 = vmatpush3.bf16.msra.mxu1 %v2577_v9 }
 0xa25   :  { %3363 = vmatmul.mubr.bf16.gmra.mrb[52].mxu1 %v2418_v33 }
 0xa26   :  { %3366 = vmatprep.mubr.bf16.mxu1 %v2419_v17 }
 0xa2d   :  { %3367 = vmatmul.mubr.bf16.gmra.mrb[56].mxu1 %v2420_v30 }
 0xa2e   :  { %3370 = vmatprep.mubr.bf16.mxu1 %v2421_v20 }
 0xa35   :  { %3371 = vmatmul.mubr.bf16.gmra.mrb[60].mxu1 %v2422_v53 }
 0xaf0   :  { %v3360_v7 = vpop.f32.mrb[48].mxu1 }
 0xaf1   :  { %v2481_v11 = vpop.f32.mrb[49].mxu1 }
 0xaf2   :  { %v3361_v8 = vpop.f32.mrb[50].mxu1 }
 0xaf3   :  { %v2545_v13 = vpack.c.bf16 %v3361_v8, %v3360_v7  ;;  %v2484_v60 = vpop.f32.mrb[51].mxu1 }
 0xaf4   :  { %v2544_v54 = vpack.c.bf16 %v2484_v60, %v2481_v11 }
 0xaf6   :  { %3376 = vmatprep.mubr.msk.bf16.mxu1 %vm247_vm1, %v2544_v54 }
 0xaf7   :  { %3377 = vmatmul.mubr.msk.bf16.vlgmr.msra.gmra.mrb[16].mxu1 %vm247_vm1, %v2545_v13 }
 0xaf8   :  { %v3364_v2 = vpop.f32.mrb[52].mxu1 }
 0xaf9   :  { %v2497_v46 = vpop.f32.mrb[53].mxu1 }
 0xafa   :  { %v3365_v61 = vpop.f32.mrb[54].mxu1 }
 0xafb   :  { %v2547_v58 = vpack.c.bf16 %v3365_v61, %v3364_v2  ;;  %v2500_v57 = vpop.f32.mrb[55].mxu1 }
 0xafc   :  { %v2546_v39 = vpack.c.bf16 %v2500_v57, %v2497_v46 }
 0xafe   :  { %3380 = vmatprep.mubr.msk.bf16.mxu1 %vm247_vm1, %v2546_v39 }
 0xaff   :  { %3381 = vmatmul.mubr.msk.bf16.gmra.mrb[20].mxu1 %vm247_vm1, %v2547_v58 }
 0xb00   :  { %v3368_v28 = vpop.f32.mrb[56].mxu1 }
 0xb01   :  { %v2513_v36 = vpop.f32.mrb[57].mxu1 }
 0xb02   :  { %v3369_v45 = vpop.f32.mrb[58].mxu1 }
 0xb03   :  { %v2549_v14 = vpack.c.bf16 %v3369_v45, %v3368_v28  ;;  %v2516_v51 = vpop.f32.mrb[59].mxu1 }
 0xb04   :  { %v2548_v63 = vpack.c.bf16 %v2516_v51, %v2513_v36 }
 0xb06   :  { %3384 = vmatprep.mubr.msk.bf16.mxu1 %vm247_vm1, %v2548_v63 }
 0xb07   :  { %3385 = vmatmul.mubr.msk.bf16.gmra.mrb[24].mxu1 %vm247_vm1, %v2549_v14 }
 0xb08   :  { %v3372_v10 = vpop.f32.mrb[60].mxu1 }
 0xb09   :  { %v2529_v16 = vpop.f32.mrb[61].mxu1 }
 0xb0a   :  { %v3373_v29 = vpop.f32.mrb[62].mxu1 }
 0xb0b   :  { %v2551_v15 = vpack.c.bf16 %v3373_v29, %v3372_v10  ;;  %v2532_v35 = vpop.f32.mrb[63].mxu1 }
 0xb0c   :  { %v2550_v12 = vpack.c.bf16 %v2532_v35, %v2529_v16 }
 0xb0e   :  { %3388 = vmatprep.mubr.msk.bf16.mxu1 %vm247_vm1, %v2550_v12 }
 0xb0f   :  { %3389 = vmatmul.mubr.msk.bf16.gmra.mrb[28].mxu1 %vm247_vm1, %v2551_v15 }
 0xbca   :  { %v3378_v56 = vpop.f32.mrb[16].mxu1 }
 0xbcb   :  { %v2700_v0 = vadd.f32 %v3378_v56, %v2869_v41  ;;  %v2613_v62 = vpop.f32.mrb[17].mxu1 }
 0xbcc   :  { %v2698_v26 = vadd.f32 %v2869_v41, %v2613_v62  ;;  %v3379_v6 = vpop.f32.mrb[18].mxu1 }
 0xbcd   :  { %2716 = vst.msk [vmem:[#allocation2 + $0x10] sm:$0xff] %vm72_vm0, %v2700_v0  ;;  %v2701_v31 = vadd.f32 %v3379_v6, %v2869_v41  ;;  %v2616_v47 = vpop.f32.mrb[19].mxu1 }
 0xbce   :  { %2714 = vst.msk [vmem:[#allocation2] sm:$0xff] %vm72_vm0, %v2698_v26  ;;  %v2699_v3 = vadd.f32 %v2869_v41, %v2616_v47 }
 0xbcf   :  { %2717 = vst.msk [vmem:[#allocation2 + $0x18] sm:$0xff] %vm72_vm0, %v2701_v31 }
 0xbd0   :  { %2715 = vst.msk [vmem:[#allocation2 + $0x8] sm:$0xff] %vm72_vm0, %v2699_v3 }
 0xbd2   :  { %v3382_v5 = vpop.f32.mrb[20].mxu1 }
 0xbd3   :  { %v2704_v43 = vadd.f32 %v3382_v5, %v2869_v41  ;;  %v2629_v55 = vpop.f32.mrb[21].mxu1 }
 0xbd4   :  { %v2702_v9 = vadd.f32 %v2869_v41, %v2629_v55  ;;  %v3383_v1 = vpop.f32.mrb[22].mxu1 }
 0xbd5   :  { %2720 = vst.msk [vmem:[#allocation2 + $0x30] sm:$0xff] %vm72_vm0, %v2704_v43  ;;  %v2705_v24 = vadd.f32 %v3383_v1, %v2869_v41  ;;  %v2632_v4 = vpop.f32.mrb[23].mxu1 }
 0xbd6   :  { %2718 = vst.msk [vmem:[#allocation2 + $0x20] sm:$0xff] %vm72_vm0, %v2702_v9  ;;  %v2703_v49 = vadd.f32 %v2869_v41, %v2632_v4 }
 0xbd7   :  { %2721 = vst.msk [vmem:[#allocation2 + $0x38] sm:$0xff] %vm72_vm0, %v2705_v24 }
 0xbd8   :  { %2719 = vst.msk [vmem:[#allocation2 + $0x28] sm:$0xff] %vm72_vm0, %v2703_v49 }
 0xbda   :  { %v3386_v59 = vpop.f32.mrb[24].mxu1 }
 0xbdb   :  { %v2708_v34 = vadd.f32 %v3386_v59, %v2869_v41  ;;  %v2645_v32 = vpop.f32.mrb[25].mxu1 }
 0xbdc   :  { %v2706_v25 = vadd.f32 %v2869_v41, %v2645_v32  ;;  %v3387_v18 = vpop.f32.mrb[26].mxu1 }
 0xbdd   :  { %2724 = vst.msk [vmem:[#allocation2 + $0x50] sm:$0xff] %vm72_vm0, %v2708_v34  ;;  %v2709_v42 = vadd.f32 %v3387_v18, %v2869_v41  ;;  %v2648_v44 = vpop.f32.mrb[27].mxu1 }
 0xbde   :  { %2722 = vst.msk [vmem:[#allocation2 + $0x40] sm:$0xff] %vm72_vm0, %v2706_v25  ;;  %v2707_v33 = vadd.f32 %v2869_v41, %v2648_v44 }
 0xbdf   :  { %2725 = vst.msk [vmem:[#allocation2 + $0x58] sm:$0xff] %vm72_vm0, %v2709_v42 }
 0xbe0   :  { %2723 = vst.msk [vmem:[#allocation2 + $0x48] sm:$0xff] %vm72_vm0, %v2707_v33 }
 0xbe2   :  { %v3390_v40 = vpop.f32.mrb[28].mxu1 }
 0xbe3   :  { %v2712_v17 = vadd.f32 %v3390_v40, %v2869_v41  ;;  %v2661_v27 = vpop.f32.mrb[29].mxu1 }
 0xbe4   :  { %v2710_v23 = vadd.f32 %v2869_v41, %v2661_v27  ;;  %v3391_v22 = vpop.f32.mrb[30].mxu1 }
 0xbe5   :  { %2728 = vst.msk [vmem:[#allocation2 + $0x70] sm:$0xff] %vm72_vm0, %v2712_v17  ;;  %v2713_v52 = vadd.f32 %v3391_v22, %v2869_v41  ;;  %v2664_v38 = vpop.f32.mrb[31].mxu1 }
 0xbe6   :  { %2726 = vst.msk [vmem:[#allocation2 + $0x60] sm:$0xff] %vm72_vm0, %v2710_v23  ;;  %v2711_v21 = vadd.f32 %v2869_v41, %v2664_v38 }
 0xbe7   :  { %2729 = vst.msk [vmem:[#allocation2 + $0x78] sm:$0xff] %vm72_vm0, %v2713_v52 }
 0xbe8   :  { %2727 = vst.msk [vmem:[#allocation2 + $0x68] sm:$0xff] %vm72_vm0, %v2711_v21 }
 0xbe9   :  { %3759 = shalt.err (!%p3756_p4)
}
 0xbea   :  { %s3760_s24 = scalar_lea.hbm %s5090_s6, 2048 }
 0xbeb   :  { %p3761_p5 = scmp.ne.s32.totalorder %s5090_s6, %s3760_s24  ;;  %p3764_p6 = scmp.lt.u32.totalorder %s3760_s24, %s5090_s6 }
 0xbed   :  { %p3766_p7 = pnand %p3764_p6, %p3761_p5 }
 0xbef   :  { %3769 = shalt.err (!%p3766_p7)
}
 0xbf0   :  { %s3784_s29 = smov 128   ;;  %s3785_s30 = smov 8  }
 0xbf1   :  { %2741 = dma.vmem_to_hbm [thread:$0]  %s2736_s19, 2048, %s5090_s6, [#allocation3], %s3784_s29, %s3784_s29, %s3785_s30  }
 0xbf2   :  { %3770 = dma.done.wait [#allocation3], 2048  }
 0xbf3   :  { %3771 = vsyncadd [#allocation3], 4294965248 }
 0xbf4   :  { %2745 = vsyncpa [#allocation3], 1 }

</bundles_post_ra>
